<compile_context>
chip_gen: v5e
topology: v5e:2x2
jax: 0.10.0
libtpu: 0.0.40
codegen_flags: <defaults>
</compile_context>

<pallas_src>
import jax
import jax.numpy as jnp
import numpy as np
from jax import lax
from jax.experimental import pallas as pl
from jax.experimental.pallas import tpu as pltpu


def resblock_kernel(x_ref, w1_ref, b1_ref, w2_ref, b2_ref, o_ref, col_ref):
    # x_ref  : (1, H, W, C)  f32 input block (one batch element)
    # w*_ref : (9*C, C)      bf16 flattened HWIO weights, row order (kh, kw, ci)
    # b*_ref : (1, C)        f32
    # o_ref  : (1, H, W, C)  f32
    # col_ref: (H, W, 9*C)   bf16 im2col staging scratch
    H, W, C = o_ref.shape[1], o_ref.shape[2], o_ref.shape[3]
    cdt = col_ref.dtype

    # H-halo rows: taps with kh=0 (lanes [0:3C]) never write dest row 0 and
    # taps with kh=2 (lanes [6C:9C]) never write dest row H-1.  Zero exactly
    # those two (1, W, 3C) slabs every grid step; the W-halo columns are
    # zeroed via the edge masks below, so all of col_ref is freshly written
    # each step (no reliance on scratch persistence across grid iterations).
    col_ref[0:1, :, 0:3 * C] = jnp.zeros((1, W, 3 * C), cdt)
    col_ref[H - 1:H, :, 6 * C:9 * C] = jnp.zeros((1, W, 3 * C), cdt)

    def shifted_taps(act):
        # act: (H, W, C) f32, already relu'd.  Build the three W-shifted
        # variants with XLU sublane rolls + a VPU edge-mask select so all
        # col_ref stores are full-width unmasked slabs, then cast to bf16.
        w_idx = lax.broadcasted_iota(jnp.int32, (H, W, C), 1)
        # reads act[:, w-1, :]; column 0 is halo -> 0
        left = jnp.where(w_idx == 0, 0.0, pltpu.roll(act, shift=1, axis=1))
        # reads act[:, w+1, :]; column W-1 is halo -> 0  (shift W-1 == -1)
        right = jnp.where(w_idx == W - 1, 0.0,
                          pltpu.roll(act, shift=W - 1, axis=1))
        return (left.astype(cdt), act.astype(cdt), right.astype(cdt))

    def conv3x3(act, w_ref, b_ref):
        shifts = shifted_taps(act)
        # Scatter the 9 taps: only the leading (H) axis is sliced (whole
        # (W, C) tiles per row), lane slices are 128-aligned -> unmasked vst.
        for dh in range(3):
            sh = dh - 1
            hd, hl = max(0, -sh), H - abs(sh)
            hs = hd + sh
            for dw in range(3):
                t = dh * 3 + dw
                col_ref[hd:hd + hl, :, t * C:(t + 1) * C] = \
                    shifts[dw][hs:hs + hl]
        # One fused im2col matmul: (H*W, 9C) @ (9C, C), bf16 in / f32 acc.
        # W % 16 == 0 keeps this reshape a zero-cost relayout for bf16.
        patches = col_ref[...].reshape(H * W, 9 * C)
        y = jnp.dot(patches, w_ref[...], preferred_element_type=jnp.float32)
        return (y + b_ref[0]).reshape(H, W, C)

    r = conv3x3(jnp.maximum(x_ref[0], 0.0), w1_ref, b1_ref)
    r = conv3x3(jnp.maximum(r, 0.0), w2_ref, b2_ref)
    # downsample is None for the default ResBlock (indim == outdim, stride 1).
    # Residual re-read from the ref (cheap vld, shorter live ranges).
    o_ref[0] = x_ref[0] + r


def resblock_forward(x_nhwc, w1, b1, w2, b2):
    N, H, W, C = x_nhwc.shape
    assert C % 128 == 0, "channel axis must be lane-dense (multiple of 128)"
    assert W % 16 == 0, "W must be a multiple of 16 (bf16 sublane packing)"
    assert H >= 2 and W >= 2
    # Flatten HWIO weights to (9*C, C), rows ordered (kh, kw, ci) to match the
    # tap-major / channel-minor im2col lane layout; stage in bf16.
    w1f = w1.reshape(9 * C, C).astype(jnp.bfloat16)
    w2f = w2.reshape(9 * C, C).astype(jnp.bfloat16)
    return pl.pallas_call(
        resblock_kernel,
        out_shape=jax.ShapeDtypeStruct((N, H, W, C), jnp.float32),
        grid_spec=pltpu.PrefetchScalarGridSpec(
            num_scalar_prefetch=0,
            grid=(N,),
            in_specs=[
                pl.BlockSpec((1, H, W, C), lambda n: (n, 0, 0, 0)),
                pl.BlockSpec((9 * C, C), lambda n: (0, 0)),
                pl.BlockSpec((1, C), lambda n: (0, 0)),
                pl.BlockSpec((9 * C, C), lambda n: (0, 0)),
                pl.BlockSpec((1, C), lambda n: (0, 0)),
            ],
            out_specs=pl.BlockSpec((1, H, W, C), lambda n: (n, 0, 0, 0)),
            scratch_shapes=[pltpu.VMEM((H, W, 9 * C), jnp.bfloat16)],
        ),
        compiler_params=pltpu.CompilerParams(
            dimension_semantics=("parallel",),
            vmem_limit_bytes=32 * 1024 * 1024,
        ),
    )(x_nhwc, w1f, b1.reshape(1, C), w2f, b2.reshape(1, C))


# ---- pure-JAX reference for the correctness check ----
def _conv3x3_ref(x, w, b):
    y = lax.conv_general_dilated(
        x, w, window_strides=(1, 1), padding="SAME",
        dimension_numbers=("NHWC", "HWIO", "NHWC"),
        precision=lax.Precision.HIGHEST)
    return y + b


def resblock_ref(x, w1, b1, w2, b2):
    r = _conv3x3_ref(jax.nn.relu(x), w1, b1)
    r = _conv3x3_ref(jax.nn.relu(r), w2, b2)
    return x + r


if __name__ == "__main__":
    key = jax.random.PRNGKey(0)
    # Default ResBlock config: indim == outdim, stride == 1 -> downsample=None.
    # C multiple of 128 (lane-dense), W multiple of 16 (bf16 sublane packing),
    # H*W = 256 so each im2col matmul has M = 256.
    N, H, W, C = 2, 16, 16, 128
    k1, k2, k3, k4, k5 = jax.random.split(key, 5)

    x = jax.random.normal(k1, (N, H, W, C), jnp.float32)

    # deterministic Conv2d-style init (uniform in +-1/sqrt(fan_in)), HWIO layout
    fan_in = C * 3 * 3
    bound = 1.0 / np.sqrt(fan_in)
    w1 = jax.random.uniform(k2, (3, 3, C, C), jnp.float32, -bound, bound)
    b1 = jax.random.uniform(k3, (C,), jnp.float32, -bound, bound)
    w2 = jax.random.uniform(k4, (3, 3, C, C), jnp.float32, -bound, bound)
    b2 = jax.random.uniform(k5, (C,), jnp.float32, -bound, bound)

    out = jax.block_until_ready(resblock_forward(x, w1, b1, w2, b2))

    ref = resblock_ref(x, w1, b1, w2, b2)
    # Kernel stages activations/weights in bf16 (f32 MXU accumulation), so
    # allow single-bf16-pass slack against the f32 HIGHEST-precision ref.
    np.testing.assert_allclose(np.asarray(out), np.asarray(ref),
                               atol=1e-2, rtol=1e-2)
    print("KERNEL_OK")
</pallas_src>

<mosaic_0001>
module attributes {stable_mosaic.version = 11 : i64} {
  func.func @resblock_kernel(%arg0: i32, %arg1: memref<1x16x16x128xf32, #tpu.memory_space<vmem>>, %arg2: memref<1152x128xbf16, #tpu.memory_space<vmem>>, %arg3: memref<1x128xf32, #tpu.memory_space<vmem>>, %arg4: memref<1152x128xbf16, #tpu.memory_space<vmem>>, %arg5: memref<1x128xf32, #tpu.memory_space<vmem>>, %arg6: memref<1x16x16x128xf32, #tpu.memory_space<vmem>>, %arg7: memref<16x16x1152xbf16, #tpu.memory_space<vmem>>) attributes {dimension_semantics = [#tpu.dimension_semantics<parallel>], iteration_bounds = array<i64: 2>, scalar_prefetch = 0 : i64, scratch_operands = 1 : i64, tpu.core_type = #tpu.core_type<tc>, window_params = [{transform_indices = @transform_0, window_bounds = array<i64: 1, 16, 16, 128>}, {pipeline_mode = #tpu.pipeline_mode<synchronous>, transform_indices = @transform_1, window_bounds = array<i64: 1152, 128>}, {pipeline_mode = #tpu.pipeline_mode<synchronous>, transform_indices = @transform_2, window_bounds = array<i64: 1, 128>}, {pipeline_mode = #tpu.pipeline_mode<synchronous>, transform_indices = @transform_3, window_bounds = array<i64: 1152, 128>}, {pipeline_mode = #tpu.pipeline_mode<synchronous>, transform_indices = @transform_4, window_bounds = array<i64: 1, 128>}, {transform_indices = @transform_5, window_bounds = array<i64: 1, 16, 16, 128>}]} {
    %cst = arith.constant 0.000000e+00 : bf16
    %0 = vector.broadcast %cst : bf16 to vector<1x16x384xbf16>
    %c0 = arith.constant 0 : index
    %c0_0 = arith.constant 0 : index
    %c0_1 = arith.constant 0 : index
    %1 = vector.load %arg7[%c0, %c0_0, %c0_1] : memref<16x16x1152xbf16, #tpu.memory_space<vmem>>, vector<1x16x384xbf16>
    tpu.vector_store %arg7[%c0, %c0_0, %c0_1], %0 {strides = array<i32>} : memref<16x16x1152xbf16, #tpu.memory_space<vmem>>, vector<1x16x384xbf16>,
    %cst_2 = arith.constant 0.000000e+00 : bf16
    %2 = vector.broadcast %cst_2 : bf16 to vector<1x16x384xbf16>
    %c15 = arith.constant 15 : index
    %c0_3 = arith.constant 0 : index
    %c768 = arith.constant 768 : index
    %3 = vector.load %arg7[%c15, %c0_3, %c768] : memref<16x16x1152xbf16, #tpu.memory_space<vmem>>, vector<1x16x384xbf16>
    tpu.vector_store %arg7[%c15, %c0_3, %c768], %2 {strides = array<i32>} : memref<16x16x1152xbf16, #tpu.memory_space<vmem>>, vector<1x16x384xbf16>,
    %c0_4 = arith.constant 0 : index
    %c0_5 = arith.constant 0 : index
    %c0_6 = arith.constant 0 : index
    %c0_7 = arith.constant 0 : index
    %4 = vector.load %arg1[%c0_4, %c0_5, %c0_6, %c0_7] : memref<1x16x16x128xf32, #tpu.memory_space<vmem>>, vector<1x16x16x128xf32>
    %5 = vector.shape_cast %4 : vector<1x16x16x128xf32> to vector<16x16x128xf32>
    %cst_8 = arith.constant 0.000000e+00 : f32
    %6 = vector.broadcast %cst_8 : f32 to vector<16x16x128xf32>
    %7 = arith.maximumf %5, %6 : vector<16x16x128xf32>
    %8 = tpu.iota {dimensions = array<i32: 1>} : vector<16x16x128xi32>
    %c0_i32 = arith.constant 0 : i32
    %9 = vector.broadcast %c0_i32 : i32 to vector<16x16x128xi32>
    %10 = arith.cmpi eq, %8, %9 : vector<16x16x128xi32>
    %c1_i32 = arith.constant 1 : i32
    %11 = tpu.dynamic_rotate %7 by %c1_i32 dim 1 : vector<16x16x128xf32>, i32 -> vector<16x16x128xf32>
    %cst_9 = arith.constant 0.000000e+00 : f32
    %12 = vector.broadcast %cst_9 : f32 to vector<16x16x128xf32>
    %13 = arith.select %10, %12, %11 : vector<16x16x128xi1>, vector<16x16x128xf32>
    %c15_i32 = arith.constant 15 : i32
    %14 = vector.broadcast %c15_i32 : i32 to vector<16x16x128xi32>
    %15 = arith.cmpi eq, %8, %14 : vector<16x16x128xi32>
    %c15_i32_10 = arith.constant 15 : i32
    %16 = tpu.dynamic_rotate %7 by %c15_i32_10 dim 1 : vector<16x16x128xf32>, i32 -> vector<16x16x128xf32>
    %cst_11 = arith.constant 0.000000e+00 : f32
    %17 = vector.broadcast %cst_11 : f32 to vector<16x16x128xf32>
    %18 = arith.select %15, %17, %16 : vector<16x16x128xi1>, vector<16x16x128xf32>
    %19 = arith.truncf %13 : vector<16x16x128xf32> to vector<16x16x128xbf16>
    %20 = arith.truncf %7 : vector<16x16x128xf32> to vector<16x16x128xbf16>
    %21 = arith.truncf %18 : vector<16x16x128xf32> to vector<16x16x128xbf16>
    %22 = vector.extract_strided_slice %19 {offsets = [0, 0, 0], sizes = [15, 16, 128], strides = [1, 1, 1]} : vector<16x16x128xbf16> to vector<15x16x128xbf16>
    %c1 = arith.constant 1 : index
    %c0_12 = arith.constant 0 : index
    %c0_13 = arith.constant 0 : index
    %23 = vector.load %arg7[%c1, %c0_12, %c0_13] : memref<16x16x1152xbf16, #tpu.memory_space<vmem>>, vector<15x16x128xbf16>
    tpu.vector_store %arg7[%c1, %c0_12, %c0_13], %22 {strides = array<i32>} : memref<16x16x1152xbf16, #tpu.memory_space<vmem>>, vector<15x16x128xbf16>,
    %24 = vector.extract_strided_slice %20 {offsets = [0, 0, 0], sizes = [15, 16, 128], strides = [1, 1, 1]} : vector<16x16x128xbf16> to vector<15x16x128xbf16>
    %c1_14 = arith.constant 1 : index
    %c0_15 = arith.constant 0 : index
    %c128 = arith.constant 128 : index
    %25 = vector.load %arg7[%c1_14, %c0_15, %c128] : memref<16x16x1152xbf16, #tpu.memory_space<vmem>>, vector<15x16x128xbf16>
    tpu.vector_store %arg7[%c1_14, %c0_15, %c128], %24 {strides = array<i32>} : memref<16x16x1152xbf16, #tpu.memory_space<vmem>>, vector<15x16x128xbf16>,
    %26 = vector.extract_strided_slice %21 {offsets = [0, 0, 0], sizes = [15, 16, 128], strides = [1, 1, 1]} : vector<16x16x128xbf16> to vector<15x16x128xbf16>
    %c1_16 = arith.constant 1 : index
    %c0_17 = arith.constant 0 : index
    %c256 = arith.constant 256 : index
    %27 = vector.load %arg7[%c1_16, %c0_17, %c256] : memref<16x16x1152xbf16, #tpu.memory_space<vmem>>, vector<15x16x128xbf16>
    tpu.vector_store %arg7[%c1_16, %c0_17, %c256], %26 {strides = array<i32>} : memref<16x16x1152xbf16, #tpu.memory_space<vmem>>, vector<15x16x128xbf16>,
    %c0_18 = arith.constant 0 : index
    %c0_19 = arith.constant 0 : index
    %c384 = arith.constant 384 : index
    %28 = vector.load %arg7[%c0_18, %c0_19, %c384] : memref<16x16x1152xbf16, #tpu.memory_space<vmem>>, vector<16x16x128xbf16>
    tpu.vector_store %arg7[%c0_18, %c0_19, %c384], %19 {strides = array<i32>} : memref<16x16x1152xbf16, #tpu.memory_space<vmem>>, vector<16x16x128xbf16>,
    %c0_20 = arith.constant 0 : index
    %c0_21 = arith.constant 0 : index
    %c512 = arith.constant 512 : index
    %29 = vector.load %arg7[%c0_20, %c0_21, %c512] : memref<16x16x1152xbf16, #tpu.memory_space<vmem>>, vector<16x16x128xbf16>
    tpu.vector_store %arg7[%c0_20, %c0_21, %c512], %20 {strides = array<i32>} : memref<16x16x1152xbf16, #tpu.memory_space<vmem>>, vector<16x16x128xbf16>,
    %c0_22 = arith.constant 0 : index
    %c0_23 = arith.constant 0 : index
    %c640 = arith.constant 640 : index
    %30 = vector.load %arg7[%c0_22, %c0_23, %c640] : memref<16x16x1152xbf16, #tpu.memory_space<vmem>>, vector<16x16x128xbf16>
    tpu.vector_store %arg7[%c0_22, %c0_23, %c640], %21 {strides = array<i32>} : memref<16x16x1152xbf16, #tpu.memory_space<vmem>>, vector<16x16x128xbf16>,
    %31 = vector.extract_strided_slice %19 {offsets = [1, 0, 0], sizes = [15, 16, 128], strides = [1, 1, 1]} : vector<16x16x128xbf16> to vector<15x16x128xbf16>
    %c0_24 = arith.constant 0 : index
    %c0_25 = arith.constant 0 : index
    %c768_26 = arith.constant 768 : index
    %32 = vector.load %arg7[%c0_24, %c0_25, %c768_26] : memref<16x16x1152xbf16, #tpu.memory_space<vmem>>, vector<15x16x128xbf16>
    tpu.vector_store %arg7[%c0_24, %c0_25, %c768_26], %31 {strides = array<i32>} : memref<16x16x1152xbf16, #tpu.memory_space<vmem>>, vector<15x16x128xbf16>,
    %33 = vector.extract_strided_slice %20 {offsets = [1, 0, 0], sizes = [15, 16, 128], strides = [1, 1, 1]} : vector<16x16x128xbf16> to vector<15x16x128xbf16>
    %c0_27 = arith.constant 0 : index
    %c0_28 = arith.constant 0 : index
    %c896 = arith.constant 896 : index
    %34 = vector.load %arg7[%c0_27, %c0_28, %c896] : memref<16x16x1152xbf16, #tpu.memory_space<vmem>>, vector<15x16x128xbf16>
    tpu.vector_store %arg7[%c0_27, %c0_28, %c896], %33 {strides = array<i32>} : memref<16x16x1152xbf16, #tpu.memory_space<vmem>>, vector<15x16x128xbf16>,
    %35 = vector.extract_strided_slice %21 {offsets = [1, 0, 0], sizes = [15, 16, 128], strides = [1, 1, 1]} : vector<16x16x128xbf16> to vector<15x16x128xbf16>
    %c0_29 = arith.constant 0 : index
    %c0_30 = arith.constant 0 : index
    %c1024 = arith.constant 1024 : index
    %36 = vector.load %arg7[%c0_29, %c0_30, %c1024] : memref<16x16x1152xbf16, #tpu.memory_space<vmem>>, vector<15x16x128xbf16>
    tpu.vector_store %arg7[%c0_29, %c0_30, %c1024], %35 {strides = array<i32>} : memref<16x16x1152xbf16, #tpu.memory_space<vmem>>, vector<15x16x128xbf16>,
    %c0_31 = arith.constant 0 : index
    %c0_32 = arith.constant 0 : index
    %c0_33 = arith.constant 0 : index
    %37 = vector.load %arg7[%c0_31, %c0_32, %c0_33] : memref<16x16x1152xbf16, #tpu.memory_space<vmem>>, vector<16x16x1152xbf16>
    %38 = vector.shape_cast %37 : vector<16x16x1152xbf16> to vector<256x1152xbf16>
    %c0_34 = arith.constant 0 : index
    %c0_35 = arith.constant 0 : index
    %39 = vector.load %arg2[%c0_34, %c0_35] : memref<1152x128xbf16, #tpu.memory_space<vmem>>, vector<1152x128xbf16>
    %cst_36 = arith.constant dense<0.000000e+00> : vector<256x128xf32>
    %40 = tpu.matmul %38, %39, %cst_36 {dimension_numbers = #tpu.dot_dimension_numbers<[1], [0], [0], [1], [0, 0, 1, 1], [], []>} : vector<256x1152xbf16>, vector<1152x128xbf16>, vector<256x128xf32> -> vector<256x128xf32>
    %c0_37 = arith.constant 0 : index
    %c0_38 = arith.constant 0 : index
    %41 = vector.load %arg3[%c0_37, %c0_38] : memref<1x128xf32, #tpu.memory_space<vmem>>, vector<1x128xf32>
    %42 = vector.shape_cast %41 : vector<1x128xf32> to vector<128xf32>
    %43 = vector.shape_cast %42 : vector<128xf32> to vector<1x128xf32>
    %44 = vector.broadcast %43 : vector<1x128xf32> to vector<256x128xf32>
    %45 = arith.addf %40, %44 : vector<256x128xf32>
    %46 = vector.shape_cast %45 : vector<256x128xf32> to vector<16x16x128xf32>
    %cst_39 = arith.constant 0.000000e+00 : f32
    %47 = vector.broadcast %cst_39 : f32 to vector<16x16x128xf32>
    %48 = arith.maximumf %46, %47 : vector<16x16x128xf32>
    %49 = tpu.iota {dimensions = array<i32: 1>} : vector<16x16x128xi32>
    %c0_i32_40 = arith.constant 0 : i32
    %50 = vector.broadcast %c0_i32_40 : i32 to vector<16x16x128xi32>
    %51 = arith.cmpi eq, %49, %50 : vector<16x16x128xi32>
    %c1_i32_41 = arith.constant 1 : i32
    %52 = tpu.dynamic_rotate %48 by %c1_i32_41 dim 1 : vector<16x16x128xf32>, i32 -> vector<16x16x128xf32>
    %cst_42 = arith.constant 0.000000e+00 : f32
    %53 = vector.broadcast %cst_42 : f32 to vector<16x16x128xf32>
    %54 = arith.select %51, %53, %52 : vector<16x16x128xi1>, vector<16x16x128xf32>
    %c15_i32_43 = arith.constant 15 : i32
    %55 = vector.broadcast %c15_i32_43 : i32 to vector<16x16x128xi32>
    %56 = arith.cmpi eq, %49, %55 : vector<16x16x128xi32>
    %c15_i32_44 = arith.constant 15 : i32
    %57 = tpu.dynamic_rotate %48 by %c15_i32_44 dim 1 : vector<16x16x128xf32>, i32 -> vector<16x16x128xf32>
    %cst_45 = arith.constant 0.000000e+00 : f32
    %58 = vector.broadcast %cst_45 : f32 to vector<16x16x128xf32>
    %59 = arith.select %56, %58, %57 : vector<16x16x128xi1>, vector<16x16x128xf32>
    %60 = arith.truncf %54 : vector<16x16x128xf32> to vector<16x16x128xbf16>
    %61 = arith.truncf %48 : vector<16x16x128xf32> to vector<16x16x128xbf16>
    %62 = arith.truncf %59 : vector<16x16x128xf32> to vector<16x16x128xbf16>
    %63 = vector.extract_strided_slice %60 {offsets = [0, 0, 0], sizes = [15, 16, 128], strides = [1, 1, 1]} : vector<16x16x128xbf16> to vector<15x16x128xbf16>
    %c1_46 = arith.constant 1 : index
    %c0_47 = arith.constant 0 : index
    %c0_48 = arith.constant 0 : index
    %64 = vector.load %arg7[%c1_46, %c0_47, %c0_48] : memref<16x16x1152xbf16, #tpu.memory_space<vmem>>, vector<15x16x128xbf16>
    tpu.vector_store %arg7[%c1_46, %c0_47, %c0_48], %63 {strides = array<i32>} : memref<16x16x1152xbf16, #tpu.memory_space<vmem>>, vector<15x16x128xbf16>,
    %65 = vector.extract_strided_slice %61 {offsets = [0, 0, 0], sizes = [15, 16, 128], strides = [1, 1, 1]} : vector<16x16x128xbf16> to vector<15x16x128xbf16>
    %c1_49 = arith.constant 1 : index
    %c0_50 = arith.constant 0 : index
    %c128_51 = arith.constant 128 : index
    %66 = vector.load %arg7[%c1_49, %c0_50, %c128_51] : memref<16x16x1152xbf16, #tpu.memory_space<vmem>>, vector<15x16x128xbf16>
    tpu.vector_store %arg7[%c1_49, %c0_50, %c128_51], %65 {strides = array<i32>} : memref<16x16x1152xbf16, #tpu.memory_space<vmem>>, vector<15x16x128xbf16>,
    %67 = vector.extract_strided_slice %62 {offsets = [0, 0, 0], sizes = [15, 16, 128], strides = [1, 1, 1]} : vector<16x16x128xbf16> to vector<15x16x128xbf16>
    %c1_52 = arith.constant 1 : index
    %c0_53 = arith.constant 0 : index
    %c256_54 = arith.constant 256 : index
    %68 = vector.load %arg7[%c1_52, %c0_53, %c256_54] : memref<16x16x1152xbf16, #tpu.memory_space<vmem>>, vector<15x16x128xbf16>
    tpu.vector_store %arg7[%c1_52, %c0_53, %c256_54], %67 {strides = array<i32>} : memref<16x16x1152xbf16, #tpu.memory_space<vmem>>, vector<15x16x128xbf16>,
    %c0_55 = arith.constant 0 : index
    %c0_56 = arith.constant 0 : index
    %c384_57 = arith.constant 384 : index
    %69 = vector.load %arg7[%c0_55, %c0_56, %c384_57] : memref<16x16x1152xbf16, #tpu.memory_space<vmem>>, vector<16x16x128xbf16>
    tpu.vector_store %arg7[%c0_55, %c0_56, %c384_57], %60 {strides = array<i32>} : memref<16x16x1152xbf16, #tpu.memory_space<vmem>>, vector<16x16x128xbf16>,
    %c0_58 = arith.constant 0 : index
    %c0_59 = arith.constant 0 : index
    %c512_60 = arith.constant 512 : index
    %70 = vector.load %arg7[%c0_58, %c0_59, %c512_60] : memref<16x16x1152xbf16, #tpu.memory_space<vmem>>, vector<16x16x128xbf16>
    tpu.vector_store %arg7[%c0_58, %c0_59, %c512_60], %61 {strides = array<i32>} : memref<16x16x1152xbf16, #tpu.memory_space<vmem>>, vector<16x16x128xbf16>,
    %c0_61 = arith.constant 0 : index
    %c0_62 = arith.constant 0 : index
    %c640_63 = arith.constant 640 : index
    %71 = vector.load %arg7[%c0_61, %c0_62, %c640_63] : memref<16x16x1152xbf16, #tpu.memory_space<vmem>>, vector<16x16x128xbf16>
    tpu.vector_store %arg7[%c0_61, %c0_62, %c640_63], %62 {strides = array<i32>} : memref<16x16x1152xbf16, #tpu.memory_space<vmem>>, vector<16x16x128xbf16>,
    %72 = vector.extract_strided_slice %60 {offsets = [1, 0, 0], sizes = [15, 16, 128], strides = [1, 1, 1]} : vector<16x16x128xbf16> to vector<15x16x128xbf16>
    %c0_64 = arith.constant 0 : index
    %c0_65 = arith.constant 0 : index
    %c768_66 = arith.constant 768 : index
    %73 = vector.load %arg7[%c0_64, %c0_65, %c768_66] : memref<16x16x1152xbf16, #tpu.memory_space<vmem>>, vector<15x16x128xbf16>
    tpu.vector_store %arg7[%c0_64, %c0_65, %c768_66], %72 {strides = array<i32>} : memref<16x16x1152xbf16, #tpu.memory_space<vmem>>, vector<15x16x128xbf16>,
    %74 = vector.extract_strided_slice %61 {offsets = [1, 0, 0], sizes = [15, 16, 128], strides = [1, 1, 1]} : vector<16x16x128xbf16> to vector<15x16x128xbf16>
    %c0_67 = arith.constant 0 : index
    %c0_68 = arith.constant 0 : index
    %c896_69 = arith.constant 896 : index
    %75 = vector.load %arg7[%c0_67, %c0_68, %c896_69] : memref<16x16x1152xbf16, #tpu.memory_space<vmem>>, vector<15x16x128xbf16>
    tpu.vector_store %arg7[%c0_67, %c0_68, %c896_69], %74 {strides = array<i32>} : memref<16x16x1152xbf16, #tpu.memory_space<vmem>>, vector<15x16x128xbf16>,
    %76 = vector.extract_strided_slice %62 {offsets = [1, 0, 0], sizes = [15, 16, 128], strides = [1, 1, 1]} : vector<16x16x128xbf16> to vector<15x16x128xbf16>
    %c0_70 = arith.constant 0 : index
    %c0_71 = arith.constant 0 : index
    %c1024_72 = arith.constant 1024 : index
    %77 = vector.load %arg7[%c0_70, %c0_71, %c1024_72] : memref<16x16x1152xbf16, #tpu.memory_space<vmem>>, vector<15x16x128xbf16>
    tpu.vector_store %arg7[%c0_70, %c0_71, %c1024_72], %76 {strides = array<i32>} : memref<16x16x1152xbf16, #tpu.memory_space<vmem>>, vector<15x16x128xbf16>,
    %c0_73 = arith.constant 0 : index
    %c0_74 = arith.constant 0 : index
    %c0_75 = arith.constant 0 : index
    %78 = vector.load %arg7[%c0_73, %c0_74, %c0_75] : memref<16x16x1152xbf16, #tpu.memory_space<vmem>>, vector<16x16x1152xbf16>
    %79 = vector.shape_cast %78 : vector<16x16x1152xbf16> to vector<256x1152xbf16>
    %c0_76 = arith.constant 0 : index
    %c0_77 = arith.constant 0 : index
    %80 = vector.load %arg4[%c0_76, %c0_77] : memref<1152x128xbf16, #tpu.memory_space<vmem>>, vector<1152x128xbf16>
    %cst_78 = arith.constant dense<0.000000e+00> : vector<256x128xf32>
    %81 = tpu.matmul %79, %80, %cst_78 {dimension_numbers = #tpu.dot_dimension_numbers<[1], [0], [0], [1], [0, 0, 1, 1], [], []>} : vector<256x1152xbf16>, vector<1152x128xbf16>, vector<256x128xf32> -> vector<256x128xf32>
    %c0_79 = arith.constant 0 : index
    %c0_80 = arith.constant 0 : index
    %82 = vector.load %arg5[%c0_79, %c0_80] : memref<1x128xf32, #tpu.memory_space<vmem>>, vector<1x128xf32>
    %83 = vector.shape_cast %82 : vector<1x128xf32> to vector<128xf32>
    %84 = vector.shape_cast %83 : vector<128xf32> to vector<1x128xf32>
    %85 = vector.broadcast %84 : vector<1x128xf32> to vector<256x128xf32>
    %86 = arith.addf %81, %85 : vector<256x128xf32>
    %87 = vector.shape_cast %86 : vector<256x128xf32> to vector<16x16x128xf32>
    %c0_81 = arith.constant 0 : index
    %c0_82 = arith.constant 0 : index
    %c0_83 = arith.constant 0 : index
    %c0_84 = arith.constant 0 : index
    %88 = vector.load %arg1[%c0_81, %c0_82, %c0_83, %c0_84] : memref<1x16x16x128xf32, #tpu.memory_space<vmem>>, vector<1x16x16x128xf32>
    %89 = vector.shape_cast %88 : vector<1x16x16x128xf32> to vector<16x16x128xf32>
    %90 = arith.addf %89, %87 : vector<16x16x128xf32>
    %c0_85 = arith.constant 0 : index
    %c0_86 = arith.constant 0 : index
    %c0_87 = arith.constant 0 : index
    %c0_88 = arith.constant 0 : index
    %91 = vector.load %arg6[%c0_85, %c0_86, %c0_87, %c0_88] : memref<1x16x16x128xf32, #tpu.memory_space<vmem>>, vector<1x16x16x128xf32>
    %92 = vector.shape_cast %91 : vector<1x16x16x128xf32> to vector<16x16x128xf32>
    %93 = vector.shape_cast %90 : vector<16x16x128xf32> to vector<1x16x16x128xf32>
    tpu.vector_store %arg6[%c0_85, %c0_86, %c0_87, %c0_88], %93 {strides = array<i32>} : memref<1x16x16x128xf32, #tpu.memory_space<vmem>>, vector<1x16x16x128xf32>,
    return
  }
  func.func @transform_0(%arg0: i32) -> (i32, i32, i32, i32) {
    %c0_i32 = arith.constant 0 : i32
    %c0_i32_0 = arith.constant 0 : i32
    %c0_i32_1 = arith.constant 0 : i32
    %c0_i32_2 = arith.constant 0 : i32
    return %arg0, %c0_i32, %c0_i32_0, %c0_i32_1 : i32, i32, i32, i32
  }
  func.func @transform_1(%arg0: i32) -> (i32, i32) {
    %c0_i32 = arith.constant 0 : i32
    %c0_i32_0 = arith.constant 0 : i32
    %c0_i32_1 = arith.constant 0 : i32
    return %c0_i32, %c0_i32_0 : i32, i32
  }
  func.func @transform_2(%arg0: i32) -> (i32, i32) {
    %c0_i32 = arith.constant 0 : i32
    %c0_i32_0 = arith.constant 0 : i32
    %c0_i32_1 = arith.constant 0 : i32
    return %c0_i32, %c0_i32_0 : i32, i32
  }
  func.func @transform_3(%arg0: i32) -> (i32, i32) {
    %c0_i32 = arith.constant 0 : i32
    %c0_i32_0 = arith.constant 0 : i32
    %c0_i32_1 = arith.constant 0 : i32
    return %c0_i32, %c0_i32_0 : i32, i32
  }
  func.func @transform_4(%arg0: i32) -> (i32, i32) {
    %c0_i32 = arith.constant 0 : i32
    %c0_i32_0 = arith.constant 0 : i32
    %c0_i32_1 = arith.constant 0 : i32
    return %c0_i32, %c0_i32_0 : i32, i32
  }
  func.func @transform_5(%arg0: i32) -> (i32, i32, i32, i32) {
    %c0_i32 = arith.constant 0 : i32
    %c0_i32_0 = arith.constant 0 : i32
    %c0_i32_1 = arith.constant 0 : i32
    %c0_i32_2 = arith.constant 0 : i32
    return %arg0, %c0_i32, %c0_i32_0, %c0_i32_1 : i32, i32, i32, i32
  }
}

</mosaic_0001>

<bundles_post_ra>
// kernel: tpu_custom_call.1
= control target key start
LH: loop header
LB: loop body
LE: loop exit
PB: predicated region body
PF: predicated region fallthrough
CT: control target
= control target key end

     0   :  { %10 = vsyncpa [#allocation4], 0  ;;  %s10507_s0 = inlined_call_operand.hbm [shape: f32[2,16,16,128], index: 0, kind: input, shape index: {}]   ;;  %s10508_s1 = inlined_call_operand.hbm [shape: bf16[1152,128], index: 1, kind: input, shape index: {}]   ;;  %s10509_s2 = inlined_call_operand.vmem [shape: f32[1,128], index: 2, kind: input, shape index: {}]   ;;  %s10510_s3 = inlined_call_operand.hbm [shape: bf16[1152,128], index: 3, kind: input, shape index: {}]   ;;  %s10511_s4 = inlined_call_operand.vmem [shape: f32[1,128], index: 4, kind: input, shape index: {}]   ;;  %s10512_s5 = inlined_call_operand.hbm [shape: f32[2,16,16,128], index: 5, kind: output, shape index: {}]  }
   0x1   :  { %12 = vsyncpa [#allocation4 + $0x1], 0 }
   0x2   :  { %13 = vsyncpa [#allocation7], 0 }
   0x3   :  { %14 = vsyncpa [#allocation5], 0 }
   0x4   :  { %16 = vsyncpa [#allocation5 + $0x1], 0  ;;  %s8755_s18 = smov 0   ;;  %s8757_s19 = smov 0  }
   0x5   :  { %s8759_s20 = smov 0   ;;  %s8761_s21 = smov 0  }
   0x6 LB: > { %s8776_s22 = sadd.s32 4294967295, %s8714_s21   ;;  %s6280_s23 = sadd.s32 4294967294, %s8714_s21   ;;  %s8714_s21 = sphi %s8761_s21, %s10558_s21   ;;  %s8710_s20 = sphi %s8759_s20, %s10557_s20   ;;  %s8706_s19 = sphi %s8757_s19, %s10556_s19   ;;  %s8702_s18 = sphi %s8755_s18, %s10555_s18  }
   0x7   : > { %p42_p0 = scmp.ne.s32.totalorder %s8706_s19, %s8702_s18  ;;  %p43_p1 = scmp.eq.s32.totalorder %s8776_s22, 0 }
   0x8   : > { %p150_p2 = scmp.eq.s32.totalorder %s8776_s22, 1  ;;  %p156_p3 = scmp.eq.s32.totalorder %s6280_s23, 1 }
   0x9   : > { %p8785_p4 = por %p43_p1, %p42_p0  ;;  %p6281_p5 = scmp.ge.s32.totalorder %s8714_s21, 1 }
   0xa   : > { %p8790_p6 = por %p156_p3, %p42_p0  ;;  %p163_p7 = scmp.lt.s32.totalorder %s8714_s21, 3 }
   0xb   : > { %s174_s28 = sshll.u32 %s10508_s1, 4  ;;  %s8716_s30 = smov [#allocation6]   ;;  %s175_s28 = int_to_ptr.hbm [resolvable:$true] %s174_s28 }
   0xc   : > { %p8798_p8 = pnand %p6281_p5, %p163_p7  ;;  %s176_s6 = sshll.u32 %s8716_s30, 4  ;;  %s177_s6 = int_to_ptr.vmem [resolvable:$true] %s176_s6 }
   0xd   : > { %s191_s9 = sshll.u32 %s10510_s3, 4  ;;  %s8717_s10 = smov 64   ;;  %s192_s9 = int_to_ptr.hbm [resolvable:$true] %s191_s9 }
   0xe   : > { %p8488_p9 = pneg %p8798_p8  ;;  %s8718_s11 = smov 4  }
   0xf   : > { %s8719_s12 = smov [#allocation8]   ;;  %s8811_s14 = sadd.s32 1, %s8714_s21  }
  0x10   : > { %p8489_p10 = pnand %p8488_p9, %p43_p1  ;;  %s193_s13 = sshll.u32 %s8719_s12, 4  ;;  %s194_s13 = int_to_ptr.vmem [resolvable:$true] %s193_s13 }
  0x11   : > { %s29_s15 = sadd.s32 1, %s8710_s20  ;;  %s26_s16 = ssub.s32 %s8714_s21, %s8811_s14 }
  0x12   : > { %8491 = dma.hbm_to_vmem [thread:$0]  (!%p8489_p10), %s175_s28, 9216, %s177_s6, [#allocation7], %s8717_s10, %s8717_s10, %s8718_s11  }
  0x13   : > { %8494 = dma.hbm_to_vmem [thread:$0]  (!%p8489_p10), %s192_s9, 9216, %s194_s13, [#allocation7], %s8717_s10, %s8717_s10, %s8718_s11  }
  0x14   : > { %p36_p12 = scmp.ne.s32.totalorder %s8710_s20, %s8706_s19  ;;  %p27_p13 = scmp.eq.s32.totalorder %s26_s16, 0 }
  0x15   : > { %p37_p0 = scmp.eq.s32.totalorder %s8714_s21, 0  ;;  %p8505_p5 = scmp.lt.s32.totalorder %s8714_s21, 2 }
  0x16   : > { %p8821_p3 = por %p150_p2, %p36_p12  ;;  %s210_s26 = sand.u32 1, %s8710_s20  }
  0x17   : > { %s8827_s23 = scalar_select %p27_p13, %s8710_s20, %s29_s15  }
  0x18   : > { %p38_p7 = por %p37_p0, %p36_p12  ;;  %s6285_s27 = sshll.u32 %s210_s26, 8 }
  0x19   : > { %s8026_s28 = sshll.u32 %s8714_s21, 8  ;;  %s214_s8 = scalar_lea.vmem [#allocation3], %s6285_s27 }
  0x1a   : > { %s219_s7 = scalar_lea.hbm %s10507_s0, %s8026_s28  ;;  %s222_s9 = sshll.u32 %s214_s8, 4  ;;  %s223_s9 = int_to_ptr.vmem [resolvable:$true] %s222_s9 }
  0x1b   : > { %s220_s10 = sshll.u32 %s219_s7, 4  ;;  %p8834_p2 = pnand %p8505_p5, %p38_p7  ;;  %s221_s10 = int_to_ptr.hbm [resolvable:$true] %s220_s10 }
  0x1c   : > { %s211_s12 = scalar_lea.sflag [#allocation4], %s210_s26  ;;  %s8614_s13 = sshra.s32 %s221_s10, 4  ;;  %s8615_s13 = int_to_ptr.hbm [resolvable:$true] %s8614_s13 }
  0x1d   : > { %s8616_s15 = scalar_lea.hbm %s8615_s13, 256  ;;  %p8618_p10 = pneg %p8834_p2 }
  0x1e   : > { %p8617_p9 = scmp.ne.s32.totalorder %s8615_s13, %s8616_s15  ;;  %s8621_s28 = scalar_lea.hbm %s10507_s0, 512 }
  0x1f   : > { %p8622_p0 = scmp.lt.s32.totalorder %s8615_s13, %s10507_s0  ;;  %p8623_p5 = scmp.lt.s32.totalorder %s8621_s28, %s8616_s15 }
  0x20   : > { %p8619_p12 = pnand %p8618_p10, %p8617_p9 }
  0x21   : > { %p8624_p7 = por %p8623_p5, %p8622_p0 }
  0x22   : > { %p8620_p13 = pneg %p8619_p12 }
  0x24   : > { %p8625_p11 = pnand %p8624_p7, %p8620_p13 }
  0x26   : > { %8628 = shalt.err (!%p8625_p11)
}
  0x27   : > { %s8720_s26 = smov 128   ;;  %s8721_s7 = smov 8  }
  0x28   : > { %8498 = dma.hbm_to_vmem [thread:$0]  (!%p8834_p2), %s221_s10, 4096, %s223_s9, %s211_s12, %s8720_s26, %s8720_s26, %s8721_s7  }
  0x29   : > { %234 = sbr.rel (%p8798_p8) target bundleno = 1571 (0x623), region = 40 }
  0x2e   : > { %s8851_s8 = sand.u32 1, %s8706_s19  }
  0x2f   : > { %s6289_s13 = sshll.u32 %s8851_s8, 8  ;;  %s237_s15 = scalar_lea.sflag [#allocation4], %s8851_s8 }
  0x30   : > { %s8857_s16 = scalar_lea.vmem [#allocation3], %s6289_s13 }
  0x31   : > { %8689 = dma.done.wait (%p8785_p4), %s237_s15, 4096  }
  0x32   : > { %8691 = vsyncadd (%p8785_p4), %s237_s15, 4294963200 }
  0x33   : > { %8693 = dma.done.wait (%p43_p1), [#allocation7], 18432  }
  0x34   : > { %8695 = vsyncadd (%p43_p1), [#allocation7], 4294948864  ;;  %v8722_v0 = vmov 0   ;;  %v8178_v1 = vld [vmem:[#allocation6 + $0x38] sm:$0xff]  ;;  %v352_v3 = vlaneseq  ;;  %v8177_v4 = vld [vmem:[#allocation6 + $0x30] sm:$0xff]  ;;  %s10374_s30 = scalar_lea.vmem [#allocation9], %s6289_s13 }
  0x35   : > { %279 = vst [vmem:[#allocation2] sm:$0xff] %v8722_v0  ;;  %v8186_v2 = vld [vmem:[#allocation6 + $0x78] sm:$0xff]  ;;  %2402 = vmatpush.bf16.msra.mxu0 %v8178_v1  ;;  %8460 = vmatpush.bf16.msra.mxu2 %v8178_v1  ;;  %v8185_v5 = vld [vmem:[#allocation6 + $0x70] sm:$0xff]  ;;  %v8176_v7 = vld [vmem:[#allocation6 + $0x28] sm:$0xff]  ;;  %s8459_s6 = sshll.u32 %s8776_s22, 8  ;;  %s6185_s15 = sshll.u32 %s10374_s30, 4  ;;  %s6186_s15 = int_to_ptr.vmem [resolvable:$true] %s6185_s15 }
  0x36   : > { %281 = vst [vmem:[#allocation2 + $0x24] sm:$0xff] %v8722_v0  ;;  %8468 = vmatpush.bf16.msra.mxu3 %v8186_v2  ;;  %2491 = vmatpush.bf16.msra.mxu1 %v8186_v2  ;;  %v8867_v6 = vshrl.u32 %v352_v3, 7  ;;  %v302_v8 = vld [vmem:[%s8857_s16 + $0x70] sm:$0xff]  ;;  %v303_v9 = vld [vmem:[%s8857_s16 + $0x78] sm:$0xff]  ;;  %v8184_v10 = vld [vmem:[#allocation6 + $0x68] sm:$0xff]  ;;  %s6184_s13 = scalar_lea.hbm %s10512_s5, %s8459_s6  ;;  %s6173_s22 = scalar_lea.sflag [#allocation5], %s8851_s8 }
  0x37   : > { %280 = vst [vmem:[#allocation2 + $0x8] sm:$0xf] %v8722_v0  ;;  %v8871_v11 = vmax.f32 %v302_v8, 0.0  ;;  %v8873_v12 = vmax.f32 %v303_v9, 0.0  ;;  %v288_v13 = vld [vmem:[%s8857_s16] sm:$0xff]  ;;  %v289_v14 = vld [vmem:[%s8857_s16 + $0x8] sm:$0xff] }
  0x38   : > { %282 = vst [vmem:[#allocation2 + $0x2c] sm:$0xf] %v8722_v0  ;;  %vm355_vm0 = vcmp.eq.s32.totalorder %v8867_v6, 0  ;;  %vm389_vm1 = vcmp.lt.s32.totalorder %v8867_v6, 1  ;;  %v304_v19 = vld [vmem:[%s8857_s16 + $0x80] sm:$0xff]  ;;  %v305_v20 = vld [vmem:[%s8857_s16 + $0x88] sm:$0xff] }
  0x39   : > { %284 = vst [vmem:[#allocation2 + $0x450] sm:$0xff] %v8722_v0  ;;  %2403 = vmatpush.bf16.msra.mxu0 %v8177_v4  ;;  %8461 = vmatpush.bf16.msra.mxu2 %v8177_v4  ;;  %v364_v15 = vrot.slane %v8871_v11, 7  ;;  %v380_v16 = vrot.slane %v8873_v12, 7  ;;  %v599_v17 = vpack.c.bf16 %v8871_v11, %v8871_v11  ;;  %v600_v18 = vpack.c.bf16 %v8873_v12, %v8873_v12  ;;  %v8175_v21 = vld [vmem:[#allocation6 + $0x20] sm:$0xff]  ;;  %v8174_v36 = vld [vmem:[#allocation6 + $0x18] sm:$0xff]  ;;  %v8173_v42 = vld [vmem:[#allocation6 + $0x10] sm:$0xff] }
  0x3a   : > { %285 = vst [vmem:[#allocation2 + $0x458] sm:$0xf] %v8722_v0  ;;  %8469 = vmatpush.bf16.msra.mxu3 %v8185_v5  ;;  %2492 = vmatpush.bf16.msra.mxu1 %v8185_v5  ;;  %v8887_v22 = vmax.f32 %v288_v13, 0.0  ;;  %v8889_v23 = vmax.f32 %v289_v14, 0.0  ;;  %v8891_v24 = vmax.f32 %v304_v19, 0.0  ;;  %v8183_v25 = vld [vmem:[#allocation6 + $0x60] sm:$0xff] }
  0x3b   : > { %286 = vst [vmem:[#allocation2 + $0x474] sm:$0xff] %v8722_v0  ;;  %v397_v26 = vsel %vm389_vm1, %v364_v15, %v380_v16  ;;  %v413_v27 = vsel %vm389_vm1, %v380_v16, %v364_v15  ;;  %v8897_v28 = vmax.f32 %v305_v20, 0.0  ;;  %v8182_v38 = vld [vmem:[#allocation6 + $0x58] sm:$0xff]  ;;  %v8181_v43 = vld [vmem:[#allocation6 + $0x50] sm:$0xff]  ;;  %v8172_v49 = vld [vmem:[#allocation6 + $0x8] sm:$0xff]  ;;  %vm488_vm2 = vcmp.lt.s32.totalorder %v8867_v6, 7 }
  0x3c   : > { %287 = vst [vmem:[#allocation2 + $0x47c] sm:$0xf] %v8722_v0  ;;  %v436_v29 = vsel %vm355_vm0, 0.0, %v413_v27  ;;  %v568_v30 = vpack.c.bf16 %v397_v26, %v397_v26  ;;  %v357_v31 = vrot.slane %v8887_v22, 7  ;;  %v373_v32 = vrot.slane %v8889_v23, 7  ;;  %v290_v48 = vld [vmem:[%s8857_s16 + $0x10] sm:$0xff] }
  0x3d   : > { %2404 = vmatpush.bf16.msra.mxu0 %v8176_v7  ;;  %8462 = vmatpush.bf16.msra.mxu2 %v8176_v7  ;;  %694 = vst [vmem:[#allocation2 + $0x244] sm:$0xf] %v599_v17  ;;  %v567_v33 = vpack.c.bf16 %v436_v29, %v436_v29  ;;  %v365_v34 = vrot.slane %v8891_v24, 7  ;;  %v381_v35 = vrot.slane %v8897_v28, 7  ;;  %v291_v50 = vld [vmem:[%s8857_s16 + $0x18] sm:$0xff]  ;;  %v8180_v51 = vld [vmem:[#allocation6 + $0x48] sm:$0xff]  ;;  %v601_v8 = vpack.c.bf16 %v8891_v24, %v8891_v24 }
  0x3e   : > { %8470 = vmatpush.bf16.msra.mxu3 %v8184_v10  ;;  %2493 = vmatpush.bf16.msra.mxu1 %v8184_v10  ;;  %695 = vst [vmem:[#allocation2 + $0x268] sm:$0xf] %v600_v18  ;;  %v406_v37 = vsel %vm389_vm1, %v373_v32, %v357_v31  ;;  %v390_v40 = vsel %vm389_vm1, %v357_v31, %v373_v32  ;;  %v6295_v52 = vld [vmem:[#allocation2] sm:$0xf]  ;;  %v8031_v55 = vld [vmem:[#allocation2 + $0x20] sm:$0xf0] }
  0x3f   : > { %786 = vst [vmem:[#allocation2 + $0x208] sm:$0xf] %v599_v17  ;;  %v422_v39 = vsel %vm355_vm0, 0.0, %v406_v37  ;;  %v414_v41 = vsel %vm389_vm1, %v381_v35, %v365_v34  ;;  %v554_v45 = vpack.c.bf16 %v390_v40, %v390_v40  ;;  %v398_v47 = vsel %vm389_vm1, %v365_v34, %v381_v35  ;;  %v8171_v54 = vld [vmem:[#allocation6] sm:$0xff]  ;;  %v8194_v59 = vld [vmem:[#allocation6 + $0xb8] sm:$0xff]  ;;  %v306_v61 = vld [vmem:[%s8857_s16 + $0x90] sm:$0xff] }
  0x40   : > { %665 = vst [vmem:[#allocation2 + $0x264] sm:$0xf] %v568_v30  ;;  %v553_v44 = vpack.c.bf16 %v422_v39, %v422_v39  ;;  %v438_v46 = vsel %vm355_vm0, 0.0, %v414_v41  ;;  %v570_v56 = vpack.c.bf16 %v398_v47, %v398_v47  ;;  %v8919_v57 = vmax.f32 %v290_v48, 0.0  ;;  %v8179_v58 = vld [vmem:[#allocation6 + $0x40] sm:$0xff]  ;;  %v307_v62 = vld [vmem:[%s8857_s16 + $0x98] sm:$0xff] }
  0x41   : > { %2405 = vmatpush.bf16.msra.mxu0 %v8175_v21  ;;  %8463 = vmatpush.bf16.msra.mxu2 %v8175_v21  ;;  %664 = vst [vmem:[#allocation2 + $0x240] sm:$0xf] %v567_v33  ;;  %v569_v53 = vpack.c.bf16 %v438_v46, %v438_v46  ;;  %v8921_v60 = vmax.f32 %v291_v50, 0.0  ;;  %v8027_v1 = vld [vmem:[#allocation2 + $0x4] sm:$0xf]  ;;  %v6296_v4 = vor.u32 %v8031_v55, %v6295_v52  ;;  %v8202_v5 = vld [vmem:[#allocation6 + $0xf8] sm:$0xff] }
  0x42   : > { %8471 = vmatpush.bf16.msra.mxu3 %v8183_v25  ;;  %2494 = vmatpush.bf16.msra.mxu1 %v8183_v25  ;;  %754 = vst [vmem:[#allocation2 + $0x204] sm:$0xf] %v567_v33  ;;  %v6297_v7 = vld [vmem:[#allocation2 + $0x24] sm:$0xf0]  ;;  %v358_v9 = vrot.slane %v8919_v57, 7  ;;  %v8929_v14 = vmax.f32 %v306_v61, 0.0  ;;  %v586_v32 = vpack.c.bf16 %v8889_v23, %v8889_v23 }
  0x43   : > { %755 = vst [vmem:[#allocation2 + $0x228] sm:$0xf] %v568_v30  ;;  %v374_v13 = vrot.slane %v8921_v60, 7  ;;  %v8931_v15 = vmax.f32 %v307_v62, 0.0  ;;  %v6300_v19 = vor.u32 %v8027_v1, %v6297_v7  ;;  %v8193_v20 = vld [vmem:[#allocation6 + $0xb0] sm:$0xff]  ;;  %v8192_v31 = vld [vmem:[#allocation6 + $0xa8] sm:$0xff] }
  0x44   : > { %848 = vst [vmem:[#allocation2 + $0x1c8] sm:$0xf] %v567_v33  ;;  %v8099_v2 = vld [vmem:[#allocation2 + $0x244] sm:$0xf]  ;;  %v8201_v21 = vld [vmem:[#allocation6 + $0xf0] sm:$0xff]  ;;  %v366_v26 = vrot.slane %v8929_v14, 7  ;;  %v603_v62 = vpack.c.bf16 %v8929_v14, %v8929_v14 }
  0x45   : > { %2406 = vmatpush.bf16.msra.mxu0 %v8174_v36  ;;  %8464 = vmatpush.bf16.msra.mxu2 %v8174_v36  ;;  %849 = vst [vmem:[#allocation2 + $0x1ec] sm:$0xf] %v568_v30  ;;  %v6585_v3 = vld [vmem:[#allocation2 + $0x264] sm:$0xf0]  ;;  %v407_v25 = vsel %vm389_vm1, %v374_v13, %v358_v9  ;;  %v382_v27 = vrot.slane %v8931_v15, 7  ;;  %v8209_v29 = vld [vmem:[#allocation6 + $0x130] sm:$0xff]  ;;  %v585_v30 = vpack.c.bf16 %v8887_v22, %v8887_v22 }
  0x46   : > { %8472 = vmatpush.bf16.msra.mxu3 %v8182_v38  ;;  %2495 = vmatpush.bf16.msra.mxu1 %v8182_v38  ;;  %787 = vst [vmem:[#allocation2 + $0x22c] sm:$0xf] %v600_v18  ;;  %v6588_v16 = vor.u32 %v8099_v2, %v6585_v3  ;;  %v424_v33 = vsel %vm355_vm0, 0.0, %v407_v25  ;;  %v8200_v34 = vld [vmem:[#allocation6 + $0xe8] sm:$0xff]  ;;  %v391_v35 = vsel %vm389_vm1, %v358_v9, %v374_v13  ;;  %s6187_s24 = sshll.u32 %s6184_s13, 4  ;;  %s8664_s12 = scalar_lea.hbm %s10512_s5, 512  ;;  %s6188_s24 = int_to_ptr.hbm [resolvable:$true] %s6187_s24 }
  0x47   : > { %878 = vst [vmem:[#allocation2 + $0x1cc] sm:$0xf] %v599_v17  ;;  %v8103_v0 = vld [vmem:[#allocation2 + $0x260] sm:$0xf0]  ;;  %v8210_v17 = vld [vmem:[#allocation6 + $0x138] sm:$0xff]  ;;  %v415_v36 = vsel %vm389_vm1, %v382_v27, %v366_v26  ;;  %v555_v37 = vpack.c.bf16 %v424_v33, %v424_v33  ;;  %v556_v38 = vpack.c.bf16 %v391_v35, %v391_v35  ;;  %v8208_v40 = vld [vmem:[#allocation6 + $0x128] sm:$0xff]  ;;  %v399_v47 = vsel %vm389_vm1, %v366_v26, %v382_v27 }
  0x48   : > { %879 = vst [vmem:[#allocation2 + $0x1f0] sm:$0xf] %v600_v18  ;;  %v6583_v63 = vld [vmem:[#allocation2 + $0x240] sm:$0xf]  ;;  %v602_v18 = vpack.c.bf16 %v8897_v28, %v8897_v28  ;;  %v440_v39 = vsel %vm355_vm0, 0.0, %v415_v36  ;;  %v293_v55 = vld [vmem:[%s8857_s16 + $0x28] sm:$0xff] }
  0x49   : > { %2407 = vmatpush.bf16.msra.mxu0 %v8173_v42  ;;  %8465 = vmatpush.bf16.msra.mxu2 %v8173_v42  ;;  %650 = vst [vmem:[#allocation2 + $0x48] sm:$0xf] %v553_v44  ;;  %v6584_v10 = vor.u32 %v8103_v0, %v6583_v63  ;;  %v571_v50 = vpack.c.bf16 %v440_v39, %v440_v39  ;;  %v8957_v61 = vmax.f32 %v293_v55, 0.0  ;;  %v308_v0 = vld [vmem:[%s8857_s16 + $0xa0] sm:$0xff]  ;;  %v309_v1 = vld [vmem:[%s8857_s16 + $0xa8] sm:$0xff]  ;;  %s8658_s29 = sshra.s32 %s6188_s24, 4  ;;  %s8659_s29 = int_to_ptr.hbm [resolvable:$true] %s8658_s29 }
  0x4a   : > { %8473 = vmatpush.bf16.msra.mxu3 %v8181_v43  ;;  %2496 = vmatpush.bf16.msra.mxu1 %v8181_v43  ;;  %651 = vst [vmem:[#allocation2 + $0x6c] sm:$0xf] %v554_v45  ;;  %v604_v63 = vpack.c.bf16 %v8931_v15, %v8931_v15  ;;  %v8207_v36 = vld [vmem:[#allocation6 + $0x120] sm:$0xff]  ;;  %s8660_s9 = scalar_lea.hbm %s8659_s29, 256  ;;  %p8665_p11 = scmp.lt.s32.totalorder %s8659_s29, %s10512_s5 }
  0x4b   : > { %740 = vst [vmem:[#allocation2 + $0xc] sm:$0xf] %v553_v44  ;;  %v375_v3 = vrot.slane %v8957_v61, 7  ;;  %p8661_p1 = scmp.ne.s32.totalorder %s8659_s29, %s8660_s9  ;;  %p8666_p2 = scmp.lt.s32.totalorder %s8664_s12, %s8660_s9 }
  0x4c   : > { %741 = vst [vmem:[#allocation2 + $0x30] sm:$0xf] %v554_v45 }
  0x4d   : > { %2408 = vmatpush.bf16.msra.mxu0 %v8172_v49  ;;  %8466 = vmatpush.bf16.msra.mxu2 %v8172_v49  ;;  %666 = vst [vmem:[#allocation2 + $0x288] sm:$0xf] %v569_v53  ;;  %p8662_p4 = pnand %p8661_p1, %p8821_p3  ;;  %p8667_p9 = por %p8666_p2, %p8665_p11 }
  0x4e   : > { %8474 = vmatpush.bf16.msra.mxu3 %v8180_v51  ;;  %2497 = vmatpush.bf16.msra.mxu1 %v8180_v51  ;;  %667 = vst [vmem:[#allocation2 + $0x2ac] sm:$0xf] %v570_v56 }
  0x4f   : > { %756 = vst [vmem:[#allocation2 + $0x24c] sm:$0xf] %v569_v53  ;;  %p8663_p8 = pneg %p8662_p4 }
  0x50   : > { %757 = vst [vmem:[#allocation2 + $0x270] sm:$0xf] %v570_v56  ;;  %v6331_v41 = vld [vmem:[#allocation2 + $0x48] sm:$0xf] }
  0x51   : > { %2409 = vmatpush.bf16.msra.mxu0 %v8171_v54  ;;  %8467 = vmatpush.bf16.msra.mxu2 %v8171_v54  ;;  %850 = vst [vmem:[#allocation2 + $0x210] sm:$0xf] %v569_v53  ;;  %v8040_v42 = vld [vmem:[#allocation2 + $0x68] sm:$0xf0]  ;;  %v572_v53 = vpack.c.bf16 %v399_v47, %v399_v47  ;;  %v292_v54 = vld [vmem:[%s8857_s16 + $0x20] sm:$0xff]  ;;  %p8668_p10 = pnand %p8667_p9, %p8663_p8 }
  0x52   : > { %8475 = vmatpush.bf16.msra.mxu3 %v8179_v58  ;;  %2498 = vmatpush.bf16.msra.mxu1 %v8179_v58  ;;  %851 = vst [vmem:[#allocation2 + $0x234] sm:$0xf] %v570_v56  ;;  %v6332_v48 = vor.u32 %v8040_v42, %v6331_v41 }
  0x53   : > { %696 = vst [vmem:[#allocation2 + $0x28c] sm:$0xf] %v601_v8 }
  0x54   : > { %2410 = vmatmul.bf16.vlgmr.msra.gmra.mxu0 %v6296_v4  ;;  %2450 = vmatmul.bf16.vlgmr.msra.gmra.mxu2 %v6584_v10  ;;  %697 = vst [vmem:[#allocation2 + $0x2b0] sm:$0xf] %v602_v18  ;;  %v6619_v43 = vld [vmem:[#allocation2 + $0x288] sm:$0xf]  ;;  %v8967_v4 = vmax.f32 %v308_v0, 0.0  ;;  %v587_v10 = vpack.c.bf16 %v8919_v57, %v8919_v57 }
  0x55   : > { %2580 = vmatpush.bf16.msrb.mxu2 %v8194_v59  ;;  %2539 = vmatmul.bf16.vlgmr.msra.gmra.mxu3 %v6588_v16  ;;  %788 = vst [vmem:[#allocation2 + $0x250] sm:$0xf] %v601_v8  ;;  %v8112_v44 = vld [vmem:[#allocation2 + $0x2a8] sm:$0xf0]  ;;  %v8955_v59 = vmax.f32 %v292_v54, 0.0 }
  0x56   : > { %2669 = vmatpush.bf16.msrb.mxu3 %v8202_v5  ;;  %2758 = vmatpush.bf16.msrb.mxu0 %v8210_v17  ;;  %789 = vst [vmem:[#allocation2 + $0x274] sm:$0xf] %v602_v18  ;;  %v6620_v49 = vor.u32 %v8112_v44, %v6619_v43  ;;  %v8969_v5 = vmax.f32 %v309_v1, 0.0  ;;  %v588_v17 = vpack.c.bf16 %v8921_v60, %v8921_v60  ;;  %v294_v44 = vld [vmem:[%s8857_s16 + $0x30] sm:$0xff] }
  0x57   : > { %2499 = vmatmul.bf16.vlgmr.msra.gmra.mxu1 %v6300_v19  ;;  %880 = vst [vmem:[#allocation2 + $0x214] sm:$0xf] %v601_v8  ;;  %v359_v2 = vrot.slane %v8955_v59, 7  ;;  %v8199_v19 = vld [vmem:[#allocation6 + $0xe0] sm:$0xff]  ;;  %v589_v1 = vpack.c.bf16 %v8955_v59, %v8955_v59 }
  0x58   : > { %881 = vst [vmem:[#allocation2 + $0x238] sm:$0xf] %v602_v18  ;;  %v8191_v18 = vld [vmem:[#allocation6 + $0xa0] sm:$0xff] }
  0x59   : > { %2581 = vmatpush.bf16.msrb.mxu2 %v8193_v20  ;;  %680 = vst [vmem:[#allocation2 + $0x4c] sm:$0xf] %v585_v30  ;;  %v408_v13 = vsel %vm389_vm1, %v375_v3, %v359_v2  ;;  %v367_v20 = vrot.slane %v8967_v4, 7 }
  0x5a   : > { %2670 = vmatpush.bf16.msrb.mxu3 %v8201_v21  ;;  %2759 = vmatpush.bf16.msrb.mxu0 %v8209_v29  ;;  %681 = vst [vmem:[#allocation2 + $0x70] sm:$0xf] %v586_v32  ;;  %v8108_v45 = vld [vmem:[#allocation2 + $0x28c] sm:$0xf]  ;;  %v383_v21 = vrot.slane %v8969_v5, 7  ;;  %v426_v25 = vsel %vm355_vm0, 0.0, %v408_v13  ;;  %v392_v29 = vsel %vm389_vm1, %v359_v2, %v375_v3 }
  0x5b   : > { %772 = vst [vmem:[#allocation2 + $0x10] sm:$0xf] %v585_v30  ;;  %v6621_v46 = vld [vmem:[#allocation2 + $0x2ac] sm:$0xf0]  ;;  %v558_v35 = vpack.c.bf16 %v392_v29, %v392_v29 }
  0x5c   : > { %773 = vst [vmem:[#allocation2 + $0x34] sm:$0xf] %v586_v32  ;;  %v6624_v51 = vor.u32 %v8108_v45, %v6621_v46  ;;  %v557_v32 = vpack.c.bf16 %v426_v25, %v426_v25  ;;  %v416_v33 = vsel %vm389_vm1, %v383_v21, %v367_v20  ;;  %v295_v45 = vld [vmem:[%s8857_s16 + $0x38] sm:$0xff]  ;;  %v8991_v46 = vmax.f32 %v294_v44, 0.0 }
  0x5d   : > { %2582 = vmatpush.bf16.msrb.mxu2 %v8192_v31  ;;  %652 = vst [vmem:[#allocation2 + $0x90] sm:$0xf] %v555_v37  ;;  %v8993_v47 = vmax.f32 %v295_v45, 0.0  ;;  %v312_v45 = vld [vmem:[%s8857_s16 + $0xc0] sm:$0xff] }
  0x5e   : > { %2671 = vmatpush.bf16.msrb.mxu3 %v8200_v34  ;;  %2760 = vmatpush.bf16.msrb.mxu0 %v8208_v40  ;;  %653 = vst [vmem:[#allocation2 + $0xb4] sm:$0xf] %v556_v38  ;;  %v360_v55 = vrot.slane %v8991_v46, 7 }
  0x5f   : > { %836 = vst [vmem:[#allocation2 + $0x18] sm:$0xf] %v555_v37 }
  0x60   : > { %v8036_v52 = vld [vmem:[#allocation2 + $0x4c] sm:$0xf]  ;;  %837 = vst [vmem:[#allocation2 + $0x3c] sm:$0xf] %v556_v38 }
  0x61   : > { %v6333_v56 = vld [vmem:[#allocation2 + $0x6c] sm:$0xf0]  ;;  %742 = vst [vmem:[#allocation2 + $0x54] sm:$0xf] %v555_v37  ;;  %2583 = vmatpush.bf16.msrb.mxu2 %v8191_v18  ;;  %v442_v37 = vsel %vm355_vm0, 0.0, %v416_v33 }
  0x62   : > { %v6336_v58 = vor.u32 %v8036_v52, %v6333_v56  ;;  %743 = vst [vmem:[#allocation2 + $0x78] sm:$0xf] %v556_v38  ;;  %2672 = vmatpush.bf16.msrb.mxu3 %v8199_v19  ;;  %2761 = vmatpush.bf16.msrb.mxu0 %v8207_v36  ;;  %v400_v38 = vsel %vm389_vm1, %v367_v20, %v383_v21  ;;  %v310_v52 = vld [vmem:[%s8857_s16 + $0xb0] sm:$0xff]  ;;  %v376_v56 = vrot.slane %v8993_v47, 7  ;;  %v296_v36 = vld [vmem:[%s8857_s16 + $0x40] sm:$0xff] }
  0x63   : > { %668 = vst [vmem:[#allocation2 + $0x2d0] sm:$0xf] %v571_v50  ;;  %v573_v41 = vpack.c.bf16 %v442_v37, %v442_v37  ;;  %v574_v43 = vpack.c.bf16 %v400_v38, %v400_v38  ;;  %v297_v37 = vld [vmem:[%s8857_s16 + $0x48] sm:$0xff]  ;;  %v9027_v38 = vmax.f32 %v296_v36, 0.0 }
  0x64   : > { %2415 = vmatmul.bf16.gmra.mxu0 %v6332_v48  ;;  %2455 = vmatmul.bf16.gmra.mxu2 %v6620_v49  ;;  %669 = vst [vmem:[#allocation2 + $0x2f4] sm:$0xf] %v572_v53  ;;  %v6367_v7 = vld [vmem:[#allocation2 + $0x90] sm:$0xf]  ;;  %v409_v2 = vsel %vm389_vm1, %v376_v56, %v360_v55 }
  0x65   : > { %2544 = vmatmul.bf16.gmra.mxu3 %v6624_v51  ;;  %758 = vst [vmem:[#allocation2 + $0x294] sm:$0xf] %v571_v50  ;;  %v8049_v8 = vld [vmem:[#allocation2 + $0xb0] sm:$0xf0]  ;;  %v606_v51 = vpack.c.bf16 %v8969_v5, %v8969_v5 }
  0x66   : > { %759 = vst [vmem:[#allocation2 + $0x2b8] sm:$0xf] %v572_v53  ;;  %v6368_v26 = vor.u32 %v8049_v8, %v6367_v7  ;;  %v590_v7 = vpack.c.bf16 %v8957_v61, %v8957_v61  ;;  %v8190_v8 = vld [vmem:[#allocation6 + $0x98] sm:$0xff] }
  0x67   : > { %2504 = vmatmul.bf16.gmra.mxu1 %v6336_v58  ;;  %852 = vst [vmem:[#allocation2 + $0x258] sm:$0xf] %v571_v50  ;;  %v605_v50 = vpack.c.bf16 %v8967_v4, %v8967_v4  ;;  %v9003_v58 = vmax.f32 %v310_v52, 0.0  ;;  %2584 = vmatpush.bf16.msrb.mxu2 %v8190_v8 }
  0x68   : > { %853 = vst [vmem:[#allocation2 + $0x27c] sm:$0xf] %v572_v53  ;;  %v311_v53 = vld [vmem:[%s8857_s16 + $0xb8] sm:$0xff] }
  0x69   : > { %698 = vst [vmem:[#allocation2 + $0x2d4] sm:$0xf] %v603_v62 }
  0x6a   : > { %699 = vst [vmem:[#allocation2 + $0x2f8] sm:$0xf] %v604_v63  ;;  %v6655_v9 = vld [vmem:[#allocation2 + $0x2d0] sm:$0xf] }
  0x6b   : > { %790 = vst [vmem:[#allocation2 + $0x298] sm:$0xf] %v603_v62  ;;  %v8121_v16 = vld [vmem:[#allocation2 + $0x2f0] sm:$0xf0] }
  0x6c   : > { %791 = vst [vmem:[#allocation2 + $0x2bc] sm:$0xf] %v604_v63  ;;  %v6656_v27 = vor.u32 %v8121_v16, %v6655_v9  ;;  %v8198_v9 = vld [vmem:[#allocation6 + $0xd8] sm:$0xff]  ;;  %v428_v16 = vsel %vm355_vm0, 0.0, %v409_v2  ;;  %v8197_v2 = vld [vmem:[#allocation6 + $0xd0] sm:$0xff] }
  0x6d   : > { %882 = vst [vmem:[#allocation2 + $0x25c] sm:$0xf] %v603_v62  ;;  %v9005_v62 = vmax.f32 %v311_v53, 0.0  ;;  %2673 = vmatpush.bf16.msrb.mxu3 %v8198_v9  ;;  %v559_v20 = vpack.c.bf16 %v428_v16, %v428_v16 }
  0x6e   : > { %883 = vst [vmem:[#allocation2 + $0x280] sm:$0xf] %v604_v63 }
  0x6f   : > { %682 = vst [vmem:[#allocation2 + $0x94] sm:$0xf] %v587_v10  ;;  %v384_v13 = vrot.slane %v9005_v62, 7  ;;  %v608_v44 = vpack.c.bf16 %v9005_v62, %v9005_v62 }
  0x70   : > { %v8117_v30 = vld [vmem:[#allocation2 + $0x2d4] sm:$0xf]  ;;  %683 = vst [vmem:[#allocation2 + $0xb8] sm:$0xf] %v588_v17 }
  0x71   : > { %v6657_v31 = vld [vmem:[#allocation2 + $0x2f4] sm:$0xf0]  ;;  %866 = vst [vmem:[#allocation2 + $0x1c] sm:$0xf] %v587_v10  ;;  %2674 = vmatpush.bf16.msrb.mxu3 %v8197_v2  ;;  %v8196_v2 = vld [vmem:[#allocation6 + $0xc8] sm:$0xff] }
  0x72   : > { %v6660_v34 = vor.u32 %v8117_v30, %v6657_v31  ;;  %867 = vst [vmem:[#allocation2 + $0x40] sm:$0xf] %v588_v17 }
  0x73   : > { %774 = vst [vmem:[#allocation2 + $0x58] sm:$0xf] %v587_v10  ;;  %v368_v10 = vrot.slane %v9003_v58, 7 }
  0x74   : > { %2420 = vmatmul.bf16.gmra.mxu0 %v6368_v26  ;;  %2460 = vmatmul.bf16.gmra.mxu2 %v6656_v27  ;;  %775 = vst [vmem:[#allocation2 + $0x7c] sm:$0xf] %v588_v17  ;;  %v393_v17 = vsel %vm389_vm1, %v360_v55, %v376_v56  ;;  %v8206_v27 = vld [vmem:[#allocation6 + $0x118] sm:$0xff]  ;;  %v591_v55 = vpack.c.bf16 %v8991_v46, %v8991_v46 }
  0x75   : > { %2549 = vmatmul.bf16.gmra.mxu3 %v6660_v34  ;;  %654 = vst [vmem:[#allocation2 + $0xd8] sm:$0xf] %v557_v32  ;;  %v417_v21 = vsel %vm389_vm1, %v384_v13, %v368_v10  ;;  %v560_v26 = vpack.c.bf16 %v393_v17, %v393_v17  ;;  %2762 = vmatpush.bf16.msrb.mxu0 %v8206_v27 }
  0x76   : > { %v8045_v39 = vld [vmem:[#allocation2 + $0x94] sm:$0xf]  ;;  %655 = vst [vmem:[#allocation2 + $0xfc] sm:$0xf] %v558_v35  ;;  %v444_v29 = vsel %vm355_vm0, 0.0, %v417_v21  ;;  %v401_v30 = vsel %vm389_vm1, %v368_v10, %v384_v13  ;;  %2675 = vmatpush.bf16.msrb.mxu3 %v8196_v2 }
  0x77   : > { %v6369_v40 = vld [vmem:[#allocation2 + $0xb4] sm:$0xf0]  ;;  %744 = vst [vmem:[#allocation2 + $0x9c] sm:$0xf] %v557_v32  ;;  %v575_v33 = vpack.c.bf16 %v444_v29, %v444_v29 }
  0x78   : > { %v6372_v42 = vor.u32 %v8045_v39, %v6369_v40  ;;  %745 = vst [vmem:[#allocation2 + $0xc0] sm:$0xf] %v558_v35  ;;  %v9029_v39 = vmax.f32 %v297_v37, 0.0 }
  0x79   : > { %838 = vst [vmem:[#allocation2 + $0x60] sm:$0xf] %v557_v32 }
  0x7a   : > { %2509 = vmatmul.bf16.gmra.mxu1 %v6372_v42  ;;  %839 = vst [vmem:[#allocation2 + $0x84] sm:$0xf] %v558_v35  ;;  %v576_v35 = vpack.c.bf16 %v401_v30, %v401_v30  ;;  %v607_v42 = vpack.c.bf16 %v9003_v58, %v9003_v58 }
  0x7b   : > { %670 = vst [vmem:[#allocation2 + $0x318] sm:$0xf] %v573_v41 }
  0x7c   : > { %v6403_v48 = vld [vmem:[#allocation2 + $0xd8] sm:$0xf]  ;;  %671 = vst [vmem:[#allocation2 + $0x33c] sm:$0xf] %v574_v43 }
  0x7d   : > { %v8058_v49 = vld [vmem:[#allocation2 + $0xf8] sm:$0xf0]  ;;  %760 = vst [vmem:[#allocation2 + $0x2dc] sm:$0xf] %v573_v41 }
  0x7e   : > { %761 = vst [vmem:[#allocation2 + $0x300] sm:$0xf] %v574_v43  ;;  %v6404_v54 = vor.u32 %v8058_v49, %v6403_v48  ;;  %v313_v48 = vld [vmem:[%s8857_s16 + $0xc8] sm:$0xff]  ;;  %v361_v49 = vrot.slane %v9027_v38, 7 }
  0x7f   : > { %854 = vst [vmem:[#allocation2 + $0x2a0] sm:$0xf] %v573_v41  ;;  %v9041_v52 = vmax.f32 %v313_v48, 0.0 }
  0x80   : > { %855 = vst [vmem:[#allocation2 + $0x2c4] sm:$0xf] %v574_v43 }
  0x81   : > { %700 = vst [vmem:[#allocation2 + $0x31c] sm:$0xf] %v605_v50 }
  0x82   : > { %v6691_v63 = vld [vmem:[#allocation2 + $0x318] sm:$0xf]  ;;  %701 = vst [vmem:[#allocation2 + $0x340] sm:$0xf] %v606_v51 }
  0x83   : > { %v8130_v0 = vld [vmem:[#allocation2 + $0x338] sm:$0xf0]  ;;  %792 = vst [vmem:[#allocation2 + $0x2e0] sm:$0xf] %v605_v50 }
  0x84   : > { %2425 = vmatmul.bf16.gmra.mxu0 %v6404_v54  ;;  %v6692_v3 = vor.u32 %v8130_v0, %v6691_v63  ;;  %793 = vst [vmem:[#allocation2 + $0x304] sm:$0xf] %v606_v51  ;;  %v592_v0 = vpack.c.bf16 %v8993_v47, %v8993_v47 }
  0x85   : > { %884 = vst [vmem:[#allocation2 + $0x2a4] sm:$0xf] %v605_v50  ;;  %v377_v50 = vrot.slane %v9029_v39, 7 }
  0x86   : > { %2465 = vmatmul.bf16.gmra.mxu2 %v6692_v3  ;;  %885 = vst [vmem:[#allocation2 + $0x2c8] sm:$0xf] %v606_v51  ;;  %v9039_v51 = vmax.f32 %v312_v45, 0.0 }
  0x87   : > { %684 = vst [vmem:[#allocation2 + $0xdc] sm:$0xf] %v589_v1  ;;  %v410_v56 = vsel %vm389_vm1, %v377_v50, %v361_v49  ;;  %v394_v9 = vsel %vm389_vm1, %v361_v49, %v377_v50 }
  0x88   : > { %v8126_v18 = vld [vmem:[#allocation2 + $0x31c] sm:$0xf]  ;;  %685 = vst [vmem:[#allocation2 + $0x100] sm:$0xf] %v590_v7  ;;  %v369_v3 = vrot.slane %v9039_v51, 7  ;;  %v430_v8 = vsel %vm355_vm0, 0.0, %v410_v56 }
  0x89   : > { %v6693_v19 = vld [vmem:[#allocation2 + $0x33c] sm:$0xf0]  ;;  %776 = vst [vmem:[#allocation2 + $0xa0] sm:$0xf] %v589_v1  ;;  %v561_v16 = vpack.c.bf16 %v430_v8, %v430_v8 }
  0x8a   : > { %v6696_v25 = vor.u32 %v8126_v18, %v6693_v19  ;;  %777 = vst [vmem:[#allocation2 + $0xc4] sm:$0xf] %v590_v7  ;;  %v562_v19 = vpack.c.bf16 %v394_v9, %v394_v9 }
  0x8b   : > { %868 = vst [vmem:[#allocation2 + $0x64] sm:$0xf] %v589_v1  ;;  %v8189_v1 = vld [vmem:[#allocation6 + $0x90] sm:$0xff] }
  0x8c   : > { %2554 = vmatmul.bf16.gmra.mxu3 %v6696_v25  ;;  %869 = vst [vmem:[#allocation2 + $0x88] sm:$0xf] %v590_v7  ;;  %v385_v7 = vrot.slane %v9041_v52, 7  ;;  %2585 = vmatpush.bf16.msrb.mxu2 %v8189_v1  ;;  %v8188_v1 = vld [vmem:[#allocation6 + $0x88] sm:$0xff] }
  0x8d   : > { %656 = vst [vmem:[#allocation2 + $0x120] sm:$0xf] %v559_v20 }
  0x8e   : > { %v8054_v31 = vld [vmem:[#allocation2 + $0xdc] sm:$0xf]  ;;  %657 = vst [vmem:[#allocation2 + $0x144] sm:$0xf] %v560_v26  ;;  %v418_v17 = vsel %vm389_vm1, %v385_v7, %v369_v3  ;;  %v402_v25 = vsel %vm389_vm1, %v369_v3, %v385_v7 }
  0x8f   : > { %v6405_v32 = vld [vmem:[#allocation2 + $0xfc] sm:$0xf0]  ;;  %746 = vst [vmem:[#allocation2 + $0xe4] sm:$0xf] %v559_v20  ;;  %v446_v21 = vsel %vm355_vm0, 0.0, %v418_v17 }
  0x90   : > { %v6408_v34 = vor.u32 %v8054_v31, %v6405_v32  ;;  %747 = vst [vmem:[#allocation2 + $0x108] sm:$0xf] %v560_v26  ;;  %v577_v29 = vpack.c.bf16 %v446_v21, %v446_v21  ;;  %v578_v31 = vpack.c.bf16 %v402_v25, %v402_v25  ;;  %v298_v32 = vld [vmem:[%s8857_s16 + $0x50] sm:$0xff]  ;;  %2586 = vmatpush.bf16.msrb.mxu2 %v8188_v1  ;;  %v8218_v21 = vld [vmem:[#allocation6 + $0x178] sm:$0xff] }
  0x91   : > { %840 = vst [vmem:[#allocation2 + $0xa8] sm:$0xf] %v559_v20  ;;  %v8205_v20 = vld [vmem:[#allocation6 + $0x110] sm:$0xff]  ;;  %2847 = vmatpush.bf16.msrb.mxu1 %v8218_v21 }
  0x92   : > { %2514 = vmatmul.bf16.gmra.mxu1 %v6408_v34  ;;  %841 = vst [vmem:[#allocation2 + $0xcc] sm:$0xf] %v560_v26  ;;  %2763 = vmatpush.bf16.msrb.mxu0 %v8205_v20  ;;  %v9063_v34 = vmax.f32 %v298_v32, 0.0  ;;  %v8204_v20 = vld [vmem:[#allocation6 + $0x108] sm:$0xff] }
  0x93   : > { %672 = vst [vmem:[#allocation2 + $0x360] sm:$0xf] %v575_v33 }
  0x94   : > { %v6439_v40 = vld [vmem:[#allocation2 + $0x120] sm:$0xf]  ;;  %673 = vst [vmem:[#allocation2 + $0x384] sm:$0xf] %v576_v35  ;;  %v362_v45 = vrot.slane %v9063_v34, 7  ;;  %v595_v2 = vpack.c.bf16 %v9063_v34, %v9063_v34 }
  0x95   : > { %v8067_v41 = vld [vmem:[#allocation2 + $0x140] sm:$0xf0]  ;;  %762 = vst [vmem:[#allocation2 + $0x324] sm:$0xf] %v575_v33 }
  0x96   : > { %v6440_v43 = vor.u32 %v8067_v41, %v6439_v40  ;;  %763 = vst [vmem:[#allocation2 + $0x348] sm:$0xf] %v576_v35  ;;  %v609_v40 = vpack.c.bf16 %v9039_v51, %v9039_v51  ;;  %2764 = vmatpush.bf16.msrb.mxu0 %v8204_v20 }
  0x97   : > { %856 = vst [vmem:[#allocation2 + $0x2e8] sm:$0xf] %v575_v33  ;;  %v299_v33 = vld [vmem:[%s8857_s16 + $0x58] sm:$0xff] }
  0x98   : > { %2430 = vmatmul.bf16.gmra.mxu0 %v6440_v43  ;;  %857 = vst [vmem:[#allocation2 + $0x30c] sm:$0xf] %v576_v35  ;;  %v9065_v35 = vmax.f32 %v299_v33, 0.0  ;;  %v314_v43 = vld [vmem:[%s8857_s16 + $0xd0] sm:$0xff]  ;;  %v300_v33 = vld [vmem:[%s8857_s16 + $0x60] sm:$0xff] }
  0x99   : > { %702 = vst [vmem:[#allocation2 + $0x364] sm:$0xf] %v607_v42  ;;  %v9075_v49 = vmax.f32 %v314_v43, 0.0 }
  0x9a   : > { %v6727_v53 = vld [vmem:[#allocation2 + $0x360] sm:$0xf]  ;;  %703 = vst [vmem:[#allocation2 + $0x388] sm:$0xf] %v608_v44  ;;  %v378_v48 = vrot.slane %v9065_v35, 7 }
  0x9b   : > { %v8139_v54 = vld [vmem:[#allocation2 + $0x380] sm:$0xf0]  ;;  %794 = vst [vmem:[#allocation2 + $0x328] sm:$0xf] %v607_v42  ;;  %v370_v3 = vrot.slane %v9075_v49, 7  ;;  %v611_v43 = vpack.c.bf16 %v9075_v49, %v9075_v49 }
  0x9c   : > { %v6728_v63 = vor.u32 %v8139_v54, %v6727_v53  ;;  %795 = vst [vmem:[#allocation2 + $0x34c] sm:$0xf] %v608_v44  ;;  %v411_v56 = vsel %vm389_vm1, %v378_v48, %v362_v45  ;;  %v395_v9 = vsel %vm389_vm1, %v362_v45, %v378_v48  ;;  %v316_v48 = vld [vmem:[%s8857_s16 + $0xe0] sm:$0xff] }
  0x9d   : > { %886 = vst [vmem:[#allocation2 + $0x2ec] sm:$0xf] %v607_v42  ;;  %v610_v42 = vpack.c.bf16 %v9041_v52, %v9041_v52  ;;  %v432_v8 = vsel %vm355_vm0, 0.0, %v411_v56  ;;  %v9111_v56 = vmax.f32 %v316_v48, 0.0  ;;  %v8214_v48 = vld [vmem:[#allocation6 + $0x158] sm:$0xff] }
  0x9e   : > { %2470 = vmatmul.bf16.gmra.mxu2 %v6728_v63  ;;  %887 = vst [vmem:[#allocation2 + $0x310] sm:$0xf] %v608_v44  ;;  %v315_v44 = vld [vmem:[%s8857_s16 + $0xd8] sm:$0xff] }
  0x9f   : > { %686 = vst [vmem:[#allocation2 + $0x124] sm:$0xf] %v591_v55  ;;  %v9077_v50 = vmax.f32 %v315_v44, 0.0 }
  0xa0   : > { %v8135_v10 = vld [vmem:[#allocation2 + $0x364] sm:$0xf]  ;;  %687 = vst [vmem:[#allocation2 + $0x148] sm:$0xf] %v592_v0 }
  0xa1   : > { %v6729_v13 = vld [vmem:[#allocation2 + $0x384] sm:$0xf0]  ;;  %778 = vst [vmem:[#allocation2 + $0xe8] sm:$0xf] %v591_v55  ;;  %v386_v7 = vrot.slane %v9077_v50, 7  ;;  %v612_v45 = vpack.c.bf16 %v9077_v50, %v9077_v50 }
  0xa2   : > { %v6732_v18 = vor.u32 %v8135_v10, %v6729_v13  ;;  %779 = vst [vmem:[#allocation2 + $0x10c] sm:$0xf] %v592_v0 }
  0xa3   : > { %870 = vst [vmem:[#allocation2 + $0xac] sm:$0xf] %v591_v55  ;;  %v593_v55 = vpack.c.bf16 %v9027_v38, %v9027_v38  ;;  %v419_v17 = vsel %vm389_vm1, %v386_v7, %v370_v3 }
  0xa4   : > { %2559 = vmatmul.bf16.gmra.mxu3 %v6732_v18  ;;  %871 = vst [vmem:[#allocation2 + $0xd0] sm:$0xf] %v592_v0  ;;  %v594_v0 = vpack.c.bf16 %v9029_v39, %v9029_v39  ;;  %v448_v25 = vsel %vm355_vm0, 0.0, %v419_v17 }
  0xa5   : > { %658 = vst [vmem:[#allocation2 + $0x168] sm:$0xf] %v561_v16 }
  0xa6   : > { %v8063_v26 = vld [vmem:[#allocation2 + $0x124] sm:$0xf]  ;;  %659 = vst [vmem:[#allocation2 + $0x18c] sm:$0xf] %v562_v19 }
  0xa7   : > { %v6441_v27 = vld [vmem:[#allocation2 + $0x144] sm:$0xf0]  ;;  %748 = vst [vmem:[#allocation2 + $0x12c] sm:$0xf] %v561_v16 }
  0xa8   : > { %v6444_v30 = vor.u32 %v8063_v26, %v6441_v27  ;;  %749 = vst [vmem:[#allocation2 + $0x150] sm:$0xf] %v562_v19  ;;  %v403_v26 = vsel %vm389_vm1, %v370_v3, %v386_v7  ;;  %v8217_v7 = vld [vmem:[#allocation6 + $0x170] sm:$0xff] }
  0xa9   : > { %842 = vst [vmem:[#allocation2 + $0xf0] sm:$0xf] %v561_v16  ;;  %v563_v16 = vpack.c.bf16 %v432_v8, %v432_v8  ;;  %v580_v32 = vpack.c.bf16 %v403_v26, %v403_v26  ;;  %2848 = vmatpush.bf16.msrb.mxu1 %v8217_v7 }
  0xaa   : > { %2519 = vmatmul.bf16.gmra.mxu1 %v6444_v30  ;;  %843 = vst [vmem:[#allocation2 + $0x114] sm:$0xf] %v562_v19  ;;  %v564_v19 = vpack.c.bf16 %v395_v9, %v395_v9  ;;  %v579_v30 = vpack.c.bf16 %v448_v25, %v448_v25  ;;  %v596_v9 = vpack.c.bf16 %v9065_v35, %v9065_v35 }
  0xab   : > { %674 = vst [vmem:[#allocation2 + $0x3a8] sm:$0xf] %v577_v29 }
  0xac   : > { %v6475_v36 = vld [vmem:[#allocation2 + $0x168] sm:$0xf]  ;;  %675 = vst [vmem:[#allocation2 + $0x3cc] sm:$0xf] %v578_v31 }
  0xad   : > { %v8076_v37 = vld [vmem:[#allocation2 + $0x188] sm:$0xf0]  ;;  %764 = vst [vmem:[#allocation2 + $0x36c] sm:$0xf] %v577_v29 }
  0xae   : > { %v6476_v41 = vor.u32 %v8076_v37, %v6475_v36  ;;  %765 = vst [vmem:[#allocation2 + $0x390] sm:$0xf] %v578_v31  ;;  %v301_v36 = vld [vmem:[%s8857_s16 + $0x68] sm:$0xff]  ;;  %v9099_v37 = vmax.f32 %v300_v33, 0.0 }
  0xaf   : > { %858 = vst [vmem:[#allocation2 + $0x330] sm:$0xf] %v577_v29 }
  0xb0   : > { %2435 = vmatmul.bf16.gmra.mxu0 %v6476_v41  ;;  %859 = vst [vmem:[#allocation2 + $0x354] sm:$0xf] %v578_v31 }
  0xb1   : > { %704 = vst [vmem:[#allocation2 + $0x3ac] sm:$0xf] %v609_v40 }
  0xb2   : > { %v6763_v53 = vld [vmem:[#allocation2 + $0x3a8] sm:$0xf]  ;;  %705 = vst [vmem:[#allocation2 + $0x3d0] sm:$0xf] %v610_v42 }
  0xb3   : > { %v8148_v54 = vld [vmem:[#allocation2 + $0x3c8] sm:$0xf0]  ;;  %796 = vst [vmem:[#allocation2 + $0x370] sm:$0xf] %v609_v40 }
  0xb4   : > { %v6764_v63 = vor.u32 %v8148_v54, %v6763_v53  ;;  %797 = vst [vmem:[#allocation2 + $0x394] sm:$0xf] %v610_v42  ;;  %v317_v53 = vld [vmem:[%s8857_s16 + $0xe8] sm:$0xff]  ;;  %v363_v54 = vrot.slane %v9099_v37, 7 }
  0xb5   : > { %888 = vst [vmem:[#allocation2 + $0x334] sm:$0xf] %v609_v40  ;;  %v9101_v40 = vmax.f32 %v301_v36, 0.0 }
  0xb6   : > { %2475 = vmatmul.bf16.gmra.mxu2 %v6764_v63  ;;  %889 = vst [vmem:[#allocation2 + $0x358] sm:$0xf] %v610_v42  ;;  %v9113_v63 = vmax.f32 %v317_v53, 0.0 }
  0xb7   : > { %688 = vst [vmem:[#allocation2 + $0x16c] sm:$0xf] %v593_v55 }
  0xb8   : > { %v8144_v10 = vld [vmem:[#allocation2 + $0x3ac] sm:$0xf]  ;;  %689 = vst [vmem:[#allocation2 + $0x190] sm:$0xf] %v594_v0  ;;  %v387_v17 = vrot.slane %v9113_v63, 7 }
  0xb9   : > { %v6765_v13 = vld [vmem:[#allocation2 + $0x3cc] sm:$0xf0]  ;;  %780 = vst [vmem:[#allocation2 + $0x130] sm:$0xf] %v593_v55 }
  0xba   : > { %v6768_v18 = vor.u32 %v8144_v10, %v6765_v13  ;;  %781 = vst [vmem:[#allocation2 + $0x154] sm:$0xf] %v594_v0  ;;  %v8187_v10 = vld [vmem:[#allocation6 + $0x80] sm:$0xff] }
  0xbb   : > { %872 = vst [vmem:[#allocation2 + $0xf4] sm:$0xf] %v593_v55  ;;  %v379_v55 = vrot.slane %v9101_v40, 7  ;;  %v8195_v13 = vld [vmem:[#allocation6 + $0xc0] sm:$0xff]  ;;  %2587 = vmatpush.bf16.msrb.mxu2 %v8187_v10 }
  0xbc   : > { %2564 = vmatmul.bf16.gmra.mxu3 %v6768_v18  ;;  %873 = vst [vmem:[#allocation2 + $0x118] sm:$0xf] %v594_v0 }
  0xbd   : > { %660 = vst [vmem:[#allocation2 + $0x1b0] sm:$0xf] %v563_v16  ;;  %v412_v3 = vsel %vm389_vm1, %v379_v55, %v363_v54  ;;  %2676 = vmatpush.bf16.msrb.mxu3 %v8195_v13  ;;  %v8234_v13 = vld [vmem:[#allocation6 + $0x1f8] sm:$0xff] }
  0xbe   : > { %v8072_v27 = vld [vmem:[#allocation2 + $0x16c] sm:$0xf]  ;;  %661 = vst [vmem:[#allocation2 + $0x1d4] sm:$0xf] %v564_v19  ;;  %v434_v18 = vsel %vm355_vm0, 0.0, %v412_v3  ;;  %v8213_v3 = vld [vmem:[#allocation6 + $0x150] sm:$0xff] }
  0xbf   : > { %v6477_v29 = vld [vmem:[#allocation2 + $0x18c] sm:$0xf0]  ;;  %750 = vst [vmem:[#allocation2 + $0x174] sm:$0xf] %v563_v16  ;;  %v565_v25 = vpack.c.bf16 %v434_v18, %v434_v18 }
  0xc0   : > { %v6480_v31 = vor.u32 %v8072_v27, %v6477_v29  ;;  %751 = vst [vmem:[#allocation2 + $0x198] sm:$0xf] %v564_v19  ;;  %v8216_v27 = vld [vmem:[#allocation6 + $0x168] sm:$0xff] }
  0xc1   : > { %844 = vst [vmem:[#allocation2 + $0x138] sm:$0xf] %v563_v16  ;;  %v371_v16 = vrot.slane %v9111_v56, 7  ;;  %2849 = vmatpush.bf16.msrb.mxu1 %v8216_v27  ;;  %3025 = vmatpush.bf16.msra.mxu3 %v8234_v13  ;;  %v9151_v27 = vadd.s32 8, %v8867_v6  ;;  %v457_v13 = vrot.slane %v8919_v57, 1 }
  0xc2   : > { %2524 = vmatmul.bf16.gmra.mxu1 %v6480_v31  ;;  %845 = vst [vmem:[#allocation2 + $0x15c] sm:$0xf] %v564_v19  ;;  %v396_v19 = vsel %vm389_vm1, %v363_v54, %v379_v55  ;;  %v8203_v31 = vld [vmem:[#allocation6 + $0x100] sm:$0xff] }
  0xc3   : > { %676 = vst [vmem:[#allocation2 + $0x3f0] sm:$0xf] %v579_v30  ;;  %v420_v26 = vsel %vm389_vm1, %v387_v17, %v371_v16  ;;  %2765 = vmatpush.bf16.msrb.mxu0 %v8203_v31  ;;  %vm455_vm3 = vcmp.eq.s32.totalorder %v9151_v27, 15 }
  0xc4   : > { %v6511_v41 = vld [vmem:[#allocation2 + $0x1b0] sm:$0xf]  ;;  %677 = vst [vmem:[#allocation2 + $0x414] sm:$0xf] %v580_v32  ;;  %v450_v36 = vsel %vm355_vm0, 0.0, %v420_v26  ;;  %v8212_v26 = vld [vmem:[#allocation6 + $0x148] sm:$0xff] }
  0xc5   : > { %v8085_v42 = vld [vmem:[#allocation2 + $0x1d0] sm:$0xf0]  ;;  %766 = vst [vmem:[#allocation2 + $0x3b4] sm:$0xf] %v579_v30 }
  0xc6   : > { %v6512_v44 = vor.u32 %v8085_v42, %v6511_v41  ;;  %767 = vst [vmem:[#allocation2 + $0x3d8] sm:$0xf] %v580_v32  ;;  %v404_v41 = vsel %vm389_vm1, %v371_v16, %v387_v17 }
  0xc7   : > { %860 = vst [vmem:[#allocation2 + $0x378] sm:$0xf] %v579_v30  ;;  %v566_v30 = vpack.c.bf16 %v396_v19, %v396_v19  ;;  %v582_v54 = vpack.c.bf16 %v404_v41, %v404_v41 }
  0xc8   : > { %2440 = vmatmul.bf16.gmra.mxu0 %v6512_v44  ;;  %861 = vst [vmem:[#allocation2 + $0x39c] sm:$0xf] %v580_v32  ;;  %v8215_v32 = vld [vmem:[#allocation6 + $0x160] sm:$0xff] }
  0xc9   : > { %706 = vst [vmem:[#allocation2 + $0x3f4] sm:$0xf] %v611_v43  ;;  %2850 = vmatpush.bf16.msrb.mxu1 %v8215_v32 }
  0xca   : > { %v6799_v0 = vld [vmem:[#allocation2 + $0x3f0] sm:$0xf]  ;;  %707 = vst [vmem:[#allocation2 + $0x418] sm:$0xf] %v612_v45 }
  0xcb   : > { %v8157_v1 = vld [vmem:[#allocation2 + $0x410] sm:$0xf0]  ;;  %798 = vst [vmem:[#allocation2 + $0x3b8] sm:$0xf] %v611_v43 }
  0xcc   : > { %v6800_v8 = vor.u32 %v8157_v1, %v6799_v0  ;;  %799 = vst [vmem:[#allocation2 + $0x3dc] sm:$0xf] %v612_v45  ;;  %v8226_v1 = vld [vmem:[#allocation6 + $0x1b8] sm:$0xff] }
  0xcd   : > { %890 = vst [vmem:[#allocation2 + $0x37c] sm:$0xf] %v611_v43  ;;  %v9136_v43 = vld [vmem:[%s10509_s2] ss:$0 sm:$0xff]  ;;  %2851 = vmatpush.bf16.msrb.mxu1 %v8214_v48  ;;  %2936 = vmatpush.bf16.msra.mxu2 %v8226_v1 }
  0xce   : > { %2480 = vmatmul.bf16.gmra.mxu2 %v6800_v8  ;;  %891 = vst [vmem:[#allocation2 + $0x3a0] sm:$0xf] %v612_v45  ;;  %v581_v45 = vpack.c.bf16 %v450_v36, %v450_v36  ;;  %v8211_v36 = vld [vmem:[#allocation6 + $0x140] sm:$0xff] }
  0xcf   : > { %690 = vst [vmem:[#allocation2 + $0x1b4] sm:$0xf] %v595_v2 }
  0xd0   : > { %v8153_v20 = vld [vmem:[#allocation2 + $0x3f4] sm:$0xf]  ;;  %691 = vst [vmem:[#allocation2 + $0x1d8] sm:$0xf] %v596_v9 }
  0xd1   : > { %v6801_v21 = vld [vmem:[#allocation2 + $0x414] sm:$0xf0]  ;;  %782 = vst [vmem:[#allocation2 + $0x178] sm:$0xf] %v595_v2  ;;  %v2411_v33 = vpop.f32.mrf.mxu0  ;;  %2852 = vmatpush.bf16.msrb.mxu1 %v8213_v3 }
  0xd2   : > { %v6804_v29 = vor.u32 %v8153_v20, %v6801_v21  ;;  %783 = vst [vmem:[#allocation2 + $0x19c] sm:$0xf] %v596_v9  ;;  %v2412_v55 = vadd.f32 %v9136_v43, %v2411_v33  ;;  %v614_v20 = vpack.c.bf16 %v9113_v63, %v9113_v63  ;;  %v8242_v21 = vld [vmem:[#allocation6 + $0x238] sm:$0xff]  ;;  %v597_v33 = vpack.c.bf16 %v9099_v37, %v9099_v37 }
  0xd3   : > { %874 = vst [vmem:[#allocation2 + $0x13c] sm:$0xf] %v595_v2  ;;  %3114 = vmatpush.bf16.msra.mxu0 %v8242_v21 }
  0xd4   : > { %2569 = vmatmul.bf16.gmra.mxu3 %v6804_v29  ;;  %875 = vst [vmem:[#allocation2 + $0x160] sm:$0xf] %v596_v9  ;;  %v2500_v2 = vpop.f32.mrf.mxu1  ;;  %v613_v9 = vpack.c.bf16 %v9111_v56, %v9111_v56  ;;  %v456_v29 = vrot.slane %v8887_v22, 1  ;;  %v598_v22 = vpack.c.bf16 %v9101_v40, %v9101_v40 }
  0xd5   : > { %662 = vst [vmem:[#allocation2 + $0x1f8] sm:$0xf] %v565_v25  ;;  %v9141_v10 = vadd.f32 %v2500_v2, %v2412_v55  ;;  %2853 = vmatpush.bf16.msrb.mxu1 %v8212_v26  ;;  %v8033_v2 = vld [vmem:[#allocation2 + $0x30] sm:$0xf0] }
  0xd6   : > { %v8081_v42 = vld [vmem:[#allocation2 + $0x1b4] sm:$0xf]  ;;  %663 = vst [vmem:[#allocation2 + $0x21c] sm:$0xf] %v566_v30 }
  0xd7   : > { %v6513_v44 = vld [vmem:[#allocation2 + $0x1d4] sm:$0xf0]  ;;  %752 = vst [vmem:[#allocation2 + $0x1bc] sm:$0xf] %v565_v25  ;;  %v2451_v7 = vpop.f32.mrf.mxu2 }
  0xd8   : > { %v6516_v53 = vor.u32 %v8081_v42, %v6513_v44  ;;  %753 = vst [vmem:[#allocation2 + $0x1e0] sm:$0xf] %v566_v30  ;;  %v2452_v16 = vadd.f32 %v9136_v43, %v2451_v7  ;;  %v2540_v17 = vpop.f32.mrf.mxu3 }
  0xd9   : > { %846 = vst [vmem:[#allocation2 + $0x180] sm:$0xf] %v565_v25  ;;  %v9144_v18 = vpop.f32.mrf.mxu0  ;;  %2854 = vmatpush.bf16.msrb.mxu1 %v8211_v36  ;;  %v6303_v36 = vld [vmem:[#allocation2 + $0x8] sm:$0xf] }
  0xda   : > { %2529 = vmatmul.bf16.gmra.mxu1 %v6516_v53  ;;  %847 = vst [vmem:[#allocation2 + $0x1a4] sm:$0xf] %v566_v30  ;;  %v9148_v25 = vadd.f32 %v2540_v17, %v2452_v16  ;;  %v472_v30 = vrot.slane %v8889_v23, 1  ;;  %v473_v16 = vrot.slane %v8921_v60, 1 }
  0xdb   : > { %678 = vst [vmem:[#allocation2 + $0x438] sm:$0xf] %v581_v45 }
  0xdc   : > { %v6547_v0 = vld [vmem:[#allocation2 + $0x1f8] sm:$0xf]  ;;  %679 = vst [vmem:[#allocation2 + $0x45c] sm:$0xf] %v582_v54  ;;  %v9160_v42 = vpop.f32.mrf.mxu1  ;;  %v505_v44 = vsel %vm488_vm2, %v472_v30, %v456_v29  ;;  %v489_v53 = vsel %vm488_vm2, %v456_v29, %v472_v30  ;;  %v490_v21 = vsel %vm488_vm2, %v457_v13, %v473_v16  ;;  %v506_v26 = vsel %vm488_vm2, %v473_v16, %v457_v13  ;;  %v8042_v13 = vld [vmem:[#allocation2 + $0x78] sm:$0xf0] }
  0xdd   : > { %v8094_v8 = vld [vmem:[#allocation2 + $0x218] sm:$0xf0]  ;;  %768 = vst [vmem:[#allocation2 + $0x3fc] sm:$0xf] %v581_v45  ;;  %v617_v3 = vpack.c.bf16 %v489_v53, %v489_v53  ;;  %v524_v60 = vsel %vm455_vm3, 0.0, %v506_v26 }
  0xde   : > { %v6548_v19 = vor.u32 %v8094_v8, %v6547_v0  ;;  %769 = vst [vmem:[#allocation2 + $0x420] sm:$0xf] %v582_v54  ;;  %v6311_v0 = vld [vmem:[#allocation2 + $0x10] sm:$0xf] }
  0xdf   : > { %862 = vst [vmem:[#allocation2 + $0x3c0] sm:$0xf] %v581_v45  ;;  %v9162_v23 = vpop.f32.mrf.mxu2  ;;  %v6312_v17 = vor.u32 %v8033_v2, %v6311_v0  ;;  %v6305_v2 = vld [vmem:[#allocation2 + $0x2c] sm:$0xf0] }
  0xe0   : > { %2445 = vmatmul.bf16.gmra.mxu0 %v6548_v19  ;;  %863 = vst [vmem:[#allocation2 + $0x3e4] sm:$0xf] %v582_v54  ;;  %v9167_v45 = vpop.f32.mrf.mxu3  ;;  %v522_v54 = vsel %vm455_vm3, 0.0, %v505_v44  ;;  %v8032_v44 = vld [vmem:[#allocation2 + $0x28] sm:$0xf0] }
  0xe1   : > { %708 = vst [vmem:[#allocation2 + $0x43c] sm:$0xf] %v613_v9  ;;  %v2416_v48 = vpop.f32.mrf.mxu0 }
  0xe2   : > { %v6835_v31 = vld [vmem:[#allocation2 + $0x438] sm:$0xf]  ;;  %709 = vst [vmem:[#allocation2 + $0x460] sm:$0xf] %v614_v20  ;;  %v2417_v7 = vadd.f32 %v9136_v43, %v2416_v48 }
  0xe3   : > { %v8166_v32 = vld [vmem:[#allocation2 + $0x458] sm:$0xf0]  ;;  %800 = vst [vmem:[#allocation2 + $0x400] sm:$0xf] %v613_v9 }
  0xe4   : > { %v6836_v41 = vor.u32 %v8166_v32, %v6835_v31  ;;  %801 = vst [vmem:[#allocation2 + $0x424] sm:$0xf] %v614_v20  ;;  %v2505_v19 = vpop.f32.mrf.mxu1  ;;  %v619_v32 = vpack.c.bf16 %v490_v21, %v490_v21 }
  0xe5   : > { %892 = vst [vmem:[#allocation2 + $0x3c4] sm:$0xf] %v613_v9  ;;  %v618_v9 = vpack.c.bf16 %v522_v54, %v522_v54  ;;  %v9180_v29 = vadd.f32 %v2505_v19, %v2417_v7  ;;  %v6304_v54 = vor.u32 %v8032_v44, %v6303_v36  ;;  %v474_v19 = vrot.slane %v8957_v61, 1  ;;  %v8241_v61 = vld [vmem:[#allocation6 + $0x230] sm:$0xff] }
  0xe6   : > { %2485 = vmatmul.bf16.gmra.mxu2 %v6836_v41  ;;  %893 = vst [vmem:[#allocation2 + $0x3e8] sm:$0xf] %v614_v20  ;;  %v620_v41 = vpack.c.bf16 %v524_v60, %v524_v60  ;;  %v8233_v60 = vld [vmem:[#allocation6 + $0x1f0] sm:$0xff]  ;;  %3115 = vmatpush.bf16.msra.mxu0 %v8241_v61 }
  0xe7   : > { %692 = vst [vmem:[#allocation2 + $0x1fc] sm:$0xf] %v597_v33  ;;  %v2456_v20 = vpop.f32.mrf.mxu2  ;;  %3026 = vmatpush.bf16.msra.mxu3 %v8233_v60  ;;  %v459_v60 = vrot.slane %v8991_v46, 1 }
  0xe8   : > { %v8162_v55 = vld [vmem:[#allocation2 + $0x43c] sm:$0xf]  ;;  %693 = vst [vmem:[#allocation2 + $0x220] sm:$0xf] %v598_v22  ;;  %v2457_v30 = vadd.f32 %v9136_v43, %v2456_v20  ;;  %v2545_v57 = vpop.f32.mrf.mxu3 }
  0xe9   : > { %v6837_v1 = vld [vmem:[#allocation2 + $0x45c] sm:$0xf0]  ;;  %784 = vst [vmem:[#allocation2 + $0x1c0] sm:$0xf] %v597_v33  ;;  %v9183_v31 = vpop.f32.mrf.mxu0 }
  0xea   : > { %v6840_v8 = vor.u32 %v8162_v55, %v6837_v1  ;;  %785 = vst [vmem:[#allocation2 + $0x1e4] sm:$0xf] %v598_v22  ;;  %v9187_v48 = vadd.f32 %v2545_v57, %v2457_v30  ;;  %v8028_v1 = vld [vmem:[#allocation2 + $0xc] sm:$0xf]  ;;  %v8225_v30 = vld [vmem:[#allocation6 + $0x1b0] sm:$0xff] }
  0xeb   : > { %876 = vst [vmem:[#allocation2 + $0x184] sm:$0xf] %v597_v33  ;;  %2937 = vmatpush.bf16.msra.mxu2 %v8225_v30 }
  0xec   : > { %2574 = vmatmul.bf16.gmra.mxu3 %v6840_v8  ;;  %877 = vst [vmem:[#allocation2 + $0x1a8] sm:$0xf] %v598_v22  ;;  %v9189_v55 = vpop.f32.mrf.mxu1  ;;  %v6308_v8 = vor.u32 %v8028_v1, %v6305_v2 }
  0xed   : > { %804 = vst [vmem:[#allocation2 + $0x14] sm:$0xf] %v617_v3 }
  0xee   : > { %v8090_v33 = vld [vmem:[#allocation2 + $0x1fc] sm:$0xf]  ;;  %805 = vst [vmem:[#allocation2 + $0x38] sm:$0xf] %v618_v9 }
  0xef   : > { %v6549_v22 = vld [vmem:[#allocation2 + $0x21c] sm:$0xf0]  ;;  %710 = vst [vmem:[#allocation2 + $0x50] sm:$0xf] %v617_v3  ;;  %v9191_v0 = vpop.f32.mrf.mxu2 }
  0xf0   : > { %v6552_v53 = vor.u32 %v8090_v33, %v6549_v22  ;;  %2766 = vmatmul.bf16.vlgmr.msrb.gmra.mxu0 %v6312_v17  ;;  %711 = vst [vmem:[#allocation2 + $0x74] sm:$0xf] %v618_v9  ;;  %v9193_v7 = vpop.f32.mrf.mxu3  ;;  %v6347_v9 = vld [vmem:[#allocation2 + $0x58] sm:$0xf]  ;;  %v458_v17 = vrot.slane %v8955_v59, 1 }
  0xf1   : > { %806 = vst [vmem:[#allocation2 + $0x5c] sm:$0xf] %v619_v32  ;;  %v2421_v3 = vpop.f32.mrf.mxu0  ;;  %v6348_v26 = vor.u32 %v8042_v13, %v6347_v9 }
  0xf2   : > { %2534 = vmatmul.bf16.gmra.mxu1 %v6552_v53  ;;  %807 = vst [vmem:[#allocation2 + $0x80] sm:$0xf] %v620_v41  ;;  %v2422_v16 = vadd.f32 %v9136_v43, %v2421_v3  ;;  %v491_v33 = vsel %vm488_vm2, %v458_v17, %v474_v19  ;;  %v507_v36 = vsel %vm488_vm2, %v474_v19, %v458_v17  ;;  %v8037_v17 = vld [vmem:[#allocation2 + $0x54] sm:$0xf]  ;;  %v6341_v19 = vld [vmem:[#allocation2 + $0x74] sm:$0xf0] }
  0xf3   : > { %896 = vst [vmem:[#allocation2 + $0x20] sm:$0xf] %v619_v32  ;;  %v526_v44 = vsel %vm455_vm3, 0.0, %v507_v36  ;;  %v621_v53 = vpack.c.bf16 %v491_v33, %v491_v33  ;;  %v6344_v30 = vor.u32 %v8037_v17, %v6341_v19 }
  0xf4   : > { %897 = vst [vmem:[#allocation2 + $0x44] sm:$0xf] %v620_v41  ;;  %v8029_v20 = vld [vmem:[#allocation2 + $0x14] sm:$0xf]  ;;  %v622_v1 = vpack.c.bf16 %v526_v44, %v526_v44 }
  0xf5   : > { %712 = vst [vmem:[#allocation2 + $0x98] sm:$0xf] %v619_v32  ;;  %v6313_v21 = vld [vmem:[#allocation2 + $0x34] sm:$0xf0] }
  0xf6   : > { %2588 = vmatmul.bf16.vlgmr.msrb.gmra.mxu2 %v6304_v54  ;;  %713 = vst [vmem:[#allocation2 + $0xbc] sm:$0xf] %v620_v41  ;;  %v6316_v54 = vor.u32 %v8029_v20, %v6313_v21  ;;  %v6339_v2 = vld [vmem:[#allocation2 + $0x50] sm:$0xf] }
  0xf7   : > { %v2510_v57 = vpop.f32.mrf.mxu1  ;;  %v2461_v32 = vpop.f32.mrf.mxu2  ;;  %v8041_v3 = vld [vmem:[#allocation2 + $0x70] sm:$0xf0]  ;;  %808 = vst [vmem:[#allocation2 + $0xa4] sm:$0xf] %v621_v53 }
  0xf8   : > { %v9202_v41 = vadd.f32 %v2510_v57, %v2422_v16  ;;  %v2462_v59 = vadd.f32 %v9136_v43, %v2461_v32  ;;  %v2550_v22 = vpop.f32.mrf.mxu3  ;;  %809 = vst [vmem:[#allocation2 + $0xc8] sm:$0xf] %v622_v1  ;;  %v6340_v13 = vor.u32 %v8041_v3, %v6339_v2  ;;  %v8051_v57 = vld [vmem:[#allocation2 + $0xc0] sm:$0xf0]  ;;  %v475_v32 = vrot.slane %v8993_v47, 1 }
  0xf9   : > { %v9209_v9 = vpop.f32.mrf.mxu0  ;;  %714 = vst [vmem:[#allocation2 + $0xe0] sm:$0xf] %v621_v53  ;;  %v8038_v33 = vld [vmem:[#allocation2 + $0x5c] sm:$0xf]  ;;  %v6349_v36 = vld [vmem:[#allocation2 + $0x7c] sm:$0xf0] }
  0xfa   : > { %715 = vst [vmem:[#allocation2 + $0x104] sm:$0xf] %v622_v1  ;;  %v6352_v2 = vor.u32 %v8038_v33, %v6349_v36  ;;  %v6377_v33 = vld [vmem:[#allocation2 + $0xbc] sm:$0xf0] }
  0xfb   : > { %898 = vst [vmem:[#allocation2 + $0x68] sm:$0xf] %v621_v53  ;;  %v492_v53 = vsel %vm488_vm2, %v459_v60, %v475_v32 }
  0xfc   : > { %2677 = vmatmul.bf16.vlgmr.msrb.gmra.mxu3 %v6308_v8  ;;  %v9207_v8 = vadd.f32 %v2550_v22, %v2462_v59  ;;  %899 = vst [vmem:[#allocation2 + $0x8c] sm:$0xf] %v622_v1  ;;  %v623_v47 = vpack.c.bf16 %v492_v53, %v492_v53  ;;  %v460_v53 = vrot.slane %v9027_v38, 1 }
  0xfd   : > { %v8050_v17 = vld [vmem:[#allocation2 + $0xb8] sm:$0xf0] }
  0xfe   : > { %810 = vst [vmem:[#allocation2 + $0xec] sm:$0xf] %v623_v47 }
  0xff   : > { %v9211_v16 = vpop.f32.mrf.mxu2  ;;  %v9213_v20 = vpop.f32.mrf.mxu1  ;;  %716 = vst [vmem:[#allocation2 + $0x128] sm:$0xf] %v623_v47 }
 0x100   : > { %2771 = vmatmul.bf16.gmra.mxu0 %v6348_v26  ;;  %10518 = vst [vmem:[#allocation13_spill] sm:$0xff] %v9211_v16  ;;  %v9215_v21 = vpop.f32.mrf.mxu3  ;;  %v6383_v26 = vld [vmem:[#allocation2 + $0xa0] sm:$0xf] }
 0x101   : > { %10519 = vst [vmem:[#allocation14_spill] sm:$0xff] %v9215_v21  ;;  %v2426_v59 = vpop.f32.mrf.mxu0  ;;  %v6384_v22 = vor.u32 %v8051_v57, %v6383_v26 }
 0x102   : > { %2855 = vmatmul.bf16.vlgmr.msrb.gmra.mxu1 %v6316_v54  ;;  %v2427_v61 = vadd.f32 %v9136_v43, %v2426_v59  ;;  %v508_v54 = vsel %vm488_vm2, %v475_v32, %v459_v60  ;;  %900 = vst [vmem:[#allocation2 + $0xb0] sm:$0xf] %v623_v47  ;;  %v8046_v32 = vld [vmem:[#allocation2 + $0x9c] sm:$0xf]  ;;  %v8224_v47 = vld [vmem:[#allocation6 + $0x1a8] sm:$0xff] }
 0x103   : > { %v528_v46 = vsel %vm455_vm3, 0.0, %v508_v54  ;;  %v476_v54 = vrot.slane %v9029_v39, 1  ;;  %2938 = vmatpush.bf16.msra.mxu2 %v8224_v47  ;;  %v6413_v47 = vld [vmem:[#allocation2 + $0x104] sm:$0xf0] }
 0x104   : > { %v624_v3 = vpack.c.bf16 %v528_v46, %v528_v46  ;;  %v6385_v46 = vld [vmem:[#allocation2 + $0xc4] sm:$0xf0] }
 0x106   : > { %2593 = vmatmul.bf16.gmra.mxu2 %v6340_v13  ;;  %v6375_v13 = vld [vmem:[#allocation2 + $0x98] sm:$0xf]  ;;  %811 = vst [vmem:[#allocation2 + $0x110] sm:$0xf] %v624_v3 }
 0x107   : > { %v6376_v60 = vor.u32 %v8050_v17, %v6375_v13  ;;  %717 = vst [vmem:[#allocation2 + $0x14c] sm:$0xf] %v624_v3  ;;  %v8240_v13 = vld [vmem:[#allocation6 + $0x228] sm:$0xff]  ;;  %v493_v17 = vsel %vm488_vm2, %v460_v53, %v476_v54 }
 0x108   : > { %901 = vst [vmem:[#allocation2 + $0xd4] sm:$0xf] %v624_v3  ;;  %v8232_v3 = vld [vmem:[#allocation6 + $0x1e8] sm:$0xff]  ;;  %v625_v39 = vpack.c.bf16 %v493_v17, %v493_v17  ;;  %3116 = vmatpush.bf16.msra.mxu0 %v8240_v13 }
 0x109   : > { %v2466_v44 = vpop.f32.mrf.mxu2  ;;  %v9231_v36 = vpop.f32.mrf.mxu0  ;;  %3027 = vmatpush.bf16.msra.mxu3 %v8232_v3 }
 0x10a   : > { %v2467_v1 = vadd.f32 %v9136_v43, %v2466_v44  ;;  %v6380_v44 = vor.u32 %v8046_v32, %v6377_v33  ;;  %812 = vst [vmem:[#allocation2 + $0x134] sm:$0xf] %v625_v39 }
 0x10b   : > { %718 = vst [vmem:[#allocation2 + $0x170] sm:$0xf] %v625_v39 }
 0x10c   : > { %2682 = vmatmul.bf16.gmra.mxu3 %v6344_v30  ;;  %902 = vst [vmem:[#allocation2 + $0xf8] sm:$0xf] %v625_v39  ;;  %v461_v39 = vrot.slane %v9063_v34, 1 }
 0x10e   : > { %v8068_v34 = vld [vmem:[#allocation2 + $0x148] sm:$0xf0] }
 0x10f   : > { %v2515_v19 = vpop.f32.mrf.mxu1  ;;  %v2555_v30 = vpop.f32.mrf.mxu3 }
 0x110   : > { %2776 = vmatmul.bf16.gmra.mxu0 %v6384_v22  ;;  %v9227_v26 = vadd.f32 %v2515_v19, %v2427_v61  ;;  %v9229_v57 = vadd.f32 %v2555_v30, %v2467_v1  ;;  %v6419_v22 = vld [vmem:[#allocation2 + $0xe8] sm:$0xf]  ;;  %v8060_v61 = vld [vmem:[#allocation2 + $0x108] sm:$0xf0]  ;;  %v8047_v1 = vld [vmem:[#allocation2 + $0xa4] sm:$0xf]  ;;  %v509_v19 = vsel %vm488_vm2, %v476_v54, %v460_v53 }
 0x111   : > { %v9233_v59 = vpop.f32.mrf.mxu2  ;;  %v530_v38 = vsel %vm455_vm3, 0.0, %v509_v19  ;;  %v6388_v32 = vor.u32 %v8047_v1, %v6385_v46  ;;  %v8055_v46 = vld [vmem:[#allocation2 + $0xe4] sm:$0xf] }
 0x112   : > { %10520 = vst [vmem:[#allocation15_spill] sm:$0xff] %v9229_v57  ;;  %2860 = vmatmul.bf16.gmra.mxu1 %v6352_v2  ;;  %v6420_v2 = vor.u32 %v8060_v61, %v6419_v22  ;;  %v626_v33 = vpack.c.bf16 %v530_v38, %v530_v38  ;;  %v8059_v22 = vld [vmem:[#allocation2 + $0x100] sm:$0xf0]  ;;  %v6416_v17 = vor.u32 %v8055_v46, %v6413_v47 }
 0x113   : > { %10521 = vst [vmem:[#allocation16_spill] sm:$0xff] %v9233_v59  ;;  %v8231_v59 = vld [vmem:[#allocation6 + $0x1e0] sm:$0xff] }
 0x114   : > { %813 = vst [vmem:[#allocation2 + $0x158] sm:$0xf] %v626_v33  ;;  %3028 = vmatpush.bf16.msra.mxu3 %v8231_v59  ;;  %v8073_v59 = vld [vmem:[#allocation2 + $0x174] sm:$0xf] }
 0x115   : > { %v2431_v61 = vpop.f32.mrf.mxu0  ;;  %719 = vst [vmem:[#allocation2 + $0x194] sm:$0xf] %v626_v33 }
 0x116   : > { %2598 = vmatmul.bf16.gmra.mxu2 %v6376_v60  ;;  %v2432_v19 = vadd.f32 %v9136_v43, %v2431_v61  ;;  %903 = vst [vmem:[#allocation2 + $0x11c] sm:$0xf] %v626_v33  ;;  %v8056_v61 = vld [vmem:[#allocation2 + $0xec] sm:$0xf]  ;;  %v6421_v33 = vld [vmem:[#allocation2 + $0x10c] sm:$0xf0] }
 0x117   : > { %v9241_v30 = vpop.f32.mrf.mxu1  ;;  %v9243_v60 = vpop.f32.mrf.mxu3  ;;  %v6424_v47 = vor.u32 %v8056_v61, %v6421_v33  ;;  %v6491_v33 = vld [vmem:[#allocation2 + $0x178] sm:$0xf] }
 0x118   : > { %10522 = vst [vmem:[#allocation17_spill] sm:$0xff] %v9243_v60  ;;  %v6455_v60 = vld [vmem:[#allocation2 + $0x130] sm:$0xf] }
 0x11c   : > { %2687 = vmatmul.bf16.gmra.mxu3 %v6380_v44  ;;  %v6411_v44 = vld [vmem:[#allocation2 + $0xe0] sm:$0xf] }
 0x11d   : > { %v6412_v54 = vor.u32 %v8059_v22, %v6411_v44  ;;  %v9253_v44 = vpop.f32.mrf.mxu0  ;;  %v477_v22 = vrot.slane %v9065_v35, 1 }
 0x120   : > { %2781 = vmatmul.bf16.gmra.mxu0 %v6420_v2 }
 0x121   : > { %v2471_v53 = vpop.f32.mrf.mxu2 }
 0x122   : > { %2865 = vmatmul.bf16.gmra.mxu1 %v6388_v32  ;;  %v2472_v1 = vadd.f32 %v9136_v43, %v2471_v53  ;;  %v8069_v32 = vld [vmem:[#allocation2 + $0x150] sm:$0xf0] }
 0x123   : > { %v6456_v53 = vor.u32 %v8069_v32, %v6455_v60  ;;  %v6449_v32 = vld [vmem:[#allocation2 + $0x14c] sm:$0xf0] }
 0x126   : > { %2603 = vmatmul.bf16.gmra.mxu2 %v6412_v54  ;;  %v494_v54 = vsel %vm488_vm2, %v461_v39, %v477_v22 }
 0x127   : > { %v2520_v3 = vpop.f32.mrf.mxu1  ;;  %v2560_v13 = vpop.f32.mrf.mxu3  ;;  %v627_v46 = vpack.c.bf16 %v494_v54, %v494_v54  ;;  %v8078_v54 = vld [vmem:[#allocation2 + $0x198] sm:$0xf0] }
 0x128   : > { %v9249_v2 = vadd.f32 %v2520_v3, %v2432_v19  ;;  %v9251_v38 = vadd.f32 %v2560_v13, %v2472_v1  ;;  %v510_v19 = vsel %vm488_vm2, %v477_v22, %v461_v39  ;;  %v6447_v13 = vld [vmem:[#allocation2 + $0x128] sm:$0xf] }
 0x129   : > { %v532_v1 = vsel %vm455_vm3, 0.0, %v510_v19  ;;  %814 = vst [vmem:[#allocation2 + $0x17c] sm:$0xf] %v627_v46  ;;  %v6448_v35 = vor.u32 %v8068_v34, %v6447_v13  ;;  %v6457_v13 = vld [vmem:[#allocation2 + $0x154] sm:$0xf0] }
 0x12a   : > { %10523 = vst [vmem:[#allocation18_spill] sm:$0xff] %v9251_v38  ;;  %v628_v3 = vpack.c.bf16 %v532_v1, %v532_v1  ;;  %v9263_v38 = vpop.f32.mrf.mxu2  ;;  %v478_v1 = vrot.slane %v9101_v40, 1 }
 0x12b   : > { %10524 = vst [vmem:[#allocation19_spill] sm:$0xff] %v9263_v38  ;;  %v8223_v38 = vld [vmem:[#allocation6 + $0x1a0] sm:$0xff] }
 0x12c   : > { %2692 = vmatmul.bf16.gmra.mxu3 %v6416_v17  ;;  %815 = vst [vmem:[#allocation2 + $0x1a0] sm:$0xf] %v628_v3  ;;  %v8064_v17 = vld [vmem:[#allocation2 + $0x12c] sm:$0xf]  ;;  %2939 = vmatpush.bf16.msra.mxu2 %v8223_v38  ;;  %v6485_v38 = vld [vmem:[#allocation2 + $0x194] sm:$0xf0] }
 0x12d   : > { %720 = vst [vmem:[#allocation2 + $0x1b8] sm:$0xf] %v627_v46  ;;  %v2436_v60 = vpop.f32.mrf.mxu0  ;;  %v6452_v61 = vor.u32 %v8064_v17, %v6449_v32 }
 0x12e   : > { %721 = vst [vmem:[#allocation2 + $0x1dc] sm:$0xf] %v628_v3 }
 0x12f   : > { %904 = vst [vmem:[#allocation2 + $0x140] sm:$0xf] %v627_v46  ;;  %v9265_v39 = vpop.f32.mrf.mxu1  ;;  %v9267_v22 = vpop.f32.mrf.mxu3  ;;  %v2437_v46 = vadd.f32 %v9136_v43, %v2436_v60 }
 0x130   : > { %2786 = vmatmul.bf16.gmra.mxu0 %v6456_v53  ;;  %905 = vst [vmem:[#allocation2 + $0x164] sm:$0xf] %v628_v3  ;;  %v462_v53 = vrot.slane %v9099_v37, 1  ;;  %v6492_v3 = vor.u32 %v8078_v54, %v6491_v33  ;;  %v6483_v33 = vld [vmem:[#allocation2 + $0x170] sm:$0xf] }
 0x131   : > { %10525 = vst [vmem:[#allocation20_spill] sm:$0xff] %v9267_v22  ;;  %v8077_v54 = vld [vmem:[#allocation2 + $0x190] sm:$0xf0] }
 0x132   : > { %2870 = vmatmul.bf16.gmra.mxu1 %v6424_v47  ;;  %v8065_v47 = vld [vmem:[#allocation2 + $0x134] sm:$0xf]  ;;  %v495_v17 = vsel %vm488_vm2, %v462_v53, %v478_v1 }
 0x133   : > { %v6460_v40 = vor.u32 %v8065_v47, %v6457_v13  ;;  %v629_v60 = vpack.c.bf16 %v495_v17, %v495_v17  ;;  %v6488_v13 = vor.u32 %v8073_v59, %v6485_v38  ;;  %v8074_v17 = vld [vmem:[#allocation2 + $0x17c] sm:$0xf] }
 0x135   : > { %v9279_v32 = vpop.f32.mrf.mxu0  ;;  %816 = vst [vmem:[#allocation2 + $0x1c4] sm:$0xf] %v629_v60  ;;  %v8086_v59 = vld [vmem:[#allocation2 + $0x1d8] sm:$0xf0] }
 0x136   : > { %2608 = vmatmul.bf16.gmra.mxu2 %v6448_v35  ;;  %v511_v35 = vsel %vm488_vm2, %v478_v1, %v462_v53  ;;  %v8239_v53 = vld [vmem:[#allocation6 + $0x220] sm:$0xff]  ;;  %v6484_v1 = vor.u32 %v8077_v54, %v6483_v33  ;;  %722 = vst [vmem:[#allocation2 + $0x200] sm:$0xf] %v629_v60 }
 0x137   : > { %v534_v37 = vsel %vm455_vm3, 0.0, %v511_v35  ;;  %3117 = vmatpush.bf16.msra.mxu0 %v8239_v53  ;;  %906 = vst [vmem:[#allocation2 + $0x188] sm:$0xf] %v629_v60  ;;  %v479_v35 = vrot.slane %v8873_v12, 1 }
 0x139   : > { %v2476_v19 = vpop.f32.mrf.mxu2 }
 0x13a   : > { %v2477_v34 = vadd.f32 %v9136_v43, %v2476_v19 }
 0x13c   : > { %2697 = vmatmul.bf16.gmra.mxu3 %v6452_v61  ;;  %v630_v61 = vpack.c.bf16 %v534_v37, %v534_v37  ;;  %v6493_v37 = vld [vmem:[#allocation2 + $0x19c] sm:$0xf0] }
 0x13e   : > { %817 = vst [vmem:[#allocation2 + $0x1e8] sm:$0xf] %v630_v61 }
 0x13f   : > { %v2525_v19 = vpop.f32.mrf.mxu1  ;;  %v2565_v22 = vpop.f32.mrf.mxu3  ;;  %723 = vst [vmem:[#allocation2 + $0x224] sm:$0xf] %v630_v61 }
 0x140   : > { %2791 = vmatmul.bf16.gmra.mxu0 %v6492_v3  ;;  %v9281_v57 = vadd.f32 %v2525_v19, %v2437_v46  ;;  %v9283_v21 = vadd.f32 %v2565_v22, %v2477_v34  ;;  %907 = vst [vmem:[#allocation2 + $0x1ac] sm:$0xf] %v630_v61  ;;  %v6527_v3 = vld [vmem:[#allocation2 + $0x1c0] sm:$0xf]  ;;  %v8087_v22 = vld [vmem:[#allocation2 + $0x1e0] sm:$0xf0] }
 0x141   : > { %v9285_v47 = vpop.f32.mrf.mxu2  ;;  %v463_v34 = vrot.slane %v8871_v11, 1  ;;  %v6496_v11 = vor.u32 %v8074_v17, %v6493_v37  ;;  %v6521_v17 = vld [vmem:[#allocation2 + $0x1dc] sm:$0xf0] }
 0x142   : > { %10526 = vst [vmem:[#allocation21_spill] sm:$0xff] %v9283_v21  ;;  %2875 = vmatmul.bf16.gmra.mxu1 %v6460_v40  ;;  %v6528_v40 = vor.u32 %v8087_v22, %v6527_v3  ;;  %v8230_v21 = vld [vmem:[#allocation6 + $0x1d8] sm:$0xff] }
 0x143   : > { %10527 = vst [vmem:[#allocation22_spill] sm:$0xff] %v9285_v47  ;;  %v512_v60 = vsel %vm488_vm2, %v479_v35, %v463_v34  ;;  %v496_v54 = vsel %vm488_vm2, %v463_v34, %v479_v35  ;;  %v8082_v35 = vld [vmem:[#allocation2 + $0x1bc] sm:$0xf]  ;;  %3029 = vmatpush.bf16.msra.mxu3 %v8230_v21  ;;  %v6557_v21 = vld [vmem:[#allocation2 + $0x224] sm:$0xf0] }
 0x144   : > { %v536_v19 = vsel %vm455_vm3, 0.0, %v512_v60  ;;  %v631_v53 = vpack.c.bf16 %v496_v54, %v496_v54  ;;  %v6524_v60 = vor.u32 %v8082_v35, %v6521_v17  ;;  %v8222_v47 = vld [vmem:[#allocation6 + $0x198] sm:$0xff] }
 0x145   : > { %v2441_v46 = vpop.f32.mrf.mxu0  ;;  %v632_v12 = vpack.c.bf16 %v536_v19, %v536_v19  ;;  %2940 = vmatpush.bf16.msra.mxu2 %v8222_v47  ;;  %v8091_v47 = vld [vmem:[#allocation2 + $0x204] sm:$0xf] }
 0x146   : > { %2613 = vmatmul.bf16.gmra.mxu2 %v6484_v1  ;;  %v6519_v1 = vld [vmem:[#allocation2 + $0x1b8] sm:$0xf]  ;;  %818 = vst [vmem:[#allocation2 + $0x20c] sm:$0xf] %v631_v53  ;;  %v2442_v22 = vadd.f32 %v9136_v43, %v2441_v46  ;;  %v480_v46 = vrot.slane %v8897_v28, 1 }
 0x147   : > { %v9291_v33 = vpop.f32.mrf.mxu1  ;;  %v9293_v61 = vpop.f32.mrf.mxu3  ;;  %819 = vst [vmem:[#allocation2 + $0x230] sm:$0xf] %v632_v12 }
 0x148   : > { %10528 = vst [vmem:[#allocation23_spill] sm:$0xff] %v9293_v61  ;;  %v464_v61 = vrot.slane %v8891_v24, 1 }
 0x149   : > { %724 = vst [vmem:[#allocation2 + $0x248] sm:$0xf] %v631_v53 }
 0x14a   : > { %725 = vst [vmem:[#allocation2 + $0x26c] sm:$0xf] %v632_v12  ;;  %v497_v35 = vsel %vm488_vm2, %v464_v61, %v480_v46 }
 0x14b   : > { %908 = vst [vmem:[#allocation2 + $0x1d0] sm:$0xf] %v631_v53  ;;  %v6529_v53 = vld [vmem:[#allocation2 + $0x1e4] sm:$0xf0]  ;;  %v633_v28 = vpack.c.bf16 %v497_v35, %v497_v35  ;;  %v465_v35 = vrot.slane %v8929_v14, 1 }
 0x14c   : > { %2702 = vmatmul.bf16.gmra.mxu3 %v6488_v13  ;;  %v6520_v13 = vor.u32 %v8086_v59, %v6519_v1  ;;  %909 = vst [vmem:[#allocation2 + $0x1f4] sm:$0xf] %v632_v12  ;;  %v6563_v1 = vld [vmem:[#allocation2 + $0x208] sm:$0xf]  ;;  %v8096_v59 = vld [vmem:[#allocation2 + $0x228] sm:$0xf0] }
 0x14d   : > { %v9299_v3 = vpop.f32.mrf.mxu0  ;;  %820 = vst [vmem:[#allocation2 + $0x254] sm:$0xf] %v633_v28 }
 0x14e   : > { %726 = vst [vmem:[#allocation2 + $0x290] sm:$0xf] %v633_v28 }
 0x14f   : > { %910 = vst [vmem:[#allocation2 + $0x218] sm:$0xf] %v633_v28 }
 0x150   : > { %2796 = vmatmul.bf16.gmra.mxu0 %v6528_v40 }
 0x151   : > { %v2481_v38 = vpop.f32.mrf.mxu2 }
 0x152   : > { %2880 = vmatmul.bf16.gmra.mxu1 %v6496_v11  ;;  %v2482_v34 = vadd.f32 %v9136_v43, %v2481_v38  ;;  %v8083_v38 = vld [vmem:[#allocation2 + $0x1c4] sm:$0xf] }
 0x153   : > { %v6532_v17 = vor.u32 %v8083_v38, %v6529_v53  ;;  %v6560_v53 = vor.u32 %v8091_v47, %v6557_v21 }
 0x156   : > { %2618 = vmatmul.bf16.gmra.mxu2 %v6520_v13  ;;  %v6564_v13 = vor.u32 %v8096_v59, %v6563_v1 }
 0x157   : > { %v2530_v37 = vpop.f32.mrf.mxu1  ;;  %v2570_v40 = vpop.f32.mrf.mxu3 }
 0x158   : > { %v9303_v54 = vadd.f32 %v2530_v37, %v2442_v22  ;;  %v9305_v19 = vadd.f32 %v2570_v40, %v2482_v34  ;;  %v513_v22 = vsel %vm488_vm2, %v480_v46, %v464_v61  ;;  %v8238_v61 = vld [vmem:[#allocation6 + $0x218] sm:$0xff] }
 0x159   : > { %v2483_v11 = vpop.f32.mrf.mxu2  ;;  %v538_v24 = vsel %vm455_vm3, 0.0, %v513_v22  ;;  %3118 = vmatpush.bf16.msra.mxu0 %v8238_v61  ;;  %v6599_v22 = vld [vmem:[#allocation2 + $0x250] sm:$0xf] }
 0x15a   : > { %10529 = vst [vmem:[#allocation24_spill] sm:$0xff] %v9305_v19  ;;  %v2484_v12 = vadd.f32 %v9136_v43, %v2483_v11  ;;  %v634_v37 = vpack.c.bf16 %v538_v24, %v538_v24  ;;  %v8095_v11 = vld [vmem:[#allocation2 + $0x220] sm:$0xf0]  ;;  %v481_v24 = vrot.slane %v8931_v15, 1  ;;  %v8104_v19 = vld [vmem:[#allocation2 + $0x268] sm:$0xf0] }
 0x15c   : > { %2707 = vmatmul.bf16.gmra.mxu3 %v6524_v60  ;;  %v6555_v60 = vld [vmem:[#allocation2 + $0x200] sm:$0xf]  ;;  %821 = vst [vmem:[#allocation2 + $0x278] sm:$0xf] %v634_v37  ;;  %v498_v61 = vsel %vm488_vm2, %v465_v35, %v481_v24 }
 0x15d   : > { %v2446_v34 = vpop.f32.mrf.mxu0  ;;  %v6556_v59 = vor.u32 %v8095_v11, %v6555_v60  ;;  %727 = vst [vmem:[#allocation2 + $0x2b4] sm:$0xf] %v634_v37  ;;  %v635_v47 = vpack.c.bf16 %v498_v61, %v498_v61 }
 0x15e   : > { %911 = vst [vmem:[#allocation2 + $0x23c] sm:$0xf] %v634_v37  ;;  %v2447_v28 = vadd.f32 %v9136_v43, %v2446_v34  ;;  %v514_v37 = vsel %vm488_vm2, %v481_v24, %v465_v35 }
 0x15f   : > { %v2572_v40 = vpop.f32.mrf.mxu3  ;;  %v9318_v46 = vpop.f32.mrf.mxu1  ;;  %v540_v14 = vsel %vm455_vm3, 0.0, %v514_v37  ;;  %822 = vst [vmem:[#allocation2 + $0x29c] sm:$0xf] %v635_v47 }
 0x160   : > { %v9316_v1 = vadd.f32 %v2572_v40, %v2484_v12  ;;  %2801 = vmatmul.bf16.gmra.mxu0 %v6564_v13  ;;  %v8105_v13 = vld [vmem:[#allocation2 + $0x270] sm:$0xf0]  ;;  %v6565_v40 = vld [vmem:[#allocation2 + $0x22c] sm:$0xf0]  ;;  %v636_v21 = vpack.c.bf16 %v540_v14, %v540_v14  ;;  %728 = vst [vmem:[#allocation2 + $0x2d8] sm:$0xf] %v635_v47 }
 0x161   : > { %v6600_v11 = vor.u32 %v8105_v13, %v6599_v22  ;;  %v8394_v13 = vld [vmem:[#allocation8 + $0x38] sm:$0xff]  ;;  %912 = vst [vmem:[#allocation2 + $0x260] sm:$0xf] %v635_v47  ;;  %v482_v47 = vrot.slane %v8969_v5, 1 }
 0x162   : > { %10530 = vst [vmem:[#allocation25_spill] sm:$0xff] %v9316_v1  ;;  %2885 = vmatmul.bf16.gmra.mxu1 %v6532_v17  ;;  %v8092_v17 = vld [vmem:[#allocation2 + $0x20c] sm:$0xf] }
 0x163   : > { %v6568_v15 = vor.u32 %v8092_v17, %v6565_v40  ;;  %823 = vst [vmem:[#allocation2 + $0x2c0] sm:$0xf] %v636_v21  ;;  %5275 = vmatpush.bf16.msra.mxu1 %v8394_v13  ;;  %v8100_v40 = vld [vmem:[#allocation2 + $0x24c] sm:$0xf]  ;;  %v6601_v13 = vld [vmem:[#allocation2 + $0x274] sm:$0xf0] }
 0x164   : > { %729 = vst [vmem:[#allocation2 + $0x2fc] sm:$0xf] %v636_v21 }
 0x165   : > { %v2448_v38 = vpop.f32.mrf.mxu0  ;;  %913 = vst [vmem:[#allocation2 + $0x284] sm:$0xf] %v636_v21 }
 0x166   : > { %2623 = vmatmul.bf16.gmra.mxu2 %v6556_v59  ;;  %v2449_v24 = vadd.f32 %v9136_v43, %v2448_v38 }
 0x169   : > { %v2486_v12 = vpop.f32.mrf.mxu2 }
 0x16a   : > { %v2487_v60 = vadd.f32 %v9136_v43, %v2486_v12 }
 0x16c   : > { %2712 = vmatmul.bf16.gmra.mxu3 %v6560_v53  ;;  %v6591_v53 = vld [vmem:[#allocation2 + $0x248] sm:$0xf] }
 0x16d   : > { %v9326_v59 = vpop.f32.mrf.mxu0  ;;  %v6592_v35 = vor.u32 %v8104_v19, %v6591_v53  ;;  %v8101_v53 = vld [vmem:[#allocation2 + $0x254] sm:$0xf] }
 0x16e   : > { %v6604_v5 = vor.u32 %v8101_v53, %v6601_v13  ;;  %v8237_v13 = vld [vmem:[#allocation6 + $0x210] sm:$0xff] }
 0x16f   : > { %v2535_v1 = vpop.f32.mrf.mxu1  ;;  %v2575_v34 = vpop.f32.mrf.mxu3  ;;  %3119 = vmatpush.bf16.msra.mxu0 %v8237_v13 }
 0x170   : > { %v9332_v12 = vadd.f32 %v2535_v1, %v2447_v28  ;;  %v9334_v22 = vadd.f32 %v2575_v34, %v2487_v60  ;;  %2806 = vmatmul.bf16.gmra.mxu0 %v6600_v11  ;;  %v6593_v1 = vld [vmem:[#allocation2 + $0x26c] sm:$0xf0]  ;;  %v8114_v34 = vld [vmem:[#allocation2 + $0x2b8] sm:$0xf0] }
 0x171   : > { %v2488_v16 = vpop.f32.mrf.mxu2  ;;  %v6596_v19 = vor.u32 %v8100_v40, %v6593_v1 }
 0x172   : > { %10531 = vst [vmem:[#allocation26_spill] sm:$0xff] %v9334_v22  ;;  %2890 = vmatmul.bf16.gmra.mxu1 %v6568_v15  ;;  %v2489_v17 = vadd.f32 %v9136_v43, %v2488_v16  ;;  %v6635_v15 = vld [vmem:[#allocation2 + $0x298] sm:$0xf]  ;;  %v466_v16 = vrot.slane %v8967_v4, 1  ;;  %v8229_v22 = vld [vmem:[#allocation6 + $0x1d0] sm:$0xff] }
 0x173   : > { %v6636_v21 = vor.u32 %v8114_v34, %v6635_v15  ;;  %3030 = vmatpush.bf16.msra.mxu3 %v8229_v22  ;;  %v8113_v15 = vld [vmem:[#allocation2 + $0x2b0] sm:$0xf0] }
 0x175   : > { %v2769_v28 = vpop.f32.mrf.mxu0 }
 0x176   : > { %2628 = vmatmul.bf16.gmra.mxu2 %v6592_v35  ;;  %v8221_v35 = vld [vmem:[#allocation6 + $0x190] sm:$0xff] }
 0x177   : > { %v2537_v60 = vpop.f32.mrf.mxu1  ;;  %v2577_v11 = vpop.f32.mrf.mxu3  ;;  %2941 = vmatpush.bf16.msra.mxu2 %v8221_v35  ;;  %v8109_v35 = vld [vmem:[#allocation2 + $0x294] sm:$0xf] }
 0x178   : > { %v9338_v37 = vadd.f32 %v2537_v60, %v2449_v24  ;;  %v9340_v61 = vadd.f32 %v2577_v11, %v2489_v17  ;;  %v515_v24 = vsel %vm488_vm2, %v482_v47, %v466_v16  ;;  %v2414_v17 = vadd.f32 %v9136_v43, %v9144_v18 }
 0x179   : > { %v2589_v14 = vpop.f32.mrf.mxu2  ;;  %v542_v4 = vsel %vm455_vm3, 0.0, %v515_v24  ;;  %v6629_v24 = vld [vmem:[#allocation2 + $0x2b4] sm:$0xf0] }
 0x17a   : > { %v2590_v38 = vadd.f32 %v2589_v14, %v9141_v10  ;;  %v499_v10 = vsel %vm488_vm2, %v466_v16, %v482_v47  ;;  %v638_v60 = vpack.c.bf16 %v542_v4, %v542_v4  ;;  %v6627_v14 = vld [vmem:[#allocation2 + $0x290] sm:$0xf]  ;;  %v2503_v18 = vadd.f32 %v9160_v42, %v2414_v17  ;;  %v6671_v4 = vld [vmem:[#allocation2 + $0x2e0] sm:$0xf] }
 0x17b   : > { %v637_v1 = vpack.c.bf16 %v499_v10, %v499_v10  ;;  %v6628_v47 = vor.u32 %v8113_v15, %v6627_v14  ;;  %v6632_v17 = vor.u32 %v8109_v35, %v6629_v24  ;;  %v467_v14 = vrot.slane %v9003_v58, 1  ;;  %v8110_v15 = vld [vmem:[#allocation2 + $0x29c] sm:$0xf]  ;;  %v9375_v58 = vld [vmem:[%s10509_s2] ss:$0 sm:$0xff] }
 0x17c   : > { %2717 = vmatmul.bf16.gmra.mxu3 %v6596_v19  ;;  %825 = vst [vmem:[#allocation2 + $0x308] sm:$0xf] %v638_v60 }
 0x17d   : > { %v9349_v40 = vpop.f32.mrf.mxu0  ;;  %824 = vst [vmem:[#allocation2 + $0x2e4] sm:$0xf] %v637_v1 }
 0x17e   : > { %730 = vst [vmem:[#allocation2 + $0x320] sm:$0xf] %v637_v1 }
 0x17f   : > { %v2678_v11 = vpop.f32.mrf.mxu3  ;;  %v2856_v19 = vpop.f32.mrf.mxu1  ;;  %731 = vst [vmem:[#allocation2 + $0x344] sm:$0xf] %v638_v60 }
 0x180   : > { %v2679_v34 = vadd.f32 %v2678_v11, %v2590_v38  ;;  %2811 = vmatmul.bf16.gmra.mxu0 %v6636_v21  ;;  %914 = vst [vmem:[#allocation2 + $0x2a8] sm:$0xf] %v637_v1  ;;  %v483_v1 = vrot.slane %v9005_v62, 1  ;;  %v2419_v62 = vadd.f32 %v9375_v58, %v9183_v31 }
 0x181   : > { %v2591_v43 = vpop.f32.mrf.mxu2  ;;  %915 = vst [vmem:[#allocation2 + $0x2cc] sm:$0xf] %v638_v60 }
 0x182   : > { %v2768_v16 = vadd.f32 %v9326_v59, %v2679_v34  ;;  %2895 = vmatmul.bf16.gmra.mxu1 %v6604_v5  ;;  %v2592_v53 = vadd.f32 %v2591_v43, %v2503_v18  ;;  %v8123_v5 = vld [vmem:[#allocation2 + $0x300] sm:$0xf0]  ;;  %v6637_v34 = vld [vmem:[#allocation2 + $0x2bc] sm:$0xf0]  ;;  %v516_v18 = vsel %vm488_vm2, %v483_v1, %v467_v14 }
 0x183   : > { %v6672_v43 = vor.u32 %v8123_v5, %v6671_v4  ;;  %v2508_v4 = vadd.f32 %v9189_v55, %v2419_v62 }
 0x184   : > { %v9357_v22 = vadd.f32 %v2856_v19, %v2768_v16 }
 0x185   : > { %v2774_v38 = vpop.f32.mrf.mxu0 }
 0x186   : > { %2633 = vmatmul.bf16.gmra.mxu2 %v6628_v47  ;;  %v6640_v47 = vor.u32 %v8110_v15, %v6637_v34 }
 0x187   : > { %v2680_v21 = vpop.f32.mrf.mxu3  ;;  %v2858_v10 = vpop.f32.mrf.mxu1 }
 0x188   : > { %v2681_v42 = vadd.f32 %v2680_v21, %v2592_v53  ;;  %v6663_v21 = vld [vmem:[#allocation2 + $0x2d8] sm:$0xf] }
 0x189   : > { %v2594_v59 = vpop.f32.mrf.mxu2 }
 0x18a   : > { %v2770_v11 = vadd.f32 %v2769_v28, %v2681_v42  ;;  %v2595_v19 = vadd.f32 %v2594_v59, %v9180_v29  ;;  %v500_v28 = vsel %vm488_vm2, %v467_v14, %v483_v1  ;;  %v544_v29 = vsel %vm455_vm3, 0.0, %v516_v18  ;;  %v8118_v1 = vld [vmem:[#allocation2 + $0x2dc] sm:$0xf] }
 0x18b   : > { %v639_v53 = vpack.c.bf16 %v500_v28, %v500_v28  ;;  %v640_v13 = vpack.c.bf16 %v544_v29, %v544_v29  ;;  %v6707_v28 = vld [vmem:[#allocation2 + $0x328] sm:$0xf]  ;;  %v8132_v29 = vld [vmem:[#allocation2 + $0x348] sm:$0xf0] }
 0x18c   : > { %2722 = vmatmul.bf16.gmra.mxu3 %v6632_v17  ;;  %v9362_v60 = vadd.f32 %v2858_v10, %v2770_v11  ;;  %v8122_v10 = vld [vmem:[#allocation2 + $0x2f8] sm:$0xf0]  ;;  %v8393_v17 = vld [vmem:[#allocation8 + $0x30] sm:$0xff] }
 0x18d   : > { %v9366_v16 = vpop.f32.mrf.mxu0  ;;  %826 = vst [vmem:[#allocation2 + $0x32c] sm:$0xf] %v639_v53  ;;  %v6664_v11 = vor.u32 %v8122_v10, %v6663_v21  ;;  %5276 = vmatpush.bf16.msra.mxu1 %v8393_v17  ;;  %v6673_v21 = vld [vmem:[#allocation2 + $0x304] sm:$0xf0] }
 0x18e   : > { %827 = vst [vmem:[#allocation2 + $0x350] sm:$0xf] %v640_v13  ;;  %v8228_v17 = vld [vmem:[#allocation6 + $0x1c8] sm:$0xff] }
 0x18f   : > { %v2683_v35 = vpop.f32.mrf.mxu3  ;;  %v2861_v24 = vpop.f32.mrf.mxu1  ;;  %732 = vst [vmem:[#allocation2 + $0x368] sm:$0xf] %v639_v53  ;;  %3031 = vmatpush.bf16.msra.mxu3 %v8228_v17  ;;  %v8141_v17 = vld [vmem:[#allocation2 + $0x390] sm:$0xf0] }
 0x190   : > { %v2684_v42 = vadd.f32 %v2683_v35, %v2595_v19  ;;  %2816 = vmatmul.bf16.gmra.mxu0 %v6672_v43  ;;  %733 = vst [vmem:[#allocation2 + $0x38c] sm:$0xf] %v640_v13  ;;  %v6665_v19 = vld [vmem:[#allocation2 + $0x2fc] sm:$0xf0]  ;;  %v468_v35 = vrot.slane %v9039_v51, 1 }
 0x191   : > { %v2596_v59 = vpop.f32.mrf.mxu2  ;;  %916 = vst [vmem:[#allocation2 + $0x2f0] sm:$0xf] %v639_v53  ;;  %v6668_v18 = vor.u32 %v8118_v1, %v6665_v19  ;;  %v484_v53 = vrot.slane %v9041_v52, 1  ;;  %v6699_v19 = vld [vmem:[#allocation2 + $0x320] sm:$0xf] }
 0x192   : > { %v2773_v5 = vadd.f32 %v9349_v40, %v2684_v42  ;;  %2900 = vmatmul.bf16.gmra.mxu1 %v6640_v47  ;;  %v2597_v14 = vadd.f32 %v2596_v59, %v2508_v4  ;;  %917 = vst [vmem:[#allocation2 + $0x314] sm:$0xf] %v640_v13  ;;  %v6708_v13 = vor.u32 %v8132_v29, %v6707_v28  ;;  %v8220_v42 = vld [vmem:[#allocation6 + $0x188] sm:$0xff] }
 0x193   : > { %v517_v59 = vsel %vm488_vm2, %v484_v53, %v468_v35  ;;  %v501_v51 = vsel %vm488_vm2, %v468_v35, %v484_v53  ;;  %2942 = vmatpush.bf16.msra.mxu2 %v8220_v42  ;;  %v8127_v35 = vld [vmem:[#allocation2 + $0x324] sm:$0xf]  ;;  %v6701_v53 = vld [vmem:[#allocation2 + $0x344] sm:$0xf0]  ;;  %v6743_v42 = vld [vmem:[#allocation2 + $0x370] sm:$0xf] }
 0x194   : > { %v9381_v31 = vadd.f32 %v2861_v24, %v2773_v5  ;;  %v8119_v24 = vld [vmem:[#allocation2 + $0x2e4] sm:$0xf]  ;;  %v546_v52 = vsel %vm455_vm3, 0.0, %v517_v59  ;;  %v641_v5 = vpack.c.bf16 %v501_v51, %v501_v51  ;;  %v469_v51 = vrot.slane %v9075_v49, 1 }
 0x195   : > { %v9383_v15 = vpop.f32.mrf.mxu0  ;;  %v2429_v49 = vadd.f32 %v9375_v58, %v9231_v36 }
 0x196   : > { %2638 = vmatmul.bf16.gmra.mxu2 %v6664_v11  ;;  %v642_v11 = vpack.c.bf16 %v546_v52, %v546_v52  ;;  %828 = vst [vmem:[#allocation2 + $0x374] sm:$0xf] %v641_v5  ;;  %v485_v52 = vrot.slane %v9077_v50, 1 }
 0x197   : > { %v2685_v34 = vpop.f32.mrf.mxu3  ;;  %v2863_v43 = vpop.f32.mrf.mxu1  ;;  %734 = vst [vmem:[#allocation2 + $0x3b0] sm:$0xf] %v641_v5 }
 0x198   : > { %v2686_v55 = vadd.f32 %v2685_v34, %v2597_v14  ;;  %v8131_v34 = vld [vmem:[#allocation2 + $0x340] sm:$0xf0]  ;;  %829 = vst [vmem:[#allocation2 + $0x398] sm:$0xf] %v642_v11 }
 0x199   : > { %v2599_v40 = vpop.f32.mrf.mxu2  ;;  %735 = vst [vmem:[#allocation2 + $0x3d4] sm:$0xf] %v642_v11 }
 0x19a   : > { %v2775_v62 = vadd.f32 %v2774_v38, %v2686_v55  ;;  %v2600_v47 = vadd.f32 %v2599_v40, %v9202_v41  ;;  %v2424_v38 = vadd.f32 %v9375_v58, %v9209_v9  ;;  %v6676_v41 = vor.u32 %v8119_v24, %v6673_v21  ;;  %918 = vst [vmem:[#allocation2 + $0x338] sm:$0xf] %v641_v5  ;;  %v6709_v5 = vld [vmem:[#allocation2 + $0x34c] sm:$0xf0] }
 0x19b   : > { %v6700_v40 = vor.u32 %v8131_v34, %v6699_v19  ;;  %919 = vst [vmem:[#allocation2 + $0x35c] sm:$0xf] %v642_v11 }
 0x19c   : > { %2727 = vmatmul.bf16.gmra.mxu3 %v6668_v18  ;;  %v9388_v10 = vadd.f32 %v2863_v43, %v2775_v62  ;;  %v2513_v55 = vadd.f32 %v9213_v20, %v2424_v38  ;;  %v8236_v62 = vld [vmem:[#allocation6 + $0x208] sm:$0xff] }
 0x19d   : > { %v9394_v4 = vpop.f32.mrf.mxu0  ;;  %3120 = vmatpush.bf16.msra.mxu0 %v8236_v62  ;;  %v8392_v62 = vld [vmem:[#allocation8 + $0x28] sm:$0xff] }
 0x19e   : > { %5277 = vmatpush.bf16.msra.mxu1 %v8392_v62 }
 0x19f   : > { %v2688_v14 = vpop.f32.mrf.mxu3  ;;  %v2866_v1 = vpop.f32.mrf.mxu1 }
 0x1a0   : > { %v2689_v43 = vadd.f32 %v2688_v14, %v2600_v47  ;;  %2821 = vmatmul.bf16.gmra.mxu0 %v6708_v13  ;;  %v6704_v13 = vor.u32 %v8127_v35, %v6701_v53  ;;  %v6744_v14 = vor.u32 %v8141_v17, %v6743_v42  ;;  %v2518_v53 = vadd.f32 %v9241_v30, %v2429_v49  ;;  %v318_v49 = vld [vmem:[%s8857_s16 + $0xf0] sm:$0xff] }
 0x1a1   : > { %v2601_v9 = vpop.f32.mrf.mxu2 }
 0x1a2   : > { %v2778_v18 = vadd.f32 %v9366_v16, %v2689_v43  ;;  %2905 = vmatmul.bf16.gmra.mxu1 %v6676_v41  ;;  %v2602_v29 = vadd.f32 %v2601_v9, %v2513_v55  ;;  %v8128_v41 = vld [vmem:[#allocation2 + $0x32c] sm:$0xf] }
 0x1a3   : > { %v6712_v50 = vor.u32 %v8128_v41, %v6709_v5 }
 0x1a4   : > { %v9402_v28 = vadd.f32 %v2866_v1, %v2778_v18  ;;  %v518_v1 = vsel %vm488_vm2, %v485_v52, %v469_v51  ;;  %v6735_v18 = vld [vmem:[#allocation2 + $0x368] sm:$0xf] }
 0x1a5   : > { %v2784_v47 = vpop.f32.mrf.mxu0 }
 0x1a6   : > { %2643 = vmatmul.bf16.gmra.mxu2 %v6700_v40  ;;  %v8140_v40 = vld [vmem:[#allocation2 + $0x388] sm:$0xf0] }
 0x1a7   : > { %v2690_v24 = vpop.f32.mrf.mxu3  ;;  %v2868_v21 = vpop.f32.mrf.mxu1 }
 0x1a8   : > { %v2691_v20 = vadd.f32 %v2690_v24, %v2602_v29 }
 0x1a9   : > { %v2604_v16 = vpop.f32.mrf.mxu2 }
 0x1aa   : > { %v2780_v59 = vadd.f32 %v9383_v15, %v2691_v20  ;;  %v2605_v38 = vadd.f32 %v2604_v16, %v9227_v26  ;;  %v502_v15 = vsel %vm488_vm2, %v469_v51, %v485_v52  ;;  %v548_v26 = vsel %vm455_vm3, 0.0, %v518_v1  ;;  %v6737_v16 = vld [vmem:[#allocation2 + $0x38c] sm:$0xf0]  ;;  %v6779_v51 = vld [vmem:[#allocation2 + $0x3b8] sm:$0xf] }
 0x1ab   : > { %v643_v34 = vpack.c.bf16 %v502_v15, %v502_v15  ;;  %v644_v43 = vpack.c.bf16 %v548_v26, %v548_v26  ;;  %v8150_v52 = vld [vmem:[#allocation2 + $0x3d8] sm:$0xf0]  ;;  %v486_v1 = vrot.slane %v9113_v63, 1  ;;  %v8137_v15 = vld [vmem:[#allocation2 + $0x374] sm:$0xf] }
 0x1ac   : > { %2732 = vmatmul.bf16.gmra.mxu3 %v6704_v13  ;;  %v9408_v11 = vadd.f32 %v2868_v21, %v2780_v59  ;;  %v6736_v21 = vor.u32 %v8140_v40, %v6735_v18  ;;  %v8136_v13 = vld [vmem:[#allocation2 + $0x36c] sm:$0xf]  ;;  %v6745_v26 = vld [vmem:[#allocation2 + $0x394] sm:$0xf0] }
 0x1ad   : > { %v9412_v19 = vpop.f32.mrf.mxu0  ;;  %830 = vst [vmem:[#allocation2 + $0x3bc] sm:$0xf] %v643_v34  ;;  %v319_v18 = vld [vmem:[%s8857_s16 + $0xf8] sm:$0xff]  ;;  %v6748_v62 = vor.u32 %v8137_v15, %v6745_v26  ;;  %v8235_v26 = vld [vmem:[#allocation6 + $0x200] sm:$0xff] }
 0x1ae   : > { %831 = vst [vmem:[#allocation2 + $0x3e0] sm:$0xf] %v644_v43  ;;  %3121 = vmatpush.bf16.msra.mxu0 %v8235_v26 }
 0x1af   : > { %v2693_v9 = vpop.f32.mrf.mxu3  ;;  %v2871_v55 = vpop.f32.mrf.mxu1  ;;  %736 = vst [vmem:[#allocation2 + $0x3f8] sm:$0xf] %v643_v34 }
 0x1b0   : > { %v2694_v29 = vadd.f32 %v2693_v9, %v2605_v38  ;;  %2826 = vmatmul.bf16.gmra.mxu0 %v6744_v14  ;;  %737 = vst [vmem:[#allocation2 + $0x41c] sm:$0xf] %v644_v43  ;;  %v470_v14 = vrot.slane %v9111_v56, 1  ;;  %v8227_v9 = vld [vmem:[#allocation6 + $0x1c0] sm:$0xff]  ;;  %v2434_v56 = vadd.f32 %v9375_v58, %v9253_v44  ;;  %v6771_v44 = vld [vmem:[#allocation2 + $0x3b0] sm:$0xf] }
 0x1b1   : > { %v2606_v35 = vpop.f32.mrf.mxu2  ;;  %920 = vst [vmem:[#allocation2 + $0x380] sm:$0xf] %v643_v34  ;;  %v6780_v34 = vor.u32 %v8150_v52, %v6779_v51  ;;  %3032 = vmatpush.bf16.msra.mxu3 %v8227_v9 }
 0x1b2   : > { %v2783_v24 = vadd.f32 %v9394_v4, %v2694_v29  ;;  %2910 = vmatmul.bf16.gmra.mxu1 %v6712_v50  ;;  %v2607_v20 = vadd.f32 %v2606_v35, %v2518_v53  ;;  %921 = vst [vmem:[#allocation2 + $0x3a4] sm:$0xf] %v644_v43  ;;  %v6740_v4 = vor.u32 %v8136_v13, %v6737_v16  ;;  %v8219_v43 = vld [vmem:[#allocation6 + $0x180] sm:$0xff]  ;;  %v9445_v29 = vmax.f32 %v319_v18, 0.0  ;;  %v8149_v13 = vld [vmem:[#allocation2 + $0x3d0] sm:$0xf0] }
 0x1b3   : > { %v503_v63 = vsel %vm488_vm2, %v470_v14, %v486_v1  ;;  %2943 = vmatpush.bf16.msra.mxu2 %v8219_v43  ;;  %v6772_v52 = vor.u32 %v8149_v13, %v6771_v44 }
 0x1b4   : > { %v9422_v36 = vadd.f32 %v2871_v55, %v2783_v24  ;;  %v519_v55 = vsel %vm488_vm2, %v486_v1, %v470_v14  ;;  %v645_v35 = vpack.c.bf16 %v503_v63, %v503_v63  ;;  %v388_v16 = vrot.slane %v9445_v29, 7 }
 0x1b5   : > { %v9424_v42 = vpop.f32.mrf.mxu0  ;;  %v550_v40 = vsel %vm455_vm3, 0.0, %v519_v55  ;;  %v616_v55 = vpack.c.bf16 %v9445_v29, %v9445_v29  ;;  %v6781_v44 = vld [vmem:[#allocation2 + $0x3dc] sm:$0xf0] }
 0x1b6   : > { %2648 = vmatmul.bf16.gmra.mxu2 %v6736_v21  ;;  %v646_v53 = vpack.c.bf16 %v550_v40, %v550_v40  ;;  %832 = vst [vmem:[#allocation2 + $0x404] sm:$0xf] %v645_v35  ;;  %v6815_v40 = vld [vmem:[#allocation2 + $0x400] sm:$0xf] }
 0x1b7   : > { %v2695_v17 = vpop.f32.mrf.mxu3  ;;  %v2873_v30 = vpop.f32.mrf.mxu1  ;;  %738 = vst [vmem:[#allocation2 + $0x440] sm:$0xf] %v645_v35 }
 0x1b8   : > { %v2696_v59 = vadd.f32 %v2695_v17, %v2607_v20  ;;  %833 = vst [vmem:[#allocation2 + $0x428] sm:$0xf] %v646_v53 }
 0x1b9   : > { %v2609_v38 = vpop.f32.mrf.mxu2  ;;  %739 = vst [vmem:[#allocation2 + $0x464] sm:$0xf] %v646_v53 }
 0x1ba   : > { %v2785_v41 = vadd.f32 %v2784_v47, %v2696_v59  ;;  %v2610_v5 = vadd.f32 %v2609_v38, %v9249_v2  ;;  %v9435_v47 = vmax.f32 %v318_v49, 0.0  ;;  %v2523_v38 = vadd.f32 %v9265_v39, %v2434_v56  ;;  %922 = vst [vmem:[#allocation2 + $0x3c8] sm:$0xf] %v645_v35  ;;  %v8145_v49 = vld [vmem:[#allocation2 + $0x3b4] sm:$0xf] }
 0x1bb   : > { %923 = vst [vmem:[#allocation2 + $0x3ec] sm:$0xf] %v646_v53 }
 0x1bc   : > { %2737 = vmatmul.bf16.gmra.mxu3 %v6740_v4  ;;  %v9430_v50 = vadd.f32 %v2873_v30, %v2785_v41  ;;  %v372_v24 = vrot.slane %v9435_v47, 7  ;;  %v615_v39 = vpack.c.bf16 %v9435_v47, %v9435_v47  ;;  %803 = vst [vmem:[#allocation2 + $0x46c] sm:$0xf] %v616_v55 }
 0x1bd   : > { %v9439_v2 = vpop.f32.mrf.mxu0  ;;  %895 = vst [vmem:[#allocation2 + $0x430] sm:$0xf] %v616_v55 }
 0x1be   : > { %v405_v59 = vsel %vm389_vm1, %v372_v24, %v388_v16  ;;  %v421_v4 = vsel %vm389_vm1, %v388_v16, %v372_v24  ;;  %802 = vst [vmem:[#allocation2 + $0x448] sm:$0xf] %v615_v39  ;;  %v471_v24 = vrot.slane %v9435_v47, 1  ;;  %v2439_v47 = vadd.f32 %v9375_v58, %v9279_v32 }
 0x1bf   : > { %v2698_v21 = vpop.f32.mrf.mxu3  ;;  %v2876_v20 = vpop.f32.mrf.mxu1  ;;  %v452_v41 = vsel %vm355_vm0, 0.0, %v421_v4  ;;  %v584_v14 = vpack.c.bf16 %v405_v59, %v405_v59  ;;  %894 = vst [vmem:[#allocation2 + $0x40c] sm:$0xf] %v615_v39  ;;  %v8154_v39 = vld [vmem:[#allocation2 + $0x3fc] sm:$0xf] }
 0x1c0   : > { %v2699_v17 = vadd.f32 %v2698_v21, %v2610_v5  ;;  %2831 = vmatmul.bf16.gmra.mxu0 %v6780_v34  ;;  %v583_v5 = vpack.c.bf16 %v452_v41, %v452_v41  ;;  %v6773_v34 = vld [vmem:[#allocation2 + $0x3d4] sm:$0xf0]  ;;  %v487_v21 = vrot.slane %v9445_v29, 1 }
 0x1c1   : > { %v2611_v30 = vpop.f32.mrf.mxu2  ;;  %771 = vst [vmem:[#allocation2 + $0x468] sm:$0xf] %v584_v14  ;;  %v6776_v56 = vor.u32 %v8145_v49, %v6773_v34 }
 0x1c2   : > { %v2788_v51 = vadd.f32 %v9412_v19, %v2699_v17  ;;  %2915 = vmatmul.bf16.gmra.mxu1 %v6748_v62  ;;  %v2612_v15 = vadd.f32 %v2611_v30, %v2523_v38  ;;  %770 = vst [vmem:[#allocation2 + $0x444] sm:$0xf] %v583_v5  ;;  %v8159_v62 = vld [vmem:[#allocation2 + $0x420] sm:$0xf0]  ;;  %v520_v16 = vsel %vm488_vm2, %v487_v21, %v471_v24 }
 0x1c3   : > { %864 = vst [vmem:[#allocation2 + $0x408] sm:$0xf] %v583_v5  ;;  %v6816_v13 = vor.u32 %v8159_v62, %v6815_v40  ;;  %v8391_v5 = vld [vmem:[#allocation8 + $0x20] sm:$0xff] }
 0x1c4   : > { %v9457_v1 = vadd.f32 %v2876_v20, %v2788_v51  ;;  %865 = vst [vmem:[#allocation2 + $0x42c] sm:$0xf] %v584_v14  ;;  %v8146_v20 = vld [vmem:[#allocation2 + $0x3bc] sm:$0xf]  ;;  %v6807_v51 = vld [vmem:[#allocation2 + $0x3f8] sm:$0xf]  ;;  %5278 = vmatpush.bf16.msra.mxu1 %v8391_v5 }
 0x1c5   : > { %v9459_v43 = vpop.f32.mrf.mxu0  ;;  %v6784_v29 = vor.u32 %v8146_v20, %v6781_v44  ;;  %v6851_v62 = vld [vmem:[#allocation2 + $0x448] sm:$0xf] }
 0x1c6   : > { %2653 = vmatmul.bf16.gmra.mxu2 %v6772_v52  ;;  %v8158_v52 = vld [vmem:[#allocation2 + $0x418] sm:$0xf0]  ;;  %v6817_v20 = vld [vmem:[#allocation2 + $0x424] sm:$0xf0] }
 0x1c7   : > { %v2700_v19 = vpop.f32.mrf.mxu3  ;;  %v9463_v9 = vpop.f32.mrf.mxu1  ;;  %v6808_v49 = vor.u32 %v8158_v52, %v6807_v51 }
 0x1c8   : > { %v2701_v18 = vadd.f32 %v2700_v19, %v2612_v15  ;;  %v2528_v15 = vadd.f32 %v9291_v33, %v2439_v47  ;;  %v6809_v19 = vld [vmem:[#allocation2 + $0x41c] sm:$0xf0]  ;;  %v6845_v5 = vld [vmem:[#allocation2 + $0x464] sm:$0xf0] }
 0x1c9   : > { %v2614_v63 = vpop.f32.mrf.mxu2  ;;  %v6812_v40 = vor.u32 %v8154_v39, %v6809_v19  ;;  %v6327_v39 = vld [vmem:[#allocation2 + $0x20] sm:$0xf]  ;;  %v8035_v19 = vld [vmem:[#allocation2 + $0x40] sm:$0xf0] }
 0x1ca   : > { %v9468_v35 = vadd.f32 %v9424_v42, %v2701_v18  ;;  %v2615_v53 = vadd.f32 %v2614_v63, %v9281_v57  ;;  %v504_v42 = vsel %vm488_vm2, %v471_v24, %v487_v21  ;;  %v552_v57 = vsel %vm455_vm3, 0.0, %v520_v16  ;;  %v8155_v21 = vld [vmem:[#allocation2 + $0x404] sm:$0xf] }
 0x1cb   : > { %v647_v30 = vpack.c.bf16 %v504_v42, %v504_v42  ;;  %v648_v59 = vpack.c.bf16 %v552_v57, %v552_v57  ;;  %v2444_v16 = vadd.f32 %v9375_v58, %v9299_v3  ;;  %v6820_v42 = vor.u32 %v8155_v21, %v6817_v20  ;;  %v6319_v21 = vld [vmem:[#allocation2 + $0x18] sm:$0xf]  ;;  %v8034_v20 = vld [vmem:[#allocation2 + $0x38] sm:$0xf0] }
 0x1cc   : > { %2742 = vmatmul.bf16.gmra.mxu3 %v6776_v56 }
 0x1cd   : > { %v2797_v17 = vpop.f32.mrf.mxu0  ;;  %834 = vst [vmem:[#allocation2 + $0x44c] sm:$0xf] %v647_v30 }
 0x1ce   : > { %835 = vst [vmem:[#allocation2 + $0x470] sm:$0xf] %v648_v59 }
 0x1cf   : > { %v2703_v4 = vpop.f32.mrf.mxu3  ;;  %v2881_v38 = vpop.f32.mrf.mxu1  ;;  %924 = vst [vmem:[#allocation2 + $0x410] sm:$0xf] %v647_v30  ;;  %v8167_v30 = vld [vmem:[#allocation2 + $0x460] sm:$0xf0] }
 0x1d0   : > { %v2704_v41 = vadd.f32 %v2703_v4, %v2615_v53  ;;  %2836 = vmatmul.bf16.gmra.mxu0 %v6816_v13  ;;  %925 = vst [vmem:[#allocation2 + $0x434] sm:$0xf] %v648_v59 }
 0x1d1   : > { %v2616_v14 = vpop.f32.mrf.mxu2 }
 0x1d2   : > { %v2793_v26 = vadd.f32 %v9439_v2, %v2704_v41  ;;  %2920 = vmatmul.bf16.gmra.mxu1 %v6784_v29  ;;  %v2617_v34 = vadd.f32 %v2616_v14, %v2528_v15  ;;  %v8168_v2 = vld [vmem:[#allocation2 + $0x468] sm:$0xf0]  ;;  %v6843_v29 = vld [vmem:[#allocation2 + $0x440] sm:$0xf]  ;;  %v8163_v41 = vld [vmem:[#allocation2 + $0x444] sm:$0xf] }
 0x1d3   : > { %v6852_v44 = vor.u32 %v8168_v2, %v6851_v62 }
 0x1d4   : > { %v9483_v32 = vadd.f32 %v2881_v38, %v2793_v26 }
 0x1d5   : > { %v2799_v55 = vpop.f32.mrf.mxu0 }
 0x1d6   : > { %2658 = vmatmul.bf16.gmra.mxu2 %v6808_v49  ;;  %v6848_v49 = vor.u32 %v8163_v41, %v6845_v5  ;;  %v6363_v41 = vld [vmem:[#allocation2 + $0x68] sm:$0xf]  ;;  %v8044_v5 = vld [vmem:[#allocation2 + $0x88] sm:$0xf0] }
 0x1d7   : > { %v2705_v18 = vpop.f32.mrf.mxu3  ;;  %v9485_v56 = vpop.f32.mrf.mxu1 }
 0x1d8   : > { %v2706_v63 = vadd.f32 %v2705_v18, %v2617_v34 }
 0x1d9   : > { %v2619_v33 = vpop.f32.mrf.mxu2 }
 0x1da   : > { %v9488_v53 = vadd.f32 %v9459_v43, %v2706_v63  ;;  %v2620_v24 = vadd.f32 %v2619_v33, %v9303_v54  ;;  %v2533_v43 = vadd.f32 %v9318_v46, %v2444_v16  ;;  %v6844_v54 = vor.u32 %v8167_v30, %v6843_v29  ;;  %v6853_v63 = vld [vmem:[#allocation2 + $0x46c] sm:$0xf0]  ;;  %v8390_v16 = vld [vmem:[#allocation8 + $0x18] sm:$0xff]  ;;  %v6321_v30 = vld [vmem:[#allocation2 + $0x3c] sm:$0xf0] }
 0x1db   : > { %5279 = vmatpush.bf16.msra.mxu1 %v8390_v16  ;;  %v8030_v29 = vld [vmem:[#allocation2 + $0x1c] sm:$0xf] }
 0x1dc   : > { %2747 = vmatmul.bf16.gmra.mxu3 %v6812_v40  ;;  %v6328_v40 = vor.u32 %v8035_v19, %v6327_v39  ;;  %v6355_v19 = vld [vmem:[#allocation2 + $0x60] sm:$0xf] }
 0x1dd   : > { %v2802_v13 = vpop.f32.mrf.mxu0 }
 0x1df   : > { %v2708_v57 = vpop.f32.mrf.mxu3  ;;  %v2886_v47 = vpop.f32.mrf.mxu1 }
 0x1e0   : > { %v2709_v59 = vadd.f32 %v2708_v57, %v2620_v24  ;;  %2841 = vmatmul.bf16.gmra.mxu0 %v6852_v44 }
 0x1e1   : > { %v2621_v4 = vpop.f32.mrf.mxu2 }
 0x1e2   : > { %v2798_v38 = vadd.f32 %v2797_v17, %v2709_v59  ;;  %2925 = vmatmul.bf16.gmra.mxu1 %v6820_v42  ;;  %v2622_v52 = vadd.f32 %v2621_v4, %v2533_v43  ;;  %v8164_v17 = vld [vmem:[#allocation2 + $0x44c] sm:$0xf] }
 0x1e3   : > { %v6856_v62 = vor.u32 %v8164_v17, %v6853_v63 }
 0x1e4   : > { %v9494_v51 = vadd.f32 %v2886_v47, %v2798_v38  ;;  %v6320_v47 = vor.u32 %v8034_v20, %v6319_v21  ;;  %v6357_v21 = vld [vmem:[#allocation2 + $0x84] sm:$0xf0] }
 0x1e5   : > { %v2804_v14 = vpop.f32.mrf.mxu0 }
 0x1e6   : > { %2663 = vmatmul.bf16.gmra.mxu2 %v6844_v54  ;;  %v6324_v54 = vor.u32 %v8030_v29, %v6321_v30 }
 0x1e7   : > { %v2710_v3 = vpop.f32.mrf.mxu3  ;;  %v9496_v15 = vpop.f32.mrf.mxu1 }
 0x1e8   : > { %v2711_v26 = vadd.f32 %v2710_v3, %v2622_v52  ;;  %v6364_v3 = vor.u32 %v8044_v5, %v6363_v41  ;;  %v8052_v41 = vld [vmem:[#allocation2 + $0xc8] sm:$0xf0] }
 0x1e9   : > { %v2624_v34 = vpop.f32.mrf.mxu2 }
 0x1ea   : > { %v9498_v18 = vadd.f32 %v2799_v55, %v2711_v26  ;;  %v2625_v46 = vadd.f32 %v2624_v34, %v9332_v12 }
 0x1ec   : > { %2752 = vmatmul.bf16.gmra.mxu3 %v6848_v49  ;;  %v2454_v49 = vadd.f32 %v9375_v58, %v9162_v23 }
 0x1ed   : > { %v2807_v33 = vpop.f32.mrf.mxu0 }
 0x1ef   : > { %v2713_v2 = vpop.f32.mrf.mxu3  ;;  %v2891_v24 = vpop.f32.mrf.mxu1 }
 0x1f0   : > { %v2714_v44 = vadd.f32 %v2713_v2, %v2625_v46  ;;  %3122 = vmatmul.bf16.vlgmr.msra.gmra.mxu0 %v6328_v40  ;;  %v8043_v46 = vld [vmem:[#allocation2 + $0x80] sm:$0xf0]  ;;  %v2543_v40 = vadd.f32 %v9167_v45, %v2454_v49 }
 0x1f1   : > { %v2626_v42 = vpop.f32.mrf.mxu2 }
 0x1f2   : > { %v2803_v57 = vadd.f32 %v2802_v13, %v2714_v44  ;;  %v2627_v55 = vadd.f32 %v2626_v42, %v9338_v37  ;;  %2930 = vmatmul.bf16.gmra.mxu1 %v6856_v62 }
 0x1f4   : > { %v9502_v12 = vadd.f32 %v2891_v24, %v2803_v57  ;;  %v8039_v24 = vld [vmem:[#allocation2 + $0x64] sm:$0xf] }
 0x1f5   : > { %v2809_v59 = vpop.f32.mrf.mxu0  ;;  %v6360_v42 = vor.u32 %v8039_v24, %v6357_v21  ;;  %v8062_v24 = vld [vmem:[#allocation2 + $0x118] sm:$0xf0] }
 0x1f6   : > { %2944 = vmatmul.bf16.vlgmr.msra.gmra.mxu2 %v6320_v47  ;;  %v8053_v47 = vld [vmem:[#allocation2 + $0xd0] sm:$0xf0] }
 0x1f7   : > { %v2715_v4 = vpop.f32.mrf.mxu3  ;;  %v9504_v43 = vpop.f32.mrf.mxu1 }
 0x1f8   : > { %v2716_v38 = vadd.f32 %v2715_v4, %v2627_v55  ;;  %v6399_v55 = vld [vmem:[#allocation2 + $0xb0] sm:$0xf]  ;;  %v2459_v4 = vadd.f32 %v9375_v58, %v9191_v0 }
 0x1f9   : > { %v2629_v52 = vpop.f32.mrf.mxu2 }
 0x1fa   : > { %v9506_v13 = vadd.f32 %v2804_v14, %v2716_v38  ;;  %v2630_v37 = vadd.f32 %v2629_v52, %v9148_v25  ;;  %v6356_v14 = vor.u32 %v8043_v46, %v6355_v19  ;;  %v6391_v52 = vld [vmem:[#allocation2 + $0xa8] sm:$0xf]  ;;  %v2548_v49 = vadd.f32 %v9193_v7, %v2459_v4  ;;  %v8048_v19 = vld [vmem:[#allocation2 + $0xac] sm:$0xf]  ;;  %v6393_v46 = vld [vmem:[#allocation2 + $0xcc] sm:$0xf0] }
 0x1fc   : > { %3033 = vmatmul.bf16.vlgmr.msra.gmra.mxu3 %v6324_v54 }
 0x1fd   : > { %v2812_v26 = vpop.f32.mrf.mxu0 }
 0x1ff   : > { %v2718_v34 = vpop.f32.mrf.mxu3  ;;  %v2896_v39 = vpop.f32.mrf.mxu1 }
 0x200   : > { %v2719_v17 = vadd.f32 %v2718_v34, %v2630_v37  ;;  %3127 = vmatmul.bf16.gmra.mxu0 %v6364_v3  ;;  %v8389_v37 = vld [vmem:[#allocation8 + $0x10] sm:$0xff]  ;;  %v6392_v34 = vor.u32 %v8052_v41, %v6391_v52 }
 0x201   : > { %v2631_v63 = vpop.f32.mrf.mxu2  ;;  %5280 = vmatpush.bf16.msra.mxu1 %v8389_v37  ;;  %v6429_v37 = vld [vmem:[#allocation2 + $0x114] sm:$0xf0] }
 0x202   : > { %v2808_v62 = vadd.f32 %v2807_v33, %v2719_v17  ;;  %v2632_v25 = vadd.f32 %v2631_v63, %v2543_v40  ;;  %v6400_v33 = vor.u32 %v8053_v47, %v6399_v55  ;;  %v6427_v47 = vld [vmem:[#allocation2 + $0xf0] sm:$0xf] }
 0x204   : > { %v9512_v2 = vadd.f32 %v2896_v39, %v2808_v62  ;;  %v6396_v62 = vor.u32 %v8048_v19, %v6393_v46  ;;  %v6471_v46 = vld [vmem:[#allocation2 + $0x140] sm:$0xf] }
 0x205   : > { %v2814_v20 = vpop.f32.mrf.mxu0 }
 0x206   : > { %2949 = vmatmul.bf16.gmra.mxu2 %v6356_v14 }
 0x207   : > { %v2720_v44 = vpop.f32.mrf.mxu3  ;;  %v9514_v23 = vpop.f32.mrf.mxu1 }
 0x208   : > { %v2721_v16 = vadd.f32 %v2720_v44, %v2632_v25  ;;  %v6435_v25 = vld [vmem:[#allocation2 + $0xf8] sm:$0xf] }
 0x209   : > { %v2634_v57 = vpop.f32.mrf.mxu2 }
 0x20a   : > { %v9516_v29 = vadd.f32 %v2809_v59, %v2721_v16  ;;  %v2635_v45 = vadd.f32 %v2634_v57, %v9187_v48  ;;  %v10532_v16 = vld [vmem:[#allocation13_spill] sm:$0xff] }
 0x20c   : > { %3038 = vmatmul.bf16.gmra.mxu3 %v6360_v42  ;;  %v2464_v42 = vadd.f32 %v9375_v58, %v10532_v16 }
 0x20d   : > { %v2817_v30 = vpop.f32.mrf.mxu0 }
 0x20f   : > { %v2723_v38 = vpop.f32.mrf.mxu3  ;;  %v2901_v54 = vpop.f32.mrf.mxu1 }
 0x210   : > { %v2724_v5 = vadd.f32 %v2723_v38, %v2635_v45  ;;  %3132 = vmatmul.bf16.gmra.mxu0 %v6400_v33  ;;  %v8061_v45 = vld [vmem:[#allocation2 + $0x110] sm:$0xf0]  ;;  %v10533_v38 = vld [vmem:[#allocation14_spill] sm:$0xff] }
 0x211   : > { %v2636_v3 = vpop.f32.mrf.mxu2 }
 0x212   : > { %v2813_v59 = vadd.f32 %v2812_v26, %v2724_v5  ;;  %v2637_v39 = vadd.f32 %v2636_v3, %v2548_v49  ;;  %v6436_v26 = vor.u32 %v8062_v24, %v6435_v25  ;;  %v8057_v5 = vld [vmem:[#allocation2 + $0xf4] sm:$0xf]  ;;  %v10535_v24 = vld [vmem:[#allocation16_spill] sm:$0xff] }
 0x214   : > { %v9522_v48 = vadd.f32 %v2901_v54, %v2813_v59  ;;  %v2553_v54 = vadd.f32 %v10533_v38, %v2464_v42  ;;  %v6463_v42 = vld [vmem:[#allocation2 + $0x138] sm:$0xf] }
 0x215   : > { %v2819_v17 = vpop.f32.mrf.mxu0 }
 0x216   : > { %2954 = vmatmul.bf16.gmra.mxu2 %v6392_v34 }
 0x217   : > { %v2725_v0 = vpop.f32.mrf.mxu3  ;;  %v9524_v63 = vpop.f32.mrf.mxu1 }
 0x218   : > { %v2726_v40 = vadd.f32 %v2725_v0, %v2637_v39  ;;  %v6432_v39 = vor.u32 %v8057_v5, %v6429_v37  ;;  %v8071_v0 = vld [vmem:[#allocation2 + $0x160] sm:$0xf0] }
 0x219   : > { %v2639_v14 = vpop.f32.mrf.mxu2 }
 0x21a   : > { %v9526_v21 = vadd.f32 %v2814_v20, %v2726_v40  ;;  %v2640_v7 = vadd.f32 %v2639_v14, %v9207_v8  ;;  %v6428_v20 = vor.u32 %v8061_v45, %v6427_v47  ;;  %v6472_v14 = vor.u32 %v8071_v0, %v6471_v46  ;;  %v8388_v47 = vld [vmem:[#allocation8 + $0x8] sm:$0xff] }
 0x21b   : > { %5281 = vmatpush.bf16.msra.mxu1 %v8388_v47  ;;  %v6507_v46 = vld [vmem:[#allocation2 + $0x188] sm:$0xf]  ;;  %v8080_v0 = vld [vmem:[#allocation2 + $0x1a8] sm:$0xf0] }
 0x21c   : > { %3043 = vmatmul.bf16.gmra.mxu3 %v6396_v62  ;;  %v10534_v62 = vld [vmem:[#allocation15_spill] sm:$0xff] }
 0x21d   : > { %v2822_v44 = vpop.f32.mrf.mxu0 }
 0x21f   : > { %v2728_v57 = vpop.f32.mrf.mxu3  ;;  %v2906_v55 = vpop.f32.mrf.mxu1 }
 0x220   : > { %v2729_v33 = vadd.f32 %v2728_v57, %v2640_v7  ;;  %3137 = vmatmul.bf16.gmra.mxu0 %v6436_v26  ;;  %v2469_v7 = vadd.f32 %v9375_v58, %v10535_v24  ;;  %v8070_v57 = vld [vmem:[#allocation2 + $0x158] sm:$0xf0] }
 0x221   : > { %v2641_v4 = vpop.f32.mrf.mxu2  ;;  %v6464_v38 = vor.u32 %v8070_v57, %v6463_v42  ;;  %v6499_v57 = vld [vmem:[#allocation2 + $0x180] sm:$0xf] }
 0x222   : > { %v2818_v52 = vadd.f32 %v2817_v30, %v2729_v33  ;;  %v2642_v8 = vadd.f32 %v2641_v4, %v2553_v54  ;;  %v10536_v33 = vld [vmem:[#allocation17_spill] sm:$0xff] }
 0x223   : > { %v2558_v4 = vadd.f32 %v10536_v33, %v2469_v7  ;;  %v10538_v7 = vld [vmem:[#allocation19_spill] sm:$0xff]  ;;  %v10539_v33 = vld [vmem:[#allocation20_spill] sm:$0xff] }
 0x224   : > { %v9532_v41 = vadd.f32 %v2906_v55, %v2818_v52 }
 0x225   : > { %v2824_v3 = vpop.f32.mrf.mxu0 }
 0x226   : > { %2959 = vmatmul.bf16.gmra.mxu2 %v6428_v20  ;;  %v8066_v20 = vld [vmem:[#allocation2 + $0x13c] sm:$0xf] }
 0x227   : > { %v2730_v49 = vpop.f32.mrf.mxu3  ;;  %v9534_v59 = vpop.f32.mrf.mxu1 }
 0x228   : > { %v2731_v34 = vadd.f32 %v2730_v49, %v2642_v8  ;;  %v6465_v8 = vld [vmem:[#allocation2 + $0x15c] sm:$0xf0] }
 0x229   : > { %v2644_v19 = vpop.f32.mrf.mxu2 }
 0x22a   : > { %v9536_v40 = vadd.f32 %v2819_v17, %v2731_v34  ;;  %v2645_v30 = vadd.f32 %v2644_v19, %v10534_v62 }
 0x22c   : > { %3048 = vmatmul.bf16.gmra.mxu3 %v6432_v39  ;;  %v6468_v39 = vor.u32 %v8066_v20, %v6465_v8  ;;  %v8075_v20 = vld [vmem:[#allocation2 + $0x184] sm:$0xf]  ;;  %v6501_v8 = vld [vmem:[#allocation2 + $0x1a4] sm:$0xf0] }
 0x22d   : > { %v2827_v25 = vpop.f32.mrf.mxu0 }
 0x22f   : > { %v2733_v26 = vpop.f32.mrf.mxu3  ;;  %v2911_v16 = vpop.f32.mrf.mxu1 }
 0x230   : > { %v2734_v55 = vadd.f32 %v2733_v26, %v2645_v30  ;;  %3142 = vmatmul.bf16.gmra.mxu0 %v6472_v14  ;;  %v6508_v14 = vor.u32 %v8080_v0, %v6507_v46  ;;  %v2474_v26 = vadd.f32 %v9375_v58, %v10538_v7  ;;  %v6504_v46 = vor.u32 %v8075_v20, %v6501_v8  ;;  %v10541_v7 = vld [vmem:[#allocation21_spill] sm:$0xff] }
 0x231   : > { %v2646_v45 = vpop.f32.mrf.mxu2 }
 0x232   : > { %v2823_v17 = vadd.f32 %v2822_v44, %v2734_v55  ;;  %v2647_v52 = vadd.f32 %v2646_v45, %v2558_v4  ;;  %v10537_v44 = vld [vmem:[#allocation18_spill] sm:$0xff]  ;;  %v8079_v55 = vld [vmem:[#allocation2 + $0x1a0] sm:$0xf0]  ;;  %v2563_v4 = vadd.f32 %v10539_v33, %v2474_v26 }
 0x233   : > { %v8088_v33 = vld [vmem:[#allocation2 + $0x1e8] sm:$0xf0] }
 0x234   : > { %v9542_v54 = vadd.f32 %v2911_v16, %v2823_v17 }
 0x235   : > { %v2829_v5 = vpop.f32.mrf.mxu0 }
 0x236   : > { %2964 = vmatmul.bf16.gmra.mxu2 %v6464_v38 }
 0x237   : > { %v2735_v37 = vpop.f32.mrf.mxu3  ;;  %v9544_v49 = vpop.f32.mrf.mxu1 }
 0x238   : > { %v2736_v34 = vadd.f32 %v2735_v37, %v2647_v52 }
 0x239   : > { %v2649_v19 = vpop.f32.mrf.mxu2 }
 0x23a   : > { %v9546_v62 = vadd.f32 %v2824_v3, %v2736_v34  ;;  %v2650_v30 = vadd.f32 %v2649_v19, %v10537_v44  ;;  %v6500_v3 = vor.u32 %v8079_v55, %v6499_v57  ;;  %v6543_v44 = vld [vmem:[#allocation2 + $0x1d0] sm:$0xf] }
 0x23c   : > { %3053 = vmatmul.bf16.gmra.mxu3 %v6468_v39 }
 0x23d   : > { %v2832_v24 = vpop.f32.mrf.mxu0 }
 0x23f   : > { %v2738_v16 = vpop.f32.mrf.mxu3  ;;  %v2916_v42 = vpop.f32.mrf.mxu1 }
 0x240   : > { %v2739_v47 = vadd.f32 %v2738_v16, %v2650_v30  ;;  %3147 = vmatmul.bf16.gmra.mxu0 %v6508_v14  ;;  %v8089_v30 = vld [vmem:[#allocation2 + $0x1f0] sm:$0xf0] }
 0x241   : > { %v2651_v45 = vpop.f32.mrf.mxu2  ;;  %v6544_v26 = vor.u32 %v8089_v30, %v6543_v44 }
 0x242   : > { %v2828_v17 = vadd.f32 %v2827_v25, %v2739_v47  ;;  %v2652_v52 = vadd.f32 %v2651_v45, %v2563_v4  ;;  %v6535_v45 = vld [vmem:[#allocation2 + $0x1c8] sm:$0xf] }
 0x243   : > { %v6536_v8 = vor.u32 %v8088_v33, %v6535_v45 }
 0x244   : > { %v9552_v38 = vadd.f32 %v2916_v42, %v2828_v17  ;;  %v10542_v42 = vld [vmem:[#allocation22_spill] sm:$0xff]  ;;  %v8387_v17 = vld [vmem:[#allocation8] sm:$0xff] }
 0x245   : > { %v2834_v37 = vpop.f32.mrf.mxu0  ;;  %v2479_v57 = vadd.f32 %v9375_v58, %v10542_v42  ;;  %5282 = vmatpush.bf16.msra.mxu1 %v8387_v17  ;;  %v6579_v42 = vld [vmem:[#allocation2 + $0x218] sm:$0xf]  ;;  %v6571_v17 = vld [vmem:[#allocation2 + $0x210] sm:$0xf] }
 0x246   : > { %2969 = vmatmul.bf16.gmra.mxu2 %v6500_v3 }
 0x247   : > { %v2740_v34 = vpop.f32.mrf.mxu3  ;;  %v9554_v39 = vpop.f32.mrf.mxu1 }
 0x248   : > { %10540 = vst [vmem:[#allocation13_spill] sm:$0xff] %v9554_v39  ;;  %v2741_v19 = vadd.f32 %v2740_v34, %v2652_v52  ;;  %v10543_v52 = vld [vmem:[#allocation23_spill] sm:$0xff] }
 0x249   : > { %v2654_v0 = vpop.f32.mrf.mxu2  ;;  %v2568_v20 = vadd.f32 %v10543_v52, %v2479_v57 }
 0x24a   : > { %v9556_v14 = vadd.f32 %v2829_v5, %v2741_v19  ;;  %v2655_v25 = vadd.f32 %v2654_v0, %v10541_v7  ;;  %v6537_v0 = vld [vmem:[#allocation2 + $0x1ec] sm:$0xf0] }
 0x24c   : > { %3058 = vmatmul.bf16.gmra.mxu3 %v6504_v46  ;;  %v8084_v46 = vld [vmem:[#allocation2 + $0x1cc] sm:$0xf] }
 0x24d   : > { %v2837_v16 = vpop.f32.mrf.mxu0 }
 0x24f   : > { %v2743_v55 = vpop.f32.mrf.mxu3  ;;  %v2921_v47 = vpop.f32.mrf.mxu1 }
 0x250   : > { %v2744_v4 = vadd.f32 %v2743_v55, %v2655_v25  ;;  %3152 = vmatmul.bf16.gmra.mxu0 %v6544_v26  ;;  %v6540_v25 = vor.u32 %v8084_v46, %v6537_v0  ;;  %v8098_v55 = vld [vmem:[#allocation2 + $0x238] sm:$0xf0] }
 0x251   : > { %v2656_v3 = vpop.f32.mrf.mxu2 }
 0x252   : > { %v2833_v5 = vadd.f32 %v2832_v24, %v2744_v4  ;;  %v2657_v19 = vadd.f32 %v2656_v3, %v2568_v20  ;;  %v10545_v24 = vld [vmem:[#allocation24_spill] sm:$0xff]  ;;  %v8097_v3 = vld [vmem:[#allocation2 + $0x230] sm:$0xf0] }
 0x253   : > { %v6572_v46 = vor.u32 %v8097_v3, %v6571_v17  ;;  %v10549_v17 = vld [vmem:[#allocation26_spill] sm:$0xff]  ;;  %v8247_v3 = vld [vmem:[#allocation2 + $0x20] sm:$0xf0] }
 0x254   : > { %v9562_v34 = vadd.f32 %v2921_v47, %v2833_v5  ;;  %v6580_v47 = vor.u32 %v8098_v55, %v6579_v42 }
 0x255   : > { %v2839_v44 = vpop.f32.mrf.mxu0 }
 0x256   : > { %2974 = vmatmul.bf16.gmra.mxu2 %v6536_v8  ;;  %v10546_v8 = vld [vmem:[#allocation25_spill] sm:$0xff] }
 0x257   : > { %v2745_v58 = vpop.f32.mrf.mxu3  ;;  %v9564_v30 = vpop.f32.mrf.mxu1 }
 0x258   : > { %10544 = vst [vmem:[#allocation14_spill] sm:$0xff] %v9564_v30  ;;  %v2746_v7 = vadd.f32 %v2745_v58, %v2657_v19  ;;  %v6573_v58 = vld [vmem:[#allocation2 + $0x234] sm:$0xf0]  ;;  %v8107_v30 = vld [vmem:[#allocation2 + $0x280] sm:$0xf0] }
 0x259   : > { %v2659_v26 = vpop.f32.mrf.mxu2 }
 0x25a   : > { %v9566_v39 = vadd.f32 %v2834_v37, %v2746_v7  ;;  %v2660_v57 = vadd.f32 %v2659_v26, %v10545_v24  ;;  %v8093_v37 = vld [vmem:[#allocation2 + $0x214] sm:$0xf]  ;;  %v6615_v24 = vld [vmem:[#allocation2 + $0x260] sm:$0xf] }
 0x25b   : > { %v6576_v55 = vor.u32 %v8093_v37, %v6573_v58  ;;  %v8106_v37 = vld [vmem:[#allocation2 + $0x278] sm:$0xf0] }
 0x25c   : > { %3063 = vmatmul.bf16.gmra.mxu3 %v6540_v25 }
 0x25d   : > { %v2842_v45 = vpop.f32.mrf.mxu0 }
 0x25f   : > { %v2748_v33 = vpop.f32.mrf.mxu3  ;;  %v2926_v4 = vpop.f32.mrf.mxu1 }
 0x260   : > { %v2749_v52 = vadd.f32 %v2748_v33, %v2660_v57  ;;  %3157 = vmatmul.bf16.gmra.mxu0 %v6580_v47  ;;  %v8402_v47 = vld [vmem:[#allocation8 + $0x78] sm:$0xff] }
 0x261   : > { %v2661_v20 = vpop.f32.mrf.mxu2  ;;  %v8410_v33 = vld [vmem:[#allocation8 + $0xb8] sm:$0xff]  ;;  %5364 = vmatpush.bf16.msrb.mxu2 %v8402_v47 }
 0x262   : > { %v2838_v5 = vadd.f32 %v2837_v16, %v2749_v52  ;;  %v2662_v19 = vadd.f32 %v2661_v20, %v10546_v8  ;;  %v7159_v16 = vld [vmem:[#allocation2] sm:$0xf]  ;;  %5453 = vmatpush.bf16.msrb.mxu3 %v8410_v33  ;;  %v8102_v47 = vld [vmem:[#allocation2 + $0x25c] sm:$0xf] }
 0x263   : > { %v7160_v20 = vor.u32 %v8247_v3, %v7159_v16  ;;  %v6609_v33 = vld [vmem:[#allocation2 + $0x27c] sm:$0xf0]  ;;  %v6651_v3 = vld [vmem:[#allocation2 + $0x2a8] sm:$0xf] }
 0x264   : > { %v9570_v0 = vadd.f32 %v2926_v4, %v2838_v5  ;;  %v6616_v5 = vor.u32 %v8107_v30, %v6615_v24  ;;  %v6612_v24 = vor.u32 %v8102_v47, %v6609_v33  ;;  %v8111_v33 = vld [vmem:[#allocation2 + $0x2a4] sm:$0xf] }
 0x265   : > { %v2844_v7 = vpop.f32.mrf.mxu0  ;;  %5283 = vmatmul.bf16.vlgmr.msra.gmra.mxu1 %v7160_v20  ;;  %v8116_v20 = vld [vmem:[#allocation2 + $0x2c8] sm:$0xf0] }
 0x266   : > { %10547 = vst [vmem:[#allocation15_spill] sm:$0xff] %v9570_v0  ;;  %2979 = vmatmul.bf16.gmra.mxu2 %v6572_v46  ;;  %v6607_v46 = vld [vmem:[#allocation2 + $0x258] sm:$0xf] }
 0x267   : > { %v2750_v25 = vpop.f32.mrf.mxu3  ;;  %v9572_v26 = vpop.f32.mrf.mxu1 }
 0x268   : > { %10548 = vst [vmem:[#allocation16_spill] sm:$0xff] %v9572_v26  ;;  %v2751_v42 = vadd.f32 %v2750_v25, %v2662_v19 }
 0x269   : > { %v2664_v57 = vpop.f32.mrf.mxu2 }
 0x26a   : > { %v9574_v52 = vadd.f32 %v2839_v44, %v2751_v42  ;;  %v2665_v4 = vadd.f32 %v2664_v57, %v10549_v17  ;;  %v6608_v42 = vor.u32 %v8106_v37, %v6607_v46  ;;  %v6643_v46 = vld [vmem:[#allocation2 + $0x2a0] sm:$0xf]  ;;  %v8115_v37 = vld [vmem:[#allocation2 + $0x2c0] sm:$0xf0] }
 0x26c   : > { %3068 = vmatmul.bf16.gmra.mxu3 %v6576_v55 }
 0x26d   : > { %v3123_v8 = vpop.f32.mrf.mxu0 }
 0x26f   : > { %v2753_v19 = vpop.f32.mrf.mxu3  ;;  %v2931_v25 = vpop.f32.mrf.mxu1 }
 0x270   : > { %v2754_v58 = vadd.f32 %v2753_v19, %v2665_v4  ;;  %3162 = vmatmul.bf16.gmra.mxu0 %v6616_v5  ;;  %v8418_v5 = vld [vmem:[#allocation8 + $0xf8] sm:$0xff] }
 0x271   : > { %v2666_v26 = vpop.f32.mrf.mxu2  ;;  %5542 = vmatpush.bf16.msrb.mxu0 %v8418_v5 }
 0x272   : > { %v2843_v0 = vadd.f32 %v2842_v45, %v2754_v58  ;;  %v2667_v44 = vadd.f32 %v2666_v26, %v9340_v61  ;;  %v6652_v61 = vor.u32 %v8116_v20, %v6651_v3  ;;  %v8426_v26 = vld [vmem:[#allocation8 + $0x138] sm:$0xff] }
 0x273   : > { %5631 = vmatpush.bf16.msrb.mxu1 %v8426_v26 }
 0x274   : > { %v9578_v57 = vadd.f32 %v2931_v25, %v2843_v0 }
 0x275   : > { %v3125_v16 = vpop.f32.mrf.mxu0 }
 0x276   : > { %2984 = vmatmul.bf16.gmra.mxu2 %v6608_v42  ;;  %v6644_v42 = vor.u32 %v8115_v37, %v6643_v46 }
 0x277   : > { %v2755_v30 = vpop.f32.mrf.mxu3 }
 0x278   : > { %v2756_v55 = vadd.f32 %v2755_v30, %v2667_v44  ;;  %v6645_v30 = vld [vmem:[#allocation2 + $0x2c4] sm:$0xf0] }
 0x279   : > { %v2945_v17 = vpop.f32.mrf.mxu2  ;;  %v6648_v3 = vor.u32 %v8111_v33, %v6645_v30  ;;  %v8124_v33 = vld [vmem:[#allocation2 + $0x308] sm:$0xf0] }
 0x27a   : > { %v9580_v4 = vadd.f32 %v2844_v7, %v2756_v55  ;;  %v2946_v45 = vadd.f32 %v2945_v17, %v9357_v22 }
 0x27c   : > { %3073 = vmatmul.bf16.gmra.mxu3 %v6612_v24 }
 0x27d   : > { %v3128_v0 = vpop.f32.mrf.mxu0 }
 0x27f   : > { %v3034_v19 = vpop.f32.mrf.mxu3 }
 0x280   : > { %v3035_v58 = vadd.f32 %v3034_v19, %v2946_v45  ;;  %3167 = vmatmul.bf16.gmra.mxu0 %v6652_v61  ;;  %v6687_v45 = vld [vmem:[#allocation2 + $0x2f0] sm:$0xf]  ;;  %v8125_v61 = vld [vmem:[#allocation2 + $0x310] sm:$0xf0] }
 0x281   : > { %v2947_v25 = vpop.f32.mrf.mxu2  ;;  %v6688_v46 = vor.u32 %v8125_v61, %v6687_v45  ;;  %v8409_v45 = vld [vmem:[#allocation8 + $0xb0] sm:$0xff] }
 0x282   : > { %v3124_v44 = vadd.f32 %v3123_v8, %v3035_v58  ;;  %v2948_v7 = vadd.f32 %v2947_v25, %v9362_v60  ;;  %5454 = vmatpush.bf16.msrb.mxu3 %v8409_v45 }
 0x284   : > { %v3203_v47 = vmax.f32 %v3124_v44, 0.0 }
 0x285   : > { %v9584_v55 = vpop.f32.mrf.mxu0 }
 0x286   : > { %v3459_v22 = vpack.c.bf16 %v3203_v47, %v3203_v47  ;;  %2989 = vmatmul.bf16.gmra.mxu2 %v6644_v42  ;;  %v3235_v26 = vrot.slane %v3203_v47, 7  ;;  %v3331_v19 = vrot.slane %v3203_v47, 1 }
 0x287   : > { %v3036_v24 = vpop.f32.mrf.mxu3 }
 0x288   : > { %3553 = vst [vmem:[#allocation2 + $0x4c] sm:$0xf] %v3459_v22  ;;  %v3037_v17 = vadd.f32 %v3036_v24, %v2948_v7  ;;  %v6679_v7 = vld [vmem:[#allocation2 + $0x2e8] sm:$0xf] }
 0x289   : > { %3645 = vst [vmem:[#allocation2 + $0x10] sm:$0xf] %v3459_v22  ;;  %v2950_v20 = vpop.f32.mrf.mxu2 }
 0x28a   : > { %v3126_v5 = vadd.f32 %v3125_v16, %v3037_v17  ;;  %v2951_v44 = vadd.f32 %v2950_v20, %v9381_v31 }
 0x28c   : > { %v3204_v8 = vmax.f32 %v3126_v5, 0.0  ;;  %3078 = vmatmul.bf16.gmra.mxu3 %v6648_v3  ;;  %v8401_v5 = vld [vmem:[#allocation8 + $0x70] sm:$0xff] }
 0x28d   : > { %v9586_v60 = vpop.f32.mrf.mxu0  ;;  %5365 = vmatpush.bf16.msrb.mxu2 %v8401_v5 }
 0x28e   : > { %v3251_v37 = vrot.slane %v3204_v8, 7  ;;  %v3347_v58 = vrot.slane %v3204_v8, 1  ;;  %v3460_v25 = vpack.c.bf16 %v3204_v8, %v3204_v8 }
 0x28f   : > { %v3039_v42 = vpop.f32.mrf.mxu3 }
 0x290   : > { %v3267_v16 = vsel %vm389_vm1, %v3235_v26, %v3251_v37  ;;  %v3283_v30 = vsel %vm389_vm1, %v3251_v37, %v3235_v26  ;;  %v3363_v47 = vsel %vm488_vm2, %v3331_v19, %v3347_v58  ;;  %v3379_v22 = vsel %vm488_vm2, %v3347_v58, %v3331_v19  ;;  %3554 = vst [vmem:[#allocation2 + $0x70] sm:$0xf] %v3460_v25 }
 0x291   : > { %v3299_v24 = vsel %vm355_vm0, 0.0, %v3283_v30  ;;  %v3396_v31 = vsel %vm455_vm3, 0.0, %v3379_v22  ;;  %v3428_v17 = vpack.c.bf16 %v3267_v16, %v3267_v16  ;;  %v3491_v3 = vpack.c.bf16 %v3363_v47, %v3363_v47  ;;  %3646 = vst [vmem:[#allocation2 + $0x34] sm:$0xf] %v3460_v25  ;;  %v2952_v20 = vpop.f32.mrf.mxu2  ;;  %3172 = vmatmul.bf16.gmra.mxu0 %v6688_v46  ;;  %v8120_v30 = vld [vmem:[#allocation2 + $0x2ec] sm:$0xf] }
 0x292   : > { %v3427_v61 = vpack.c.bf16 %v3299_v24, %v3299_v24  ;;  %v3492_v8 = vpack.c.bf16 %v3396_v31, %v3396_v31  ;;  %v3040_v26 = vadd.f32 %v3039_v42, %v2951_v44  ;;  %v6680_v37 = vor.u32 %v8124_v33, %v6679_v7  ;;  %v6681_v16 = vld [vmem:[#allocation2 + $0x30c] sm:$0xf0]  ;;  %v6723_v22 = vld [vmem:[#allocation2 + $0x338] sm:$0xf]  ;;  %v8134_v24 = vld [vmem:[#allocation2 + $0x358] sm:$0xf0] }
 0x293   : > { %3524 = vst [vmem:[#allocation2 + $0x6c] sm:$0xf] %v3428_v17  ;;  %v2953_v58 = vadd.f32 %v2952_v20, %v9388_v10  ;;  %v6684_v7 = vor.u32 %v8120_v30, %v6681_v16  ;;  %v8133_v30 = vld [vmem:[#allocation2 + $0x350] sm:$0xf0] }
 0x294   : > { %3523 = vst [vmem:[#allocation2 + $0x48] sm:$0xf] %v3427_v61  ;;  %v3129_v19 = vadd.f32 %v3128_v0, %v3040_v26  ;;  %v6724_v26 = vor.u32 %v8134_v24, %v6723_v22 }
 0x295   : > { %3583 = vst [vmem:[#allocation2 + $0x50] sm:$0xf] %v3491_v3  ;;  %v9602_v47 = vpop.f32.mrf.mxu0 }
 0x296   : > { %3584 = vst [vmem:[#allocation2 + $0x74] sm:$0xf] %v3492_v8  ;;  %v3205_v46 = vmax.f32 %v3129_v19, 0.0  ;;  %2994 = vmatmul.bf16.gmra.mxu2 %v6680_v37 }
 0x297   : > { %3613 = vst [vmem:[#allocation2 + $0xc] sm:$0xf] %v3427_v61  ;;  %v3041_v25 = vpop.f32.mrf.mxu3 }
 0x298   : > { %3614 = vst [vmem:[#allocation2 + $0x30] sm:$0xf] %v3428_v17  ;;  %v3461_v44 = vpack.c.bf16 %v3205_v46, %v3205_v46  ;;  %v3042_v42 = vadd.f32 %v3041_v25, %v2953_v58  ;;  %v3236_v45 = vrot.slane %v3205_v46, 7  ;;  %v3332_v61 = vrot.slane %v3205_v46, 1  ;;  %v6715_v58 = vld [vmem:[#allocation2 + $0x330] sm:$0xf] }
 0x299   : > { %3677 = vst [vmem:[#allocation2 + $0x14] sm:$0xf] %v3491_v3  ;;  %v2955_v33 = vpop.f32.mrf.mxu2 }
 0x29a   : > { %3678 = vst [vmem:[#allocation2 + $0x38] sm:$0xf] %v3492_v8  ;;  %v3131_v10 = vadd.f32 %v9584_v55, %v3042_v42  ;;  %v8256_v0 = vld [vmem:[#allocation2 + $0x68] sm:$0xf0]  ;;  %v2956_v8 = vadd.f32 %v2955_v33, %v9402_v28  ;;  %v8417_v42 = vld [vmem:[#allocation8 + $0xf0] sm:$0xff] }
 0x29b   : > { %3555 = vst [vmem:[#allocation2 + $0x94] sm:$0xf] %v3461_v44  ;;  %v7195_v31 = vld [vmem:[#allocation2 + $0x48] sm:$0xf]  ;;  %5543 = vmatpush.bf16.msrb.mxu0 %v8417_v42 }
 0x29c   : > { %3647 = vst [vmem:[#allocation2 + $0x58] sm:$0xf] %v3461_v44  ;;  %v3206_v20 = vmax.f32 %v3131_v10, 0.0  ;;  %3083 = vmatmul.bf16.gmra.mxu3 %v6684_v7  ;;  %v7196_v5 = vor.u32 %v8256_v0, %v7195_v31 }
 0x29d   : > { %3739 = vst [vmem:[#allocation2 + $0x1c] sm:$0xf] %v3461_v44  ;;  %v9605_v17 = vpop.f32.mrf.mxu0 }
 0x29e   : > { %v3252_v3 = vrot.slane %v3206_v20, 7  ;;  %v3348_v37 = vrot.slane %v3206_v20, 1  ;;  %v3462_v19 = vpack.c.bf16 %v3206_v20, %v3206_v20  ;;  %5288 = vmatmul.bf16.gmra.mxu1 %v7196_v5  ;;  %v6716_v20 = vor.u32 %v8133_v30, %v6715_v58  ;;  %v8425_v5 = vld [vmem:[#allocation8 + $0x130] sm:$0xff]  ;;  %v6759_v30 = vld [vmem:[#allocation2 + $0x380] sm:$0xf] }
 0x29f   : > { %v3044_v55 = vpop.f32.mrf.mxu3  ;;  %5632 = vmatpush.bf16.msrb.mxu1 %v8425_v5 }
 0x2a0   : > { %v3268_v16 = vsel %vm389_vm1, %v3236_v45, %v3252_v3  ;;  %v3284_v25 = vsel %vm389_vm1, %v3252_v3, %v3236_v45  ;;  %v3364_v46 = vsel %vm488_vm2, %v3332_v61, %v3348_v37  ;;  %v3380_v44 = vsel %vm488_vm2, %v3348_v37, %v3332_v61  ;;  %3556 = vst [vmem:[#allocation2 + $0xb8] sm:$0xf] %v3462_v19  ;;  %v8129_v3 = vld [vmem:[#allocation2 + $0x334] sm:$0xf]  ;;  %v6717_v37 = vld [vmem:[#allocation2 + $0x354] sm:$0xf0] }
 0x2a1   : > { %v3301_v28 = vsel %vm355_vm0, 0.0, %v3284_v25  ;;  %v3398_v7 = vsel %vm455_vm3, 0.0, %v3380_v44  ;;  %v3430_v33 = vpack.c.bf16 %v3268_v16, %v3268_v16  ;;  %v3493_v22 = vpack.c.bf16 %v3364_v46, %v3364_v46  ;;  %3648 = vst [vmem:[#allocation2 + $0x7c] sm:$0xf] %v3462_v19  ;;  %v2957_v10 = vpop.f32.mrf.mxu2  ;;  %3177 = vmatmul.bf16.gmra.mxu0 %v6724_v26  ;;  %v8143_v25 = vld [vmem:[#allocation2 + $0x3a0] sm:$0xf0] }
 0x2a2   : > { %v3429_v0 = vpack.c.bf16 %v3301_v28, %v3301_v28  ;;  %v3494_v24 = vpack.c.bf16 %v3398_v7, %v3398_v7  ;;  %3740 = vst [vmem:[#allocation2 + $0x40] sm:$0xf] %v3462_v19  ;;  %v3045_v31 = vadd.f32 %v3044_v55, %v2956_v8  ;;  %v2958_v61 = vadd.f32 %v2957_v10, %v9408_v11 }
 0x2a3   : > { %3526 = vst [vmem:[#allocation2 + $0xb4] sm:$0xf] %v3430_v33  ;;  %v6720_v55 = vor.u32 %v8129_v3, %v6717_v37  ;;  %v6751_v3 = vld [vmem:[#allocation2 + $0x378] sm:$0xf] }
 0x2a4   : > { %3525 = vst [vmem:[#allocation2 + $0x90] sm:$0xf] %v3429_v0  ;;  %v3134_v45 = vadd.f32 %v9586_v60, %v3045_v31 }
 0x2a5   : > { %3585 = vst [vmem:[#allocation2 + $0x98] sm:$0xf] %v3493_v22  ;;  %v9622_v16 = vpop.f32.mrf.mxu0 }
 0x2a6   : > { %3586 = vst [vmem:[#allocation2 + $0xbc] sm:$0xf] %v3494_v24  ;;  %2999 = vmatmul.bf16.gmra.mxu2 %v6716_v20  ;;  %v3207_v26 = vmax.f32 %v3134_v45, 0.0  ;;  %v6760_v20 = vor.u32 %v8143_v25, %v6759_v30 }
 0x2a7   : > { %3615 = vst [vmem:[#allocation2 + $0x54] sm:$0xf] %v3429_v0  ;;  %v3046_v19 = vpop.f32.mrf.mxu3 }
 0x2a8   : > { %3616 = vst [vmem:[#allocation2 + $0x78] sm:$0xf] %v3430_v33  ;;  %v3047_v8 = vadd.f32 %v3046_v19, %v2958_v61  ;;  %v3463_v46 = vpack.c.bf16 %v3207_v26, %v3207_v26  ;;  %v3237_v7 = vrot.slane %v3207_v26, 7  ;;  %v3333_v10 = vrot.slane %v3207_v26, 1 }
 0x2a9   : > { %3679 = vst [vmem:[#allocation2 + $0x5c] sm:$0xf] %v3493_v22  ;;  %v2960_v58 = vpop.f32.mrf.mxu2 }
 0x2aa   : > { %3680 = vst [vmem:[#allocation2 + $0x80] sm:$0xf] %v3494_v24  ;;  %v3136_v11 = vadd.f32 %v9602_v47, %v3047_v8  ;;  %v8265_v60 = vld [vmem:[#allocation2 + $0xb0] sm:$0xf0]  ;;  %v2961_v47 = vadd.f32 %v2960_v58, %v9422_v36 }
 0x2ab   : > { %3709 = vst [vmem:[#allocation2 + $0x18] sm:$0xf] %v3429_v0  ;;  %v7231_v44 = vld [vmem:[#allocation2 + $0x90] sm:$0xf] }
 0x2ac   : > { %3710 = vst [vmem:[#allocation2 + $0x3c] sm:$0xf] %v3430_v33  ;;  %v3208_v42 = vmax.f32 %v3136_v11, 0.0  ;;  %3088 = vmatmul.bf16.gmra.mxu3 %v6720_v55  ;;  %v7232_v28 = vor.u32 %v8265_v60, %v7231_v44  ;;  %v8142_v33 = vld [vmem:[#allocation2 + $0x398] sm:$0xf0] }
 0x2ad   : > { %3769 = vst [vmem:[#allocation2 + $0x20] sm:$0xf] %v3493_v22  ;;  %v9625_v31 = vpop.f32.mrf.mxu0  ;;  %v6752_v25 = vor.u32 %v8142_v33, %v6751_v3 }
 0x2ae   : > { %3770 = vst [vmem:[#allocation2 + $0x44] sm:$0xf] %v3494_v24  ;;  %v3253_v5 = vrot.slane %v3208_v42, 7  ;;  %v3349_v45 = vrot.slane %v3208_v42, 1  ;;  %v3464_v61 = vpack.c.bf16 %v3208_v42, %v3208_v42  ;;  %5293 = vmatmul.bf16.gmra.mxu1 %v7232_v28  ;;  %v6753_v28 = vld [vmem:[#allocation2 + $0x39c] sm:$0xf0] }
 0x2af   : > { %3557 = vst [vmem:[#allocation2 + $0xdc] sm:$0xf] %v3463_v46  ;;  %v3049_v0 = vpop.f32.mrf.mxu3 }
 0x2b0   : > { %3649 = vst [vmem:[#allocation2 + $0xa0] sm:$0xf] %v3463_v46  ;;  %v3269_v22 = vsel %vm389_vm1, %v3237_v7, %v3253_v5  ;;  %v3285_v37 = vsel %vm389_vm1, %v3253_v5, %v3237_v7  ;;  %v3365_v24 = vsel %vm488_vm2, %v3333_v10, %v3349_v45  ;;  %v3381_v26 = vsel %vm488_vm2, %v3349_v45, %v3333_v10  ;;  %v8400_v10 = vld [vmem:[#allocation8 + $0x68] sm:$0xff] }
 0x2b1   : > { %3741 = vst [vmem:[#allocation2 + $0x64] sm:$0xf] %v3463_v46  ;;  %v3303_v36 = vsel %vm355_vm0, 0.0, %v3285_v37  ;;  %v3400_v19 = vsel %vm455_vm3, 0.0, %v3381_v26  ;;  %v3432_v8 = vpack.c.bf16 %v3269_v22, %v3269_v22  ;;  %v3495_v55 = vpack.c.bf16 %v3365_v24, %v3365_v24  ;;  %v2962_v58 = vpop.f32.mrf.mxu2  ;;  %3182 = vmatmul.bf16.gmra.mxu0 %v6760_v20  ;;  %v8138_v46 = vld [vmem:[#allocation2 + $0x37c] sm:$0xf]  ;;  %5366 = vmatpush.bf16.msrb.mxu2 %v8400_v10 }
 0x2b2   : > { %v3431_v30 = vpack.c.bf16 %v3303_v36, %v3303_v36  ;;  %v3496_v11 = vpack.c.bf16 %v3400_v19, %v3400_v19  ;;  %3558 = vst [vmem:[#allocation2 + $0x100] sm:$0xf] %v3464_v61  ;;  %v3050_v60 = vadd.f32 %v3049_v0, %v2961_v47  ;;  %v2963_v44 = vadd.f32 %v2962_v58, %v9430_v50  ;;  %v8408_v5 = vld [vmem:[#allocation8 + $0xa8] sm:$0xff] }
 0x2b3   : > { %3528 = vst [vmem:[#allocation2 + $0xfc] sm:$0xf] %v3432_v8  ;;  %5455 = vmatpush.bf16.msrb.mxu3 %v8408_v5  ;;  %v6756_v47 = vor.u32 %v8138_v46, %v6753_v28  ;;  %v6795_v24 = vld [vmem:[#allocation2 + $0x3c8] sm:$0xf]  ;;  %v8151_v28 = vld [vmem:[#allocation2 + $0x3e0] sm:$0xf0] }
 0x2b4   : > { %3527 = vst [vmem:[#allocation2 + $0xd8] sm:$0xf] %v3431_v30  ;;  %v3139_v42 = vadd.f32 %v9605_v17, %v3050_v60  ;;  %v8152_v60 = vld [vmem:[#allocation2 + $0x3e8] sm:$0xf0] }
 0x2b5   : > { %3587 = vst [vmem:[#allocation2 + $0xe0] sm:$0xf] %v3495_v55  ;;  %v9642_v7 = vpop.f32.mrf.mxu0  ;;  %v6796_v46 = vor.u32 %v8152_v60, %v6795_v24  ;;  %v8147_v24 = vld [vmem:[#allocation2 + $0x3c4] sm:$0xf]  ;;  %v8424_v60 = vld [vmem:[#allocation8 + $0x128] sm:$0xff] }
 0x2b6   : > { %3588 = vst [vmem:[#allocation2 + $0x104] sm:$0xf] %v3496_v11  ;;  %3004 = vmatmul.bf16.gmra.mxu2 %v6752_v25  ;;  %v3209_v50 = vmax.f32 %v3139_v42, 0.0  ;;  %v6787_v42 = vld [vmem:[#allocation2 + $0x3c0] sm:$0xf]  ;;  %5633 = vmatpush.bf16.msrb.mxu1 %v8424_v60 }
 0x2b7   : > { %3617 = vst [vmem:[#allocation2 + $0x9c] sm:$0xf] %v3431_v30  ;;  %v3051_v20 = vpop.f32.mrf.mxu3 }
 0x2b8   : > { %3618 = vst [vmem:[#allocation2 + $0xc0] sm:$0xf] %v3432_v8  ;;  %v3052_v45 = vadd.f32 %v3051_v20, %v2963_v44  ;;  %v3238_v26 = vrot.slane %v3209_v50, 7  ;;  %v3334_v36 = vrot.slane %v3209_v50, 1  ;;  %v3465_v19 = vpack.c.bf16 %v3209_v50, %v3209_v50 }
 0x2b9   : > { %3650 = vst [vmem:[#allocation2 + $0xc4] sm:$0xf] %v3464_v61  ;;  %v2965_v0 = vpop.f32.mrf.mxu2 }
 0x2ba   : > { %3681 = vst [vmem:[#allocation2 + $0xa4] sm:$0xf] %v3495_v55  ;;  %v3141_v17 = vadd.f32 %v9622_v16, %v3052_v45  ;;  %v8274_v3 = vld [vmem:[#allocation2 + $0xf8] sm:$0xf0]  ;;  %v2966_v16 = vadd.f32 %v2965_v0, %v9457_v1  ;;  %v2879_v1 = vadd.f32 %v9463_v9, %v9468_v35  ;;  %v8416_v35 = vld [vmem:[#allocation8 + $0xe8] sm:$0xff] }
 0x2bb   : > { %3682 = vst [vmem:[#allocation2 + $0xc8] sm:$0xf] %v3496_v11  ;;  %v7267_v33 = vld [vmem:[#allocation2 + $0xd8] sm:$0xf]  ;;  %5544 = vmatpush.bf16.msrb.mxu0 %v8416_v35 }
 0x2bc   : > { %3711 = vst [vmem:[#allocation2 + $0x60] sm:$0xf] %v3431_v30  ;;  %v3210_v22 = vmax.f32 %v3141_v17, 0.0  ;;  %3093 = vmatmul.bf16.gmra.mxu3 %v6756_v47  ;;  %v7268_v37 = vor.u32 %v8274_v3, %v7267_v33  ;;  %v6788_v17 = vor.u32 %v8151_v28, %v6787_v42 }
 0x2bd   : > { %3712 = vst [vmem:[#allocation2 + $0x84] sm:$0xf] %v3432_v8  ;;  %v9645_v58 = vpop.f32.mrf.mxu0 }
 0x2be   : > { %3742 = vst [vmem:[#allocation2 + $0x88] sm:$0xf] %v3464_v61  ;;  %v3254_v25 = vrot.slane %v3210_v22, 7  ;;  %v3350_v44 = vrot.slane %v3210_v22, 1  ;;  %5298 = vmatmul.bf16.gmra.mxu1 %v7268_v37  ;;  %v3466_v50 = vpack.c.bf16 %v3210_v22, %v3210_v22 }
 0x2bf   : > { %3771 = vst [vmem:[#allocation2 + $0x68] sm:$0xf] %v3495_v55  ;;  %v3054_v30 = vpop.f32.mrf.mxu3 }
 0x2c0   : > { %3772 = vst [vmem:[#allocation2 + $0x8c] sm:$0xf] %v3496_v11  ;;  %v3270_v8 = vsel %vm389_vm1, %v3238_v26, %v3254_v25  ;;  %v3286_v10 = vsel %vm389_vm1, %v3254_v25, %v3238_v26  ;;  %v3366_v61 = vsel %vm488_vm2, %v3334_v36, %v3350_v44  ;;  %v3382_v5 = vsel %vm488_vm2, %v3350_v44, %v3334_v36  ;;  %v6789_v26 = vld [vmem:[#allocation2 + $0x3e4] sm:$0xf0] }
 0x2c1   : > { %3559 = vst [vmem:[#allocation2 + $0x124] sm:$0xf] %v3465_v19  ;;  %v3305_v55 = vsel %vm355_vm0, 0.0, %v3286_v10  ;;  %v3402_v11 = vsel %vm455_vm3, 0.0, %v3382_v5  ;;  %v3434_v20 = vpack.c.bf16 %v3270_v8, %v3270_v8  ;;  %v2967_v45 = vpop.f32.mrf.mxu2  ;;  %3187 = vmatmul.bf16.gmra.mxu0 %v6796_v46  ;;  %v3055_v0 = vadd.f32 %v3054_v30, %v2966_v16 }
 0x2c2   : > { %3651 = vst [vmem:[#allocation2 + $0xe8] sm:$0xf] %v3465_v19  ;;  %v3433_v47 = vpack.c.bf16 %v3305_v55, %v3305_v55  ;;  %v3497_v3 = vpack.c.bf16 %v3366_v61, %v3366_v61  ;;  %v3498_v33 = vpack.c.bf16 %v3402_v11, %v3402_v11  ;;  %v2968_v9 = vadd.f32 %v2967_v45, %v2879_v1  ;;  %v6823_v45 = vld [vmem:[#allocation2 + $0x408] sm:$0xf] }
 0x2c3   : > { %3743 = vst [vmem:[#allocation2 + $0xac] sm:$0xf] %v3465_v19  ;;  %v3144_v37 = vadd.f32 %v9625_v31, %v3055_v0  ;;  %v6792_v25 = vor.u32 %v8147_v24, %v6789_v26  ;;  %v8160_v0 = vld [vmem:[#allocation2 + $0x428] sm:$0xf0] }
 0x2c4   : > { %3529 = vst [vmem:[#allocation2 + $0x120] sm:$0xf] %v3433_v47  ;;  %v6824_v60 = vor.u32 %v8160_v0, %v6823_v45 }
 0x2c5   : > { %3530 = vst [vmem:[#allocation2 + $0x144] sm:$0xf] %v3434_v20  ;;  %v9663_v36 = vpop.f32.mrf.mxu0  ;;  %v3211_v44 = vmax.f32 %v3144_v37, 0.0 }
 0x2c6   : > { %3560 = vst [vmem:[#allocation2 + $0x148] sm:$0xf] %v3466_v50  ;;  %3009 = vmatmul.bf16.gmra.mxu2 %v6788_v17 }
 0x2c7   : > { %3589 = vst [vmem:[#allocation2 + $0x128] sm:$0xf] %v3497_v3  ;;  %v3056_v22 = vpop.f32.mrf.mxu3  ;;  %v3239_v28 = vrot.slane %v3211_v44, 7  ;;  %v3335_v61 = vrot.slane %v3211_v44, 1  ;;  %v3467_v11 = vpack.c.bf16 %v3211_v44, %v3211_v44 }
 0x2c8   : > { %3590 = vst [vmem:[#allocation2 + $0x14c] sm:$0xf] %v3498_v33  ;;  %v3057_v19 = vadd.f32 %v3056_v22, %v2968_v9 }
 0x2c9   : > { %3619 = vst [vmem:[#allocation2 + $0xe4] sm:$0xf] %v3433_v47  ;;  %v2970_v16 = vpop.f32.mrf.mxu2 }
 0x2ca   : > { %3620 = vst [vmem:[#allocation2 + $0x108] sm:$0xf] %v3434_v20  ;;  %v3146_v31 = vadd.f32 %v9642_v7, %v3057_v19  ;;  %v2971_v55 = vadd.f32 %v2970_v16, %v9483_v32  ;;  %v6831_v32 = vld [vmem:[#allocation2 + $0x410] sm:$0xf] }
 0x2cb   : > { %3652 = vst [vmem:[#allocation2 + $0x10c] sm:$0xf] %v3466_v50  ;;  %v7303_v46 = vld [vmem:[#allocation2 + $0x120] sm:$0xf] }
 0x2cc   : > { %3683 = vst [vmem:[#allocation2 + $0xec] sm:$0xf] %v3497_v3  ;;  %v3212_v30 = vmax.f32 %v3146_v31, 0.0  ;;  %3098 = vmatmul.bf16.gmra.mxu3 %v6792_v25  ;;  %v8283_v42 = vld [vmem:[#allocation2 + $0x140] sm:$0xf0] }
 0x2cd   : > { %3684 = vst [vmem:[#allocation2 + $0x110] sm:$0xf] %v3498_v33  ;;  %v7304_v8 = vor.u32 %v8283_v42, %v7303_v46  ;;  %v9666_v10 = vpop.f32.mrf.mxu0  ;;  %v8156_v42 = vld [vmem:[#allocation2 + $0x40c] sm:$0xf] }
 0x2ce   : > { %3713 = vst [vmem:[#allocation2 + $0xa8] sm:$0xf] %v3433_v47  ;;  %v3255_v5 = vrot.slane %v3212_v30, 7  ;;  %v3351_v1 = vrot.slane %v3212_v30, 1  ;;  %v3468_v16 = vpack.c.bf16 %v3212_v30, %v3212_v30 }
 0x2cf   : > { %3714 = vst [vmem:[#allocation2 + $0xcc] sm:$0xf] %v3434_v20  ;;  %v3059_v7 = vpop.f32.mrf.mxu3  ;;  %5303 = vmatmul.bf16.gmra.mxu1 %v7304_v8  ;;  %v8161_v20 = vld [vmem:[#allocation2 + $0x430] sm:$0xf0] }
 0x2d0   : > { %3744 = vst [vmem:[#allocation2 + $0xd0] sm:$0xf] %v3466_v50  ;;  %v3271_v17 = vsel %vm389_vm1, %v3239_v28, %v3255_v5  ;;  %v3287_v9 = vsel %vm389_vm1, %v3255_v5, %v3239_v28  ;;  %v3367_v47 = vsel %vm488_vm2, %v3335_v61, %v3351_v1  ;;  %v3383_v35 = vsel %vm488_vm2, %v3351_v1, %v3335_v61  ;;  %v6825_v28 = vld [vmem:[#allocation2 + $0x42c] sm:$0xf0]  ;;  %v8399_v1 = vld [vmem:[#allocation8 + $0x60] sm:$0xff] }
 0x2d1   : > { %3773 = vst [vmem:[#allocation2 + $0xb0] sm:$0xf] %v3497_v3  ;;  %v3307_v37 = vsel %vm355_vm0, 0.0, %v3287_v9  ;;  %v2972_v24 = vpop.f32.mrf.mxu2  ;;  %v2884_v50 = vadd.f32 %v9485_v56, %v9488_v53  ;;  %v3060_v22 = vadd.f32 %v3059_v7, %v2971_v55  ;;  %v3404_v19 = vsel %vm455_vm3, 0.0, %v3383_v35  ;;  %v8407_v55 = vld [vmem:[#allocation8 + $0xa0] sm:$0xff]  ;;  %5367 = vmatpush.bf16.msrb.mxu2 %v8399_v1 }
 0x2d2   : > { %3774 = vst [vmem:[#allocation2 + $0xd4] sm:$0xf] %v3498_v33  ;;  %v3435_v26 = vpack.c.bf16 %v3307_v37, %v3307_v37  ;;  %v3436_v25 = vpack.c.bf16 %v3271_v17, %v3271_v17  ;;  %v6832_v44 = vor.u32 %v8161_v20, %v6831_v32  ;;  %v3499_v31 = vpack.c.bf16 %v3367_v47, %v3367_v47 }
 0x2d3   : > { %3561 = vst [vmem:[#allocation2 + $0x16c] sm:$0xf] %v3467_v11  ;;  %v2973_v3 = vadd.f32 %v2972_v24, %v2884_v50  ;;  %v3149_v46 = vadd.f32 %v9645_v58, %v3060_v22  ;;  %v3500_v53 = vpack.c.bf16 %v3404_v19, %v3404_v19  ;;  %v6828_v61 = vor.u32 %v8156_v42, %v6825_v28  ;;  %v6859_v24 = vld [vmem:[#allocation2 + $0x450] sm:$0xf]  ;;  %v8170_v42 = vld [vmem:[#allocation2 + $0x478] sm:$0xf0] }
 0x2d4   : > { %3653 = vst [vmem:[#allocation2 + $0x130] sm:$0xf] %v3467_v11  ;;  %3192 = vmatmul.bf16.gmra.mxu0 %v6832_v44  ;;  %5456 = vmatpush.bf16.msrb.mxu3 %v8407_v55  ;;  %v8169_v44 = vld [vmem:[#allocation2 + $0x470] sm:$0xf0]  ;;  %v2889_v28 = vadd.f32 %v9496_v15, %v9498_v18 }
 0x2d5   : > { %3745 = vst [vmem:[#allocation2 + $0xf4] sm:$0xf] %v3467_v11  ;;  %v9684_v56 = vpop.f32.mrf.mxu0  ;;  %v3213_v30 = vmax.f32 %v3149_v46, 0.0  ;;  %v8415_v11 = vld [vmem:[#allocation8 + $0xe0] sm:$0xff]  ;;  %v6860_v1 = vor.u32 %v8169_v44, %v6859_v24  ;;  %v8404_v24 = vld [vmem:[#allocation8 + $0x88] sm:$0xff] }
 0x2d6   : > { %3531 = vst [vmem:[#allocation2 + $0x168] sm:$0xf] %v3435_v26  ;;  %3014 = vmatmul.bf16.gmra.mxu2 %v6824_v60  ;;  %5545 = vmatpush.bf16.msrb.mxu0 %v8415_v11  ;;  %v8397_v11 = vld [vmem:[#allocation8 + $0x50] sm:$0xff] }
 0x2d7   : > { %3532 = vst [vmem:[#allocation2 + $0x18c] sm:$0xf] %v3436_v25  ;;  %v3061_v33 = vpop.f32.mrf.mxu3  ;;  %v3240_v45 = vrot.slane %v3213_v30, 7  ;;  %v3336_v0 = vrot.slane %v3213_v30, 1 }
 0x2d8   : > { %3562 = vst [vmem:[#allocation2 + $0x190] sm:$0xf] %v3468_v16  ;;  %v3062_v8 = vadd.f32 %v3061_v33, %v2973_v3  ;;  %v3469_v3 = vpack.c.bf16 %v3213_v30, %v3213_v30 }
 0x2d9   : > { %3591 = vst [vmem:[#allocation2 + $0x170] sm:$0xf] %v3499_v31  ;;  %v2975_v5 = vpop.f32.mrf.mxu2 }
 0x2da   : > { %3592 = vst [vmem:[#allocation2 + $0x194] sm:$0xf] %v3500_v53  ;;  %v3151_v58 = vadd.f32 %v9663_v36, %v3062_v8  ;;  %v2976_v32 = vadd.f32 %v2975_v5, %v9494_v51  ;;  %v6867_v51 = vld [vmem:[#allocation2 + $0x458] sm:$0xf] }
 0x2db   : > { %3621 = vst [vmem:[#allocation2 + $0x12c] sm:$0xf] %v3435_v26  ;;  %v8398_v8 = vld [vmem:[#allocation8 + $0x58] sm:$0xff]  ;;  %v6868_v55 = vor.u32 %v8170_v42, %v6867_v51  ;;  %v8395_v51 = vld [vmem:[#allocation8 + $0x40] sm:$0xff] }
 0x2dc   : > { %3622 = vst [vmem:[#allocation2 + $0x150] sm:$0xf] %v3436_v25  ;;  %v3214_v7 = vmax.f32 %v3151_v58, 0.0  ;;  %3103 = vmatmul.bf16.gmra.mxu3 %v6828_v61  ;;  %v8406_v61 = vld [vmem:[#allocation8 + $0x98] sm:$0xff]  ;;  %v8165_v58 = vld [vmem:[#allocation2 + $0x454] sm:$0xf]  ;;  %5368 = vmatpush.bf16.msrb.mxu2 %v8398_v8 }
 0x2dd   : > { %3654 = vst [vmem:[#allocation2 + $0x154] sm:$0xf] %v3468_v16  ;;  %v7339_v17 = vld [vmem:[#allocation2 + $0x168] sm:$0xf]  ;;  %v9687_v9 = vpop.f32.mrf.mxu0  ;;  %v8414_v5 = vld [vmem:[#allocation8 + $0xd8] sm:$0xff]  ;;  %5457 = vmatpush.bf16.msrb.mxu3 %v8406_v61 }
 0x2de   : > { %3685 = vst [vmem:[#allocation2 + $0x134] sm:$0xf] %v3499_v31  ;;  %v3256_v47 = vrot.slane %v3214_v7, 7  ;;  %v3352_v35 = vrot.slane %v3214_v7, 1  ;;  %v8292_v36 = vld [vmem:[#allocation2 + $0x188] sm:$0xf0]  ;;  %5546 = vmatpush.bf16.msrb.mxu0 %v8414_v5 }
 0x2df   : > { %3686 = vst [vmem:[#allocation2 + $0x158] sm:$0xf] %v3500_v53  ;;  %v3064_v20 = vpop.f32.mrf.mxu3  ;;  %v7340_v37 = vor.u32 %v8292_v36, %v7339_v17  ;;  %v8413_v17 = vld [vmem:[#allocation8 + $0xd0] sm:$0xff]  ;;  %v8243_v5 = vld [vmem:[#allocation2 + $0x4] sm:$0xf] }
 0x2e0   : > { %3715 = vst [vmem:[#allocation2 + $0xf0] sm:$0xf] %v3435_v26  ;;  %v3272_v50 = vsel %vm389_vm1, %v3240_v45, %v3256_v47  ;;  %v3288_v22 = vsel %vm389_vm1, %v3256_v47, %v3240_v45  ;;  %v3368_v60 = vsel %vm488_vm2, %v3336_v0, %v3352_v35  ;;  %v3384_v19 = vsel %vm488_vm2, %v3352_v35, %v3336_v0  ;;  %v8405_v45 = vld [vmem:[#allocation8 + $0x90] sm:$0xff] }
 0x2e1   : > { %3716 = vst [vmem:[#allocation2 + $0x114] sm:$0xf] %v3436_v25  ;;  %v3309_v46 = vsel %vm355_vm0, 0.0, %v3288_v22  ;;  %5308 = vmatmul.bf16.gmra.mxu1 %v7340_v37  ;;  %v2977_v26 = vpop.f32.mrf.mxu2  ;;  %v3065_v33 = vadd.f32 %v3064_v20, %v2976_v32  ;;  %v3406_v15 = vsel %vm455_vm3, 0.0, %v3384_v19  ;;  %v9706_v18 = vpack.c.bf16 %v3272_v50, %v3272_v50  ;;  %5369 = vmatpush.bf16.msrb.mxu2 %v8397_v11  ;;  %v8396_v20 = vld [vmem:[#allocation8 + $0x48] sm:$0xff] }
 0x2e2   : > { %3746 = vst [vmem:[#allocation2 + $0x118] sm:$0xf] %v3468_v16  ;;  %v9702_v25 = vpack.c.bf16 %v3309_v46, %v3309_v46  ;;  %v2978_v30 = vadd.f32 %v2977_v26, %v2889_v28  ;;  %v9713_v47 = vpack.c.bf16 %v3368_v60, %v3368_v60  ;;  %v9715_v32 = vpack.c.bf16 %v3406_v15, %v3406_v15  ;;  %v8412_v22 = vld [vmem:[#allocation8 + $0xc8] sm:$0xff]  ;;  %v8423_v60 = vld [vmem:[#allocation8 + $0x120] sm:$0xff] }
 0x2e3   : > { %3775 = vst [vmem:[#allocation2 + $0xf8] sm:$0xf] %v3499_v31  ;;  %v3154_v16 = vadd.f32 %v9666_v10, %v3065_v33  ;;  %v6861_v31 = vld [vmem:[#allocation2 + $0x474] sm:$0xf0]  ;;  %5458 = vmatpush.bf16.msrb.mxu3 %v8405_v45  ;;  %5547 = vmatpush.bf16.msrb.mxu0 %v8413_v17  ;;  %v8411_v28 = vld [vmem:[#allocation8 + $0xc0] sm:$0xff] }
 0x2e4   : > { %3776 = vst [vmem:[#allocation2 + $0x11c] sm:$0xf] %v3500_v53  ;;  %3197 = vmatmul.bf16.gmra.mxu0 %v6868_v55  ;;  %v9711_v53 = vpack.c.bf16 %v3214_v7, %v3214_v7  ;;  %v6864_v10 = vor.u32 %v8165_v58, %v6861_v31  ;;  %5634 = vmatpush.bf16.msrb.mxu1 %v8423_v60  ;;  %v7161_v11 = vld [vmem:[#allocation2 + $0x24] sm:$0xf0]  ;;  %v8244_v15 = vld [vmem:[#allocation2 + $0xc] sm:$0xf] }
 0x2e5   : > { %3563 = vst [vmem:[#allocation2 + $0x1b4] sm:$0xf] %v3469_v3  ;;  %v9709_v0 = vpop.f32.mrf.mxu0  ;;  %v3215_v7 = vmax.f32 %v3154_v16, 0.0  ;;  %5370 = vmatpush.bf16.msrb.mxu2 %v8396_v20  ;;  %v7169_v16 = vld [vmem:[#allocation2 + $0x2c] sm:$0xf0]  ;;  %v2894_v31 = vadd.f32 %v9504_v43, %v9506_v13  ;;  %v7164_v20 = vor.u32 %v8243_v5, %v7161_v11  ;;  %v9755_v5 = vpop.f32.mrf.mxu1 }
 0x2e6   : > { %3655 = vst [vmem:[#allocation2 + $0x178] sm:$0xf] %v3469_v3  ;;  %3019 = vmatmul.bf16.gmra.mxu2 %v6860_v1  ;;  %v7167_v13 = vld [vmem:[#allocation2 + $0x8] sm:$0xf] }
 0x2e7   : > { %3747 = vst [vmem:[#allocation2 + $0x13c] sm:$0xf] %v3469_v3  ;;  %v3066_v35 = vpop.f32.mrf.mxu3  ;;  %v3241_v44 = vrot.slane %v3215_v7, 7  ;;  %5459 = vmatpush.bf16.msrb.mxu3 %v8404_v24  ;;  %v8403_v3 = vld [vmem:[#allocation8 + $0x80] sm:$0xff]  ;;  %5548 = vmatpush.bf16.msrb.mxu0 %v8412_v22  ;;  %v7172_v24 = vor.u32 %v8244_v15, %v7169_v16  ;;  %v7205_v15 = vld [vmem:[#allocation2 + $0x74] sm:$0xf0]  ;;  %v2899_v16 = vadd.f32 %v9514_v23, %v9516_v29 }
 0x2e8   : > { %3533 = vst [vmem:[#allocation2 + $0x1b0] sm:$0xf] %v9702_v25  ;;  %v3067_v36 = vadd.f32 %v3066_v35, %v2978_v30  ;;  %v7203_v29 = vld [vmem:[#allocation2 + $0x50] sm:$0xf] }
 0x2e9   : > { %3534 = vst [vmem:[#allocation2 + $0x1d4] sm:$0xf] %v9706_v18  ;;  %v2980_v37 = vpop.f32.mrf.mxu2  ;;  %5371 = vmatpush.bf16.msrb.mxu2 %v8395_v51 }
 0x2ea   : > { %3564 = vst [vmem:[#allocation2 + $0x1d8] sm:$0xf] %v9711_v53  ;;  %v3156_v50 = vadd.f32 %v9684_v56, %v3067_v36  ;;  %v3337_v56 = vrot.slane %v3215_v7, 1  ;;  %v2981_v42 = vadd.f32 %v2980_v37, %v9502_v12  ;;  %v3471_v36 = vpack.c.bf16 %v3215_v7, %v3215_v7 }
 0x2eb   : > { %3593 = vst [vmem:[#allocation2 + $0x1b8] sm:$0xf] %v9713_v47  ;;  %5460 = vmatpush.bf16.msrb.mxu3 %v8403_v3  ;;  %5549 = vmatpush.bf16.msrb.mxu0 %v8411_v28 }
 0x2ec   : > { %3594 = vst [vmem:[#allocation2 + $0x1dc] sm:$0xf] %v9715_v32  ;;  %v3216_v19 = vmax.f32 %v3156_v50, 0.0  ;;  %3108 = vmatmul.bf16.gmra.mxu3 %v6864_v10 }
 0x2ed   : > { %3623 = vst [vmem:[#allocation2 + $0x174] sm:$0xf] %v9702_v25  ;;  %v9727_v61 = vpop.f32.mrf.mxu0 }
 0x2ee   : > { %3624 = vst [vmem:[#allocation2 + $0x198] sm:$0xf] %v9706_v18  ;;  %v3257_v46 = vrot.slane %v3216_v19, 7  ;;  %v3353_v26 = vrot.slane %v3216_v19, 1  ;;  %v3472_v60 = vpack.c.bf16 %v3216_v19, %v3216_v19 }
 0x2ef   : > { %3656 = vst [vmem:[#allocation2 + $0x19c] sm:$0xf] %v9711_v53  ;;  %v3069_v33 = vpop.f32.mrf.mxu3  ;;  %v7375_v8 = vld [vmem:[#allocation2 + $0x1b0] sm:$0xf] }
 0x2f0   : > { %3687 = vst [vmem:[#allocation2 + $0x17c] sm:$0xf] %v9713_v47  ;;  %v3273_v1 = vsel %vm389_vm1, %v3241_v44, %v3257_v46  ;;  %v3289_v55 = vsel %vm389_vm1, %v3257_v46, %v3241_v44  ;;  %v3369_v12 = vsel %vm488_vm2, %v3337_v56, %v3353_v26  ;;  %v3385_v30 = vsel %vm488_vm2, %v3353_v26, %v3337_v56  ;;  %v8301_v58 = vld [vmem:[#allocation2 + $0x1d0] sm:$0xf0] }
 0x2f1   : > { %3688 = vst [vmem:[#allocation2 + $0x1a0] sm:$0xf] %v9715_v32  ;;  %v2982_v45 = vpop.f32.mrf.mxu2  ;;  %v3070_v17 = vadd.f32 %v3069_v33, %v2981_v42  ;;  %v7376_v35 = vor.u32 %v8301_v58, %v7375_v8  ;;  %v3311_v10 = vsel %vm355_vm0, 0.0, %v3289_v55  ;;  %v3408_v7 = vsel %vm455_vm3, 0.0, %v3385_v30  ;;  %v7197_v30 = vld [vmem:[#allocation2 + $0x6c] sm:$0xf0] }
 0x2f2   : > { %3717 = vst [vmem:[#allocation2 + $0x138] sm:$0xf] %v9702_v25  ;;  %v2983_v37 = vadd.f32 %v2982_v45, %v2894_v31  ;;  %v8248_v25 = vld [vmem:[#allocation2 + $0x28] sm:$0xf0]  ;;  %v3440_v50 = vpack.c.bf16 %v3273_v1, %v3273_v1  ;;  %v8253_v58 = vld [vmem:[#allocation2 + $0x54] sm:$0xf] }
 0x2f3   : > { %3718 = vst [vmem:[#allocation2 + $0x15c] sm:$0xf] %v9706_v18  ;;  %5313 = vmatmul.bf16.gmra.mxu1 %v7376_v35  ;;  %v3159_v43 = vadd.f32 %v9687_v9, %v3070_v17  ;;  %v3439_v18 = vpack.c.bf16 %v3311_v10, %v3311_v10  ;;  %v7168_v44 = vor.u32 %v8248_v25, %v7167_v13  ;;  %v8257_v25 = vld [vmem:[#allocation2 + $0x70] sm:$0xf0] }
 0x2f4   : > { %3748 = vst [vmem:[#allocation2 + $0x160] sm:$0xf] %v9711_v53  ;;  %5550 = vmatmul.bf16.vlgmr.msrb.gmra.mxu0 %v7172_v24  ;;  %v3503_v9 = vpack.c.bf16 %v3369_v12, %v3369_v12 }
 0x2f5   : > { %3777 = vst [vmem:[#allocation2 + $0x140] sm:$0xf] %v9713_v47  ;;  %v9751_v22 = vpop.f32.mrf.mxu0  ;;  %v3217_v51 = vmax.f32 %v3159_v43, 0.0 }
 0x2f6   : > { %3778 = vst [vmem:[#allocation2 + $0x164] sm:$0xf] %v9715_v32  ;;  %5372 = vmatmul.bf16.vlgmr.msrb.gmra.mxu2 %v7164_v20  ;;  %v3504_v32 = vpack.c.bf16 %v3408_v7, %v3408_v7  ;;  %v9772_v7 = vpop.f32.mrf.mxu1 }
 0x2f7   : > { %3565 = vst [vmem:[#allocation2 + $0x1fc] sm:$0xf] %v3471_v36  ;;  %v3071_v53 = vpop.f32.mrf.mxu3  ;;  %v3242_v26 = vrot.slane %v3217_v51, 7  ;;  %v3338_v42 = vrot.slane %v3217_v51, 1  ;;  %v3473_v24 = vpack.c.bf16 %v3217_v51, %v3217_v51 }
 0x2f8   : > { %3657 = vst [vmem:[#allocation2 + $0x1c0] sm:$0xf] %v3471_v36  ;;  %v3072_v47 = vadd.f32 %v3071_v53, %v2983_v37  ;;  %v7208_v37 = vor.u32 %v8253_v58, %v7205_v15  ;;  %v8262_v58 = vld [vmem:[#allocation2 + $0x9c] sm:$0xf] }
 0x2f9   : > { %3749 = vst [vmem:[#allocation2 + $0x184] sm:$0xf] %v3471_v36  ;;  %v2985_v3 = vpop.f32.mrf.mxu2  ;;  %v8252_v36 = vld [vmem:[#allocation2 + $0x4c] sm:$0xf] }
 0x2fa   : > { %3535 = vst [vmem:[#allocation2 + $0x1f8] sm:$0xf] %v3439_v18  ;;  %v3161_v56 = vadd.f32 %v9709_v0, %v3072_v47  ;;  %v2986_v33 = vadd.f32 %v2985_v3, %v9512_v2  ;;  %v7200_v20 = vor.u32 %v8252_v36, %v7197_v30  ;;  %v7204_v3 = vor.u32 %v8257_v25, %v7203_v29  ;;  %v7233_v30 = vld [vmem:[#allocation2 + $0xb4] sm:$0xf0]  ;;  %v8266_v29 = vld [vmem:[#allocation2 + $0xb8] sm:$0xf0] }
 0x2fb   : > { %3536 = vst [vmem:[#allocation2 + $0x21c] sm:$0xf] %v3440_v50 }
 0x2fc   : > { %3566 = vst [vmem:[#allocation2 + $0x220] sm:$0xf] %v3472_v60  ;;  %v3218_v46 = vmax.f32 %v3161_v56, 0.0  ;;  %5461 = vmatmul.bf16.vlgmr.msrb.gmra.mxu3 %v7168_v44 }
 0x2fd   : > { %3595 = vst [vmem:[#allocation2 + $0x200] sm:$0xf] %v3503_v9  ;;  %v9765_v45 = vpop.f32.mrf.mxu0 }
 0x2fe   : > { %3596 = vst [vmem:[#allocation2 + $0x224] sm:$0xf] %v3504_v32  ;;  %v3258_v28 = vrot.slane %v3218_v46, 7  ;;  %v3354_v19 = vrot.slane %v3218_v46, 1 }
 0x2ff   : > { %3625 = vst [vmem:[#allocation2 + $0x1bc] sm:$0xf] %v3439_v18  ;;  %v3074_v8 = vpop.f32.mrf.mxu3 }
 0x300   : > { %3626 = vst [vmem:[#allocation2 + $0x1e0] sm:$0xf] %v3440_v50  ;;  %v3274_v0 = vsel %vm389_vm1, %v3242_v26, %v3258_v28  ;;  %v3290_v1 = vsel %vm389_vm1, %v3258_v28, %v3242_v26  ;;  %v3370_v55 = vsel %vm488_vm2, %v3338_v42, %v3354_v19  ;;  %v3386_v12 = vsel %vm488_vm2, %v3354_v19, %v3338_v42 }
 0x301   : > { %3658 = vst [vmem:[#allocation2 + $0x1e4] sm:$0xf] %v3472_v60  ;;  %v7411_v2 = vld [vmem:[#allocation2 + $0x1f8] sm:$0xf]  ;;  %v2987_v11 = vpop.f32.mrf.mxu2  ;;  %v3075_v31 = vadd.f32 %v3074_v8, %v2986_v33  ;;  %v3313_v43 = vsel %vm355_vm0, 0.0, %v3290_v1  ;;  %v3442_v47 = vpack.c.bf16 %v3274_v0, %v3274_v0 }
 0x302   : > { %3689 = vst [vmem:[#allocation2 + $0x1c4] sm:$0xf] %v3503_v9  ;;  %v8310_v17 = vld [vmem:[#allocation2 + $0x218] sm:$0xf0]  ;;  %v2988_v10 = vadd.f32 %v2987_v11, %v2899_v16  ;;  %v2904_v11 = vadd.f32 %v9524_v63, %v9526_v21  ;;  %v9794_v16 = vpop.f32.mrf.mxu1  ;;  %v7239_v63 = vld [vmem:[#allocation2 + $0x98] sm:$0xf] }
 0x303   : > { %3690 = vst [vmem:[#allocation2 + $0x1e8] sm:$0xf] %v3504_v32  ;;  %v7412_v35 = vor.u32 %v8310_v17, %v7411_v2  ;;  %v3164_v13 = vadd.f32 %v9727_v61, %v3075_v31  ;;  %v8422_v8 = vld [vmem:[#allocation8 + $0x118] sm:$0xff]  ;;  %v7241_v2 = vld [vmem:[#allocation2 + $0xbc] sm:$0xf0] }
 0x304   : > { %3719 = vst [vmem:[#allocation2 + $0x180] sm:$0xf] %v3439_v18  ;;  %5555 = vmatmul.bf16.gmra.mxu0 %v7208_v37  ;;  %v3441_v18 = vpack.c.bf16 %v3313_v43, %v3313_v43  ;;  %5635 = vmatpush.bf16.msrb.mxu1 %v8422_v8  ;;  %v7244_v37 = vor.u32 %v8262_v58, %v7241_v2 }
 0x305   : > { %3720 = vst [vmem:[#allocation2 + $0x1a4] sm:$0xf] %v3440_v50  ;;  %5318 = vmatmul.bf16.gmra.mxu1 %v7412_v35  ;;  %v3410_v50 = vsel %vm455_vm3, 0.0, %v3386_v12  ;;  %v3219_v44 = vmax.f32 %v3164_v13, 0.0  ;;  %v9776_v51 = vpop.f32.mrf.mxu0  ;;  %v8261_v35 = vld [vmem:[#allocation2 + $0x94] sm:$0xf] }
 0x306   : > { %3750 = vst [vmem:[#allocation2 + $0x1a8] sm:$0xf] %v3472_v60  ;;  %5377 = vmatmul.bf16.gmra.mxu2 %v7200_v20  ;;  %v3474_v60 = vpack.c.bf16 %v3218_v46, %v3218_v46  ;;  %v3506_v56 = vpack.c.bf16 %v3410_v50, %v3410_v50  ;;  %v7236_v20 = vor.u32 %v8261_v35, %v7233_v30  ;;  %v8271_v30 = vld [vmem:[#allocation2 + $0xe4] sm:$0xf] }
 0x307   : > { %3779 = vst [vmem:[#allocation2 + $0x188] sm:$0xf] %v3503_v9  ;;  %v3076_v23 = vpop.f32.mrf.mxu3  ;;  %v3243_v42 = vrot.slane %v3219_v44, 7  ;;  %v3339_v28 = vrot.slane %v3219_v44, 1  ;;  %v3475_v21 = vpack.c.bf16 %v3219_v44, %v3219_v44 }
 0x308   : > { %3780 = vst [vmem:[#allocation2 + $0x1ac] sm:$0xf] %v3504_v32  ;;  %v3077_v53 = vadd.f32 %v3076_v23, %v2988_v10  ;;  %v3505_v32 = vpack.c.bf16 %v3370_v55, %v3370_v55 }
 0x309   : > { %3567 = vst [vmem:[#allocation2 + $0x244] sm:$0xf] %v3473_v24  ;;  %v2990_v61 = vpop.f32.mrf.mxu2 }
 0x30a   : > { %3659 = vst [vmem:[#allocation2 + $0x208] sm:$0xf] %v3473_v24  ;;  %v3166_v9 = vadd.f32 %v9751_v22, %v3077_v53  ;;  %v2991_v46 = vadd.f32 %v2990_v61, %v9522_v48 }
 0x30b   : > { %3751 = vst [vmem:[#allocation2 + $0x1cc] sm:$0xf] %v3473_v24 }
 0x30c   : > { %3537 = vst [vmem:[#allocation2 + $0x240] sm:$0xf] %v3441_v18  ;;  %v9779_v26 = vmax.f32 %v3166_v9, 0.0  ;;  %5466 = vmatmul.bf16.gmra.mxu3 %v7204_v3 }
 0x30d   : > { %3538 = vst [vmem:[#allocation2 + $0x264] sm:$0xf] %v3442_v47 }
 0x30e   : > { %3568 = vst [vmem:[#allocation2 + $0x268] sm:$0xf] %v3474_v60  ;;  %v3259_v19 = vrot.slane %v9779_v26, 7  ;;  %v3355_v33 = vrot.slane %v9779_v26, 1  ;;  %v9796_v17 = vpop.f32.mrf.mxu0 }
 0x30f   : > { %3597 = vst [vmem:[#allocation2 + $0x248] sm:$0xf] %v3505_v32  ;;  %v3079_v22 = vpop.f32.mrf.mxu3 }
 0x310   : > { %3598 = vst [vmem:[#allocation2 + $0x26c] sm:$0xf] %v3506_v56  ;;  %v3275_v0 = vsel %vm389_vm1, %v3243_v42, %v3259_v19  ;;  %v3291_v1 = vsel %vm389_vm1, %v3259_v19, %v3243_v42  ;;  %v3371_v55 = vsel %vm488_vm2, %v3339_v28, %v3355_v33  ;;  %v3387_v12 = vsel %vm488_vm2, %v3355_v33, %v3339_v28 }
 0x311   : > { %3627 = vst [vmem:[#allocation2 + $0x204] sm:$0xf] %v3441_v18  ;;  %v2992_v48 = vpop.f32.mrf.mxu2  ;;  %v3080_v15 = vadd.f32 %v3079_v22, %v2991_v46  ;;  %v3315_v13 = vsel %vm355_vm0, 0.0, %v3291_v1  ;;  %v3444_v44 = vpack.c.bf16 %v3275_v0, %v3275_v0 }
 0x312   : > { %3628 = vst [vmem:[#allocation2 + $0x228] sm:$0xf] %v3442_v47  ;;  %v2993_v10 = vadd.f32 %v2992_v48, %v2904_v11  ;;  %v2909_v48 = vadd.f32 %v9534_v59, %v9536_v40  ;;  %v8270_v11 = vld [vmem:[#allocation2 + $0xdc] sm:$0xf] }
 0x313   : > { %3660 = vst [vmem:[#allocation2 + $0x22c] sm:$0xf] %v3474_v60  ;;  %v7447_v31 = vld [vmem:[#allocation2 + $0x240] sm:$0xf]  ;;  %v3169_v24 = vadd.f32 %v9765_v45, %v3080_v15  ;;  %v3412_v45 = vsel %vm455_vm3, 0.0, %v3387_v12 }
 0x314   : > { %3691 = vst [vmem:[#allocation2 + $0x20c] sm:$0xf] %v3505_v32  ;;  %v8319_v36 = vld [vmem:[#allocation2 + $0x260] sm:$0xf0]  ;;  %5560 = vmatmul.bf16.gmra.mxu0 %v7244_v37  ;;  %v3508_v42 = vpack.c.bf16 %v3412_v45, %v3412_v45 }
 0x315   : > { %3692 = vst [vmem:[#allocation2 + $0x230] sm:$0xf] %v3506_v56  ;;  %v7448_v43 = vor.u32 %v8319_v36, %v7447_v31  ;;  %v3221_v53 = vmax.f32 %v3169_v24, 0.0  ;;  %v7275_v24 = vld [vmem:[#allocation2 + $0xe0] sm:$0xf] }
 0x316   : > { %3721 = vst [vmem:[#allocation2 + $0x1c8] sm:$0xf] %v3441_v18  ;;  %5382 = vmatmul.bf16.gmra.mxu2 %v7236_v20  ;;  %v3443_v18 = vpack.c.bf16 %v3315_v13, %v3315_v13  ;;  %v3175_v3 = vpop.f32.mrf.mxu0 }
 0x317   : > { %3722 = vst [vmem:[#allocation2 + $0x1ec] sm:$0xf] %v3442_v47  ;;  %5323 = vmatmul.bf16.gmra.mxu1 %v7448_v43  ;;  %v3081_v23 = vpop.f32.mrf.mxu3  ;;  %v7240_v47 = vor.u32 %v8266_v29, %v7239_v63  ;;  %v3244_v28 = vrot.slane %v3221_v53, 7  ;;  %v3340_v19 = vrot.slane %v3221_v53, 1  ;;  %v8275_v43 = vld [vmem:[#allocation2 + $0x100] sm:$0xf0] }
 0x318   : > { %3752 = vst [vmem:[#allocation2 + $0x1f0] sm:$0xf] %v3474_v60  ;;  %v3082_v25 = vadd.f32 %v3081_v23, %v2993_v10  ;;  %v3476_v60 = vpack.c.bf16 %v9779_v26, %v9779_v26  ;;  %v7276_v29 = vor.u32 %v8275_v43, %v7275_v24 }
 0x319   : > { %3781 = vst [vmem:[#allocation2 + $0x1d0] sm:$0xf] %v3505_v32  ;;  %v2995_v50 = vpop.f32.mrf.mxu2 }
 0x31a   : > { %3782 = vst [vmem:[#allocation2 + $0x1f4] sm:$0xf] %v3506_v56  ;;  %v3171_v61 = vadd.f32 %v9776_v51, %v3082_v25  ;;  %v3507_v56 = vpack.c.bf16 %v3371_v55, %v3371_v55  ;;  %v2996_v46 = vadd.f32 %v2995_v50, %v9532_v41  ;;  %v7269_v55 = vld [vmem:[#allocation2 + $0xfc] sm:$0xf0]  ;;  %v7277_v41 = vld [vmem:[#allocation2 + $0x104] sm:$0xf0] }
 0x31b   : > { %3569 = vst [vmem:[#allocation2 + $0x28c] sm:$0xf] %v3475_v21  ;;  %v9804_v9 = vpop.f32.mrf.mxu1  ;;  %v7272_v31 = vor.u32 %v8270_v11, %v7269_v55  ;;  %v7280_v35 = vor.u32 %v8271_v30, %v7277_v41 }
 0x31c   : > { %3661 = vst [vmem:[#allocation2 + $0x250] sm:$0xf] %v3475_v21  ;;  %v9808_v32 = vmax.f32 %v3171_v61, 0.0  ;;  %5471 = vmatmul.bf16.gmra.mxu3 %v7240_v47 }
 0x31d   : > { %3753 = vst [vmem:[#allocation2 + $0x214] sm:$0xf] %v3475_v21  ;;  %v3477_v21 = vpack.c.bf16 %v3221_v53, %v3221_v53 }
 0x31e   : > { %3539 = vst [vmem:[#allocation2 + $0x288] sm:$0xf] %v3443_v18  ;;  %v3260_v51 = vrot.slane %v9808_v32, 7  ;;  %v3356_v33 = vrot.slane %v9808_v32, 1  ;;  %v9826_v20 = vpop.f32.mrf.mxu0  ;;  %v3478_v47 = vpack.c.bf16 %v9808_v32, %v9808_v32 }
 0x31f   : > { %3540 = vst [vmem:[#allocation2 + $0x2ac] sm:$0xf] %v3444_v44  ;;  %v3084_v22 = vpop.f32.mrf.mxu3 }
 0x320   : > { %3570 = vst [vmem:[#allocation2 + $0x2b0] sm:$0xf] %v3476_v60  ;;  %v3276_v26 = vsel %vm389_vm1, %v3244_v28, %v3260_v51  ;;  %v3292_v8 = vsel %vm389_vm1, %v3260_v51, %v3244_v28  ;;  %v3372_v0 = vsel %vm488_vm2, %v3340_v19, %v3356_v33  ;;  %v3388_v1 = vsel %vm488_vm2, %v3356_v33, %v3340_v19 }
 0x321   : > { %3599 = vst [vmem:[#allocation2 + $0x290] sm:$0xf] %v3507_v56  ;;  %v2997_v12 = vpop.f32.mrf.mxu2  ;;  %v3085_v58 = vadd.f32 %v3084_v22, %v2996_v46  ;;  %v3317_v13 = vsel %vm355_vm0, 0.0, %v3292_v8  ;;  %v3414_v45 = vsel %vm455_vm3, 0.0, %v3388_v1  ;;  %v3446_v53 = vpack.c.bf16 %v3276_v26, %v3276_v26  ;;  %v7305_v8 = vld [vmem:[#allocation2 + $0x144] sm:$0xf0] }
 0x322   : > { %3600 = vst [vmem:[#allocation2 + $0x2b4] sm:$0xf] %v3508_v42  ;;  %v2998_v15 = vadd.f32 %v2997_v12, %v2909_v48  ;;  %v3509_v19 = vpack.c.bf16 %v3372_v0, %v3372_v0  ;;  %v3510_v51 = vpack.c.bf16 %v3414_v45, %v3414_v45  ;;  %v7313_v0 = vld [vmem:[#allocation2 + $0x14c] sm:$0xf0]  ;;  %v2914_v1 = vadd.f32 %v9544_v49, %v9546_v62  ;;  %v8279_v48 = vld [vmem:[#allocation2 + $0x124] sm:$0xf] }
 0x323   : > { %3629 = vst [vmem:[#allocation2 + $0x24c] sm:$0xf] %v3443_v18  ;;  %v9823_v2 = vpop.f32.mrf.mxu1  ;;  %v3174_v36 = vadd.f32 %v9796_v17, %v3085_v58  ;;  %v8421_v12 = vld [vmem:[#allocation8 + $0x110] sm:$0xff]  ;;  %v7308_v11 = vor.u32 %v8279_v48, %v7305_v8 }
 0x324   : > { %3630 = vst [vmem:[#allocation2 + $0x270] sm:$0xf] %v3444_v44  ;;  %5565 = vmatmul.bf16.gmra.mxu0 %v7280_v35  ;;  %5636 = vmatpush.bf16.msrb.mxu1 %v8421_v12  ;;  %v7311_v35 = vld [vmem:[#allocation2 + $0x128] sm:$0xf] }
 0x325   : > { %3662 = vst [vmem:[#allocation2 + $0x274] sm:$0xf] %v3476_v60  ;;  %v7483_v10 = vld [vmem:[#allocation2 + $0x288] sm:$0xf]  ;;  %v9830_v17 = vmax.f32 %v3174_v36, 0.0 }
 0x326   : > { %3693 = vst [vmem:[#allocation2 + $0x254] sm:$0xf] %v3507_v56  ;;  %v8328_v37 = vld [vmem:[#allocation2 + $0x2a8] sm:$0xf0]  ;;  %5387 = vmatmul.bf16.gmra.mxu2 %v7272_v31 }
 0x327   : > { %3694 = vst [vmem:[#allocation2 + $0x278] sm:$0xf] %v3508_v42  ;;  %v7484_v59 = vor.u32 %v8328_v37, %v7483_v10  ;;  %v3086_v40 = vpop.f32.mrf.mxu3  ;;  %v8284_v10 = vld [vmem:[#allocation2 + $0x148] sm:$0xf0] }
 0x328   : > { %3723 = vst [vmem:[#allocation2 + $0x210] sm:$0xf] %v3443_v18  ;;  %v3087_v63 = vadd.f32 %v3086_v40, %v2998_v15  ;;  %v3445_v18 = vpack.c.bf16 %v3317_v13, %v3317_v13 }
 0x329   : > { %3724 = vst [vmem:[#allocation2 + $0x234] sm:$0xf] %v3444_v44  ;;  %5328 = vmatmul.bf16.gmra.mxu1 %v7484_v59  ;;  %v3000_v50 = vpop.f32.mrf.mxu2  ;;  %v3245_v44 = vrot.slane %v9830_v17, 7 }
 0x32a   : > { %3754 = vst [vmem:[#allocation2 + $0x238] sm:$0xf] %v3476_v60  ;;  %v3176_v23 = vadd.f32 %v3175_v3, %v3087_v63  ;;  %v3180_v3 = vpop.f32.mrf.mxu0  ;;  %v3341_v60 = vrot.slane %v9830_v17, 1  ;;  %v3001_v28 = vadd.f32 %v3000_v50, %v9542_v54  ;;  %v8280_v54 = vld [vmem:[#allocation2 + $0x12c] sm:$0xf]  ;;  %v7312_v63 = vor.u32 %v8284_v10, %v7311_v35 }
 0x32b   : > { %3783 = vst [vmem:[#allocation2 + $0x218] sm:$0xf] %v3507_v56  ;;  %v9832_v25 = vpop.f32.mrf.mxu1  ;;  %v7316_v15 = vor.u32 %v8280_v54, %v7313_v0  ;;  %v8288_v0 = vld [vmem:[#allocation2 + $0x16c] sm:$0xf] }
 0x32c   : > { %3784 = vst [vmem:[#allocation2 + $0x23c] sm:$0xf] %v3508_v42  ;;  %v9836_v61 = vmax.f32 %v3176_v23, 0.0  ;;  %5476 = vmatmul.bf16.gmra.mxu3 %v7276_v29 }
 0x32d   : > { %3571 = vst [vmem:[#allocation2 + $0x2d4] sm:$0xf] %v3477_v21 }
 0x32e   : > { %3663 = vst [vmem:[#allocation2 + $0x298] sm:$0xf] %v3477_v21  ;;  %v3261_v56 = vrot.slane %v9836_v61, 7  ;;  %v3357_v42 = vrot.slane %v9836_v61, 1 }
 0x32f   : > { %3755 = vst [vmem:[#allocation2 + $0x25c] sm:$0xf] %v3477_v21  ;;  %v3089_v33 = vpop.f32.mrf.mxu3  ;;  %v3479_v21 = vpack.c.bf16 %v9830_v17, %v9830_v17 }
 0x330   : > { %3541 = vst [vmem:[#allocation2 + $0x2d0] sm:$0xf] %v3445_v18  ;;  %v3277_v32 = vsel %vm389_vm1, %v3245_v44, %v3261_v56  ;;  %v3293_v46 = vsel %vm389_vm1, %v3261_v56, %v3245_v44  ;;  %v9851_v22 = vsel %vm488_vm2, %v3341_v60, %v3357_v42  ;;  %v3389_v26 = vsel %vm488_vm2, %v3357_v42, %v3341_v60 }
 0x331   : > { %3542 = vst [vmem:[#allocation2 + $0x2f4] sm:$0xf] %v3446_v53  ;;  %v3090_v55 = vadd.f32 %v3089_v33, %v3001_v28  ;;  %v3002_v41 = vpop.f32.mrf.mxu2  ;;  %v3480_v60 = vpack.c.bf16 %v9836_v61, %v9836_v61  ;;  %v7341_v33 = vld [vmem:[#allocation2 + $0x18c] sm:$0xf0]  ;;  %v3511_v61 = vpack.c.bf16 %v9851_v22, %v9851_v22 }
 0x332   : > { %3572 = vst [vmem:[#allocation2 + $0x2f8] sm:$0xf] %v3478_v47  ;;  %v3003_v58 = vadd.f32 %v3002_v41, %v2914_v1  ;;  %v3183_v36 = vpop.f32.mrf.mxu0  ;;  %v10550_v1 = vld [vmem:[#allocation13_spill] sm:$0xff]  ;;  %v7344_v12 = vor.u32 %v8288_v0, %v7341_v33 }
 0x333   : > { %3601 = vst [vmem:[#allocation2 + $0x2d8] sm:$0xf] %v3509_v19  ;;  %v9857_v30 = vpop.f32.mrf.mxu1  ;;  %v3179_v31 = vadd.f32 %v9826_v20, %v3090_v55  ;;  %v3319_v20 = vsel %vm355_vm0, 0.0, %v3293_v46  ;;  %v7349_v46 = vld [vmem:[#allocation2 + $0x194] sm:$0xf0]  ;;  %v2919_v55 = vadd.f32 %v10550_v1, %v9556_v14 }
 0x334   : > { %3602 = vst [vmem:[#allocation2 + $0x2fc] sm:$0xf] %v3510_v51  ;;  %5570 = vmatmul.bf16.gmra.mxu0 %v7316_v15  ;;  %v3447_v29 = vpack.c.bf16 %v3319_v20, %v3319_v20  ;;  %v7347_v15 = vld [vmem:[#allocation2 + $0x170] sm:$0xf] }
 0x335   : > { %3631 = vst [vmem:[#allocation2 + $0x294] sm:$0xf] %v3445_v18  ;;  %v9860_v40 = vmax.f32 %v3179_v31, 0.0  ;;  %v8293_v31 = vld [vmem:[#allocation2 + $0x190] sm:$0xf0] }
 0x336   : > { %3632 = vst [vmem:[#allocation2 + $0x2b8] sm:$0xf] %v3446_v53  ;;  %5392 = vmatmul.bf16.gmra.mxu2 %v7308_v11 }
 0x337   : > { %3664 = vst [vmem:[#allocation2 + $0x2bc] sm:$0xf] %v3478_v47  ;;  %v7519_v49 = vld [vmem:[#allocation2 + $0x2d0] sm:$0xf]  ;;  %v3091_v62 = vpop.f32.mrf.mxu3  ;;  %v3246_v50 = vrot.slane %v9860_v40, 7 }
 0x338   : > { %3695 = vst [vmem:[#allocation2 + $0x29c] sm:$0xf] %v3509_v19  ;;  %v8337_v37 = vld [vmem:[#allocation2 + $0x2f0] sm:$0xf0]  ;;  %v3092_v59 = vadd.f32 %v3091_v62, %v3003_v58 }
 0x339   : > { %3696 = vst [vmem:[#allocation2 + $0x2c0] sm:$0xf] %v3510_v51  ;;  %v7520_v24 = vor.u32 %v8337_v37, %v7519_v49  ;;  %v3005_v45 = vpop.f32.mrf.mxu2 }
 0x33a   : > { %3725 = vst [vmem:[#allocation2 + $0x258] sm:$0xf] %v3445_v18  ;;  %v3181_v43 = vadd.f32 %v3180_v3, %v3092_v59  ;;  %v3342_v18 = vrot.slane %v9860_v40, 1  ;;  %v3006_v17 = vadd.f32 %v3005_v45, %v9552_v38  ;;  %v3448_v3 = vpack.c.bf16 %v3277_v32, %v3277_v32  ;;  %v3185_v42 = vpop.f32.mrf.mxu0  ;;  %v8289_v32 = vld [vmem:[#allocation2 + $0x174] sm:$0xf] }
 0x33b   : > { %3726 = vst [vmem:[#allocation2 + $0x27c] sm:$0xf] %v3446_v53  ;;  %5333 = vmatmul.bf16.gmra.mxu1 %v7520_v24  ;;  %v9866_v13 = vpop.f32.mrf.mxu1  ;;  %v7352_v41 = vor.u32 %v8289_v32, %v7349_v46  ;;  %v7348_v59 = vor.u32 %v8293_v31, %v7347_v15  ;;  %v7527_v6 = vld [vmem:[#allocation2 + $0x2d8] sm:$0xf] }
 0x33c   : > { %3756 = vst [vmem:[#allocation2 + $0x280] sm:$0xf] %v3478_v47  ;;  %v9868_v23 = vmax.f32 %v3181_v43, 0.0  ;;  %5481 = vmatmul.bf16.gmra.mxu3 %v7312_v63  ;;  %v3416_v47 = vsel %vm455_vm3, 0.0, %v3389_v26  ;;  %v3481_v43 = vpack.c.bf16 %v9860_v40, %v9860_v40 }
 0x33d   : > { %3785 = vst [vmem:[#allocation2 + $0x260] sm:$0xf] %v3509_v19  ;;  %v3512_v26 = vpack.c.bf16 %v3416_v47, %v3416_v47 }
 0x33e   : > { %3786 = vst [vmem:[#allocation2 + $0x284] sm:$0xf] %v3510_v51  ;;  %v3262_v53 = vrot.slane %v9868_v23, 7  ;;  %v3358_v44 = vrot.slane %v9868_v23, 1  ;;  %v3482_v32 = vpack.c.bf16 %v9868_v23, %v9868_v23  ;;  %v7383_v23 = vld [vmem:[#allocation2 + $0x1b8] sm:$0xf] }
 0x33f   : > { %3573 = vst [vmem:[#allocation2 + $0x31c] sm:$0xf] %v3479_v21  ;;  %v3094_v56 = vpop.f32.mrf.mxu3 }
 0x340   : > { %3665 = vst [vmem:[#allocation2 + $0x2e0] sm:$0xf] %v3479_v21  ;;  %v9881_v28 = vsel %vm389_vm1, %v3246_v50, %v3262_v53  ;;  %v3294_v19 = vsel %vm389_vm1, %v3262_v53, %v3246_v50  ;;  %v9887_v38 = vsel %vm488_vm2, %v3342_v18, %v3358_v44  ;;  %v9891_v51 = vsel %vm488_vm2, %v3358_v44, %v3342_v18 }
 0x341   : > { %3757 = vst [vmem:[#allocation2 + $0x2a4] sm:$0xf] %v3479_v21  ;;  %v3095_v8 = vadd.f32 %v3094_v56, %v3006_v17  ;;  %v3007_v48 = vpop.f32.mrf.mxu2  ;;  %v3321_v24 = vsel %vm355_vm0, 0.0, %v3294_v19  ;;  %v8298_v56 = vld [vmem:[#allocation2 + $0x1bc] sm:$0xf]  ;;  %v3450_v19 = vpack.c.bf16 %v9881_v28, %v9881_v28 }
 0x342   : > { %3543 = vst [vmem:[#allocation2 + $0x318] sm:$0xf] %v3447_v29  ;;  %v3008_v22 = vadd.f32 %v3007_v48, %v2919_v55  ;;  %v3188_v62 = vpop.f32.mrf.mxu0  ;;  %v3449_v18 = vpack.c.bf16 %v3321_v24, %v3321_v24 }
 0x343   : > { %3544 = vst [vmem:[#allocation2 + $0x33c] sm:$0xf] %v3448_v3  ;;  %v9895_v54 = vpop.f32.mrf.mxu1  ;;  %v3184_v58 = vadd.f32 %v3183_v36, %v3095_v8  ;;  %v8297_v8 = vld [vmem:[#allocation2 + $0x1b4] sm:$0xf] }
 0x344   : > { %3574 = vst [vmem:[#allocation2 + $0x340] sm:$0xf] %v3480_v60  ;;  %5575 = vmatmul.bf16.gmra.mxu0 %v7352_v41 }
 0x345   : > { %3603 = vst [vmem:[#allocation2 + $0x320] sm:$0xf] %v3511_v61  ;;  %v9899_v14 = vmax.f32 %v3184_v58, 0.0  ;;  %v8302_v58 = vld [vmem:[#allocation2 + $0x1d8] sm:$0xf0] }
 0x346   : > { %3604 = vst [vmem:[#allocation2 + $0x344] sm:$0xf] %v3512_v26  ;;  %5397 = vmatmul.bf16.gmra.mxu2 %v7344_v12  ;;  %v10551_v12 = vld [vmem:[#allocation14_spill] sm:$0xff]  ;;  %v7384_v31 = vor.u32 %v8302_v58, %v7383_v23  ;;  %v7419_v23 = vld [vmem:[#allocation2 + $0x200] sm:$0xf] }
 0x347   : > { %3633 = vst [vmem:[#allocation2 + $0x2dc] sm:$0xf] %v3447_v29  ;;  %v3096_v11 = vpop.f32.mrf.mxu3  ;;  %v3247_v21 = vrot.slane %v9899_v14, 7  ;;  %v3343_v50 = vrot.slane %v9899_v14, 1  ;;  %v2924_v41 = vadd.f32 %v10551_v12, %v9566_v39  ;;  %v3483_v24 = vpack.c.bf16 %v9899_v14, %v9899_v14 }
 0x348   : > { %3634 = vst [vmem:[#allocation2 + $0x300] sm:$0xf] %v3448_v3  ;;  %v3097_v35 = vadd.f32 %v3096_v11, %v3008_v22 }
 0x349   : > { %3666 = vst [vmem:[#allocation2 + $0x304] sm:$0xf] %v3480_v60  ;;  %v7555_v49 = vld [vmem:[#allocation2 + $0x318] sm:$0xf]  ;;  %v3010_v53 = vpop.f32.mrf.mxu2 }
 0x34a   : > { %3697 = vst [vmem:[#allocation2 + $0x2e4] sm:$0xf] %v3511_v61  ;;  %v8346_v10 = vld [vmem:[#allocation2 + $0x338] sm:$0xf0]  ;;  %v3186_v37 = vadd.f32 %v3185_v42, %v3097_v35  ;;  %v3418_v42 = vsel %vm455_vm3, 0.0, %v9891_v51  ;;  %v3190_v33 = vpop.f32.mrf.mxu0  ;;  %v3011_v46 = vadd.f32 %v3010_v53, %v9562_v34  ;;  %v8420_v34 = vld [vmem:[#allocation8 + $0x108] sm:$0xff] }
 0x34b   : > { %3698 = vst [vmem:[#allocation2 + $0x308] sm:$0xf] %v3512_v26  ;;  %v7556_v36 = vor.u32 %v8346_v10, %v7555_v49  ;;  %v3514_v0 = vpack.c.bf16 %v3418_v42, %v3418_v42  ;;  %5637 = vmatpush.bf16.msrb.mxu1 %v8420_v34  ;;  %v8311_v34 = vld [vmem:[#allocation2 + $0x220] sm:$0xf0] }
 0x34c   : > { %3727 = vst [vmem:[#allocation2 + $0x2a0] sm:$0xf] %v3447_v29  ;;  %v9903_v20 = vmax.f32 %v3186_v37, 0.0  ;;  %5486 = vmatmul.bf16.gmra.mxu3 %v7348_v59  ;;  %v9907_v63 = vpop.f32.mrf.mxu1 }
 0x34d   : > { %3728 = vst [vmem:[#allocation2 + $0x2c4] sm:$0xf] %v3448_v3  ;;  %5338 = vmatmul.bf16.gmra.mxu1 %v7556_v36 }
 0x34e   : > { %3758 = vst [vmem:[#allocation2 + $0x2c8] sm:$0xf] %v3480_v60  ;;  %v3263_v29 = vrot.slane %v9903_v20, 7  ;;  %v3359_v45 = vrot.slane %v9903_v20, 1  ;;  %v7377_v60 = vld [vmem:[#allocation2 + $0x1d4] sm:$0xf0] }
 0x34f   : > { %3787 = vst [vmem:[#allocation2 + $0x2a8] sm:$0xf] %v3511_v61  ;;  %v3099_v44 = vpop.f32.mrf.mxu3  ;;  %v7385_v61 = vld [vmem:[#allocation2 + $0x1dc] sm:$0xf0]  ;;  %v7380_v51 = vor.u32 %v8297_v8, %v7377_v60  ;;  %v8307_v60 = vld [vmem:[#allocation2 + $0x204] sm:$0xf]  ;;  %v3484_v8 = vpack.c.bf16 %v9903_v20, %v9903_v20 }
 0x350   : > { %3788 = vst [vmem:[#allocation2 + $0x2cc] sm:$0xf] %v3512_v26  ;;  %v9915_v40 = vsel %vm389_vm1, %v3247_v21, %v3263_v29  ;;  %v3295_v17 = vsel %vm389_vm1, %v3263_v29, %v3247_v21  ;;  %v9921_v47 = vsel %vm488_vm2, %v3343_v50, %v3359_v45  ;;  %v9925_v3 = vsel %vm488_vm2, %v3359_v45, %v3343_v50  ;;  %v7413_v21 = vld [vmem:[#allocation2 + $0x21c] sm:$0xf0]  ;;  %v10553_v20 = vld [vmem:[#allocation16_spill] sm:$0xff] }
 0x351   : > { %3575 = vst [vmem:[#allocation2 + $0x364] sm:$0xf] %v3481_v43  ;;  %v3513_v26 = vpack.c.bf16 %v9887_v38, %v9887_v38  ;;  %v3100_v1 = vadd.f32 %v3099_v44, %v3011_v46  ;;  %v7388_v55 = vor.u32 %v8298_v56, %v7385_v61  ;;  %v3012_v48 = vpop.f32.mrf.mxu2  ;;  %v7421_v56 = vld [vmem:[#allocation2 + $0x224] sm:$0xf0]  ;;  %v3420_v61 = vsel %vm455_vm3, 0.0, %v9925_v3 }
 0x352   : > { %3667 = vst [vmem:[#allocation2 + $0x328] sm:$0xf] %v3481_v43  ;;  %v3013_v11 = vadd.f32 %v3012_v48, %v2924_v41  ;;  %v3193_v39 = vpop.f32.mrf.mxu0  ;;  %v3515_v12 = vpack.c.bf16 %v9921_v47, %v9921_v47  ;;  %v3516_v41 = vpack.c.bf16 %v3420_v61, %v3420_v61  ;;  %v2929_v48 = vadd.f32 %v10553_v20, %v9574_v52 }
 0x353   : > { %3759 = vst [vmem:[#allocation2 + $0x2ec] sm:$0xf] %v3481_v43  ;;  %v3189_v22 = vadd.f32 %v3188_v62, %v3100_v1  ;;  %v3323_v62 = vsel %vm355_vm0, 0.0, %v3295_v17 }
 0x354   : > { %3545 = vst [vmem:[#allocation2 + $0x360] sm:$0xf] %v3449_v18  ;;  %v9937_v28 = vpop.f32.mrf.mxu1  ;;  %5580 = vmatmul.bf16.gmra.mxu0 %v7388_v55  ;;  %v3451_v53 = vpack.c.bf16 %v3323_v62, %v3323_v62  ;;  %v7424_v55 = vor.u32 %v8307_v60, %v7421_v56  ;;  %v7449_v62 = vld [vmem:[#allocation2 + $0x264] sm:$0xf0] }
 0x355   : > { %3546 = vst [vmem:[#allocation2 + $0x384] sm:$0xf] %v3450_v19  ;;  %v9941_v49 = vmax.f32 %v3189_v22, 0.0 }
 0x356   : > { %3576 = vst [vmem:[#allocation2 + $0x388] sm:$0xf] %v3482_v32  ;;  %5402 = vmatmul.bf16.gmra.mxu2 %v7380_v51 }
 0x357   : > { %3605 = vst [vmem:[#allocation2 + $0x368] sm:$0xf] %v3513_v26  ;;  %v3101_v38 = vpop.f32.mrf.mxu3  ;;  %v3248_v50 = vrot.slane %v9941_v49, 7  ;;  %v3344_v29 = vrot.slane %v9941_v49, 1 }
 0x358   : > { %3606 = vst [vmem:[#allocation2 + $0x38c] sm:$0xf] %v3514_v0  ;;  %v3102_v15 = vadd.f32 %v3101_v38, %v3013_v11  ;;  %v7420_v11 = vor.u32 %v8311_v34, %v7419_v23  ;;  %v7455_v23 = vld [vmem:[#allocation2 + $0x248] sm:$0xf]  ;;  %v8320_v34 = vld [vmem:[#allocation2 + $0x268] sm:$0xf0] }
 0x359   : > { %3635 = vst [vmem:[#allocation2 + $0x324] sm:$0xf] %v3449_v18  ;;  %v3015_v44 = vpop.f32.mrf.mxu2 }
 0x35a   : > { %3636 = vst [vmem:[#allocation2 + $0x348] sm:$0xf] %v3450_v19  ;;  %v3191_v37 = vadd.f32 %v3190_v33, %v3102_v15  ;;  %v3195_v46 = vpop.f32.mrf.mxu0 }
 0x35b   : > { %3668 = vst [vmem:[#allocation2 + $0x34c] sm:$0xf] %v3482_v32  ;;  %v7591_v35 = vld [vmem:[#allocation2 + $0x360] sm:$0xf] }
 0x35c   : > { %3699 = vst [vmem:[#allocation2 + $0x32c] sm:$0xf] %v3513_v26  ;;  %v8355_v10 = vld [vmem:[#allocation2 + $0x380] sm:$0xf0]  ;;  %5491 = vmatmul.bf16.gmra.mxu3 %v7384_v31  ;;  %v9945_v36 = vmax.f32 %v3191_v37, 0.0 }
 0x35d   : > { %3700 = vst [vmem:[#allocation2 + $0x350] sm:$0xf] %v3514_v0  ;;  %v7592_v59 = vor.u32 %v8355_v10, %v7591_v35 }
 0x35e   : > { %3729 = vst [vmem:[#allocation2 + $0x2e8] sm:$0xf] %v3449_v18  ;;  %v9949_v43 = vpop.f32.mrf.mxu1  ;;  %v3264_v45 = vrot.slane %v9945_v36, 7  ;;  %v3360_v18 = vrot.slane %v9945_v36, 1 }
 0x35f   : > { %3730 = vst [vmem:[#allocation2 + $0x30c] sm:$0xf] %v3450_v19  ;;  %5343 = vmatmul.bf16.gmra.mxu1 %v7592_v59  ;;  %v3104_v17 = vpop.f32.mrf.mxu3 }
 0x360   : > { %3760 = vst [vmem:[#allocation2 + $0x310] sm:$0xf] %v3482_v32  ;;  %v9957_v14 = vsel %vm389_vm1, %v3248_v50, %v3264_v45  ;;  %v3296_v42 = vsel %vm389_vm1, %v3264_v45, %v3248_v50  ;;  %v9963_v19 = vsel %vm488_vm2, %v3344_v29, %v3360_v18  ;;  %v9967_v33 = vsel %vm488_vm2, %v3360_v18, %v3344_v29  ;;  %v7457_v50 = vld [vmem:[#allocation2 + $0x26c] sm:$0xf0]  ;;  %v8315_v18 = vld [vmem:[#allocation2 + $0x244] sm:$0xf] }
 0x361   : > { %3789 = vst [vmem:[#allocation2 + $0x2f0] sm:$0xf] %v3513_v26  ;;  %v3452_v32 = vpack.c.bf16 %v9915_v40, %v9915_v40  ;;  %v8306_v26 = vld [vmem:[#allocation2 + $0x1fc] sm:$0xf]  ;;  %v3017_v38 = vpop.f32.mrf.mxu2  ;;  %v3485_v29 = vpack.c.bf16 %v9941_v49, %v9941_v49 }
 0x362   : > { %3790 = vst [vmem:[#allocation2 + $0x314] sm:$0xf] %v3514_v0  ;;  %v10552_v0 = vld [vmem:[#allocation15_spill] sm:$0xff]  ;;  %v7416_v51 = vor.u32 %v8306_v26, %v7413_v21  ;;  %v3018_v47 = vadd.f32 %v3017_v38, %v2929_v48  ;;  %v3198_v35 = vpop.f32.mrf.mxu0  ;;  %v2934_v48 = vadd.f32 %v9755_v5, %v9580_v4 }
 0x363   : > { %3577 = vst [vmem:[#allocation2 + $0x3ac] sm:$0xf] %v3483_v24  ;;  %v3016_v1 = vadd.f32 %v3015_v44, %v10552_v0 }
 0x364   : > { %3669 = vst [vmem:[#allocation2 + $0x370] sm:$0xf] %v3483_v24  ;;  %5585 = vmatmul.bf16.gmra.mxu0 %v7424_v55 }
 0x365   : > { %3761 = vst [vmem:[#allocation2 + $0x334] sm:$0xf] %v3483_v24  ;;  %v3105_v3 = vadd.f32 %v3104_v17, %v3016_v1  ;;  %v8316_v24 = vld [vmem:[#allocation2 + $0x24c] sm:$0xf]  ;;  %v3422_v1 = vsel %vm455_vm3, 0.0, %v9967_v33 }
 0x366   : > { %3547 = vst [vmem:[#allocation2 + $0x3a8] sm:$0xf] %v3451_v53  ;;  %5407 = vmatmul.bf16.gmra.mxu2 %v7416_v51  ;;  %v9979_v40 = vpop.f32.mrf.mxu1  ;;  %v3454_v51 = vpack.c.bf16 %v9957_v14, %v9957_v14  ;;  %v3518_v20 = vpack.c.bf16 %v3422_v1, %v3422_v1 }
 0x367   : > { %3548 = vst [vmem:[#allocation2 + $0x3cc] sm:$0xf] %v3452_v32  ;;  %v3106_v58 = vpop.f32.mrf.mxu3  ;;  %v3194_v22 = vadd.f32 %v3193_v39, %v3105_v3  ;;  %v3325_v39 = vsel %vm355_vm0, 0.0, %v3296_v42  ;;  %v3517_v3 = vpack.c.bf16 %v9963_v19, %v9963_v19 }
 0x368   : > { %3578 = vst [vmem:[#allocation2 + $0x3d0] sm:$0xf] %v3484_v8  ;;  %v3107_v15 = vadd.f32 %v3106_v58, %v3018_v47  ;;  %v3453_v56 = vpack.c.bf16 %v3325_v39, %v3325_v39 }
 0x369   : > { %3607 = vst [vmem:[#allocation2 + $0x3b0] sm:$0xf] %v3515_v12  ;;  %v9983_v10 = vmax.f32 %v3194_v22, 0.0  ;;  %v3020_v42 = vpop.f32.mrf.mxu2 }
 0x36a   : > { %3608 = vst [vmem:[#allocation2 + $0x3d4] sm:$0xf] %v3516_v41  ;;  %v3196_v52 = vadd.f32 %v3195_v46, %v3107_v15  ;;  %v7460_v46 = vor.u32 %v8316_v24, %v7457_v50  ;;  %v3200_v55 = vpop.f32.mrf.mxu0 }
 0x36b   : > { %3637 = vst [vmem:[#allocation2 + $0x36c] sm:$0xf] %v3451_v53  ;;  %v3249_v44 = vrot.slane %v9983_v10, 7  ;;  %v3345_v17 = vrot.slane %v9983_v10, 1 }
 0x36c   : > { %3638 = vst [vmem:[#allocation2 + $0x390] sm:$0xf] %v3452_v32  ;;  %5496 = vmatmul.bf16.gmra.mxu3 %v7420_v11  ;;  %v9987_v21 = vmax.f32 %v3196_v52, 0.0  ;;  %v10030_v11 = vld [vmem:[%s10511_s4] ss:$0 sm:$0xff] }
 0x36d   : > { %3670 = vst [vmem:[#allocation2 + $0x394] sm:$0xf] %v3484_v8  ;;  %v7627_v31 = vld [vmem:[#allocation2 + $0x3a8] sm:$0xf]  ;;  %v7485_v52 = vld [vmem:[#allocation2 + $0x2ac] sm:$0xf0] }
 0x36e   : > { %3701 = vst [vmem:[#allocation2 + $0x374] sm:$0xf] %v3515_v12  ;;  %v8364_v37 = vld [vmem:[#allocation2 + $0x3c8] sm:$0xf0]  ;;  %v3361_v60 = vrot.slane %v9987_v21, 1 }
 0x36f   : > { %3702 = vst [vmem:[#allocation2 + $0x398] sm:$0xf] %v3516_v41  ;;  %v7628_v59 = vor.u32 %v8364_v37, %v7627_v31  ;;  %v3109_v61 = vpop.f32.mrf.mxu3 }
 0x370   : > { %3731 = vst [vmem:[#allocation2 + $0x330] sm:$0xf] %v3451_v53  ;;  %v9991_v45 = vpop.f32.mrf.mxu1  ;;  %v3265_v53 = vrot.slane %v9987_v21, 7  ;;  %v10009_v0 = vsel %vm488_vm2, %v3361_v60, %v3345_v17 }
 0x371   : > { %3732 = vst [vmem:[#allocation2 + $0x354] sm:$0xf] %v3452_v32  ;;  %5348 = vmatmul.bf16.gmra.mxu1 %v7628_v59  ;;  %v7452_v32 = vor.u32 %v8315_v18, %v7449_v62  ;;  %v3022_v58 = vpop.f32.mrf.mxu2  ;;  %v8325_v59 = vld [vmem:[#allocation2 + $0x294] sm:$0xf]  ;;  %v5285_v62 = vadd.f32 %v10030_v11, %v9772_v7  ;;  %v3487_v18 = vpack.c.bf16 %v9983_v10, %v9983_v10 }
 0x372   : > { %3762 = vst [vmem:[#allocation2 + $0x358] sm:$0xf] %v3484_v8  ;;  %v9999_v49 = vsel %vm389_vm1, %v3249_v44, %v3265_v53  ;;  %v3297_v26 = vsel %vm389_vm1, %v3265_v53, %v3249_v44  ;;  %v10005_v8 = vsel %vm488_vm2, %v3345_v17, %v3361_v60  ;;  %v3023_v19 = vadd.f32 %v3022_v58, %v2934_v48  ;;  %v10025_v47 = vpop.f32.mrf.mxu0  ;;  %v8324_v60 = vld [vmem:[#allocation2 + $0x28c] sm:$0xf] }
 0x373   : > { %3791 = vst [vmem:[#allocation2 + $0x338] sm:$0xf] %v3515_v12  ;;  %v3486_v12 = vpack.c.bf16 %v9945_v36, %v9945_v36  ;;  %v8419_v36 = vld [vmem:[#allocation8 + $0x100] sm:$0xff]  ;;  %v3327_v24 = vsel %vm355_vm0, 0.0, %v3297_v26  ;;  %v7488_v10 = vor.u32 %v8324_v60, %v7485_v52  ;;  %v3456_v48 = vpack.c.bf16 %v9999_v49, %v9999_v49 }
 0x374   : > { %3792 = vst [vmem:[#allocation2 + $0x35c] sm:$0xf] %v3516_v41  ;;  %v3021_v41 = vadd.f32 %v3020_v42, %v9578_v57  ;;  %5590 = vmatmul.bf16.gmra.mxu0 %v7460_v46  ;;  %v7456_v57 = vor.u32 %v8320_v34, %v7455_v23  ;;  %5638 = vmatpush.bf16.msrb.mxu1 %v8419_v36  ;;  %v8442_v46 = vld [vmem:[#allocation8 + $0x1b8] sm:$0xff]  ;;  %v8329_v36 = vld [vmem:[#allocation2 + $0x2b0] sm:$0xf0] }
 0x375   : > { %3579 = vst [vmem:[#allocation2 + $0x3f4] sm:$0xf] %v3485_v29  ;;  %v3455_v26 = vpack.c.bf16 %v3327_v24, %v3327_v24  ;;  %5809 = vmatpush.bf16.msra.mxu3 %v8442_v46  ;;  %v3519_v58 = vpack.c.bf16 %v10005_v8, %v10005_v8 }
 0x376   : > { %3671 = vst [vmem:[#allocation2 + $0x3b8] sm:$0xf] %v3485_v29  ;;  %5412 = vmatmul.bf16.gmra.mxu2 %v7452_v32  ;;  %v3110_v33 = vadd.f32 %v3109_v61, %v3021_v41  ;;  %v8434_v32 = vld [vmem:[#allocation8 + $0x178] sm:$0xff] }
 0x377   : > { %3763 = vst [vmem:[#allocation2 + $0x37c] sm:$0xf] %v3485_v29  ;;  %v3111_v22 = vpop.f32.mrf.mxu3  ;;  %v7493_v29 = vld [vmem:[#allocation2 + $0x2b4] sm:$0xf0]  ;;  %5720 = vmatpush.bf16.msra.mxu2 %v8434_v32 }
 0x378   : > { %3549 = vst [vmem:[#allocation2 + $0x3f0] sm:$0xf] %v3453_v56  ;;  %v10021_v14 = vpop.f32.mrf.mxu1  ;;  %v3199_v38 = vadd.f32 %v3198_v35, %v3110_v33  ;;  %v3112_v4 = vadd.f32 %v3111_v22, %v3023_v19  ;;  %v8458_v41 = vld [vmem:[#allocation8 + $0x238] sm:$0xff]  ;;  %v7491_v33 = vld [vmem:[#allocation2 + $0x290] sm:$0xf] }
 0x379   : > { %3550 = vst [vmem:[#allocation2 + $0x414] sm:$0xf] %v3454_v51  ;;  %v5373_v53 = vpop.f32.mrf.mxu2  ;;  %5987 = vmatpush.bf16.msra.mxu1 %v8458_v41  ;;  %v7492_v19 = vor.u32 %v8329_v36, %v7491_v33  ;;  %v5292_v33 = vadd.f32 %v10030_v11, %v9823_v2  ;;  %v8249_v2 = vld [vmem:[#allocation2 + $0x30] sm:$0xf0] }
 0x37a   : > { %3580 = vst [vmem:[#allocation2 + $0x418] sm:$0xf] %v3486_v12  ;;  %v10032_v5 = vmax.f32 %v3199_v38, 0.0  ;;  %v3201_v35 = vadd.f32 %v3200_v55, %v3112_v4  ;;  %v5374_v61 = vadd.f32 %v5373_v53, %v5285_v62  ;;  %v5553_v1 = vpop.f32.mrf.mxu0  ;;  %v8450_v55 = vld [vmem:[#allocation8 + $0x1f8] sm:$0xff] }
 0x37b   : > { %3609 = vst [vmem:[#allocation2 + $0x3f8] sm:$0xf] %v3517_v3  ;;  %5898 = vmatpush.bf16.msra.mxu0 %v8450_v55 }
 0x37c   : > { %3610 = vst [vmem:[#allocation2 + $0x41c] sm:$0xf] %v3518_v20  ;;  %5501 = vmatmul.bf16.gmra.mxu3 %v7456_v57  ;;  %v10038_v39 = vmax.f32 %v3201_v35, 0.0  ;;  %v3250_v44 = vrot.slane %v10032_v5, 7  ;;  %v3346_v17 = vrot.slane %v10032_v5, 1  ;;  %v3488_v57 = vpack.c.bf16 %v9987_v21, %v9987_v21 }
 0x37d   : > { %3639 = vst [vmem:[#allocation2 + $0x3b4] sm:$0xf] %v3453_v56 }
 0x37e   : > { %3640 = vst [vmem:[#allocation2 + $0x3d8] sm:$0xf] %v3454_v51  ;;  %v3362_v42 = vrot.slane %v10038_v39, 1  ;;  %v3490_v41 = vpack.c.bf16 %v10038_v39, %v10038_v39 }
 0x37f   : > { %3672 = vst [vmem:[#allocation2 + $0x3dc] sm:$0xf] %v3486_v12  ;;  %v7663_v15 = vld [vmem:[#allocation2 + $0x3f0] sm:$0xf]  ;;  %v5462_v7 = vpop.f32.mrf.mxu3 }
 0x380   : > { %3703 = vst [vmem:[#allocation2 + $0x3bc] sm:$0xf] %v3517_v3  ;;  %v8373_v31 = vld [vmem:[#allocation2 + $0x410] sm:$0xf0]  ;;  %v10056_v34 = vsel %vm488_vm2, %v3346_v17, %v3362_v42  ;;  %v5463_v38 = vadd.f32 %v5462_v7, %v5374_v61 }
 0x381   : > { %3704 = vst [vmem:[#allocation2 + $0x3e0] sm:$0xf] %v3518_v20  ;;  %v7664_v37 = vor.u32 %v8373_v31, %v7663_v15  ;;  %v5375_v21 = vpop.f32.mrf.mxu2  ;;  %v8441_v61 = vld [vmem:[#allocation8 + $0x1b0] sm:$0xff]  ;;  %v3521_v27 = vpack.c.bf16 %v10056_v34, %v10056_v34  ;;  %v5295_v34 = vadd.f32 %v10030_v11, %v9832_v25 }
 0x382   : > { %3733 = vst [vmem:[#allocation2 + $0x378] sm:$0xf] %v3453_v56  ;;  %v10040_v50 = vpop.f32.mrf.mxu1  ;;  %v3266_v56 = vrot.slane %v10038_v39, 7  ;;  %v10076_v4 = vadd.f32 %v10025_v47, %v5463_v38  ;;  %v5556_v8 = vpop.f32.mrf.mxu0  ;;  %v5290_v47 = vadd.f32 %v10030_v11, %v9804_v9  ;;  %v3489_v9 = vpack.c.bf16 %v10032_v5, %v10032_v5  ;;  %5810 = vmatpush.bf16.msra.mxu3 %v8441_v61 }
 0x383   : > { %3734 = vst [vmem:[#allocation2 + $0x39c] sm:$0xf] %v3454_v51  ;;  %5353 = vmatmul.bf16.gmra.mxu1 %v7664_v37  ;;  %v7496_v51 = vor.u32 %v8325_v59, %v7493_v29  ;;  %v7521_v59 = vld [vmem:[#allocation2 + $0x2f4] sm:$0xf0] }
 0x384   : > { %3764 = vst [vmem:[#allocation2 + $0x3a0] sm:$0xf] %v3486_v12  ;;  %v10050_v23 = vsel %vm389_vm1, %v3250_v44, %v3266_v56  ;;  %v3298_v12 = vsel %vm389_vm1, %v3266_v56, %v3250_v44  ;;  %v7529_v44 = vld [vmem:[#allocation2 + $0x2fc] sm:$0xf0]  ;;  %v8333_v56 = vld [vmem:[#allocation2 + $0x2d4] sm:$0xf] }
 0x385   : > { %3793 = vst [vmem:[#allocation2 + $0x380] sm:$0xf] %v3517_v3  ;;  %v10060_v3 = vsel %vm488_vm2, %v3362_v42, %v3346_v17  ;;  %5595 = vmatmul.bf16.gmra.mxu0 %v7496_v51  ;;  %v3329_v17 = vsel %vm355_vm0, 0.0, %v3298_v12  ;;  %v8433_v42 = vld [vmem:[#allocation8 + $0x170] sm:$0xff]  ;;  %v7524_v46 = vor.u32 %v8333_v56, %v7521_v59  ;;  %v3458_v51 = vpack.c.bf16 %v10050_v23, %v10050_v23 }
 0x386   : > { %3794 = vst [vmem:[#allocation2 + $0x3a4] sm:$0xf] %v3518_v20  ;;  %v3424_v20 = vsel %vm455_vm3, 0.0, %v10009_v0  ;;  %5417 = vmatmul.bf16.gmra.mxu2 %v7488_v10  ;;  %v5287_v0 = vadd.f32 %v10030_v11, %v9794_v16  ;;  %v8338_v10 = vld [vmem:[#allocation2 + $0x2f8] sm:$0xf0]  ;;  %v3426_v5 = vsel %vm455_vm3, 0.0, %v10060_v3 }
 0x387   : > { %3581 = vst [vmem:[#allocation2 + $0x43c] sm:$0xf] %v3487_v18  ;;  %v3520_v49 = vpack.c.bf16 %v3424_v20, %v3424_v20  ;;  %v5464_v15 = vpop.f32.mrf.mxu3  ;;  %5721 = vmatpush.bf16.msra.mxu2 %v8433_v42  ;;  %v8449_v12 = vld [vmem:[#allocation8 + $0x1f0] sm:$0xff]  ;;  %v7528_v3 = vor.u32 %v8338_v10, %v7527_v6  ;;  %v3522_v20 = vpack.c.bf16 %v3426_v5, %v3426_v5  ;;  %v7211_v6 = vld [vmem:[#allocation2 + $0x58] sm:$0xf] }
 0x388   : > { %3673 = vst [vmem:[#allocation2 + $0x400] sm:$0xf] %v3487_v18  ;;  %v5376_v31 = vadd.f32 %v5375_v21, %v5287_v0  ;;  %5899 = vmatpush.bf16.msra.mxu0 %v8449_v12  ;;  %v7175_v0 = vld [vmem:[#allocation2 + $0x10] sm:$0xf] }
 0x389   : > { %3765 = vst [vmem:[#allocation2 + $0x3c4] sm:$0xf] %v3487_v18  ;;  %v5378_v24 = vpop.f32.mrf.mxu2  ;;  %v8334_v18 = vld [vmem:[#allocation2 + $0x2dc] sm:$0xf]  ;;  %v7601_v12 = vld [vmem:[#allocation2 + $0x38c] sm:$0xf0] }
 0x38a   : > { %3551 = vst [vmem:[#allocation2 + $0x438] sm:$0xf] %v3455_v26  ;;  %v10073_v22 = vpop.f32.mrf.mxu1  ;;  %v5465_v35 = vadd.f32 %v5464_v15, %v5376_v31  ;;  %v5379_v7 = vadd.f32 %v5378_v24, %v5290_v47  ;;  %v5558_v60 = vpop.f32.mrf.mxu0  ;;  %v8343_v31 = vld [vmem:[#allocation2 + $0x324] sm:$0xf]  ;;  %v8342_v47 = vld [vmem:[#allocation2 + $0x31c] sm:$0xf] }
 0x38b   : > { %3552 = vst [vmem:[#allocation2 + $0x45c] sm:$0xf] %v3456_v48 }
 0x38c   : > { %3582 = vst [vmem:[#allocation2 + $0x460] sm:$0xf] %v3488_v57  ;;  %5506 = vmatmul.bf16.gmra.mxu3 %v7492_v19  ;;  %v10078_v16 = vadd.f32 %v5553_v1, %v5465_v35  ;;  %v7532_v1 = vor.u32 %v8334_v18, %v7529_v44  ;;  %v7176_v19 = vor.u32 %v8249_v2, %v7175_v0  ;;  %v8347_v18 = vld [vmem:[#allocation2 + $0x340] sm:$0xf0]  ;;  %v8356_v2 = vld [vmem:[#allocation2 + $0x388] sm:$0xf0] }
 0x38d   : > { %3611 = vst [vmem:[#allocation2 + $0x440] sm:$0xf] %v3519_v58  ;;  %v5302_v0 = vadd.f32 %v10030_v11, %v9895_v54 }
 0x38e   : > { %3612 = vst [vmem:[#allocation2 + $0x464] sm:$0xf] %v3520_v49 }
 0x38f   : > { %3641 = vst [vmem:[#allocation2 + $0x3fc] sm:$0xf] %v3455_v26  ;;  %v5467_v29 = vpop.f32.mrf.mxu3 }
 0x390   : > { %3642 = vst [vmem:[#allocation2 + $0x420] sm:$0xf] %v3456_v48  ;;  %v5468_v32 = vadd.f32 %v5467_v29, %v5379_v7  ;;  %v7563_v29 = vld [vmem:[#allocation2 + $0x320] sm:$0xf] }
 0x391   : > { %3674 = vst [vmem:[#allocation2 + $0x424] sm:$0xf] %v3488_v57  ;;  %v7699_v37 = vld [vmem:[#allocation2 + $0x438] sm:$0xf]  ;;  %v5380_v23 = vpop.f32.mrf.mxu2  ;;  %v7564_v7 = vor.u32 %v8347_v18, %v7563_v29  ;;  %v7629_v18 = vld [vmem:[#allocation2 + $0x3cc] sm:$0xf0] }
 0x392   : > { %3705 = vst [vmem:[#allocation2 + $0x404] sm:$0xf] %v3519_v58  ;;  %v8382_v52 = vld [vmem:[#allocation2 + $0x458] sm:$0xf0]  ;;  %v10093_v55 = vadd.f32 %v5556_v8, %v5468_v32  ;;  %v5561_v39 = vpop.f32.mrf.mxu0  ;;  %v7565_v8 = vld [vmem:[#allocation2 + $0x344] sm:$0xf0] }
 0x393   : > { %3706 = vst [vmem:[#allocation2 + $0x428] sm:$0xf] %v3520_v49  ;;  %v7700_v62 = vor.u32 %v8382_v52, %v7699_v37  ;;  %v8457_v52 = vld [vmem:[#allocation8 + $0x230] sm:$0xff]  ;;  %v7568_v25 = vor.u32 %v8343_v31, %v7565_v8  ;;  %v8448_v8 = vld [vmem:[#allocation8 + $0x1e8] sm:$0xff] }
 0x394   : > { %3735 = vst [vmem:[#allocation2 + $0x3c0] sm:$0xf] %v3455_v26  ;;  %v10084_v53 = vpop.f32.mrf.mxu1  ;;  %v3457_v26 = vpack.c.bf16 %v3329_v17, %v3329_v17  ;;  %5988 = vmatpush.bf16.msra.mxu1 %v8457_v52  ;;  %v5297_v17 = vadd.f32 %v10030_v11, %v9857_v30  ;;  %v7593_v30 = vld [vmem:[#allocation2 + $0x384] sm:$0xf0]  ;;  %5900 = vmatpush.bf16.msra.mxu0 %v8448_v8  ;;  %v8431_v8 = vld [vmem:[#allocation8 + $0x160] sm:$0xff] }
 0x395   : > { %3736 = vst [vmem:[#allocation2 + $0x3e4] sm:$0xf] %v3456_v48  ;;  %5358 = vmatmul.bf16.gmra.mxu1 %v7700_v62  ;;  %5600 = vmatmul.bf16.gmra.mxu0 %v7532_v1 }
 0x396   : > { %3766 = vst [vmem:[#allocation2 + $0x3e8] sm:$0xf] %v3488_v57  ;;  %5422 = vmatmul.bf16.gmra.mxu2 %v7524_v46  ;;  %v5381_v57 = vadd.f32 %v5380_v23, %v5292_v33  ;;  %v8258_v46 = vld [vmem:[#allocation2 + $0x78] sm:$0xf0]  ;;  %v8440_v23 = vld [vmem:[#allocation8 + $0x1a8] sm:$0xff] }
 0x397   : > { %3795 = vst [vmem:[#allocation2 + $0x3c8] sm:$0xf] %v3519_v58  ;;  %v5469_v48 = vpop.f32.mrf.mxu3  ;;  %v7212_v10 = vor.u32 %v8258_v46, %v7211_v6  ;;  %5811 = vmatpush.bf16.msra.mxu3 %v8440_v23  ;;  %v7635_v6 = vld [vmem:[#allocation2 + $0x3b0] sm:$0xf] }
 0x398   : > { %3796 = vst [vmem:[#allocation2 + $0x3ec] sm:$0xf] %v3520_v49  ;;  %v5470_v38 = vadd.f32 %v5469_v48, %v5381_v57  ;;  %v7557_v49 = vld [vmem:[#allocation2 + $0x33c] sm:$0xf0] }
 0x399   : > { %3675 = vst [vmem:[#allocation2 + $0x448] sm:$0xf] %v3489_v9  ;;  %v5383_v21 = vpop.f32.mrf.mxu2  ;;  %v7560_v24 = vor.u32 %v8342_v47, %v7557_v49 }
 0x39a   : > { %3767 = vst [vmem:[#allocation2 + $0x40c] sm:$0xf] %v3489_v9  ;;  %v10103_v58 = vadd.f32 %v5558_v60, %v5470_v38  ;;  %v5384_v35 = vadd.f32 %v5383_v21, %v5295_v34  ;;  %v5563_v37 = vpop.f32.mrf.mxu0  ;;  %v7599_v38 = vld [vmem:[#allocation2 + $0x368] sm:$0xf] }
 0x39b   : > { %3643 = vst [vmem:[#allocation2 + $0x444] sm:$0xf] %v3457_v26  ;;  %v7600_v49 = vor.u32 %v8356_v2, %v7599_v38 }
 0x39c   : > { %3644 = vst [vmem:[#allocation2 + $0x468] sm:$0xf] %v3458_v51  ;;  %v10101_v36 = vpop.f32.mrf.mxu1  ;;  %5511 = vmatmul.bf16.gmra.mxu3 %v7528_v3  ;;  %v8351_v3 = vld [vmem:[#allocation2 + $0x364] sm:$0xf] }
 0x39d   : > { %3676 = vst [vmem:[#allocation2 + $0x46c] sm:$0xf] %v3490_v41  ;;  %v7596_v57 = vor.u32 %v8351_v3, %v7593_v30 }
 0x39e   : > { %3707 = vst [vmem:[#allocation2 + $0x44c] sm:$0xf] %v3521_v27 }
 0x39f   : > { %3708 = vst [vmem:[#allocation2 + $0x470] sm:$0xf] %v3522_v20  ;;  %v5472_v15 = vpop.f32.mrf.mxu3 }
 0x3a0   : > { %3737 = vst [vmem:[#allocation2 + $0x408] sm:$0xf] %v3457_v26  ;;  %v5473_v62 = vadd.f32 %v5472_v15, %v5384_v35  ;;  %v5300_v26 = vadd.f32 %v10030_v11, %v9866_v13 }
 0x3a1   : > { %3738 = vst [vmem:[#allocation2 + $0x42c] sm:$0xf] %v3458_v51  ;;  %v5385_v9 = vpop.f32.mrf.mxu2 }
 0x3a2   : > { %3768 = vst [vmem:[#allocation2 + $0x430] sm:$0xf] %v3490_v41  ;;  %v10109_v44 = vadd.f32 %v5561_v39, %v5473_v62  ;;  %v5386_v56 = vadd.f32 %v5385_v9, %v5297_v17  ;;  %v5566_v42 = vpop.f32.mrf.mxu0  ;;  %v8352_v41 = vld [vmem:[#allocation2 + $0x36c] sm:$0xf]  ;;  %v5305_v62 = vadd.f32 %v10030_v11, %v9907_v63  ;;  %v8361_v17 = vld [vmem:[#allocation2 + $0x3b4] sm:$0xf] }
 0x3a3   : > { %3797 = vst [vmem:[#allocation2 + $0x410] sm:$0xf] %v3521_v27  ;;  %v7604_v39 = vor.u32 %v8352_v41, %v7601_v12 }
 0x3a4   : > { %3798 = vst [vmem:[#allocation2 + $0x434] sm:$0xf] %v3522_v20  ;;  %v8432_v20 = vld [vmem:[#allocation8 + $0x168] sm:$0xff] }
 0x3a5   : > { %5639 = vmatmul.bf16.vlgmr.msrb.gmra.mxu1 %v7176_v19  ;;  %5605 = vmatmul.bf16.gmra.mxu0 %v7568_v25 }
 0x3a6   : > { %v10107_v59 = vpop.f32.mrf.mxu1  ;;  %5427 = vmatmul.bf16.gmra.mxu2 %v7560_v24  ;;  %v7247_v24 = vld [vmem:[#allocation2 + $0xa0] sm:$0xf] }
 0x3a7   : > { %v5474_v60 = vpop.f32.mrf.mxu3  ;;  %5722 = vmatpush.bf16.msra.mxu2 %v8432_v20  ;;  %v8276_v20 = vld [vmem:[#allocation2 + $0x108] sm:$0xf0] }
 0x3a8   : > { %v5475_v32 = vadd.f32 %v5474_v60, %v5386_v56  ;;  %v8360_v56 = vld [vmem:[#allocation2 + $0x3ac] sm:$0xf] }
 0x3a9   : > { %v5388_v5 = vpop.f32.mrf.mxu2  ;;  %v7632_v46 = vor.u32 %v8360_v56, %v7629_v18  ;;  %v5312_v18 = vadd.f32 %v10030_v11, %v9979_v40 }
 0x3aa   : > { %v10115_v1 = vadd.f32 %v5563_v37, %v5475_v32  ;;  %v5389_v33 = vadd.f32 %v5388_v5, %v5300_v26  ;;  %v5568_v27 = vpop.f32.mrf.mxu0  ;;  %v8267_v37 = vld [vmem:[#allocation2 + $0xc0] sm:$0xf0]  ;;  %v5307_v5 = vadd.f32 %v10030_v11, %v9937_v28 }
 0x3ab   : > { %v7248_v25 = vor.u32 %v8267_v37, %v7247_v24  ;;  %5723 = vmatpush.bf16.msra.mxu2 %v8431_v8  ;;  %v8383_v8 = vld [vmem:[#allocation2 + $0x460] sm:$0xf0] }
 0x3ac   : > { %5516 = vmatmul.bf16.gmra.mxu3 %v7564_v7  ;;  %v7637_v7 = vld [vmem:[#allocation2 + $0x3d4] sm:$0xf0] }
 0x3ad   : > { %v7640_v26 = vor.u32 %v8361_v17, %v7637_v7 }
 0x3ae   : > { %v10113_v61 = vpop.f32.mrf.mxu1 }
 0x3af   : > { %v5477_v51 = vpop.f32.mrf.mxu3 }
 0x3b0   : > { %v5478_v48 = vadd.f32 %v5477_v51, %v5389_v33 }
 0x3b1   : > { %v5390_v19 = vpop.f32.mrf.mxu2 }
 0x3b2   : > { %v10121_v34 = vadd.f32 %v5566_v42, %v5478_v48  ;;  %v5391_v15 = vadd.f32 %v5390_v19, %v5302_v0  ;;  %v5571_v31 = vpop.f32.mrf.mxu0  ;;  %v8456_v42 = vld [vmem:[#allocation8 + $0x228] sm:$0xff]  ;;  %v5310_v48 = vadd.f32 %v10030_v11, %v9949_v43  ;;  %v7665_v0 = vld [vmem:[#allocation2 + $0x414] sm:$0xf0]  ;;  %v7673_v19 = vld [vmem:[#allocation2 + $0x41c] sm:$0xf0] }
 0x3b3   : > { %5989 = vmatpush.bf16.msra.mxu1 %v8456_v42  ;;  %v8439_v43 = vld [vmem:[#allocation8 + $0x1a0] sm:$0xff] }
 0x3b4   : > { %5812 = vmatpush.bf16.msra.mxu3 %v8439_v43 }
 0x3b5   : > { %5644 = vmatmul.bf16.gmra.mxu1 %v7212_v10  ;;  %5610 = vmatmul.bf16.gmra.mxu0 %v7604_v39  ;;  %v8365_v10 = vld [vmem:[#allocation2 + $0x3d0] sm:$0xf0] }
 0x3b6   : > { %5432 = vmatmul.bf16.gmra.mxu2 %v7596_v57  ;;  %v7636_v30 = vor.u32 %v8365_v10, %v7635_v6  ;;  %v7283_v57 = vld [vmem:[#allocation2 + $0xe8] sm:$0xf]  ;;  %v8430_v6 = vld [vmem:[#allocation8 + $0x158] sm:$0xff] }
 0x3b7   : > { %v5479_v21 = vpop.f32.mrf.mxu3  ;;  %v7284_v38 = vor.u32 %v8276_v20, %v7283_v57  ;;  %v8438_v10 = vld [vmem:[#allocation8 + $0x198] sm:$0xff]  ;;  %v7709_v20 = vld [vmem:[#allocation2 + $0x464] sm:$0xf0]  ;;  %5724 = vmatpush.bf16.msra.mxu2 %v8430_v6 }
 0x3b8   : > { %v10119_v13 = vpop.f32.mrf.mxu1  ;;  %v5480_v35 = vadd.f32 %v5479_v21, %v5391_v15  ;;  %5813 = vmatpush.bf16.msra.mxu3 %v8438_v10  ;;  %v8294_v6 = vld [vmem:[#allocation2 + $0x198] sm:$0xf0] }
 0x3b9   : > { %v5393_v54 = vpop.f32.mrf.mxu2 }
 0x3ba   : > { %v10127_v52 = vadd.f32 %v5568_v27, %v5480_v35  ;;  %v5394_v9 = vadd.f32 %v5393_v54, %v5305_v62  ;;  %v5573_v60 = vpop.f32.mrf.mxu0  ;;  %v7671_v62 = vld [vmem:[#allocation2 + $0x3f8] sm:$0xf]  ;;  %v8447_v54 = vld [vmem:[#allocation8 + $0x1e0] sm:$0xff] }
 0x3bb   : > { %5901 = vmatpush.bf16.msra.mxu0 %v8447_v54 }
 0x3bc   : > { %5521 = vmatmul.bf16.gmra.mxu3 %v7600_v49  ;;  %v8370_v49 = vld [vmem:[#allocation2 + $0x3fc] sm:$0xf] }
 0x3bd   : > { %v7676_v24 = vor.u32 %v8370_v49, %v7673_v19  ;;  %v8437_v49 = vld [vmem:[#allocation8 + $0x190] sm:$0xff] }
 0x3be   : > { %5814 = vmatpush.bf16.msra.mxu3 %v8437_v49  ;;  %v7183_v49 = vld [vmem:[#allocation2 + $0x18] sm:$0xf] }
 0x3bf   : > { %v5482_v29 = vpop.f32.mrf.mxu3 }
 0x3c0   : > { %v10125_v47 = vpop.f32.mrf.mxu1  ;;  %v5483_v32 = vadd.f32 %v5482_v29, %v5394_v9 }
 0x3c1   : > { %v5395_v41 = vpop.f32.mrf.mxu2 }
 0x3c2   : > { %v10131_v63 = vadd.f32 %v5571_v31, %v5483_v32  ;;  %v5396_v33 = vadd.f32 %v5395_v41, %v5307_v5  ;;  %v5576_v27 = vpop.f32.mrf.mxu0  ;;  %v8369_v31 = vld [vmem:[#allocation2 + $0x3f4] sm:$0xf]  ;;  %v8446_v5 = vld [vmem:[#allocation8 + $0x1d8] sm:$0xff]  ;;  %v7319_v41 = vld [vmem:[#allocation2 + $0x130] sm:$0xf] }
 0x3c3   : > { %v7668_v37 = vor.u32 %v8369_v31, %v7665_v0  ;;  %5902 = vmatpush.bf16.msra.mxu0 %v8446_v5  ;;  %v8429_v0 = vld [vmem:[#allocation8 + $0x150] sm:$0xff]  ;;  %v7707_v31 = vld [vmem:[#allocation2 + $0x440] sm:$0xf]  ;;  %v7355_v5 = vld [vmem:[#allocation2 + $0x178] sm:$0xf] }
 0x3c4   : > { %5725 = vmatpush.bf16.msra.mxu2 %v8429_v0  ;;  %v7708_v43 = vor.u32 %v8383_v8, %v7707_v31 }
 0x3c5   : > { %5649 = vmatmul.bf16.gmra.mxu1 %v7248_v25  ;;  %5615 = vmatmul.bf16.gmra.mxu0 %v7640_v26  ;;  %v8374_v25 = vld [vmem:[#allocation2 + $0x418] sm:$0xf0] }
 0x3c6   : > { %5437 = vmatmul.bf16.gmra.mxu2 %v7632_v46  ;;  %v7672_v17 = vor.u32 %v8374_v25, %v7671_v62  ;;  %v8285_v46 = vld [vmem:[#allocation2 + $0x150] sm:$0xf0]  ;;  %v8436_v62 = vld [vmem:[#allocation8 + $0x188] sm:$0xff]  ;;  %v5317_v25 = vadd.f32 %v10030_v11, %v10021_v14  ;;  %v5320_v14 = vadd.f32 %v10030_v11, %v10040_v50 }
 0x3c7   : > { %v5484_v12 = vpop.f32.mrf.mxu3  ;;  %v7320_v40 = vor.u32 %v8285_v46, %v7319_v41  ;;  %5815 = vmatpush.bf16.msra.mxu3 %v8436_v62 }
 0x3c8   : > { %v5485_v3 = vadd.f32 %v5484_v12, %v5396_v33 }
 0x3c9   : > { %v5398_v28 = vpop.f32.mrf.mxu2 }
 0x3ca   : > { %v10135_v51 = vpop.f32.mrf.mxu1  ;;  %v10137_v23 = vadd.f32 %v5573_v60, %v5485_v3  ;;  %v5399_v21 = vadd.f32 %v5398_v28, %v5310_v48  ;;  %v5578_v15 = vpop.f32.mrf.mxu0  ;;  %v8379_v3 = vld [vmem:[#allocation2 + $0x444] sm:$0xf] }
 0x3cc   : > { %5526 = vmatmul.bf16.gmra.mxu3 %v7636_v30  ;;  %v5315_v30 = vadd.f32 %v10030_v11, %v9991_v45 }
 0x3cf   : > { %v5487_v2 = vpop.f32.mrf.mxu3 }
 0x3d0   : > { %v5488_v35 = vadd.f32 %v5487_v2, %v5399_v21  ;;  %v8455_v2 = vld [vmem:[#allocation8 + $0x220] sm:$0xff]  ;;  %v7712_v21 = vor.u32 %v8379_v3, %v7709_v20 }
 0x3d1   : > { %v5400_v7 = vpop.f32.mrf.mxu2  ;;  %5990 = vmatpush.bf16.msra.mxu1 %v8455_v2 }
 0x3d2   : > { %v10141_v39 = vpop.f32.mrf.mxu1  ;;  %v10143_v29 = vadd.f32 %v5576_v27, %v5488_v35  ;;  %v5401_v56 = vadd.f32 %v5400_v7, %v5312_v18  ;;  %v5581_v42 = vpop.f32.mrf.mxu0  ;;  %v7701_v27 = vld [vmem:[#allocation2 + $0x45c] sm:$0xf0] }
 0x3d5   : > { %5654 = vmatmul.bf16.gmra.mxu1 %v7284_v38  ;;  %5620 = vmatmul.bf16.gmra.mxu0 %v7676_v24  ;;  %v8378_v38 = vld [vmem:[#allocation2 + $0x43c] sm:$0xf]  ;;  %v8444_v24 = vld [vmem:[#allocation8 + $0x1c8] sm:$0xff] }
 0x3d6   : > { %5442 = vmatmul.bf16.gmra.mxu2 %v7668_v37  ;;  %v7704_v19 = vor.u32 %v8378_v38, %v7701_v27  ;;  %v8428_v37 = vld [vmem:[#allocation8 + $0x148] sm:$0xff]  ;;  %v7185_v27 = vld [vmem:[#allocation2 + $0x3c] sm:$0xf0] }
 0x3d7   : > { %v5489_v9 = vpop.f32.mrf.mxu3  ;;  %5726 = vmatpush.bf16.msra.mxu2 %v8428_v37 }
 0x3d8   : > { %v5490_v32 = vadd.f32 %v5489_v9, %v5401_v56  ;;  %v8435_v56 = vld [vmem:[#allocation8 + $0x180] sm:$0xff] }
 0x3d9   : > { %v5403_v12 = vpop.f32.mrf.mxu2  ;;  %5816 = vmatpush.bf16.msra.mxu3 %v8435_v56  ;;  %v7213_v56 = vld [vmem:[#allocation2 + $0x7c] sm:$0xf0] }
 0x3da   : > { %v10149_v26 = vadd.f32 %v5578_v15, %v5490_v32  ;;  %v5404_v57 = vadd.f32 %v5403_v12, %v5315_v30  ;;  %v5583_v28 = vpop.f32.mrf.mxu0  ;;  %v8445_v15 = vld [vmem:[#allocation8 + $0x1d0] sm:$0xff]  ;;  %v7356_v30 = vor.u32 %v8294_v6, %v7355_v5  ;;  %v8454_v5 = vld [vmem:[#allocation8 + $0x218] sm:$0xff] }
 0x3db   : > { %5903 = vmatpush.bf16.msra.mxu0 %v8445_v15  ;;  %v8245_v12 = vld [vmem:[#allocation2 + $0x14] sm:$0xf]  ;;  %5991 = vmatpush.bf16.msra.mxu1 %v8454_v5 }
 0x3dc   : > { %v10147_v60 = vpop.f32.mrf.mxu1  ;;  %5531 = vmatmul.bf16.gmra.mxu3 %v7672_v17  ;;  %v8427_v17 = vld [vmem:[#allocation8 + $0x140] sm:$0xff] }
 0x3dd   : > { %5727 = vmatpush.bf16.msra.mxu2 %v8427_v17 }
 0x3df   : > { %v5492_v33 = vpop.f32.mrf.mxu3  ;;  %5904 = vmatpush.bf16.msra.mxu0 %v8444_v24 }
 0x3e0   : > { %v5493_v45 = vadd.f32 %v5492_v33, %v5404_v57  ;;  %v7177_v33 = vld [vmem:[#allocation2 + $0x34] sm:$0xf0]  ;;  %v8246_v57 = vld [vmem:[#allocation2 + $0x1c] sm:$0xf] }
 0x3e1   : > { %v5405_v54 = vpop.f32.mrf.mxu2  ;;  %v7180_v2 = vor.u32 %v8245_v12, %v7177_v33  ;;  %v7188_v0 = vor.u32 %v8246_v57, %v7185_v27  ;;  %v7219_v12 = vld [vmem:[#allocation2 + $0x60] sm:$0xf]  ;;  %v8259_v33 = vld [vmem:[#allocation2 + $0x80] sm:$0xf0] }
 0x3e2   : > { %v10155_v35 = vadd.f32 %v5581_v42, %v5493_v45  ;;  %v5406_v7 = vadd.f32 %v5405_v54, %v5317_v25  ;;  %v5586_v9 = vpop.f32.mrf.mxu0  ;;  %v8443_v42 = vld [vmem:[#allocation8 + $0x1c0] sm:$0xff]  ;;  %v8250_v45 = vld [vmem:[#allocation2 + $0x38] sm:$0xf0]  ;;  %v5325_v54 = vadd.f32 %v10030_v11, %v10084_v53 }
 0x3e3   : > { %5905 = vmatpush.bf16.msra.mxu0 %v8443_v42  ;;  %v8303_v25 = vld [vmem:[#allocation2 + $0x1e0] sm:$0xf0]  ;;  %v7221_v42 = vld [vmem:[#allocation2 + $0x84] sm:$0xf0] }
 0x3e4   : > { %v10153_v48 = vpop.f32.mrf.mxu1 }
 0x3e5   : > { %5659 = vmatmul.bf16.gmra.mxu1 %v7320_v40  ;;  %5625 = vmatmul.bf16.gmra.mxu0 %v7712_v21  ;;  %v7184_v21 = vor.u32 %v8250_v45, %v7183_v49  ;;  %v8312_v45 = vld [vmem:[#allocation2 + $0x228] sm:$0xf0] }
 0x3e6   : > { %5447 = vmatmul.bf16.gmra.mxu2 %v7704_v19  ;;  %v5322_v19 = vadd.f32 %v10030_v11, %v10073_v22  ;;  %v8254_v22 = vld [vmem:[#allocation2 + $0x5c] sm:$0xf] }
 0x3e7   : > { %v5494_v18 = vpop.f32.mrf.mxu3 }
 0x3e8   : > { %v5495_v46 = vadd.f32 %v5494_v18, %v5406_v7  ;;  %v7391_v18 = vld [vmem:[#allocation2 + $0x1c0] sm:$0xf] }
 0x3e9   : > { %v5408_v41 = vpop.f32.mrf.mxu2  ;;  %v7392_v17 = vor.u32 %v8303_v25, %v7391_v18  ;;  %v7249_v25 = vld [vmem:[#allocation2 + $0xc4] sm:$0xf0] }
 0x3ea   : > { %v10161_v10 = vadd.f32 %v5583_v28, %v5495_v46  ;;  %v5409_v3 = vadd.f32 %v5408_v41, %v5320_v14  ;;  %v5588_v20 = vpop.f32.mrf.mxu0  ;;  %v8255_v14 = vld [vmem:[#allocation2 + $0x64] sm:$0xf]  ;;  %v7216_v41 = vor.u32 %v8254_v22, %v7213_v56 }
 0x3ec   : > { %5536 = vmatmul.bf16.gmra.mxu3 %v7708_v43 }
 0x3ee   : > { %v10159_v32 = vpop.f32.mrf.mxu1 }
 0x3ef   : > { %v5497_v40 = vpop.f32.mrf.mxu3 }
 0x3f0   : > { %v5498_v28 = vadd.f32 %v5497_v40, %v5409_v3  ;;  %v7224_v40 = vor.u32 %v8255_v14, %v7221_v42  ;;  %v5327_v3 = vadd.f32 %v10030_v11, %v10101_v36  ;;  %v8263_v36 = vld [vmem:[#allocation2 + $0xa4] sm:$0xf]  ;;  %v7255_v42 = vld [vmem:[#allocation2 + $0xa8] sm:$0xf] }
 0x3f1   : > { %v5410_v15 = vpop.f32.mrf.mxu2  ;;  %v7252_v22 = vor.u32 %v8263_v36, %v7249_v25  ;;  %v8273_v36 = vld [vmem:[#allocation2 + $0xf4] sm:$0xf] }
 0x3f2   : > { %v10167_v50 = vadd.f32 %v5586_v9, %v5498_v28  ;;  %v5411_v8 = vadd.f32 %v5410_v15, %v5322_v19  ;;  %v5591_v37 = vpop.f32.mrf.mxu0  ;;  %v8453_v25 = vld [vmem:[#allocation8 + $0x210] sm:$0xff] }
 0x3f3   : > { %5992 = vmatpush.bf16.msra.mxu1 %v8453_v25  ;;  %v7327_v25 = vld [vmem:[#allocation2 + $0x138] sm:$0xf] }
 0x3f5   : > { %5664 = vmatmul.bf16.gmra.mxu1 %v7356_v30  ;;  %5906 = vmatmul.bf16.vlgmr.msra.gmra.mxu0 %v7188_v0 }
 0x3f6   : > { %v10165_v38 = vpop.f32.mrf.mxu1  ;;  %5728 = vmatmul.bf16.vlgmr.msra.gmra.mxu2 %v7180_v2 }
 0x3f7   : > { %v5499_v31 = vpop.f32.mrf.mxu3 }
 0x3f8   : > { %v5500_v62 = vadd.f32 %v5499_v31, %v5411_v8  ;;  %v7427_v31 = vld [vmem:[#allocation2 + $0x208] sm:$0xf] }
 0x3f9   : > { %v5413_v7 = vpop.f32.mrf.mxu2  ;;  %v7428_v8 = vor.u32 %v8312_v45, %v7427_v31  ;;  %v7285_v31 = vld [vmem:[#allocation2 + $0x10c] sm:$0xf0] }
 0x3fa   : > { %v10173_v43 = vadd.f32 %v5588_v20, %v5500_v62  ;;  %v5414_v46 = vadd.f32 %v5413_v7, %v5325_v54  ;;  %v5593_v6 = vpop.f32.mrf.mxu0  ;;  %v7220_v20 = vor.u32 %v8259_v33, %v7219_v12  ;;  %v7257_v54 = vld [vmem:[#allocation2 + $0xcc] sm:$0xf0]  ;;  %v8264_v7 = vld [vmem:[#allocation2 + $0xac] sm:$0xf] }
 0x3fb   : > { %v7260_v56 = vor.u32 %v8264_v7, %v7257_v54  ;;  %v8277_v7 = vld [vmem:[#allocation2 + $0x110] sm:$0xf0] }
 0x3fc   : > { %5817 = vmatmul.bf16.vlgmr.msra.gmra.mxu3 %v7184_v21  ;;  %v5330_v21 = vadd.f32 %v10030_v11, %v10107_v59 }
 0x3ff   : > { %v5502_v9 = vpop.f32.mrf.mxu3 }
 0x400   : > { %v10171_v24 = vpop.f32.mrf.mxu1  ;;  %v5503_v30 = vadd.f32 %v5502_v9, %v5414_v46  ;;  %v8268_v46 = vld [vmem:[#allocation2 + $0xc8] sm:$0xf0] }
 0x401   : > { %v5415_v57 = vpop.f32.mrf.mxu2  ;;  %v7256_v5 = vor.u32 %v8268_v46, %v7255_v42 }
 0x402   : > { %v10179_v53 = vadd.f32 %v5591_v37, %v5503_v30  ;;  %v5416_v2 = vadd.f32 %v5415_v57, %v5327_v3  ;;  %v5596_v0 = vpop.f32.mrf.mxu0  ;;  %v8321_v3 = vld [vmem:[#allocation2 + $0x270] sm:$0xf0]  ;;  %v5335_v57 = vadd.f32 %v10030_v11, %v10119_v13  ;;  %v7291_v13 = vld [vmem:[#allocation2 + $0xf0] sm:$0xf] }
 0x405   : > { %5669 = vmatmul.bf16.gmra.mxu1 %v7392_v17  ;;  %5911 = vmatmul.bf16.gmra.mxu0 %v7224_v40 }
 0x406   : > { %5733 = vmatmul.bf16.gmra.mxu2 %v7216_v41 }
 0x407   : > { %v5504_v28 = vpop.f32.mrf.mxu3 }
 0x408   : > { %v10177_v27 = vpop.f32.mrf.mxu1  ;;  %v5505_v49 = vadd.f32 %v5504_v28, %v5416_v2  ;;  %v7463_v2 = vld [vmem:[#allocation2 + $0x250] sm:$0xf] }
 0x409   : > { %v5418_v37 = vpop.f32.mrf.mxu2 }
 0x40a   : > { %v10183_v19 = vadd.f32 %v5593_v6, %v5505_v49  ;;  %v5419_v18 = vadd.f32 %v5418_v37, %v5330_v21  ;;  %v5598_v17 = vpop.f32.mrf.mxu0  ;;  %v5332_v6 = vadd.f32 %v10030_v11, %v10113_v61  ;;  %v7464_v61 = vor.u32 %v8321_v3, %v7463_v2  ;;  %v8272_v21 = vld [vmem:[#allocation2 + $0xec] sm:$0xf] }
 0x40c   : > { %5822 = vmatmul.bf16.gmra.mxu3 %v7220_v20 }
 0x40f   : > { %v5507_v62 = vpop.f32.mrf.mxu3 }
 0x410   : > { %v5508_v9 = vadd.f32 %v5507_v62, %v5419_v18  ;;  %v7288_v18 = vor.u32 %v8272_v21, %v7285_v31 }
 0x411   : > { %v5420_v30 = vpop.f32.mrf.mxu2 }
 0x412   : > { %v10187_v15 = vpop.f32.mrf.mxu1  ;;  %v10189_v59 = vadd.f32 %v5596_v0, %v5508_v9  ;;  %v5421_v40 = vadd.f32 %v5420_v30, %v5332_v6  ;;  %v5601_v12 = vpop.f32.mrf.mxu0  ;;  %v5337_v9 = vadd.f32 %v10030_v11, %v10125_v47 }
 0x415   : > { %5674 = vmatmul.bf16.gmra.mxu1 %v7428_v8  ;;  %5916 = vmatmul.bf16.gmra.mxu0 %v7260_v56  ;;  %v7293_v8 = vld [vmem:[#allocation2 + $0x114] sm:$0xf0]  ;;  %v7292_v56 = vor.u32 %v8277_v7, %v7291_v13 }
 0x416   : > { %5738 = vmatmul.bf16.gmra.mxu2 %v7252_v22 }
 0x417   : > { %v5509_v41 = vpop.f32.mrf.mxu3 }
 0x418   : > { %v5510_v33 = vadd.f32 %v5509_v41, %v5421_v40  ;;  %v8330_v40 = vld [vmem:[#allocation2 + $0x2b8] sm:$0xf0] }
 0x419   : > { %v5423_v49 = vpop.f32.mrf.mxu2 }
 0x41a   : > { %v10193_v14 = vpop.f32.mrf.mxu1  ;;  %v10195_v20 = vadd.f32 %v5598_v17, %v5510_v33  ;;  %v5424_v37 = vadd.f32 %v5423_v49, %v5335_v57  ;;  %v5603_v62 = vpop.f32.mrf.mxu0  ;;  %v7296_v17 = vor.u32 %v8273_v36, %v7293_v8  ;;  %v7499_v57 = vld [vmem:[#allocation2 + $0x298] sm:$0xf]  ;;  %v8282_v8 = vld [vmem:[#allocation2 + $0x13c] sm:$0xf] }
 0x41b   : > { %v7321_v49 = vld [vmem:[#allocation2 + $0x154] sm:$0xf0] }
 0x41c   : > { %5827 = vmatmul.bf16.gmra.mxu3 %v7256_v5 }
 0x41f   : > { %v5512_v45 = vpop.f32.mrf.mxu3 }
 0x420   : > { %v5513_v54 = vadd.f32 %v5512_v45, %v5424_v37  ;;  %v7329_v45 = vld [vmem:[#allocation2 + $0x15c] sm:$0xf0] }
 0x421   : > { %v5425_v46 = vpop.f32.mrf.mxu2  ;;  %v7332_v36 = vor.u32 %v8282_v8, %v7329_v45  ;;  %v8452_v45 = vld [vmem:[#allocation8 + $0x208] sm:$0xff] }
 0x422   : > { %v5640_v28 = vpop.f32.mrf.mxu1  ;;  %v5426_v5 = vadd.f32 %v5425_v46, %v5337_v9  ;;  %v5606_v30 = vpop.f32.mrf.mxu0  ;;  %5993 = vmatpush.bf16.msra.mxu1 %v8452_v45  ;;  %v7399_v45 = vld [vmem:[#allocation2 + $0x1c8] sm:$0xf] }
 0x423   : > { %v10200_v0 = vadd.f32 %v5640_v28, %v10076_v4  ;;  %v10202_v4 = vadd.f32 %v5601_v12, %v5513_v54  ;;  %v5340_v12 = vadd.f32 %v10030_v11, %v10135_v51  ;;  %v7500_v28 = vor.u32 %v8330_v40, %v7499_v57  ;;  %v8286_v51 = vld [vmem:[#allocation2 + $0x158] sm:$0xf0] }
 0x424   : > { %v8290_v57 = vld [vmem:[#allocation2 + $0x17c] sm:$0xf] }
 0x425   : > { %5679 = vmatmul.bf16.gmra.mxu1 %v7464_v61  ;;  %5921 = vmatmul.bf16.gmra.mxu0 %v7296_v17  ;;  %v8281_v61 = vld [vmem:[#allocation2 + $0x134] sm:$0xf]  ;;  %v7328_v17 = vor.u32 %v8286_v51, %v7327_v25 }
 0x426   : > { %5743 = vmatmul.bf16.gmra.mxu2 %v7288_v18 }
 0x427   : > { %v5514_v6 = vpop.f32.mrf.mxu3 }
 0x428   : > { %v5515_v41 = vadd.f32 %v5514_v6, %v5426_v5  ;;  %v8339_v6 = vld [vmem:[#allocation2 + $0x300] sm:$0xf0] }
 0x42a   : > { %v5642_v22 = vpop.f32.mrf.mxu1  ;;  %v10209_v33 = vadd.f32 %v5603_v62, %v5515_v41  ;;  %v5608_v31 = vpop.f32.mrf.mxu0  ;;  %v7324_v62 = vor.u32 %v8281_v61, %v7321_v49  ;;  %v8291_v49 = vld [vmem:[#allocation2 + $0x184] sm:$0xf] }
 0x42b   : > { %v10207_v42 = vadd.f32 %v5642_v22, %v10078_v16  ;;  %v5428_v16 = vpop.f32.mrf.mxu2 }
 0x42c   : > { %5832 = vmatmul.bf16.gmra.mxu3 %v7292_v56  ;;  %v5429_v21 = vadd.f32 %v5428_v16, %v5340_v12  ;;  %v7365_v16 = vld [vmem:[#allocation2 + $0x1a4] sm:$0xf0] }
 0x42d   : > { %v7368_v8 = vor.u32 %v8291_v49, %v7365_v16  ;;  %v8300_v16 = vld [vmem:[#allocation2 + $0x1cc] sm:$0xf] }
 0x42f   : > { %v5517_v2 = vpop.f32.mrf.mxu3 }
 0x430   : > { %v5518_v37 = vadd.f32 %v5517_v2, %v5429_v21 }
 0x432   : > { %v5645_v3 = vpop.f32.mrf.mxu1  ;;  %v10216_v54 = vadd.f32 %v5606_v30, %v5518_v37  ;;  %v5611_v56 = vpop.f32.mrf.mxu0  ;;  %v10228_v30 = vld [vmem:[%s10511_s4] ss:$0 sm:$0xff]  ;;  %v8295_v37 = vld [vmem:[#allocation2 + $0x1a0] sm:$0xf0] }
 0x433   : > { %v10214_v47 = vadd.f32 %v5645_v3, %v10093_v55  ;;  %v5342_v55 = vadd.f32 %v10030_v11, %v10141_v39  ;;  %v5430_v7 = vpop.f32.mrf.mxu2  ;;  %v5345_v11 = vadd.f32 %v10228_v30, %v10147_v60  ;;  %v7363_v60 = vld [vmem:[#allocation2 + $0x180] sm:$0xf] }
 0x434   : > { %v7364_v25 = vor.u32 %v8295_v37, %v7363_v60 }
 0x435   : > { %5684 = vmatmul.bf16.gmra.mxu1 %v7500_v28  ;;  %5926 = vmatmul.bf16.gmra.mxu0 %v7332_v36  ;;  %v5431_v22 = vadd.f32 %v5430_v7, %v5342_v55  ;;  %v7357_v28 = vld [vmem:[#allocation2 + $0x19c] sm:$0xf0] }
 0x436   : > { %5748 = vmatmul.bf16.gmra.mxu2 %v7324_v62  ;;  %v5347_v62 = vadd.f32 %v10228_v30, %v10153_v48 }
 0x437   : > { %v5519_v9 = vpop.f32.mrf.mxu3 }
 0x438   : > { %v5520_v46 = vadd.f32 %v5519_v9, %v5431_v22  ;;  %v8348_v22 = vld [vmem:[#allocation2 + $0x348] sm:$0xf0] }
 0x43a   : > { %v5647_v18 = vpop.f32.mrf.mxu1  ;;  %v10223_v5 = vadd.f32 %v5608_v31, %v5520_v46  ;;  %v5613_v61 = vpop.f32.mrf.mxu0  ;;  %v7360_v31 = vor.u32 %v8290_v57, %v7357_v28 }
 0x43b   : > { %v10221_v13 = vadd.f32 %v5647_v18, %v10103_v58  ;;  %v7535_v58 = vld [vmem:[#allocation2 + $0x2e0] sm:$0xf]  ;;  %v5433_v12 = vpop.f32.mrf.mxu2 }
 0x43c   : > { %5837 = vmatmul.bf16.gmra.mxu3 %v7328_v17  ;;  %v7536_v40 = vor.u32 %v8339_v6, %v7535_v58  ;;  %v5434_v2 = vadd.f32 %v5433_v12, %v5345_v11  ;;  %v7571_v11 = vld [vmem:[#allocation2 + $0x328] sm:$0xf] }
 0x43d   : > { %v7393_v12 = vld [vmem:[#allocation2 + $0x1e4] sm:$0xf0] }
 0x43f   : > { %v5522_v3 = vpop.f32.mrf.mxu3 }
 0x440   : > { %v5523_v21 = vadd.f32 %v5522_v3, %v5434_v2  ;;  %v7401_v3 = vld [vmem:[#allocation2 + $0x1ec] sm:$0xf0] }
 0x441   : > { %v7404_v49 = vor.u32 %v8300_v16, %v7401_v3  ;;  %v8451_v3 = vld [vmem:[#allocation8 + $0x200] sm:$0xff] }
 0x442   : > { %v5650_v39 = vpop.f32.mrf.mxu1  ;;  %v5616_v7 = vpop.f32.mrf.mxu0  ;;  %5994 = vmatpush.bf16.msra.mxu1 %v8451_v3  ;;  %v7471_v3 = vld [vmem:[#allocation2 + $0x258] sm:$0xf] }
 0x443   : > { %v10233_v41 = vadd.f32 %v5650_v39, %v10109_v44  ;;  %v10235_v44 = vadd.f32 %v5611_v56, %v5523_v21  ;;  %v5435_v55 = vpop.f32.mrf.mxu2  ;;  %v5350_v56 = vadd.f32 %v10228_v30, %v10159_v32  ;;  %v7572_v39 = vor.u32 %v8348_v22, %v7571_v11  ;;  %v8304_v32 = vld [vmem:[#allocation2 + $0x1e8] sm:$0xf0]  ;;  %v7607_v22 = vld [vmem:[#allocation2 + $0x370] sm:$0xf] }
 0x444   : > { %v5436_v17 = vadd.f32 %v5435_v55, %v5347_v62  ;;  %v8308_v11 = vld [vmem:[#allocation2 + $0x20c] sm:$0xf] }
 0x445   : > { %5689 = vmatmul.bf16.gmra.mxu1 %v7536_v40  ;;  %5931 = vmatmul.bf16.gmra.mxu0 %v7368_v8  ;;  %v8299_v40 = vld [vmem:[#allocation2 + $0x1c4] sm:$0xf]  ;;  %v7400_v8 = vor.u32 %v8304_v32, %v7399_v45 }
 0x446   : > { %5753 = vmatmul.bf16.gmra.mxu2 %v7360_v31 }
 0x447   : > { %v5524_v18 = vpop.f32.mrf.mxu3 }
 0x448   : > { %v5525_v9 = vadd.f32 %v5524_v18, %v5436_v17  ;;  %v8357_v18 = vld [vmem:[#allocation2 + $0x390] sm:$0xf0] }
 0x44a   : > { %v5652_v36 = vpop.f32.mrf.mxu1  ;;  %v10242_v46 = vadd.f32 %v5613_v61, %v5525_v9  ;;  %v5618_v28 = vpop.f32.mrf.mxu0  ;;  %v7396_v61 = vor.u32 %v8299_v40, %v7393_v12  ;;  %v8309_v12 = vld [vmem:[#allocation2 + $0x214] sm:$0xf] }
 0x44b   : > { %v10240_v51 = vadd.f32 %v5652_v36, %v10115_v1  ;;  %v5438_v1 = vpop.f32.mrf.mxu2 }
 0x44c   : > { %5842 = vmatmul.bf16.gmra.mxu3 %v7364_v25  ;;  %v5439_v57 = vadd.f32 %v5438_v1, %v5350_v56  ;;  %v7608_v56 = vor.u32 %v8357_v18, %v7607_v22  ;;  %v7437_v1 = vld [vmem:[#allocation2 + $0x234] sm:$0xf0] }
 0x44d   : > { %v7440_v16 = vor.u32 %v8309_v12, %v7437_v1  ;;  %v8318_v1 = vld [vmem:[#allocation2 + $0x25c] sm:$0xf] }
 0x44f   : > { %v5527_v58 = vpop.f32.mrf.mxu3 }
 0x450   : > { %v5528_v2 = vadd.f32 %v5527_v58, %v5439_v57 }
 0x452   : > { %v5655_v6 = vpop.f32.mrf.mxu1  ;;  %v10249_v21 = vadd.f32 %v5616_v7, %v5528_v2  ;;  %v5621_v25 = vpop.f32.mrf.mxu0  ;;  %v5355_v7 = vadd.f32 %v10228_v30, %v10171_v24  ;;  %v7435_v24 = vld [vmem:[#allocation2 + $0x210] sm:$0xf]  ;;  %v8313_v2 = vld [vmem:[#allocation2 + $0x230] sm:$0xf0] }
 0x453   : > { %v10247_v48 = vadd.f32 %v5655_v6, %v10121_v34  ;;  %v5352_v34 = vadd.f32 %v10228_v30, %v10165_v38  ;;  %v5440_v37 = vpop.f32.mrf.mxu2  ;;  %v7436_v45 = vor.u32 %v8313_v2, %v7435_v24 }
 0x455   : > { %5694 = vmatmul.bf16.gmra.mxu1 %v7572_v39  ;;  %5936 = vmatmul.bf16.gmra.mxu0 %v7404_v49  ;;  %v5441_v36 = vadd.f32 %v5440_v37, %v5352_v34  ;;  %v7429_v39 = vld [vmem:[#allocation2 + $0x22c] sm:$0xf0] }
 0x456   : > { %5758 = vmatmul.bf16.gmra.mxu2 %v7396_v61  ;;  %v5357_v61 = vadd.f32 %v10228_v30, %v10177_v27 }
 0x457   : > { %v5529_v62 = vpop.f32.mrf.mxu3 }
 0x458   : > { %v5530_v55 = vadd.f32 %v5529_v62, %v5441_v36  ;;  %v8366_v36 = vld [vmem:[#allocation2 + $0x3d8] sm:$0xf0] }
 0x45a   : > { %v5657_v31 = vpop.f32.mrf.mxu1  ;;  %v10256_v17 = vadd.f32 %v5618_v28, %v5530_v55  ;;  %v5623_v40 = vpop.f32.mrf.mxu0  ;;  %v7432_v28 = vor.u32 %v8308_v11, %v7429_v39 }
 0x45b   : > { %v10254_v60 = vadd.f32 %v5657_v31, %v10127_v52  ;;  %v5443_v52 = vpop.f32.mrf.mxu2 }
 0x45c   : > { %5847 = vmatmul.bf16.gmra.mxu3 %v7400_v8  ;;  %v5444_v58 = vadd.f32 %v5443_v52, %v5355_v7  ;;  %v7643_v7 = vld [vmem:[#allocation2 + $0x3b8] sm:$0xf] }
 0x45d   : > { %v7465_v52 = vld [vmem:[#allocation2 + $0x274] sm:$0xf0] }
 0x45f   : > { %v5532_v6 = vpop.f32.mrf.mxu3 }
 0x460   : > { %v5533_v57 = vadd.f32 %v5532_v6, %v5444_v58  ;;  %v7473_v6 = vld [vmem:[#allocation2 + $0x27c] sm:$0xf0] }
 0x461   : > { %v7476_v12 = vor.u32 %v8318_v1, %v7473_v6 }
 0x462   : > { %v5660_v9 = vpop.f32.mrf.mxu1  ;;  %v5626_v37 = vpop.f32.mrf.mxu0 }
 0x463   : > { %v10261_v38 = vadd.f32 %v5660_v9, %v10131_v63  ;;  %v10263_v63 = vadd.f32 %v5621_v25, %v5533_v57  ;;  %v5445_v34 = vpop.f32.mrf.mxu2  ;;  %v5360_v25 = vadd.f32 %v10228_v30, %v10187_v15  ;;  %v7644_v9 = vor.u32 %v8366_v36, %v7643_v7  ;;  %v8322_v15 = vld [vmem:[#allocation2 + $0x278] sm:$0xf0]  ;;  %v7509_v7 = vld [vmem:[#allocation2 + $0x2c4] sm:$0xf0] }
 0x464   : > { %v5446_v8 = vadd.f32 %v5445_v34, %v5357_v61 }
 0x465   : > { %5699 = vmatmul.bf16.gmra.mxu1 %v7608_v56  ;;  %5941 = vmatmul.bf16.gmra.mxu0 %v7440_v16  ;;  %v8317_v56 = vld [vmem:[#allocation2 + $0x254] sm:$0xf]  ;;  %v7472_v16 = vor.u32 %v8322_v15, %v7471_v3 }
 0x466   : > { %5763 = vmatmul.bf16.gmra.mxu2 %v7432_v28 }
 0x467   : > { %v5534_v31 = vpop.f32.mrf.mxu3 }
 0x468   : > { %v5535_v62 = vadd.f32 %v5534_v31, %v5446_v8  ;;  %v8375_v31 = vld [vmem:[#allocation2 + $0x420] sm:$0xf0] }
 0x46a   : > { %v5662_v49 = vpop.f32.mrf.mxu1  ;;  %v10270_v55 = vadd.f32 %v5623_v40, %v5535_v62  ;;  %v5628_v39 = vpop.f32.mrf.mxu0  ;;  %v7468_v40 = vor.u32 %v8317_v56, %v7465_v52 }
 0x46b   : > { %v10268_v32 = vadd.f32 %v5662_v49, %v10137_v23  ;;  %v5448_v23 = vpop.f32.mrf.mxu2 }
 0x46c   : > { %5852 = vmatmul.bf16.gmra.mxu3 %v7436_v45  ;;  %v5449_v11 = vadd.f32 %v5448_v23, %v5360_v25 }
 0x46f   : > { %v5537_v22 = vpop.f32.mrf.mxu3 }
 0x470   : > { %v5538_v58 = vadd.f32 %v5537_v22, %v5449_v11  ;;  %v8327_v22 = vld [vmem:[#allocation2 + $0x2a4] sm:$0xf]  ;;  %v7507_v11 = vld [vmem:[#allocation2 + $0x2a0] sm:$0xf] }
 0x471   : > { %v7512_v6 = vor.u32 %v8327_v22, %v7509_v7  ;;  %v7543_v7 = vld [vmem:[#allocation2 + $0x2e8] sm:$0xf] }
 0x472   : > { %v5665_v18 = vpop.f32.mrf.mxu1  ;;  %v10277_v57 = vadd.f32 %v5626_v37, %v5538_v58  ;;  %v5907_v45 = vpop.f32.mrf.mxu0  ;;  %v7679_v37 = vld [vmem:[#allocation2 + $0x400] sm:$0xf] }
 0x473   : > { %v10275_v27 = vadd.f32 %v5665_v18, %v10143_v29  ;;  %v5362_v29 = vadd.f32 %v10228_v30, %v10193_v14  ;;  %v5450_v2 = vpop.f32.mrf.mxu2  ;;  %v7680_v14 = vor.u32 %v8375_v31, %v7679_v37  ;;  %v8326_v18 = vld [vmem:[#allocation2 + $0x29c] sm:$0xf]  ;;  %v7545_v37 = vld [vmem:[#allocation2 + $0x30c] sm:$0xf0] }
 0x475   : > { %5704 = vmatmul.bf16.gmra.mxu1 %v7644_v9  ;;  %5946 = vmatmul.bf16.gmra.mxu0 %v7476_v12  ;;  %v5451_v49 = vadd.f32 %v5450_v2, %v5362_v29 }
 0x476   : > { %5768 = vmatmul.bf16.gmra.mxu2 %v7468_v40 }
 0x477   : > { %v5539_v61 = vpop.f32.mrf.mxu3 }
 0x478   : > { %v5540_v34 = vadd.f32 %v5539_v61, %v5451_v49  ;;  %v7715_v61 = vld [vmem:[#allocation2 + $0x448] sm:$0xf] }
 0x47a   : > { %v5667_v28 = vpop.f32.mrf.mxu1  ;;  %v10284_v8 = vadd.f32 %v5628_v39, %v5540_v34  ;;  %v5909_v23 = vpop.f32.mrf.mxu0  ;;  %v8331_v39 = vld [vmem:[#allocation2 + $0x2c0] sm:$0xf0] }
 0x47b   : > { %v10282_v24 = vadd.f32 %v5667_v28, %v10149_v26  ;;  %v5729_v30 = vpop.f32.mrf.mxu2  ;;  %v7501_v26 = vld [vmem:[#allocation2 + $0x2bc] sm:$0xf0]  ;;  %v7508_v58 = vor.u32 %v8331_v39, %v7507_v11  ;;  %v8384_v28 = vld [vmem:[#allocation2 + $0x468] sm:$0xf0] }
 0x47c   : > { %5857 = vmatmul.bf16.gmra.mxu3 %v7472_v16  ;;  %v5730_v9 = vadd.f32 %v5729_v30, %v10200_v0  ;;  %v7504_v52 = vor.u32 %v8326_v18, %v7501_v26  ;;  %v7191_v39 = vld [vmem:[#allocation2 + $0x20] sm:$0xf] }
 0x47f   : > { %v5818_v25 = vpop.f32.mrf.mxu3 }
 0x480   : > { %v5819_v56 = vadd.f32 %v5818_v25, %v5730_v9  ;;  %v8340_v9 = vld [vmem:[#allocation2 + $0x308] sm:$0xf0] }
 0x481   : > { %v7544_v22 = vor.u32 %v8340_v9, %v7543_v7  ;;  %v7227_v9 = vld [vmem:[#allocation2 + $0x68] sm:$0xf] }
 0x482   : > { %v5670_v62 = vpop.f32.mrf.mxu1  ;;  %v5912_v15 = vpop.f32.mrf.mxu0 }
 0x483   : > { %v10287_v36 = vadd.f32 %v5670_v62, %v10155_v35  ;;  %v10290_v35 = vadd.f32 %v5907_v45, %v5819_v56  ;;  %v5731_v12 = vpop.f32.mrf.mxu2  ;;  %v7716_v45 = vor.u32 %v8384_v28, %v7715_v61  ;;  %v7537_v62 = vld [vmem:[#allocation2 + $0x304] sm:$0xf0]  ;;  %v7581_v61 = vld [vmem:[#allocation2 + $0x354] sm:$0xf0] }
 0x484   : > { %v5732_v0 = vadd.f32 %v5731_v12, %v10207_v42  ;;  %v8336_v42 = vld [vmem:[#allocation2 + $0x2ec] sm:$0xf] }
 0x485   : > { %5709 = vmatmul.bf16.gmra.mxu1 %v7680_v14  ;;  %5951 = vmatmul.bf16.gmra.mxu0 %v7512_v6  ;;  %v7548_v26 = vor.u32 %v8336_v42, %v7545_v37  ;;  %v8349_v37 = vld [vmem:[#allocation2 + $0x350] sm:$0xf0] }
 0x486   : > { %5773 = vmatmul.bf16.gmra.mxu2 %v7504_v52 }
 0x487   : > { %v5820_v3 = vpop.f32.mrf.mxu3 }
 0x488   : > { %v5821_v29 = vadd.f32 %v5820_v3, %v5732_v0 }
 0x48a   : > { %v5672_v1 = vpop.f32.mrf.mxu1  ;;  %v10296_v16 = vadd.f32 %v5909_v23, %v5821_v29  ;;  %v5914_v25 = vpop.f32.mrf.mxu0 }
 0x48b   : > { %v10293_v40 = vadd.f32 %v5672_v1, %v10161_v10  ;;  %v5734_v34 = vpop.f32.mrf.mxu2  ;;  %v8335_v10 = vld [vmem:[#allocation2 + $0x2e4] sm:$0xf] }
 0x48c   : > { %5862 = vmatmul.bf16.gmra.mxu3 %v7508_v58  ;;  %v5735_v14 = vadd.f32 %v5734_v34, %v10214_v47  ;;  %v7540_v18 = vor.u32 %v8335_v10, %v7537_v62  ;;  %v8251_v1 = vld [vmem:[#allocation2 + $0x40] sm:$0xf0]  ;;  %v7579_v62 = vld [vmem:[#allocation2 + $0x330] sm:$0xf] }
 0x48f   : > { %v5823_v31 = vpop.f32.mrf.mxu3 }
 0x490   : > { %v5824_v30 = vadd.f32 %v5823_v31, %v5735_v14 }
 0x492   : > { %v5675_v2 = vpop.f32.mrf.mxu1  ;;  %v5917_v58 = vpop.f32.mrf.mxu0 }
 0x493   : > { %v10299_v49 = vadd.f32 %v5675_v2, %v10167_v50  ;;  %v10302_v50 = vadd.f32 %v5912_v15, %v5824_v30  ;;  %v5736_v52 = vpop.f32.mrf.mxu2  ;;  %v7192_v15 = vor.u32 %v8251_v1, %v7191_v39  ;;  %v7573_v2 = vld [vmem:[#allocation2 + $0x34c] sm:$0xf0]  ;;  %v7580_v30 = vor.u32 %v8349_v37, %v7579_v62  ;;  %v8353_v1 = vld [vmem:[#allocation2 + $0x374] sm:$0xf] }
 0x494   : > { %v5737_v47 = vadd.f32 %v5736_v52, %v10221_v13  ;;  %v8345_v13 = vld [vmem:[#allocation2 + $0x334] sm:$0xf] }
 0x495   : > { %5714 = vmatmul.bf16.gmra.mxu1 %v7716_v45  ;;  %5956 = vmatmul.bf16.gmra.mxu0 %v7548_v26  ;;  %v7584_v10 = vor.u32 %v8345_v13, %v7581_v61  ;;  %v8358_v61 = vld [vmem:[#allocation2 + $0x398] sm:$0xf0] }
 0x496   : > { %5778 = vmatmul.bf16.gmra.mxu2 %v7540_v18 }
 0x497   : > { %v5825_v6 = vpop.f32.mrf.mxu3 }
 0x498   : > { %v5826_v11 = vadd.f32 %v5825_v6, %v5737_v47 }
 0x49a   : > { %v5677_v23 = vpop.f32.mrf.mxu1  ;;  %v10308_v12 = vadd.f32 %v5914_v25, %v5826_v11  ;;  %v5919_v42 = vpop.f32.mrf.mxu0 }
 0x49b   : > { %v10305_v56 = vadd.f32 %v5677_v23, %v10173_v43  ;;  %v5739_v29 = vpop.f32.mrf.mxu2  ;;  %v8344_v43 = vld [vmem:[#allocation2 + $0x32c] sm:$0xf] }
 0x49c   : > { %5867 = vmatmul.bf16.gmra.mxu3 %v7544_v22  ;;  %v5740_v45 = vadd.f32 %v5739_v29, %v10233_v41  ;;  %v7576_v31 = vor.u32 %v8344_v43, %v7573_v2  ;;  %v8260_v23 = vld [vmem:[#allocation2 + $0x88] sm:$0xf0]  ;;  %v7615_v2 = vld [vmem:[#allocation2 + $0x378] sm:$0xf] }
 0x49d   : > { %v7228_v47 = vor.u32 %v8260_v23, %v7227_v9  ;;  %v7616_v13 = vor.u32 %v8358_v61, %v7615_v2  ;;  %v7645_v9 = vld [vmem:[#allocation2 + $0x3dc] sm:$0xf0]  ;;  %v8363_v23 = vld [vmem:[#allocation2 + $0x3c4] sm:$0xf]  ;;  %v8372_v2 = vld [vmem:[#allocation2 + $0x40c] sm:$0xf] }
 0x49f   : > { %v5828_v28 = vpop.f32.mrf.mxu3 }
 0x4a0   : > { %v5829_v34 = vadd.f32 %v5828_v28, %v5740_v45 }
 0x4a2   : > { %v5680_v3 = vpop.f32.mrf.mxu1  ;;  %v10314_v14 = vadd.f32 %v5917_v58, %v5829_v34  ;;  %v7617_v58 = vld [vmem:[#allocation2 + $0x39c] sm:$0xf0] }
 0x4a3   : > { %v10311_v0 = vadd.f32 %v5680_v3, %v10179_v53  ;;  %v5741_v18 = vpop.f32.mrf.mxu2 }
 0x4a4   : > { %v5742_v41 = vadd.f32 %v5741_v18, %v10240_v51  ;;  %v5922_v51 = vpop.f32.mrf.mxu0 }
 0x4a5   : > { %5995 = vmatmul.bf16.vlgmr.msra.gmra.mxu1 %v7192_v15  ;;  %5961 = vmatmul.bf16.gmra.mxu0 %v7584_v10  ;;  %v8354_v15 = vld [vmem:[#allocation2 + $0x37c] sm:$0xf] }
 0x4a6   : > { %5783 = vmatmul.bf16.gmra.mxu2 %v7576_v31  ;;  %v7620_v43 = vor.u32 %v8354_v15, %v7617_v58  ;;  %v8278_v58 = vld [vmem:[#allocation2 + $0x118] sm:$0xf0] }
 0x4a7   : > { %v5830_v26 = vpop.f32.mrf.mxu3 }
 0x4a8   : > { %v5831_v7 = vadd.f32 %v5830_v26, %v5742_v41 }
 0x4aa   : > { %v5682_v53 = vpop.f32.mrf.mxu1  ;;  %v10320_v22 = vadd.f32 %v5919_v42, %v5831_v7  ;;  %v8269_v42 = vld [vmem:[#allocation2 + $0xd0] sm:$0xf0]  ;;  %v8362_v7 = vld [vmem:[#allocation2 + $0x3bc] sm:$0xf] }
 0x4ab   : > { %v10317_v25 = vadd.f32 %v5682_v53, %v10183_v19  ;;  %v5744_v11 = vpop.f32.mrf.mxu2  ;;  %v7609_v19 = vld [vmem:[#allocation2 + $0x394] sm:$0xf0]  ;;  %v7263_v53 = vld [vmem:[#allocation2 + $0xb0] sm:$0xf] }
 0x4ac   : > { %5872 = vmatmul.bf16.gmra.mxu3 %v7580_v30  ;;  %v5745_v3 = vadd.f32 %v5744_v11, %v10247_v48  ;;  %v7612_v28 = vor.u32 %v8353_v1, %v7609_v19  ;;  %v5924_v37 = vpop.f32.mrf.mxu0  ;;  %v7264_v41 = vor.u32 %v8269_v42, %v7263_v53  ;;  %v8367_v11 = vld [vmem:[#allocation2 + $0x3e0] sm:$0xf0] }
 0x4af   : > { %v5833_v39 = vpop.f32.mrf.mxu3 }
 0x4b0   : > { %v5834_v29 = vadd.f32 %v5833_v39, %v5745_v3 }
 0x4b2   : > { %v5685_v52 = vpop.f32.mrf.mxu1 }
 0x4b3   : > { %v10323_v6 = vadd.f32 %v5685_v52, %v10189_v59  ;;  %v10326_v59 = vadd.f32 %v5922_v51, %v5834_v29  ;;  %v5746_v31 = vpop.f32.mrf.mxu2  ;;  %v7648_v52 = vor.u32 %v8362_v7, %v7645_v9  ;;  %v8371_v29 = vld [vmem:[#allocation2 + $0x404] sm:$0xf]  ;;  %v7723_v7 = vld [vmem:[#allocation2 + $0x450] sm:$0xf]  ;;  %v8385_v9 = vld [vmem:[#allocation2 + $0x470] sm:$0xf0] }
 0x4b4   : > { %v5747_v48 = vadd.f32 %v5746_v31, %v10254_v60  ;;  %v8376_v31 = vld [vmem:[#allocation2 + $0x428] sm:$0xf0] }
 0x4b5   : > { %6000 = vmatmul.bf16.gmra.mxu1 %v7228_v47  ;;  %5966 = vmatmul.bf16.gmra.mxu0 %v7620_v43  ;;  %v7651_v47 = vld [vmem:[#allocation2 + $0x3c0] sm:$0xf]  ;;  %v7689_v43 = vld [vmem:[#allocation2 + $0x42c] sm:$0xf0] }
 0x4b6   : > { %5788 = vmatmul.bf16.gmra.mxu2 %v7612_v28  ;;  %v7652_v1 = vor.u32 %v8367_v11, %v7651_v47  ;;  %v7681_v28 = vld [vmem:[#allocation2 + $0x424] sm:$0xf0]  ;;  %v7725_v47 = vld [vmem:[#allocation2 + $0x474] sm:$0xf0] }
 0x4b7   : > { %v5835_v10 = vpop.f32.mrf.mxu3  ;;  %v7684_v61 = vor.u32 %v8371_v29, %v7681_v28  ;;  %v7407_v29 = vld [vmem:[#allocation2 + $0x1d0] sm:$0xf] }
 0x4b8   : > { %v5836_v62 = vadd.f32 %v5835_v10, %v5747_v48 }
 0x4ba   : > { %v5687_v45 = vpop.f32.mrf.mxu1  ;;  %v10332_v30 = vadd.f32 %v5924_v37, %v5836_v62  ;;  %v8287_v62 = vld [vmem:[#allocation2 + $0x160] sm:$0xf0] }
 0x4bb   : > { %v10329_v34 = vadd.f32 %v5687_v45, %v10195_v20  ;;  %v7653_v20 = vld [vmem:[#allocation2 + $0x3e4] sm:$0xf0]  ;;  %v7692_v45 = vor.u32 %v8372_v2, %v7689_v43 }
 0x4bc   : > { %5877 = vmatmul.bf16.gmra.mxu3 %v7616_v13  ;;  %v7656_v60 = vor.u32 %v8363_v23, %v7653_v20  ;;  %v7687_v13 = vld [vmem:[#allocation2 + $0x408] sm:$0xf]  ;;  %v7724_v23 = vor.u32 %v8385_v9, %v7723_v7 }
 0x4bd   : > { %v7688_v48 = vor.u32 %v8376_v31, %v7687_v13  ;;  %v8314_v13 = vld [vmem:[#allocation2 + $0x238] sm:$0xf0] }
 0x4c2   : > { %v5690_v18 = vpop.f32.mrf.mxu1 }
 0x4c3   : > { %v10335_v26 = vadd.f32 %v5690_v18, %v10202_v4  ;;  %v7299_v4 = vld [vmem:[#allocation2 + $0xf8] sm:$0xf]  ;;  %v8380_v18 = vld [vmem:[#allocation2 + $0x44c] sm:$0xf] }
 0x4c4   : > { %v7300_v15 = vor.u32 %v8278_v58, %v7299_v4 }
 0x4c5   : > { %6005 = vmatmul.bf16.gmra.mxu1 %v7264_v41  ;;  %5971 = vmatmul.bf16.gmra.mxu0 %v7656_v60  ;;  %v7717_v41 = vld [vmem:[#allocation2 + $0x46c] sm:$0xf0]  ;;  %v8381_v60 = vld [vmem:[#allocation2 + $0x454] sm:$0xf] }
 0x4c6   : > { %5793 = vmatmul.bf16.gmra.mxu2 %v7648_v52  ;;  %v7720_v20 = vor.u32 %v8380_v18, %v7717_v41  ;;  %v7728_v11 = vor.u32 %v8381_v60, %v7725_v47  ;;  %v5927_v60 = vpop.f32.mrf.mxu0 }
 0x4ca   : > { %v5692_v39 = vpop.f32.mrf.mxu1 }
 0x4cb   : > { %v10338_v19 = vadd.f32 %v5692_v39, %v10209_v33  ;;  %v8296_v39 = vld [vmem:[#allocation2 + $0x1a8] sm:$0xf0] }
 0x4cc   : > { %5882 = vmatmul.bf16.gmra.mxu3 %v7652_v1 }
 0x4d2   : > { %v5695_v3 = vpop.f32.mrf.mxu1 }
 0x4d3   : > { %v10341_v51 = vadd.f32 %v5695_v3, %v10216_v54  ;;  %v7335_v54 = vld [vmem:[#allocation2 + $0x140] sm:$0xf] }
 0x4d4   : > { %v7336_v42 = vor.u32 %v8287_v62, %v7335_v54  ;;  %v7479_v54 = vld [vmem:[#allocation2 + $0x260] sm:$0xf]  ;;  %v8323_v62 = vld [vmem:[#allocation2 + $0x280] sm:$0xf0] }
 0x4d5   : > { %6010 = vmatmul.bf16.gmra.mxu1 %v7300_v15  ;;  %5976 = vmatmul.bf16.gmra.mxu0 %v7692_v45  ;;  %v7480_v18 = vor.u32 %v8323_v62, %v7479_v54 }
 0x4d6   : > { %5798 = vmatmul.bf16.gmra.mxu2 %v7684_v61 }
 0x4da   : > { %v5697_v33 = vpop.f32.mrf.mxu1 }
 0x4db   : > { %v10344_v10 = vadd.f32 %v5697_v33, %v10223_v5 }
 0x4dc   : > { %5887 = vmatmul.bf16.gmra.mxu3 %v7688_v48 }
 0x4e2   : > { %v5700_v37 = vpop.f32.mrf.mxu1 }
 0x4e3   : > { %v10347_v53 = vadd.f32 %v5700_v37, %v10235_v44  ;;  %v7371_v44 = vld [vmem:[#allocation2 + $0x188] sm:$0xf] }
 0x4e4   : > { %v7372_v58 = vor.u32 %v8296_v39, %v7371_v44  ;;  %v6078_v44 = vld [vmem:[%s8857_s16 + $0x10] sm:$0xff] }
 0x4e5   : > { %6015 = vmatmul.bf16.gmra.mxu1 %v7336_v42  ;;  %5981 = vmatmul.bf16.gmra.mxu0 %v7728_v11  ;;  %v6076_v42 = vld [vmem:[%s8857_s16] sm:$0xff] }
 0x4e6   : > { %5803 = vmatmul.bf16.gmra.mxu2 %v7720_v20 }
 0x4ea   : > { %v5702_v52 = vpop.f32.mrf.mxu1 }
 0x4eb   : > { %v10350_v5 = vadd.f32 %v5702_v52, %v10242_v46  ;;  %v8305_v46 = vld [vmem:[#allocation2 + $0x1f0] sm:$0xf0]  ;;  %v8332_v52 = vld [vmem:[#allocation2 + $0x2c8] sm:$0xf0] }
 0x4ec   : > { %5892 = vmatmul.bf16.gmra.mxu3 %v7724_v23  ;;  %v7408_v2 = vor.u32 %v8305_v46, %v7407_v29  ;;  %v5838_v23 = vpop.f32.mrf.mxu3  ;;  %v6079_v29 = vld [vmem:[%s8857_s16 + $0x18] sm:$0xff]  ;;  %v5929_v46 = vpop.f32.mrf.mxu0 }
 0x4f2   : > { %v5705_v1 = vpop.f32.mrf.mxu1 }
 0x4f3   : > { %v10353_v4 = vadd.f32 %v5705_v1, %v10249_v21  ;;  %v7443_v21 = vld [vmem:[#allocation2 + $0x218] sm:$0xf] }
 0x4f4   : > { %v7444_v33 = vor.u32 %v8314_v13, %v7443_v21  ;;  %v7551_v21 = vld [vmem:[#allocation2 + $0x2f0] sm:$0xf]  ;;  %v8341_v13 = vld [vmem:[#allocation2 + $0x310] sm:$0xf0]  ;;  %v5932_v62 = vpop.f32.mrf.mxu0 }
 0x4f5   : > { %6020 = vmatmul.bf16.gmra.mxu1 %v7372_v58  ;;  %v7552_v54 = vor.u32 %v8341_v13, %v7551_v21 }
 0x4fa   : > { %v5707_v3 = vpop.f32.mrf.mxu1 }
 0x4fb   : > { %v10356_v15 = vadd.f32 %v5707_v3, %v10256_v17  ;;  %v5840_v3 = vpop.f32.mrf.mxu3 }
 0x502   : > { %v5710_v28 = vpop.f32.mrf.mxu1 }
 0x503   : > { %v10359_v43 = vadd.f32 %v5710_v28, %v10263_v63 }
 0x505   : > { %6025 = vmatmul.bf16.gmra.mxu1 %v7408_v2 }
 0x50a   : > { %v5712_v61 = vpop.f32.mrf.mxu1 }
 0x50b   : > { %v10362_v45 = vadd.f32 %v5712_v61, %v10270_v55 }
 0x512   : > { %v5715_v31 = vpop.f32.mrf.mxu1 }
 0x513   : > { %v10365_v17 = vadd.f32 %v5715_v31, %v10277_v57  ;;  %v5749_v57 = vpop.f32.mrf.mxu2  ;;  %v5843_v31 = vpop.f32.mrf.mxu3 }
 0x515   : > { %6030 = vmatmul.bf16.gmra.mxu1 %v7444_v33  ;;  %v6080_v33 = vld [vmem:[%s8857_s16 + $0x20] sm:$0xff] }
 0x51a   : > { %v5717_v48 = vpop.f32.mrf.mxu1 }
 0x51b   : > { %v10368_v63 = vadd.f32 %v5717_v48, %v10284_v8  ;;  %v6077_v8 = vld [vmem:[%s8857_s16 + $0x8] sm:$0xff]  ;;  %v5751_v47 = vpop.f32.mrf.mxu2 }
 0x522   : > { %v5996_v37 = vpop.f32.mrf.mxu1 }
 0x523   : > { %v5997_v55 = vadd.f32 %v5996_v37, %v10290_v35  ;;  %v7515_v35 = vld [vmem:[#allocation2 + $0x2a8] sm:$0xf]  ;;  %v5754_v2 = vpop.f32.mrf.mxu2 }
 0x524   : > { %v7516_v1 = vor.u32 %v8332_v52, %v7515_v35  ;;  %v6082_v52 = vld [vmem:[%s8857_s16 + $0x30] sm:$0xff] }
 0x525   : > { %v6108_v41 = vadd.f32 %v6076_v42, %v5997_v55  ;;  %6035 = vmatmul.bf16.gmra.mxu1 %v7480_v18  ;;  %v6081_v55 = vld [vmem:[%s8857_s16 + $0x28] sm:$0xff] }
 0x527   : > { %6140 = vst [vmem:[%s10374_s30] sm:$0xff] %v6108_v41  ;;  %v5845_v41 = vpop.f32.mrf.mxu3 }
 0x52a   : > { %v5998_v7 = vpop.f32.mrf.mxu1 }
 0x52b   : > { %v5999_v9 = vadd.f32 %v5998_v7, %v10296_v16  ;;  %v5756_v42 = vpop.f32.mrf.mxu2 }
 0x52d   : > { %v6109_v20 = vadd.f32 %v6077_v8, %v5999_v9  ;;  %v10391_v8 = vpop.f32.mrf.mxu0 }
 0x52f   : > { %6141 = vst [vmem:[%s10374_s30 + $0x8] sm:$0xff] %v6109_v20  ;;  %v8350_v20 = vld [vmem:[#allocation2 + $0x358] sm:$0xf0] }
 0x532   : > { %v6001_v11 = vpop.f32.mrf.mxu1 }
 0x533   : > { %v6002_v39 = vadd.f32 %v6001_v11, %v10302_v50  ;;  %v5759_v9 = vpop.f32.mrf.mxu2 }
 0x535   : > { %v6110_v58 = vadd.f32 %v6078_v44, %v6002_v39  ;;  %6040 = vmatmul.bf16.gmra.mxu1 %v7516_v1  ;;  %v5848_v1 = vpop.f32.mrf.mxu3 }
 0x537   : > { %6142 = vst [vmem:[%s10374_s30 + $0x10] sm:$0xff] %v6110_v58  ;;  %v5937_v58 = vpop.f32.mrf.mxu0 }
 0x53a   : > { %v6003_v16 = vpop.f32.mrf.mxu1 }
 0x53b   : > { %v6004_v28 = vadd.f32 %v6003_v16, %v10308_v12  ;;  %v5761_v16 = vpop.f32.mrf.mxu2 }
 0x53d   : > { %v6111_v61 = vadd.f32 %v6079_v29, %v6004_v28  ;;  %v6083_v28 = vld [vmem:[%s8857_s16 + $0x38] sm:$0xff] }
 0x53f   : > { %6143 = vst [vmem:[%s10374_s30 + $0x18] sm:$0xff] %v6111_v61 }
 0x542   : > { %v6006_v50 = vpop.f32.mrf.mxu1 }
 0x543   : > { %v6007_v48 = vadd.f32 %v6006_v50, %v10314_v14  ;;  %v7587_v14 = vld [vmem:[#allocation2 + $0x338] sm:$0xf]  ;;  %v5850_v50 = vpop.f32.mrf.mxu3 }
 0x544   : > { %v7588_v44 = vor.u32 %v8350_v20, %v7587_v14 }
 0x545   : > { %v6112_v37 = vadd.f32 %v6080_v33, %v6007_v48  ;;  %6045 = vmatmul.bf16.gmra.mxu1 %v7552_v54  ;;  %v8359_v33 = vld [vmem:[#allocation2 + $0x3a0] sm:$0xf0]  ;;  %v5752_v48 = vadd.f32 %v5751_v47, %v10268_v32  ;;  %v6085_v32 = vld [vmem:[%s8857_s16 + $0x48] sm:$0xff] }
 0x547   : > { %6144 = vst [vmem:[%s10374_s30 + $0x20] sm:$0xff] %v6112_v37 }
 0x54a   : > { %v6008_v12 = vpop.f32.mrf.mxu1 }
 0x54b   : > { %v6009_v18 = vadd.f32 %v6008_v12, %v10320_v22  ;;  %v5750_v22 = vadd.f32 %v5749_v57, %v10261_v38  ;;  %v6084_v12 = vld [vmem:[%s8857_s16 + $0x40] sm:$0xff]  ;;  %v5939_v38 = vpop.f32.mrf.mxu0  ;;  %v5853_v20 = vpop.f32.mrf.mxu3 }
 0x54d   : > { %v6113_v7 = vadd.f32 %v6081_v55, %v6009_v18  ;;  %v5839_v21 = vadd.f32 %v5838_v23, %v5750_v22  ;;  %v5764_v18 = vpop.f32.mrf.mxu2  ;;  %v5755_v23 = vadd.f32 %v5754_v2, %v10275_v27  ;;  %v8368_v22 = vld [vmem:[#allocation2 + $0x3e8] sm:$0xf0]  ;;  %v6086_v27 = vld [vmem:[%s8857_s16 + $0x50] sm:$0xff] }
 0x54f   : > { %6145 = vst [vmem:[%s10374_s30 + $0x28] sm:$0xff] %v6113_v7  ;;  %v5928_v54 = vadd.f32 %v5927_v60, %v5839_v21  ;;  %v5841_v7 = vadd.f32 %v5840_v3, %v5752_v48  ;;  %v5844_v60 = vadd.f32 %v5843_v31, %v5755_v23  ;;  %v5757_v3 = vadd.f32 %v5756_v42, %v10282_v24  ;;  %v6087_v42 = vld [vmem:[%s8857_s16 + $0x58] sm:$0xff] }
 0x551   : > { %v5930_v14 = vadd.f32 %v5929_v46, %v5841_v7  ;;  %v5846_v21 = vadd.f32 %v5845_v41, %v5757_v3  ;;  %v8377_v41 = vld [vmem:[#allocation2 + $0x430] sm:$0xf0] }
 0x552   : > { %v6011_v35 = vpop.f32.mrf.mxu1 }
 0x553   : > { %v6012_v11 = vadd.f32 %v6011_v35, %v10326_v59  ;;  %v7623_v59 = vld [vmem:[#allocation2 + $0x380] sm:$0xf]  ;;  %v5935_v48 = vadd.f32 %v10391_v8, %v5846_v21 }
 0x554   : > { %v7624_v55 = vor.u32 %v8359_v33, %v7623_v59  ;;  %v5760_v33 = vadd.f32 %v5759_v9, %v10287_v36  ;;  %v6088_v9 = vld [vmem:[%s8857_s16 + $0x60] sm:$0xff] }
 0x555   : > { %v6114_v39 = vadd.f32 %v6082_v52, %v6012_v11  ;;  %6050 = vmatmul.bf16.gmra.mxu1 %v7588_v44  ;;  %v5942_v52 = vpop.f32.mrf.mxu0  ;;  %v5766_v44 = vpop.f32.mrf.mxu2 }
 0x557   : > { %6146 = vst [vmem:[%s10374_s30 + $0x30] sm:$0xff] %v6114_v39  ;;  %v7659_v39 = vld [vmem:[#allocation2 + $0x3c8] sm:$0xf] }
 0x558   : > { %v7660_v46 = vor.u32 %v8368_v22, %v7659_v39 }
 0x55a   : > { %v6013_v29 = vpop.f32.mrf.mxu1 }
 0x55b   : > { %v6014_v61 = vadd.f32 %v6013_v29, %v10332_v30  ;;  %v5933_v29 = vadd.f32 %v5932_v62, %v5844_v60 }
 0x55d   : > { %v6115_v13 = vadd.f32 %v6083_v28, %v6014_v61  ;;  %v5855_v61 = vpop.f32.mrf.mxu3  ;;  %v5944_v31 = vpop.f32.mrf.mxu0 }
 0x55e   : > { %v5769_v59 = vpop.f32.mrf.mxu2 }
 0x55f   : > { %6147 = vst [vmem:[%s10374_s30 + $0x38] sm:$0xff] %v6115_v13 }
 0x562   : > { %v6016_v37 = vpop.f32.mrf.mxu1 }
 0x563   : > { %v6017_v57 = vadd.f32 %v6016_v37, %v5928_v54  ;;  %v5849_v54 = vadd.f32 %v5848_v1, %v5760_v33 }
 0x565   : > { %v6116_v30 = vadd.f32 %v6084_v12, %v6017_v57  ;;  %6055 = vmatmul.bf16.gmra.mxu1 %v7624_v55  ;;  %v5858_v12 = vpop.f32.mrf.mxu3  ;;  %v7695_v57 = vld [vmem:[#allocation2 + $0x410] sm:$0xf]  ;;  %v5762_v55 = vadd.f32 %v5761_v16, %v10293_v40  ;;  %v5947_v7 = vpop.f32.mrf.mxu0  ;;  %v6089_v40 = vld [vmem:[%s8857_s16 + $0x68] sm:$0xff] }
 0x566   : > { %v5771_v23 = vpop.f32.mrf.mxu2  ;;  %v7696_v8 = vor.u32 %v8377_v41, %v7695_v57 }
 0x567   : > { %6148 = vst [vmem:[%s10374_s30 + $0x40] sm:$0xff] %v6116_v30  ;;  %v5938_v30 = vadd.f32 %v5937_v58, %v5849_v54  ;;  %v5772_v57 = vadd.f32 %v5771_v23, %v10317_v25 }
 0x56a   : > { %v6018_v35 = vpop.f32.mrf.mxu1 }
 0x56b   : > { %v6019_v47 = vadd.f32 %v6018_v35, %v5930_v14  ;;  %v5851_v35 = vadd.f32 %v5850_v50, %v5762_v55  ;;  %v5767_v50 = vadd.f32 %v5766_v44, %v10305_v56  ;;  %v6091_v56 = vld [vmem:[%s8857_s16 + $0x78] sm:$0xff] }
 0x56d   : > { %v6117_v11 = vadd.f32 %v6085_v32, %v6019_v47  ;;  %v5860_v1 = vpop.f32.mrf.mxu3  ;;  %v5765_v47 = vadd.f32 %v5764_v18, %v10299_v49  ;;  %v5940_v60 = vadd.f32 %v5939_v38, %v5851_v35  ;;  %v5949_v16 = vpop.f32.mrf.mxu0  ;;  %v6090_v38 = vld [vmem:[%s8857_s16 + $0x70] sm:$0xff]  ;;  %v5856_v21 = vadd.f32 %v5855_v61, %v5767_v50 }
 0x56e   : > { %v5774_v58 = vpop.f32.mrf.mxu2 }
 0x56f   : > { %6149 = vst [vmem:[%s10374_s30 + $0x48] sm:$0xff] %v6117_v11  ;;  %v5854_v22 = vadd.f32 %v5853_v20, %v5765_v47 }
 0x572   : > { %v6021_v28 = vpop.f32.mrf.mxu1 }
 0x573   : > { %v6022_v2 = vadd.f32 %v6021_v28, %v5933_v29  ;;  %v7731_v29 = vld [vmem:[#allocation2 + $0x458] sm:$0xf]  ;;  %v8386_v28 = vld [vmem:[#allocation2 + $0x478] sm:$0xf0] }
 0x575   : > { %v6118_v13 = vadd.f32 %v6086_v27, %v6022_v2  ;;  %6060 = vmatmul.bf16.gmra.mxu1 %v7660_v46  ;;  %v5943_v27 = vadd.f32 %v5942_v52, %v5854_v22  ;;  %v7732_v2 = vor.u32 %v8386_v28, %v7731_v29  ;;  %v5863_v46 = vpop.f32.mrf.mxu3 }
 0x576   : > { %v5776_v20 = vpop.f32.mrf.mxu2 }
 0x577   : > { %6150 = vst [vmem:[%s10374_s30 + $0x50] sm:$0xff] %v6118_v13  ;;  %v5952_v13 = vpop.f32.mrf.mxu0 }
 0x57a   : > { %v6023_v24 = vpop.f32.mrf.mxu1 }
 0x57b   : > { %v6024_v62 = vadd.f32 %v6023_v24, %v5935_v48  ;;  %v5770_v48 = vadd.f32 %v5769_v59, %v10311_v0  ;;  %v5945_v24 = vadd.f32 %v5944_v31, %v5856_v21  ;;  %v5861_v0 = vadd.f32 %v5860_v1, %v5772_v57 }
 0x57c   : > { %v5777_v1 = vadd.f32 %v5776_v20, %v10329_v34 }
 0x57d   : > { %v6119_v37 = vadd.f32 %v6087_v42, %v6024_v62  ;;  %v5865_v44 = vpop.f32.mrf.mxu3  ;;  %v5859_v62 = vadd.f32 %v5858_v12, %v5770_v48 }
 0x57e   : > { %v5779_v61 = vpop.f32.mrf.mxu2 }
 0x57f   : > { %6151 = vst [vmem:[%s10374_s30 + $0x58] sm:$0xff] %v6119_v37  ;;  %v5954_v37 = vpop.f32.mrf.mxu0  ;;  %v5948_v41 = vadd.f32 %v5947_v7, %v5859_v62 }
 0x582   : > { %v6026_v36 = vpop.f32.mrf.mxu1 }
 0x583   : > { %v6027_v14 = vadd.f32 %v6026_v36, %v5938_v30  ;;  %v6092_v30 = vld [vmem:[%s8857_s16 + $0x80] sm:$0xff] }
 0x585   : > { %v6120_v32 = vadd.f32 %v6088_v9, %v6027_v14  ;;  %6065 = vmatmul.bf16.gmra.mxu1 %v7696_v8  ;;  %v5868_v59 = vpop.f32.mrf.mxu3  ;;  %v5775_v9 = vadd.f32 %v5774_v58, %v10323_v6  ;;  %v5950_v14 = vadd.f32 %v5949_v16, %v5861_v0  ;;  %v5866_v16 = vadd.f32 %v5865_v44, %v5777_v1 }
 0x586   : > { %v5781_v8 = vpop.f32.mrf.mxu2 }
 0x587   : > { %6152 = vst [vmem:[%s10374_s30 + $0x60] sm:$0xff] %v6120_v32  ;;  %v5957_v12 = vpop.f32.mrf.mxu0  ;;  %v6093_v32 = vld [vmem:[%s8857_s16 + $0x88] sm:$0xff]  ;;  %v5864_v25 = vadd.f32 %v5863_v46, %v5775_v9  ;;  %v5955_v29 = vadd.f32 %v5954_v37, %v5866_v16 }
 0x58a   : > { %v6028_v11 = vpop.f32.mrf.mxu1 }
 0x58b   : > { %v6029_v39 = vadd.f32 %v6028_v11, %v5940_v60  ;;  %v5953_v60 = vadd.f32 %v5952_v13, %v5864_v25 }
 0x58d   : > { %v6121_v3 = vadd.f32 %v6089_v40, %v6029_v39  ;;  %v5870_v23 = vpop.f32.mrf.mxu3  ;;  %v6094_v40 = vld [vmem:[%s8857_s16 + $0x90] sm:$0xff] }
 0x58e   : > { %v5784_v58 = vpop.f32.mrf.mxu2 }
 0x58f   : > { %6153 = vst [vmem:[%s10374_s30 + $0x68] sm:$0xff] %v6121_v3  ;;  %v5959_v39 = vpop.f32.mrf.mxu0  ;;  %v5780_v3 = vadd.f32 %v5779_v61, %v10335_v26 }
 0x591   : > { %v5869_v34 = vadd.f32 %v5868_v59, %v5780_v3 }
 0x592   : > { %v6031_v49 = vpop.f32.mrf.mxu1 }
 0x593   : > { %v6032_v18 = vadd.f32 %v6031_v49, %v5943_v27  ;;  %v6095_v27 = vld [vmem:[%s8857_s16 + $0x98] sm:$0xff]  ;;  %v5958_v21 = vadd.f32 %v5957_v12, %v5869_v34 }
 0x595   : > { %v6122_v33 = vadd.f32 %v6090_v38, %v6032_v18  ;;  %6070 = vmatmul.bf16.gmra.mxu1 %v7732_v2  ;;  %v5873_v28 = vpop.f32.mrf.mxu3  ;;  %v5782_v18 = vadd.f32 %v5781_v8, %v10338_v19 }
 0x596   : > { %v5786_v38 = vpop.f32.mrf.mxu2 }
 0x597   : > { %6154 = vst [vmem:[%s10374_s30 + $0x70] sm:$0xff] %v6122_v33  ;;  %v5962_v46 = vpop.f32.mrf.mxu0  ;;  %v6096_v33 = vld [vmem:[%s8857_s16 + $0xa0] sm:$0xff]  ;;  %v5871_v48 = vadd.f32 %v5870_v23, %v5782_v18 }
 0x599   : > { %v5960_v44 = vadd.f32 %v5959_v39, %v5871_v48  ;;  %v6100_v39 = vld [vmem:[%s8857_s16 + $0xc0] sm:$0xff] }
 0x59a   : > { %v6033_v42 = vpop.f32.mrf.mxu1 }
 0x59b   : > { %v6034_v52 = vadd.f32 %v6033_v42, %v5945_v24 }
 0x59d   : > { %v6123_v54 = vadd.f32 %v6091_v56, %v6034_v52  ;;  %v5875_v26 = vpop.f32.mrf.mxu3  ;;  %v5785_v52 = vadd.f32 %v5784_v58, %v10341_v51 }
 0x59e   : > { %v5789_v56 = vpop.f32.mrf.mxu2 }
 0x59f   : > { %6155 = vst [vmem:[%s10374_s30 + $0x78] sm:$0xff] %v6123_v54  ;;  %v5964_v42 = vpop.f32.mrf.mxu0  ;;  %v6097_v54 = vld [vmem:[%s8857_s16 + $0xa8] sm:$0xff]  ;;  %v5874_v19 = vadd.f32 %v5873_v28, %v5785_v52 }
 0x5a2   : > { %v6036_v55 = vpop.f32.mrf.mxu1 }
 0x5a3   : > { %v6037_v36 = vadd.f32 %v6036_v55, %v5948_v41  ;;  %v5787_v41 = vadd.f32 %v5786_v38, %v10344_v10 }
 0x5a5   : > { %v6124_v31 = vadd.f32 %v6092_v30, %v6037_v36  ;;  %v5878_v57 = vpop.f32.mrf.mxu3  ;;  %v5963_v30 = vadd.f32 %v5962_v46, %v5874_v19  ;;  %v5876_v51 = vadd.f32 %v5875_v26, %v5787_v41  ;;  %v6104_v41 = vld [vmem:[%s8857_s16 + $0xe0] sm:$0xff] }
 0x5a6   : > { %v5791_v36 = vpop.f32.mrf.mxu2 }
 0x5a7   : > { %6156 = vst [vmem:[%s10374_s30 + $0x80] sm:$0xff] %v6124_v31  ;;  %v5967_v55 = vpop.f32.mrf.mxu0  ;;  %v6098_v31 = vld [vmem:[%s8857_s16 + $0xb0] sm:$0xff]  ;;  %v5965_v8 = vadd.f32 %v5964_v42, %v5876_v51  ;;  %v5792_v1 = vadd.f32 %v5791_v36, %v10350_v5 }
 0x5aa   : > { %v6038_v35 = vpop.f32.mrf.mxu1 }
 0x5ab   : > { %v6039_v47 = vadd.f32 %v6038_v35, %v5950_v14  ;;  %v5790_v14 = vadd.f32 %v5789_v56, %v10347_v53 }
 0x5ad   : > { %v6125_v7 = vadd.f32 %v6093_v32, %v6039_v47  ;;  %v5880_v12 = vpop.f32.mrf.mxu3  ;;  %v6099_v32 = vld [vmem:[%s8857_s16 + $0xb8] sm:$0xff] }
 0x5ae   : > { %v5794_v25 = vpop.f32.mrf.mxu2  ;;  %v5881_v53 = vadd.f32 %v5880_v12, %v5792_v1  ;;  %v6105_v12 = vld [vmem:[%s8857_s16 + $0xe8] sm:$0xff] }
 0x5af   : > { %6157 = vst [vmem:[%s10374_s30 + $0x88] sm:$0xff] %v6125_v7  ;;  %v5969_v47 = vpop.f32.mrf.mxu0  ;;  %v5879_v7 = vadd.f32 %v5878_v57, %v5790_v14  ;;  %v5795_v3 = vadd.f32 %v5794_v25, %v10353_v4 }
 0x5b2   : > { %v6041_v11 = vpop.f32.mrf.mxu1 }
 0x5b3   : > { %v6042_v6 = vadd.f32 %v6041_v11, %v5953_v60  ;;  %v5968_v60 = vadd.f32 %v5967_v55, %v5879_v7 }
 0x5b5   : > { %v6126_v22 = vadd.f32 %v6094_v40, %v6042_v6  ;;  %v5883_v11 = vpop.f32.mrf.mxu3 }
 0x5b7   : > { %6158 = vst [vmem:[%s10374_s30 + $0x90] sm:$0xff] %v6126_v22  ;;  %v5972_v58 = vpop.f32.mrf.mxu0  ;;  %v5796_v22 = vpop.f32.mrf.mxu2 }
 0x5b8   : > { %v5797_v38 = vadd.f32 %v5796_v22, %v10356_v15 }
 0x5ba   : > { %v6043_v50 = vpop.f32.mrf.mxu1 }
 0x5bb   : > { %v6044_v2 = vadd.f32 %v6043_v50, %v5955_v29  ;;  %v5970_v29 = vadd.f32 %v5969_v47, %v5881_v53  ;;  %v6101_v50 = vld [vmem:[%s8857_s16 + $0xc8] sm:$0xff] }
 0x5bd   : > { %v6127_v49 = vadd.f32 %v6095_v27, %v6044_v2  ;;  %v5885_v5 = vpop.f32.mrf.mxu3  ;;  %v5884_v2 = vadd.f32 %v5883_v11, %v5795_v3 }
 0x5be   : > { %v5886_v4 = vadd.f32 %v5885_v5, %v5797_v38 }
 0x5bf   : > { %6159 = vst [vmem:[%s10374_s30 + $0x98] sm:$0xff] %v6127_v49  ;;  %v5974_v46 = vpop.f32.mrf.mxu0  ;;  %v5799_v49 = vpop.f32.mrf.mxu2  ;;  %v5973_v18 = vadd.f32 %v5972_v58, %v5884_v2 }
 0x5c0   : > { %v5975_v42 = vadd.f32 %v5974_v46, %v5886_v4 }
 0x5c2   : > { %v6046_v13 = vpop.f32.mrf.mxu1 }
 0x5c3   : > { %v6047_v20 = vadd.f32 %v6046_v13, %v5958_v21  ;;  %v6102_v13 = vld [vmem:[%s8857_s16 + $0xd0] sm:$0xff] }
 0x5c5   : > { %v6128_v24 = vadd.f32 %v6096_v33, %v6047_v20  ;;  %v5888_v26 = vpop.f32.mrf.mxu3 }
 0x5c7   : > { %6160 = vst [vmem:[%s10374_s30 + $0xa0] sm:$0xff] %v6128_v24  ;;  %v5977_v48 = vpop.f32.mrf.mxu0  ;;  %v5800_v24 = vadd.f32 %v5799_v49, %v10359_v43  ;;  %v5801_v56 = vpop.f32.mrf.mxu2 }
 0x5c8   : > { %v5802_v19 = vadd.f32 %v5801_v56, %v10362_v45 }
 0x5c9   : > { %v5889_v15 = vadd.f32 %v5888_v26, %v5800_v24 }
 0x5ca   : > { %v6048_v62 = vpop.f32.mrf.mxu1 }
 0x5cb   : > { %v6049_v37 = vadd.f32 %v6048_v62, %v5960_v44  ;;  %v6103_v44 = vld [vmem:[%s8857_s16 + $0xd8] sm:$0xff] }
 0x5cd   : > { %v6129_v61 = vadd.f32 %v6097_v54, %v6049_v37  ;;  %v5890_v37 = vpop.f32.mrf.mxu3 }
 0x5ce   : > { %v5891_v36 = vadd.f32 %v5890_v37, %v5802_v19 }
 0x5cf   : > { %6161 = vst [vmem:[%s10374_s30 + $0xa8] sm:$0xff] %v6129_v61  ;;  %v5978_v61 = vadd.f32 %v5977_v48, %v5889_v15  ;;  %v5804_v43 = vpop.f32.mrf.mxu2 }
 0x5d2   : > { %v6051_v0 = vpop.f32.mrf.mxu1 }
 0x5d3   : > { %v6052_v59 = vadd.f32 %v6051_v0, %v5963_v30  ;;  %v5979_v30 = vpop.f32.mrf.mxu0 }
 0x5d4   : > { %v5980_v51 = vadd.f32 %v5979_v30, %v5891_v36 }
 0x5d5   : > { %v6130_v9 = vadd.f32 %v6098_v31, %v6052_v59  ;;  %v5893_v31 = vpop.f32.mrf.mxu3  ;;  %v5805_v59 = vadd.f32 %v5804_v43, %v10365_v17 }
 0x5d7   : > { %6162 = vst [vmem:[%s10374_s30 + $0xb0] sm:$0xff] %v6130_v9 }
 0x5da   : > { %v6053_v35 = vpop.f32.mrf.mxu1 }
 0x5db   : > { %v6054_v10 = vadd.f32 %v6053_v35, %v5965_v8  ;;  %v5982_v45 = vpop.f32.mrf.mxu0  ;;  %v5894_v8 = vadd.f32 %v5893_v31, %v5805_v59 }
 0x5dd   : > { %v6131_v23 = vadd.f32 %v6099_v32, %v6054_v10  ;;  %v5806_v32 = vpop.f32.mrf.mxu2  ;;  %v5983_v47 = vadd.f32 %v5982_v45, %v5894_v8  ;;  %v5895_v25 = vpop.f32.mrf.mxu3 }
 0x5de   : > { %v5807_v10 = vadd.f32 %v5806_v32, %v10368_v63 }
 0x5df   : > { %6163 = vst [vmem:[%s10374_s30 + $0xb8] sm:$0xff] %v6131_v23  ;;  %v6106_v23 = vld [vmem:[%s8857_s16 + $0xf0] sm:$0xff] }
 0x5e0   : > { %v5896_v1 = vadd.f32 %v5895_v25, %v5807_v10 }
 0x5e2   : > { %v6056_v40 = vpop.f32.mrf.mxu1 }
 0x5e3   : > { %v6057_v6 = vadd.f32 %v6056_v40, %v5968_v60  ;;  %v5984_v11 = vpop.f32.mrf.mxu0 }
 0x5e4   : > { %v5985_v40 = vadd.f32 %v5984_v11, %v5896_v1 }
 0x5e5   : > { %v6132_v16 = vadd.f32 %v6100_v39, %v6057_v6  ;;  %v6107_v39 = vld [vmem:[%s8857_s16 + $0xf8] sm:$0xff] }
 0x5e7   : > { %6164 = vst [vmem:[%s10374_s30 + $0xc0] sm:$0xff] %v6132_v16 }
 0x5ea   : > { %v6058_v28 = vpop.f32.mrf.mxu1 }
 0x5eb   : > { %v6059_v27 = vadd.f32 %v6058_v28, %v5970_v29 }
 0x5ed   : > { %v6133_v34 = vadd.f32 %v6101_v50, %v6059_v27 }
 0x5ef   : > { %6165 = vst [vmem:[%s10374_s30 + $0xc8] sm:$0xff] %v6133_v34 }
 0x5f2   : > { %v6061_v21 = vpop.f32.mrf.mxu1 }
 0x5f3   : > { %v6062_v33 = vadd.f32 %v6061_v21, %v5973_v18 }
 0x5f5   : > { %v6134_v20 = vadd.f32 %v6102_v13, %v6062_v33 }
 0x5f7   : > { %6166 = vst [vmem:[%s10374_s30 + $0xd0] sm:$0xff] %v6134_v20 }
 0x5fa   : > { %v6063_v52 = vpop.f32.mrf.mxu1 }
 0x5fb   : > { %v6064_v62 = vadd.f32 %v6063_v52, %v5975_v42 }
 0x5fd   : > { %v6135_v54 = vadd.f32 %v6103_v44, %v6064_v62 }
 0x5ff   : > { %6167 = vst [vmem:[%s10374_s30 + $0xd8] sm:$0xff] %v6135_v54 }
 0x602   : > { %v6066_v57 = vpop.f32.mrf.mxu1 }
 0x603   : > { %v6067_v55 = vadd.f32 %v6066_v57, %v5978_v61 }
 0x605   : > { %v6136_v0 = vadd.f32 %v6104_v41, %v6067_v55 }
 0x607   : > { %6168 = vst [vmem:[%s10374_s30 + $0xe0] sm:$0xff] %v6136_v0 }
 0x60a   : > { %v6068_v9 = vpop.f32.mrf.mxu1 }
 0x60b   : > { %v6069_v14 = vadd.f32 %v6068_v9, %v5980_v51 }
 0x60d   : > { %v6137_v35 = vadd.f32 %v6105_v12, %v6069_v14 }
 0x60f   : > { %6169 = vst [vmem:[%s10374_s30 + $0xe8] sm:$0xff] %v6137_v35 }
 0x612   : > { %v6071_v7 = vpop.f32.mrf.mxu1 }
 0x613   : > { %v6072_v17 = vadd.f32 %v6071_v7, %v5983_v47 }
 0x615   : > { %v6138_v60 = vadd.f32 %v6106_v23, %v6072_v17 }
 0x617   : > { %6170 = vst [vmem:[%s10374_s30 + $0xf0] sm:$0xff] %v6138_v60 }
 0x61a   : > { %v6073_v63 = vpop.f32.mrf.mxu1 }
 0x61b   : > { %v6074_v6 = vadd.f32 %v6073_v63, %v5985_v40 }
 0x61d   : > { %v6139_v53 = vadd.f32 %v6107_v39, %v6074_v6 }
 0x61f   : > { %6171 = vst [vmem:[%s10374_s30 + $0xf8] sm:$0xff] %v6139_v53 }
 0x620   : > { %8671 = shalt.err (!%p8668_p10)
}
 0x621   : > { %s8723_s8 = smov 128   ;;  %s8724_s16 = smov 8  }
 0x622   : > { %8486 = dma.vmem_to_hbm [thread:$0]  (%p8821_p3), %s6186_s15, 4096, %s6188_s24, %s6173_s22, %s8723_s8, %s8723_s8, %s8724_s16  }
 0x623 PF: > { %s6202_s30 = sand.u32 1, %s8702_s18   ;;  %p10554_p12 = scmp.ge.s32.totalorder %s8714_s21, 2 }
 0x624   : > { %s6203_s6 = scalar_lea.sflag [#allocation5], %s6202_s30 }
 0x625   : > { %p8500_p13 = pnand %p10554_p12, %p8790_p6 }
 0x627   : > { %p8501_p0 = pneg %p8500_p13 }
 0x629   : > { %8697 = dma.done.wait (%p8501_p0), %s6203_s6, 4096  }
 0x62a   : > { %8699 = vsyncadd (%p8501_p0), %s6203_s6, 4294963200  ;;  %p19_p5 = scmp.ge.s32.totalorder %s8811_s14, 4   ;;  %s10555_s18 = smov %s8706_s19 }
 0x62b   : > { %s10556_s19 = smov %s8710_s20  ;;  %s10557_s20 = smov %s8827_s23 }
 0x62c   : > { %s10558_s21 = smov %s8811_s14  ;;  %21 = sbr.rel (!%p19_p5) target bundleno = 6 (0x6), region = 95 }
 0x631   :  { %6209 = vsyncpa [#allocation4], 1 }
 0x632   :  { %6211 = vsyncpa [#allocation4 + $0x1], 1 }
 0x633   :  { %6212 = vsyncpa [#allocation7], 1 }
 0x634   :  { %6213 = vsyncpa [#allocation5], 1 }
 0x635   :  { %6215 = vsyncpa [#allocation5 + $0x1], 1 }

</bundles_post_ra>
